<compile_context>
chip_gen: v5e
topology: v5e:2x2
jax: 0.10.0
libtpu: 0.0.40
codegen_flags: <defaults>
</compile_context>

<pallas_src>
import functools

import jax
import jax.numpy as jnp
from jax.experimental import pallas as pl
from jax.experimental.pallas import tpu as pltpu

NUM_CLASSES = 4
NUM_HEADS = 4
BN_EPS = 1e-5
IM2COL_K = 32   # conv1 im2col contraction (27 -> 32)
FC_PAD = 128    # classifier output padded to 128 lanes (sliced to 4 outside)


# ----------------------------- Pallas kernels ------------------------------ #

def _bn_relu_pool_store(acc, shift_ref, o_ref, h_ref, H, W, Cout, pad_out):
    """Shared epilogue: +shift, ReLU, 2x2 max-pool, (optionally halo-padded) store.

    acc: (H*W, Cout) f32 value; h_ref: (H//2, W, Cout) f32 scratch.
    """
    Ho, Wo = H // 2, W // 2
    y = jnp.maximum(acc + shift_ref[...], 0.0)                   # folded BN + ReLU
    y = y.reshape(Ho, 2, W, Cout)
    h_ref[...] = jnp.maximum(y[:, 0], y[:, 1])                   # H-direction pool
    pooled = jnp.maximum(h_ref[:, pl.ds(0, Wo, stride=2), :],
                         h_ref[:, pl.ds(1, Wo, stride=2), :])    # W-direction pool
    if pad_out:
        # zero-halo padded output: next conv reads it directly (no jnp.pad pass)
        o_ref[...] = jnp.zeros_like(o_ref)
        o_ref[0, 1:1 + Ho, 1:1 + Wo, :] = pooled.astype(o_ref.dtype)
    else:
        o_ref[0] = pooled.astype(o_ref.dtype)


def conv1_kernel(patch_ref, w_ref, shift_ref, o_ref, h_ref, *, H, W):
    """conv1: one im2col matmul (M=H*W, K=32) + BN/ReLU/2x2-pool epilogue.

    patch_ref: (1, H*W, 32) bf16 im2col patches; w_ref: (32, 32) bf16 (BN folded)
    shift_ref: (1, 32) f32; o_ref: (1, H//2+2, W//2+2, 32) bf16 (zero halo)
    """
    Cout = w_ref.shape[-1]
    acc = jnp.dot(patch_ref[0], w_ref[...], preferred_element_type=jnp.float32)
    _bn_relu_pool_store(acc, shift_ref, o_ref, h_ref, H, W, Cout, pad_out=True)


def conv_pool_kernel(xp_ref, w_ref, shift_ref, o_ref, h_ref, *, pad_out):
    """Fused 3x3 conv (stride 1, pad 1) + folded-BN + ReLU + 2x2 max-pool.

    xp_ref : (1, H+2, W+2, Cin) bf16 zero-halo padded input (true Cin, no K pad)
    w_ref  : (3, 3, Cin, Cout)  bf16 conv weights with BN scale folded in
    shift_ref : (1, Cout) f32 folded BN shift
    o_ref  : padded bf16 (1, H//2+2, W//2+2, Cout) or unpadded f32 (1, H//2, W//2, Cout)
    h_ref  : (H//2, W, Cout) f32 scratch for the W-direction pool
    """
    _, Hp, Wp, Cin = xp_ref.shape
    H, W = Hp - 2, Wp - 2
    Cout = w_ref.shape[-1]

    # 9 shifted-tap matmuls with true K=Cin, accumulated in a VALUE (one store).
    acc = None
    for ki in range(3):
        for kj in range(3):
            patch = xp_ref[0, ki:ki + H, kj:kj + W, :].reshape(H * W, Cin)  # bf16
            t = jnp.dot(patch, w_ref[ki, kj], preferred_element_type=jnp.float32)
            acc = t if acc is None else acc + t

    _bn_relu_pool_store(acc, shift_ref, o_ref, h_ref, H, W, Cout, pad_out)


def cbam_head_kernel(x_ref, ca_qkv_ref, ca_pw_ref, ca_pb_ref,
                     sa_qkv_ref, sa_pw_ref, sa_pb_ref,
                     k7_ref, b7_ref, fcw_ref, fcb_ref, o_ref, *, scale, inv_n):
    """ChannelAttention + SpatialAttention + 7x7 gate + avgpool + Linear, fused.

    Batch is folded into M for all dense matmuls; softmax stays per-batch.
    The reference CrossAttention is single-head over the full channel dim.
    """
    B, N, C = x_ref.shape

    def cross_attention(x, qkv_w_ref, pw_ref, pb_ref):
        xb = x.reshape(B * N, C).astype(jnp.bfloat16)
        qkv = jnp.dot(xb, qkv_w_ref[...], preferred_element_type=jnp.float32)
        qkv = qkv.reshape(B, N, 3 * C)
        q = qkv[..., :C].astype(jnp.bfloat16)
        k = qkv[..., C:2 * C].astype(jnp.bfloat16)
        v = qkv[..., 2 * C:].astype(jnp.bfloat16)
        attn = jnp.einsum('bqd,bkd->bqk', q, k,
                          preferred_element_type=jnp.float32) * scale
        attn = attn - jnp.max(attn, axis=-1, keepdims=True)
        p = jnp.exp(attn)
        p = p / jnp.sum(p, axis=-1, keepdims=True)            # exact softmax
        out = jnp.einsum('bqk,bkd->bqd', p.astype(jnp.bfloat16), v,
                         preferred_element_type=jnp.float32)
        out = jnp.dot(out.reshape(B * N, C).astype(jnp.bfloat16), pw_ref[...],
                      preferred_element_type=jnp.float32) + pb_ref[...]
        return out.reshape(B, N, C)

    x = x_ref[...]                                             # (B, N, C) f32

    # ChannelAttention: sigmoid(CA(x, x)) * x
    x = jax.nn.sigmoid(cross_attention(x, ca_qkv_ref, ca_pw_ref, ca_pb_ref)) * x

    # SpatialAttention: sigmoid(Conv7x7(CA(x, x))) * x
    sa = cross_attention(x, sa_qkv_ref, sa_pw_ref, sa_pb_ref)   # (B, N, C)
    # 7x7 conv (C -> 1, pad 3) over the HxW token map as a dense (N, N, C)
    # contraction (precomputed at init): gate[b,n] = sum_{m,c} K7[n,m,c]*sa[b,m,c].
    k7 = k7_ref[...].astype(jnp.float32)                        # (N, N, C)
    gates = []
    for b in range(B):                                          # B is tiny & static
        gb = jnp.sum(k7 * sa[b][None, :, :], axis=1)            # (N, C)
        gb = jnp.sum(gb, axis=-1, keepdims=True) + b7_ref[...]  # (N, 1)
        gates.append(gb)
    g = jnp.stack(gates, axis=0)                                # (B, N, 1)
    x = jax.nn.sigmoid(g) * x

    # AdaptiveAvgPool2d(1) over tokens + Linear(128 -> num_classes, lane-padded)
    pooled = jnp.sum(x, axis=1) * inv_n                         # (B, C)
    o_ref[...] = jnp.dot(pooled.astype(jnp.bfloat16), fcw_ref[...],
                         preferred_element_type=jnp.float32) + fcb_ref[...]


# ------------------------------ kernel wrappers ----------------------------- #

def im2col_3x3(x_nhwc):
    """Cheap wrapper-side im2col for conv1 (Cin=3): (B,H,W,3) -> (B,H*W,32) bf16."""
    B, H, W, Cin = x_nhwc.shape
    xp = jnp.pad(x_nhwc, ((0, 0), (1, 1), (1, 1), (0, 0)))
    cols = [xp[:, ki:ki + H, kj:kj + W, :] for ki in range(3) for kj in range(3)]
    p = jnp.concatenate(cols, axis=-1).reshape(B, H * W, 9 * Cin)
    p = jnp.pad(p, ((0, 0), (0, 0), (0, IM2COL_K - 9 * Cin)))
    return p.astype(jnp.bfloat16)


def conv1_block(x_nhwc, blk):
    B, H, W, _ = x_nhwc.shape
    Cout = blk["w"].shape[-1]
    Ho, Wo = H // 2, W // 2
    patches = im2col_3x3(x_nhwc)                                 # (B, H*W, 32) bf16
    kern = functools.partial(conv1_kernel, H=H, W=W)
    return pl.pallas_call(
        kern,
        out_shape=jax.ShapeDtypeStruct((B, Ho + 2, Wo + 2, Cout), jnp.bfloat16),
        grid=(B,),
        in_specs=[
            pl.BlockSpec((1, H * W, IM2COL_K), lambda b: (b, 0, 0)),
            pl.BlockSpec((IM2COL_K, Cout), lambda b: (0, 0)),
            pl.BlockSpec((1, Cout), lambda b: (0, 0)),
        ],
        out_specs=pl.BlockSpec((1, Ho + 2, Wo + 2, Cout), lambda b: (b, 0, 0, 0)),
        scratch_shapes=[pltpu.VMEM((Ho, W, Cout), jnp.float32)],
        compiler_params=pltpu.CompilerParams(dimension_semantics=("parallel",)),
    )(patches, blk["w"], blk["shift"])


def conv_block(xp, blk, *, pad_out):
    """xp: (B, H+2, W+2, Cin) bf16 zero-halo padded activation from the previous block."""
    B, Hp, Wp, Cin = xp.shape
    H, W = Hp - 2, Wp - 2
    Ho, Wo = H // 2, W // 2
    Cout = blk["w"].shape[-1]
    if pad_out:
        out_hw, out_dtype = (Ho + 2, Wo + 2), jnp.bfloat16
    else:
        out_hw, out_dtype = (Ho, Wo), jnp.float32
    kern = functools.partial(conv_pool_kernel, pad_out=pad_out)
    return pl.pallas_call(
        kern,
        out_shape=jax.ShapeDtypeStruct((B,) + out_hw + (Cout,), out_dtype),
        grid=(B,),
        in_specs=[
            pl.BlockSpec((1, Hp, Wp, Cin), lambda b: (b, 0, 0, 0)),
            pl.BlockSpec((3, 3, Cin, Cout), lambda b: (0, 0, 0, 0)),
            pl.BlockSpec((1, Cout), lambda b: (0, 0)),
        ],
        out_specs=pl.BlockSpec((1,) + out_hw + (Cout,), lambda b: (b, 0, 0, 0)),
        scratch_shapes=[pltpu.VMEM((Ho, W, Cout), jnp.float32)],
        compiler_params=pltpu.CompilerParams(dimension_semantics=("parallel",)),
    )(xp, blk["w"], blk["shift"])


def cbam_head(tokens, p):
    """Fused CA_CBAM + AdaptiveAvgPool + fc, one pallas_call over the whole batch."""
    B, N, C = tokens.shape
    scale = float((C // NUM_HEADS) ** -0.5)
    kern = functools.partial(cbam_head_kernel, scale=scale, inv_n=1.0 / N)
    return pl.pallas_call(
        kern,
        out_shape=jax.ShapeDtypeStruct((B, FC_PAD), jnp.float32),
        grid=(1,),
        in_specs=[
            pl.BlockSpec((B, N, C), lambda i: (0, 0, 0)),
            pl.BlockSpec((C, 3 * C), lambda i: (0, 0)),
            pl.BlockSpec((C, C), lambda i: (0, 0)),
            pl.BlockSpec((1, C), lambda i: (0, 0)),
            pl.BlockSpec((C, 3 * C), lambda i: (0, 0)),
            pl.BlockSpec((C, C), lambda i: (0, 0)),
            pl.BlockSpec((1, C), lambda i: (0, 0)),
            pl.BlockSpec((N, N, C), lambda i: (0, 0, 0)),
            pl.BlockSpec((1, 1), lambda i: (0, 0)),
            pl.BlockSpec((C, FC_PAD), lambda i: (0, 0)),
            pl.BlockSpec((1, FC_PAD), lambda i: (0, 0)),
        ],
        out_specs=pl.BlockSpec((B, FC_PAD), lambda i: (0, 0)),
        compiler_params=pltpu.CompilerParams(dimension_semantics=("arbitrary",)),
    )(tokens, p["ca_qkv"], p["ca_proj_w"], p["ca_proj_b"],
      p["sa_qkv"], p["sa_proj_w"], p["sa_proj_b"],
      p["k7"], p["sa_conv_b"], p["fc_w"], p["fc_b"])


def build_k7(w7, H, W):
    """Unfold Conv2d(C,1,7,pad=3) weights into a dense (N, N, C) kernel over the
    HxW token grid: K7[n,m,c] = w7[c, hm-hn+3, wm-wn+3] (0 outside the window)."""
    hn = jnp.repeat(jnp.arange(H), W)
    wn = jnp.tile(jnp.arange(W), H)
    dh = hn[None, :] - hn[:, None] + 3
    dw = wn[None, :] - wn[:, None] + 3
    valid = (dh >= 0) & (dh < 7) & (dw >= 0) & (dw < 7)
    k = w7[:, jnp.clip(dh, 0, 6), jnp.clip(dw, 0, 6)]     # (C, N, N)
    k = jnp.where(valid[None, :, :], k, 0.0)
    return jnp.transpose(k, (1, 2, 0))                    # (N, N, C)


# ------------------------------- full forward ------------------------------- #

def face_recognition_forward(params, x_nchw):
    x = jnp.transpose(x_nchw, (0, 2, 3, 1)).astype(jnp.float32)   # NCHW -> NHWC

    # backbone: 3x [Conv3x3 + BN + ReLU + MaxPool2d(2)]  (Dropout: identity)
    x = conv1_block(x, params["conv1"])                 # (B, H/2+2, W/2+2, 32) bf16
    x = conv_block(x, params["conv2"], pad_out=True)    # (B, H/4+2, W/4+2, 64) bf16
    x = conv_block(x, params["conv3"], pad_out=False)   # (B, H/8,   W/8,  128) f32

    B, Ho, Wo, C = x.shape
    tokens = x.reshape(B, Ho * Wo, C)   # == flatten(2).permute(0,2,1) of NCHW

    # CA_CBAM + AdaptiveAvgPool2d(1) + Linear, fused
    logits_pad = cbam_head(tokens, params)
    return logits_pad[:, :NUM_CLASSES]


# --------------------------- deterministic params --------------------------- #

def init_params(key, input_hw=(32, 32)):
    ks = jax.random.split(key, 16)

    def w(k, shape, fan_in):
        return jax.random.normal(k, shape, jnp.float32) / jnp.sqrt(float(fan_in))

    def bias(k, n):
        return 0.01 * jax.random.normal(k, (n,), jnp.float32)

    def conv_bn(wk, bk, cin, cout):
        # weight layout (3,3,Cin,Cout) == torch (Cout,Cin,3,3).transpose(2,3,1,0)
        wt = w(wk, (3, 3, cin, cout), cin * 9)
        b = bias(bk, cout)
        # eval-mode BatchNorm2d (default running stats) folded: scale -> weights,
        # shift -> per-channel bias.
        gamma = jnp.ones((cout,), jnp.float32)
        beta = jnp.zeros((cout,), jnp.float32)
        mean = jnp.zeros((cout,), jnp.float32)
        var = jnp.ones((cout,), jnp.float32)
        s = gamma / jnp.sqrt(var + BN_EPS)
        shift = beta + (b - mean) * s
        return wt * s, shift

    C = 128
    p = {}

    # conv1: im2col weight, K padded 27 -> 32, true Cout=32
    w1, sh1 = conv_bn(ks[0], ks[1], 3, 32)
    w1 = jnp.pad(w1.reshape(27, 32), ((0, IM2COL_K - 27), (0, 0)))
    p["conv1"] = {"w": w1.astype(jnp.bfloat16), "shift": sh1[None, :]}

    # conv2/conv3: true Cin contraction (K=32 / K=64), true Cout (64 / 128)
    w2, sh2 = conv_bn(ks[2], ks[3], 32, 64)
    p["conv2"] = {"w": w2.astype(jnp.bfloat16), "shift": sh2[None, :]}
    w3, sh3 = conv_bn(ks[4], ks[5], 64, 128)
    p["conv3"] = {"w": w3.astype(jnp.bfloat16), "shift": sh3[None, :]}

    # ChannelAttention.cross_attention (qkv bias-free, proj with bias)
    p["ca_qkv"] = w(ks[6], (C, 3 * C), C).astype(jnp.bfloat16)
    p["ca_proj_w"] = w(ks[7], (C, C), C).astype(jnp.bfloat16)
    p["ca_proj_b"] = bias(ks[8], C)[None, :]
    # SpatialAttention.cross_attention + 7x7 conv (C -> 1), unfolded once at init
    p["sa_qkv"] = w(ks[9], (C, 3 * C), C).astype(jnp.bfloat16)
    p["sa_proj_w"] = w(ks[10], (C, C), C).astype(jnp.bfloat16)
    p["sa_proj_b"] = bias(ks[11], C)[None, :]
    Hf, Wf = input_hw[0] // 8, input_hw[1] // 8
    w7 = w(ks[12], (C, 7, 7), C * 49)
    p["k7"] = build_k7(w7, Hf, Wf).astype(jnp.bfloat16)     # (N, N, C) bf16
    p["sa_conv_b"] = bias(ks[13], 1)[None, :]               # (1, 1)
    # classifier head, padded to 128 output lanes (valid outputs are [:4])
    fcw = w(ks[14], (C, NUM_CLASSES), C)
    fcb = bias(ks[15], NUM_CLASSES)
    p["fc_w"] = jnp.pad(fcw, ((0, 0), (0, FC_PAD - NUM_CLASSES))).astype(jnp.bfloat16)
    p["fc_b"] = jnp.pad(fcb, (0, FC_PAD - NUM_CLASSES))[None, :]
    return p


if __name__ == "__main__":
    key = jax.random.PRNGKey(0)
    pkey, xkey = jax.random.split(key)

    # small NCHW input: 3 channels, 32x32 so three max-pools give a 4x4 token map
    params = init_params(pkey, input_hw=(32, 32))
    x = jax.random.normal(xkey, (2, 3, 32, 32), jnp.float32)

    fwd = jax.jit(face_recognition_forward)
    out = fwd(params, x)
    jax.block_until_ready(out)
    assert out.shape == (2, NUM_CLASSES)
    assert bool(jnp.all(jnp.isfinite(out)))
    print("KERNEL_OK")
</pallas_src>

<mosaic_0001>
module attributes {stable_mosaic.version = 11 : i64} {
  func.func @conv1_kernel(%arg0: i32, %arg1: memref<1x1024x32xbf16, #tpu.memory_space<vmem>>, %arg2: memref<32x32xbf16, #tpu.memory_space<vmem>>, %arg3: memref<1x32xf32, #tpu.memory_space<vmem>>, %arg4: memref<1x18x18x32xbf16, #tpu.memory_space<vmem>>, %arg5: memref<16x32x32xf32, #tpu.memory_space<vmem>>) attributes {dimension_semantics = [#tpu.dimension_semantics<parallel>], iteration_bounds = array<i64: 2>, scalar_prefetch = 0 : i64, scratch_operands = 1 : i64, tpu.core_type = #tpu.core_type<tc>, window_params = [{transform_indices = @transform_0, window_bounds = array<i64: 1, 1024, 32>}, {pipeline_mode = #tpu.pipeline_mode<synchronous>, transform_indices = @transform_1, window_bounds = array<i64: 32, 32>}, {pipeline_mode = #tpu.pipeline_mode<synchronous>, transform_indices = @transform_2, window_bounds = array<i64: 1, 32>}, {transform_indices = @transform_3, window_bounds = array<i64: 1, 18, 18, 32>}]} {
    %c0 = arith.constant 0 : index
    %c0_0 = arith.constant 0 : index
    %c0_1 = arith.constant 0 : index
    %0 = vector.load %arg1[%c0, %c0_0, %c0_1] : memref<1x1024x32xbf16, #tpu.memory_space<vmem>>, vector<1x1024x32xbf16>
    %1 = vector.shape_cast %0 : vector<1x1024x32xbf16> to vector<1024x32xbf16>
    %c0_2 = arith.constant 0 : index
    %c0_3 = arith.constant 0 : index
    %2 = vector.load %arg2[%c0_2, %c0_3] : memref<32x32xbf16, #tpu.memory_space<vmem>>, vector<32x32xbf16>
    %cst = arith.constant dense<0.000000e+00> : vector<1024x32xf32>
    %3 = tpu.matmul %1, %2, %cst {dimension_numbers = #tpu.dot_dimension_numbers<[1], [0], [0], [1], [0, 0, 1, 1], [], []>} : vector<1024x32xbf16>, vector<32x32xbf16>, vector<1024x32xf32> -> vector<1024x32xf32>
    %c0_4 = arith.constant 0 : index
    %c0_5 = arith.constant 0 : index
    %4 = vector.load %arg3[%c0_4, %c0_5] : memref<1x32xf32, #tpu.memory_space<vmem>>, vector<1x32xf32>
    %5 = vector.broadcast %4 : vector<1x32xf32> to vector<1024x32xf32>
    %6 = arith.addf %3, %5 : vector<1024x32xf32>
    %cst_6 = arith.constant 0.000000e+00 : f32
    %7 = vector.broadcast %cst_6 : f32 to vector<1024x32xf32>
    %8 = arith.maximumf %6, %7 : vector<1024x32xf32>
    %9 = vector.shape_cast %8 : vector<1024x32xf32> to vector<16x2x32x32xf32>
    %10 = vector.extract_strided_slice %9 {offsets = [0, 0, 0, 0], sizes = [16, 1, 32, 32], strides = [1, 1, 1, 1]} : vector<16x2x32x32xf32> to vector<16x1x32x32xf32>
    %11 = vector.shape_cast %10 : vector<16x1x32x32xf32> to vector<16x32x32xf32>
    %12 = vector.extract_strided_slice %9 {offsets = [0, 1, 0, 0], sizes = [16, 1, 32, 32], strides = [1, 1, 1, 1]} : vector<16x2x32x32xf32> to vector<16x1x32x32xf32>
    %13 = vector.shape_cast %12 : vector<16x1x32x32xf32> to vector<16x32x32xf32>
    %14 = arith.maximumf %11, %13 : vector<16x32x32xf32>
    %c0_7 = arith.constant 0 : index
    %c0_8 = arith.constant 0 : index
    %c0_9 = arith.constant 0 : index
    %15 = vector.load %arg5[%c0_7, %c0_8, %c0_9] : memref<16x32x32xf32, #tpu.memory_space<vmem>>, vector<16x32x32xf32>
    tpu.vector_store %arg5[%c0_7, %c0_8, %c0_9], %14 {strides = array<i32>} : memref<16x32x32xf32, #tpu.memory_space<vmem>>, vector<16x32x32xf32>,
    %c0_10 = arith.constant 0 : index
    %c0_11 = arith.constant 0 : index
    %c0_12 = arith.constant 0 : index
    %16 = tpu.strided_load %arg5[%c0_10, %c0_11, %c0_12] {strides = array<i32: 1, 2, 1>} : memref<16x32x32xf32, #tpu.memory_space<vmem>>, vector<16x16x32xf32>
    %c0_13 = arith.constant 0 : index
    %c1 = arith.constant 1 : index
    %c0_14 = arith.constant 0 : index
    %17 = tpu.strided_load %arg5[%c0_13, %c1, %c0_14] {strides = array<i32: 1, 2, 1>} : memref<16x32x32xf32, #tpu.memory_space<vmem>>, vector<16x16x32xf32>
    %18 = arith.maximumf %16, %17 : vector<16x16x32xf32>
    %cst_15 = arith.constant 0.000000e+00 : bf16
    %19 = vector.broadcast %cst_15 : bf16 to vector<1x18x18x32xbf16>
    %c0_16 = arith.constant 0 : index
    %c0_17 = arith.constant 0 : index
    %c0_18 = arith.constant 0 : index
    %c0_19 = arith.constant 0 : index
    %20 = vector.load %arg4[%c0_16, %c0_17, %c0_18, %c0_19] : memref<1x18x18x32xbf16, #tpu.memory_space<vmem>>, vector<1x18x18x32xbf16>
    tpu.vector_store %arg4[%c0_16, %c0_17, %c0_18, %c0_19], %19 {strides = array<i32>} : memref<1x18x18x32xbf16, #tpu.memory_space<vmem>>, vector<1x18x18x32xbf16>,
    %21 = arith.truncf %18 : vector<16x16x32xf32> to vector<16x16x32xbf16>
    %c0_20 = arith.constant 0 : index
    %c1_21 = arith.constant 1 : index
    %c1_22 = arith.constant 1 : index
    %c0_23 = arith.constant 0 : index
    %22 = vector.load %arg4[%c0_20, %c1_21, %c1_22, %c0_23] : memref<1x18x18x32xbf16, #tpu.memory_space<vmem>>, vector<1x16x16x32xbf16>
    %23 = vector.shape_cast %22 : vector<1x16x16x32xbf16> to vector<16x16x32xbf16>
    %24 = vector.shape_cast %21 : vector<16x16x32xbf16> to vector<1x16x16x32xbf16>
    tpu.vector_store %arg4[%c0_20, %c1_21, %c1_22, %c0_23], %24 {strides = array<i32>} : memref<1x18x18x32xbf16, #tpu.memory_space<vmem>>, vector<1x16x16x32xbf16>,
    return
  }
  func.func @transform_0(%arg0: i32) -> (i32, i32, i32) {
    %c0_i32 = arith.constant 0 : i32
    %c0_i32_0 = arith.constant 0 : i32
    %c0_i32_1 = arith.constant 0 : i32
    return %arg0, %c0_i32, %c0_i32_0 : i32, i32, i32
  }
  func.func @transform_1(%arg0: i32) -> (i32, i32) {
    %c0_i32 = arith.constant 0 : i32
    %c0_i32_0 = arith.constant 0 : i32
    %c0_i32_1 = arith.constant 0 : i32
    return %c0_i32, %c0_i32_0 : i32, i32
  }
  func.func @transform_2(%arg0: i32) -> (i32, i32) {
    %c0_i32 = arith.constant 0 : i32
    %c0_i32_0 = arith.constant 0 : i32
    %c0_i32_1 = arith.constant 0 : i32
    return %c0_i32, %c0_i32_0 : i32, i32
  }
  func.func @transform_3(%arg0: i32) -> (i32, i32, i32, i32) {
    %c0_i32 = arith.constant 0 : i32
    %c0_i32_0 = arith.constant 0 : i32
    %c0_i32_1 = arith.constant 0 : i32
    %c0_i32_2 = arith.constant 0 : i32
    return %arg0, %c0_i32, %c0_i32_0, %c0_i32_1 : i32, i32, i32, i32
  }
}

module attributes {stable_mosaic.version = 11 : i64} {
  func.func @conv_pool_kernel(%arg0: i32, %arg1: memref<1x18x18x32xbf16, #tpu.memory_space<vmem>>, %arg2: memref<3x3x32x64xbf16, #tpu.memory_space<vmem>>, %arg3: memref<1x64xf32, #tpu.memory_space<vmem>>, %arg4: memref<1x10x10x64xbf16, #tpu.memory_space<vmem>>, %arg5: memref<8x16x64xf32, #tpu.memory_space<vmem>>) attributes {dimension_semantics = [#tpu.dimension_semantics<parallel>], iteration_bounds = array<i64: 2>, scalar_prefetch = 0 : i64, scratch_operands = 1 : i64, tpu.core_type = #tpu.core_type<tc>, window_params = [{transform_indices = @transform_0, window_bounds = array<i64: 1, 18, 18, 32>}, {pipeline_mode = #tpu.pipeline_mode<synchronous>, transform_indices = @transform_1, window_bounds = array<i64: 3, 3, 32, 64>}, {pipeline_mode = #tpu.pipeline_mode<synchronous>, transform_indices = @transform_2, window_bounds = array<i64: 1, 64>}, {transform_indices = @transform_3, window_bounds = array<i64: 1, 10, 10, 64>}]} {
    %c0 = arith.constant 0 : index
    %c0_0 = arith.constant 0 : index
    %c0_1 = arith.constant 0 : index
    %c0_2 = arith.constant 0 : index
    %0 = vector.load %arg1[%c0, %c0_0, %c0_1, %c0_2] : memref<1x18x18x32xbf16, #tpu.memory_space<vmem>>, vector<1x16x16x32xbf16>
    %1 = vector.shape_cast %0 : vector<1x16x16x32xbf16> to vector<16x16x32xbf16>
    %2 = vector.shape_cast %1 : vector<16x16x32xbf16> to vector<256x32xbf16>
    %c0_3 = arith.constant 0 : index
    %c0_4 = arith.constant 0 : index
    %c0_5 = arith.constant 0 : index
    %c0_6 = arith.constant 0 : index
    %3 = vector.load %arg2[%c0_3, %c0_4, %c0_5, %c0_6] : memref<3x3x32x64xbf16, #tpu.memory_space<vmem>>, vector<1x1x32x64xbf16>
    %4 = vector.shape_cast %3 : vector<1x1x32x64xbf16> to vector<32x64xbf16>
    %cst = arith.constant dense<0.000000e+00> : vector<256x64xf32>
    %5 = tpu.matmul %2, %4, %cst {dimension_numbers = #tpu.dot_dimension_numbers<[1], [0], [0], [1], [0, 0, 1, 1], [], []>} : vector<256x32xbf16>, vector<32x64xbf16>, vector<256x64xf32> -> vector<256x64xf32>
    %c0_7 = arith.constant 0 : index
    %c0_8 = arith.constant 0 : index
    %c1 = arith.constant 1 : index
    %c0_9 = arith.constant 0 : index
    %6 = vector.load %arg1[%c0_7, %c0_8, %c1, %c0_9] : memref<1x18x18x32xbf16, #tpu.memory_space<vmem>>, vector<1x16x16x32xbf16>
    %7 = vector.shape_cast %6 : vector<1x16x16x32xbf16> to vector<16x16x32xbf16>
    %8 = vector.shape_cast %7 : vector<16x16x32xbf16> to vector<256x32xbf16>
    %c0_10 = arith.constant 0 : index
    %c1_11 = arith.constant 1 : index
    %c0_12 = arith.constant 0 : index
    %c0_13 = arith.constant 0 : index
    %9 = vector.load %arg2[%c0_10, %c1_11, %c0_12, %c0_13] : memref<3x3x32x64xbf16, #tpu.memory_space<vmem>>, vector<1x1x32x64xbf16>
    %10 = vector.shape_cast %9 : vector<1x1x32x64xbf16> to vector<32x64xbf16>
    %cst_14 = arith.constant dense<0.000000e+00> : vector<256x64xf32>
    %11 = tpu.matmul %8, %10, %cst_14 {dimension_numbers = #tpu.dot_dimension_numbers<[1], [0], [0], [1], [0, 0, 1, 1], [], []>} : vector<256x32xbf16>, vector<32x64xbf16>, vector<256x64xf32> -> vector<256x64xf32>
    %12 = arith.addf %5, %11 : vector<256x64xf32>
    %c0_15 = arith.constant 0 : index
    %c0_16 = arith.constant 0 : index
    %c2 = arith.constant 2 : index
    %c0_17 = arith.constant 0 : index
    %13 = vector.load %arg1[%c0_15, %c0_16, %c2, %c0_17] : memref<1x18x18x32xbf16, #tpu.memory_space<vmem>>, vector<1x16x16x32xbf16>
    %14 = vector.shape_cast %13 : vector<1x16x16x32xbf16> to vector<16x16x32xbf16>
    %15 = vector.shape_cast %14 : vector<16x16x32xbf16> to vector<256x32xbf16>
    %c0_18 = arith.constant 0 : index
    %c2_19 = arith.constant 2 : index
    %c0_20 = arith.constant 0 : index
    %c0_21 = arith.constant 0 : index
    %16 = vector.load %arg2[%c0_18, %c2_19, %c0_20, %c0_21] : memref<3x3x32x64xbf16, #tpu.memory_space<vmem>>, vector<1x1x32x64xbf16>
    %17 = vector.shape_cast %16 : vector<1x1x32x64xbf16> to vector<32x64xbf16>
    %cst_22 = arith.constant dense<0.000000e+00> : vector<256x64xf32>
    %18 = tpu.matmul %15, %17, %cst_22 {dimension_numbers = #tpu.dot_dimension_numbers<[1], [0], [0], [1], [0, 0, 1, 1], [], []>} : vector<256x32xbf16>, vector<32x64xbf16>, vector<256x64xf32> -> vector<256x64xf32>
    %19 = arith.addf %12, %18 : vector<256x64xf32>
    %c0_23 = arith.constant 0 : index
    %c1_24 = arith.constant 1 : index
    %c0_25 = arith.constant 0 : index
    %c0_26 = arith.constant 0 : index
    %20 = vector.load %arg1[%c0_23, %c1_24, %c0_25, %c0_26] : memref<1x18x18x32xbf16, #tpu.memory_space<vmem>>, vector<1x16x16x32xbf16>
    %21 = vector.shape_cast %20 : vector<1x16x16x32xbf16> to vector<16x16x32xbf16>
    %22 = vector.shape_cast %21 : vector<16x16x32xbf16> to vector<256x32xbf16>
    %c1_27 = arith.constant 1 : index
    %c0_28 = arith.constant 0 : index
    %c0_29 = arith.constant 0 : index
    %c0_30 = arith.constant 0 : index
    %23 = vector.load %arg2[%c1_27, %c0_28, %c0_29, %c0_30] : memref<3x3x32x64xbf16, #tpu.memory_space<vmem>>, vector<1x1x32x64xbf16>
    %24 = vector.shape_cast %23 : vector<1x1x32x64xbf16> to vector<32x64xbf16>
    %cst_31 = arith.constant dense<0.000000e+00> : vector<256x64xf32>
    %25 = tpu.matmul %22, %24, %cst_31 {dimension_numbers = #tpu.dot_dimension_numbers<[1], [0], [0], [1], [0, 0, 1, 1], [], []>} : vector<256x32xbf16>, vector<32x64xbf16>, vector<256x64xf32> -> vector<256x64xf32>
    %26 = arith.addf %19, %25 : vector<256x64xf32>
    %c0_32 = arith.constant 0 : index
    %c1_33 = arith.constant 1 : index
    %c1_34 = arith.constant 1 : index
    %c0_35 = arith.constant 0 : index
    %27 = vector.load %arg1[%c0_32, %c1_33, %c1_34, %c0_35] : memref<1x18x18x32xbf16, #tpu.memory_space<vmem>>, vector<1x16x16x32xbf16>
    %28 = vector.shape_cast %27 : vector<1x16x16x32xbf16> to vector<16x16x32xbf16>
    %29 = vector.shape_cast %28 : vector<16x16x32xbf16> to vector<256x32xbf16>
    %c1_36 = arith.constant 1 : index
    %c1_37 = arith.constant 1 : index
    %c0_38 = arith.constant 0 : index
    %c0_39 = arith.constant 0 : index
    %30 = vector.load %arg2[%c1_36, %c1_37, %c0_38, %c0_39] : memref<3x3x32x64xbf16, #tpu.memory_space<vmem>>, vector<1x1x32x64xbf16>
    %31 = vector.shape_cast %30 : vector<1x1x32x64xbf16> to vector<32x64xbf16>
    %cst_40 = arith.constant dense<0.000000e+00> : vector<256x64xf32>
    %32 = tpu.matmul %29, %31, %cst_40 {dimension_numbers = #tpu.dot_dimension_numbers<[1], [0], [0], [1], [0, 0, 1, 1], [], []>} : vector<256x32xbf16>, vector<32x64xbf16>, vector<256x64xf32> -> vector<256x64xf32>
    %33 = arith.addf %26, %32 : vector<256x64xf32>
    %c0_41 = arith.constant 0 : index
    %c1_42 = arith.constant 1 : index
    %c2_43 = arith.constant 2 : index
    %c0_44 = arith.constant 0 : index
    %34 = vector.load %arg1[%c0_41, %c1_42, %c2_43, %c0_44] : memref<1x18x18x32xbf16, #tpu.memory_space<vmem>>, vector<1x16x16x32xbf16>
    %35 = vector.shape_cast %34 : vector<1x16x16x32xbf16> to vector<16x16x32xbf16>
    %36 = vector.shape_cast %35 : vector<16x16x32xbf16> to vector<256x32xbf16>
    %c1_45 = arith.constant 1 : index
    %c2_46 = arith.constant 2 : index
    %c0_47 = arith.constant 0 : index
    %c0_48 = arith.constant 0 : index
    %37 = vector.load %arg2[%c1_45, %c2_46, %c0_47, %c0_48] : memref<3x3x32x64xbf16, #tpu.memory_space<vmem>>, vector<1x1x32x64xbf16>
    %38 = vector.shape_cast %37 : vector<1x1x32x64xbf16> to vector<32x64xbf16>
    %cst_49 = arith.constant dense<0.000000e+00> : vector<256x64xf32>
    %39 = tpu.matmul %36, %38, %cst_49 {dimension_numbers = #tpu.dot_dimension_numbers<[1], [0], [0], [1], [0, 0, 1, 1], [], []>} : vector<256x32xbf16>, vector<32x64xbf16>, vector<256x64xf32> -> vector<256x64xf32>
    %40 = arith.addf %33, %39 : vector<256x64xf32>
    %c0_50 = arith.constant 0 : index
    %c2_51 = arith.constant 2 : index
    %c0_52 = arith.constant 0 : index
    %c0_53 = arith.constant 0 : index
    %41 = vector.load %arg1[%c0_50, %c2_51, %c0_52, %c0_53] : memref<1x18x18x32xbf16, #tpu.memory_space<vmem>>, vector<1x16x16x32xbf16>
    %42 = vector.shape_cast %41 : vector<1x16x16x32xbf16> to vector<16x16x32xbf16>
    %43 = vector.shape_cast %42 : vector<16x16x32xbf16> to vector<256x32xbf16>
    %c2_54 = arith.constant 2 : index
    %c0_55 = arith.constant 0 : index
    %c0_56 = arith.constant 0 : index
    %c0_57 = arith.constant 0 : index
    %44 = vector.load %arg2[%c2_54, %c0_55, %c0_56, %c0_57] : memref<3x3x32x64xbf16, #tpu.memory_space<vmem>>, vector<1x1x32x64xbf16>
    %45 = vector.shape_cast %44 : vector<1x1x32x64xbf16> to vector<32x64xbf16>
    %cst_58 = arith.constant dense<0.000000e+00> : vector<256x64xf32>
    %46 = tpu.matmul %43, %45, %cst_58 {dimension_numbers = #tpu.dot_dimension_numbers<[1], [0], [0], [1], [0, 0, 1, 1], [], []>} : vector<256x32xbf16>, vector<32x64xbf16>, vector<256x64xf32> -> vector<256x64xf32>
    %47 = arith.addf %40, %46 : vector<256x64xf32>
    %c0_59 = arith.constant 0 : index
    %c2_60 = arith.constant 2 : index
    %c1_61 = arith.constant 1 : index
    %c0_62 = arith.constant 0 : index
    %48 = vector.load %arg1[%c0_59, %c2_60, %c1_61, %c0_62] : memref<1x18x18x32xbf16, #tpu.memory_space<vmem>>, vector<1x16x16x32xbf16>
    %49 = vector.shape_cast %48 : vector<1x16x16x32xbf16> to vector<16x16x32xbf16>
    %50 = vector.shape_cast %49 : vector<16x16x32xbf16> to vector<256x32xbf16>
    %c2_63 = arith.constant 2 : index
    %c1_64 = arith.constant 1 : index
    %c0_65 = arith.constant 0 : index
    %c0_66 = arith.constant 0 : index
    %51 = vector.load %arg2[%c2_63, %c1_64, %c0_65, %c0_66] : memref<3x3x32x64xbf16, #tpu.memory_space<vmem>>, vector<1x1x32x64xbf16>
    %52 = vector.shape_cast %51 : vector<1x1x32x64xbf16> to vector<32x64xbf16>
    %cst_67 = arith.constant dense<0.000000e+00> : vector<256x64xf32>
    %53 = tpu.matmul %50, %52, %cst_67 {dimension_numbers = #tpu.dot_dimension_numbers<[1], [0], [0], [1], [0, 0, 1, 1], [], []>} : vector<256x32xbf16>, vector<32x64xbf16>, vector<256x64xf32> -> vector<256x64xf32>
    %54 = arith.addf %47, %53 : vector<256x64xf32>
    %c0_68 = arith.constant 0 : index
    %c2_69 = arith.constant 2 : index
    %c2_70 = arith.constant 2 : index
    %c0_71 = arith.constant 0 : index
    %55 = vector.load %arg1[%c0_68, %c2_69, %c2_70, %c0_71] : memref<1x18x18x32xbf16, #tpu.memory_space<vmem>>, vector<1x16x16x32xbf16>
    %56 = vector.shape_cast %55 : vector<1x16x16x32xbf16> to vector<16x16x32xbf16>
    %57 = vector.shape_cast %56 : vector<16x16x32xbf16> to vector<256x32xbf16>
    %c2_72 = arith.constant 2 : index
    %c2_73 = arith.constant 2 : index
    %c0_74 = arith.constant 0 : index
    %c0_75 = arith.constant 0 : index
    %58 = vector.load %arg2[%c2_72, %c2_73, %c0_74, %c0_75] : memref<3x3x32x64xbf16, #tpu.memory_space<vmem>>, vector<1x1x32x64xbf16>
    %59 = vector.shape_cast %58 : vector<1x1x32x64xbf16> to vector<32x64xbf16>
    %cst_76 = arith.constant dense<0.000000e+00> : vector<256x64xf32>
    %60 = tpu.matmul %57, %59, %cst_76 {dimension_numbers = #tpu.dot_dimension_numbers<[1], [0], [0], [1], [0, 0, 1, 1], [], []>} : vector<256x32xbf16>, vector<32x64xbf16>, vector<256x64xf32> -> vector<256x64xf32>
    %61 = arith.addf %54, %60 : vector<256x64xf32>
    %c0_77 = arith.constant 0 : index
    %c0_78 = arith.constant 0 : index
    %62 = vector.load %arg3[%c0_77, %c0_78] : memref<1x64xf32, #tpu.memory_space<vmem>>, vector<1x64xf32>
    %63 = vector.broadcast %62 : vector<1x64xf32> to vector<256x64xf32>
    %64 = arith.addf %61, %63 : vector<256x64xf32>
    %cst_79 = arith.constant 0.000000e+00 : f32
    %65 = vector.broadcast %cst_79 : f32 to vector<256x64xf32>
    %66 = arith.maximumf %64, %65 : vector<256x64xf32>
    %67 = vector.shape_cast %66 : vector<256x64xf32> to vector<8x2x16x64xf32>
    %68 = vector.extract_strided_slice %67 {offsets = [0, 0, 0, 0], sizes = [8, 1, 16, 64], strides = [1, 1, 1, 1]} : vector<8x2x16x64xf32> to vector<8x1x16x64xf32>
    %69 = vector.shape_cast %68 : vector<8x1x16x64xf32> to vector<8x16x64xf32>
    %70 = vector.extract_strided_slice %67 {offsets = [0, 1, 0, 0], sizes = [8, 1, 16, 64], strides = [1, 1, 1, 1]} : vector<8x2x16x64xf32> to vector<8x1x16x64xf32>
    %71 = vector.shape_cast %70 : vector<8x1x16x64xf32> to vector<8x16x64xf32>
    %72 = arith.maximumf %69, %71 : vector<8x16x64xf32>
    %c0_80 = arith.constant 0 : index
    %c0_81 = arith.constant 0 : index
    %c0_82 = arith.constant 0 : index
    %73 = vector.load %arg5[%c0_80, %c0_81, %c0_82] : memref<8x16x64xf32, #tpu.memory_space<vmem>>, vector<8x16x64xf32>
    tpu.vector_store %arg5[%c0_80, %c0_81, %c0_82], %72 {strides = array<i32>} : memref<8x16x64xf32, #tpu.memory_space<vmem>>, vector<8x16x64xf32>,
    %c0_83 = arith.constant 0 : index
    %c0_84 = arith.constant 0 : index
    %c0_85 = arith.constant 0 : index
    %74 = tpu.strided_load %arg5[%c0_83, %c0_84, %c0_85] {strides = array<i32: 1, 2, 1>} : memref<8x16x64xf32, #tpu.memory_space<vmem>>, vector<8x8x64xf32>
    %c0_86 = arith.constant 0 : index
    %c1_87 = arith.constant 1 : index
    %c0_88 = arith.constant 0 : index
    %75 = tpu.strided_load %arg5[%c0_86, %c1_87, %c0_88] {strides = array<i32: 1, 2, 1>} : memref<8x16x64xf32, #tpu.memory_space<vmem>>, vector<8x8x64xf32>
    %76 = arith.maximumf %74, %75 : vector<8x8x64xf32>
    %cst_89 = arith.constant 0.000000e+00 : bf16
    %77 = vector.broadcast %cst_89 : bf16 to vector<1x10x10x64xbf16>
    %c0_90 = arith.constant 0 : index
    %c0_91 = arith.constant 0 : index
    %c0_92 = arith.constant 0 : index
    %c0_93 = arith.constant 0 : index
    %78 = vector.load %arg4[%c0_90, %c0_91, %c0_92, %c0_93] : memref<1x10x10x64xbf16, #tpu.memory_space<vmem>>, vector<1x10x10x64xbf16>
    tpu.vector_store %arg4[%c0_90, %c0_91, %c0_92, %c0_93], %77 {strides = array<i32>} : memref<1x10x10x64xbf16, #tpu.memory_space<vmem>>, vector<1x10x10x64xbf16>,
    %79 = arith.truncf %76 : vector<8x8x64xf32> to vector<8x8x64xbf16>
    %c0_94 = arith.constant 0 : index
    %c1_95 = arith.constant 1 : index
    %c1_96 = arith.constant 1 : index
    %c0_97 = arith.constant 0 : index
    %80 = vector.load %arg4[%c0_94, %c1_95, %c1_96, %c0_97] : memref<1x10x10x64xbf16, #tpu.memory_space<vmem>>, vector<1x8x8x64xbf16>
    %81 = vector.shape_cast %80 : vector<1x8x8x64xbf16> to vector<8x8x64xbf16>
    %82 = vector.shape_cast %79 : vector<8x8x64xbf16> to vector<1x8x8x64xbf16>
    tpu.vector_store %arg4[%c0_94, %c1_95, %c1_96, %c0_97], %82 {strides = array<i32>} : memref<1x10x10x64xbf16, #tpu.memory_space<vmem>>, vector<1x8x8x64xbf16>,
    return
  }
  func.func @transform_0(%arg0: i32) -> (i32, i32, i32, i32) {
    %c0_i32 = arith.constant 0 : i32
    %c0_i32_0 = arith.constant 0 : i32
    %c0_i32_1 = arith.constant 0 : i32
    %c0_i32_2 = arith.constant 0 : i32
    return %arg0, %c0_i32, %c0_i32_0, %c0_i32_1 : i32, i32, i32, i32
  }
  func.func @transform_1(%arg0: i32) -> (i32, i32, i32, i32) {
    %c0_i32 = arith.constant 0 : i32
    %c0_i32_0 = arith.constant 0 : i32
    %c0_i32_1 = arith.constant 0 : i32
    %c0_i32_2 = arith.constant 0 : i32
    %c0_i32_3 = arith.constant 0 : i32
    return %c0_i32, %c0_i32_0, %c0_i32_1, %c0_i32_2 : i32, i32, i32, i32
  }
  func.func @transform_2(%arg0: i32) -> (i32, i32) {
    %c0_i32 = arith.constant 0 : i32
    %c0_i32_0 = arith.constant 0 : i32
    %c0_i32_1 = arith.constant 0 : i32
    return %c0_i32, %c0_i32_0 : i32, i32
  }
  func.func @transform_3(%arg0: i32) -> (i32, i32, i32, i32) {
    %c0_i32 = arith.constant 0 : i32
    %c0_i32_0 = arith.constant 0 : i32
    %c0_i32_1 = arith.constant 0 : i32
    %c0_i32_2 = arith.constant 0 : i32
    return %arg0, %c0_i32, %c0_i32_0, %c0_i32_1 : i32, i32, i32, i32
  }
}

module attributes {stable_mosaic.version = 11 : i64} {
  func.func @conv_pool_kernel(%arg0: i32, %arg1: memref<1x10x10x64xbf16, #tpu.memory_space<vmem>>, %arg2: memref<3x3x64x128xbf16, #tpu.memory_space<vmem>>, %arg3: memref<1x128xf32, #tpu.memory_space<vmem>>, %arg4: memref<1x4x4x128xf32, #tpu.memory_space<vmem>>, %arg5: memref<4x8x128xf32, #tpu.memory_space<vmem>>) attributes {dimension_semantics = [#tpu.dimension_semantics<parallel>], iteration_bounds = array<i64: 2>, scalar_prefetch = 0 : i64, scratch_operands = 1 : i64, tpu.core_type = #tpu.core_type<tc>, window_params = [{transform_indices = @transform_0, window_bounds = array<i64: 1, 10, 10, 64>}, {pipeline_mode = #tpu.pipeline_mode<synchronous>, transform_indices = @transform_1, window_bounds = array<i64: 3, 3, 64, 128>}, {pipeline_mode = #tpu.pipeline_mode<synchronous>, transform_indices = @transform_2, window_bounds = array<i64: 1, 128>}, {transform_indices = @transform_3, window_bounds = array<i64: 1, 4, 4, 128>}]} {
    %c0 = arith.constant 0 : index
    %c0_0 = arith.constant 0 : index
    %c0_1 = arith.constant 0 : index
    %c0_2 = arith.constant 0 : index
    %0 = vector.load %arg1[%c0, %c0_0, %c0_1, %c0_2] : memref<1x10x10x64xbf16, #tpu.memory_space<vmem>>, vector<1x8x8x64xbf16>
    %1 = vector.shape_cast %0 : vector<1x8x8x64xbf16> to vector<8x8x64xbf16>
    %2 = vector.shape_cast %1 : vector<8x8x64xbf16> to vector<64x64xbf16>
    %c0_3 = arith.constant 0 : index
    %c0_4 = arith.constant 0 : index
    %c0_5 = arith.constant 0 : index
    %c0_6 = arith.constant 0 : index
    %3 = vector.load %arg2[%c0_3, %c0_4, %c0_5, %c0_6] : memref<3x3x64x128xbf16, #tpu.memory_space<vmem>>, vector<1x1x64x128xbf16>
    %4 = vector.shape_cast %3 : vector<1x1x64x128xbf16> to vector<64x128xbf16>
    %cst = arith.constant dense<0.000000e+00> : vector<64x128xf32>
    %5 = tpu.matmul %2, %4, %cst {dimension_numbers = #tpu.dot_dimension_numbers<[1], [0], [0], [1], [0, 0, 1, 1], [], []>} : vector<64x64xbf16>, vector<64x128xbf16>, vector<64x128xf32> -> vector<64x128xf32>
    %c0_7 = arith.constant 0 : index
    %c0_8 = arith.constant 0 : index
    %c1 = arith.constant 1 : index
    %c0_9 = arith.constant 0 : index
    %6 = vector.load %arg1[%c0_7, %c0_8, %c1, %c0_9] : memref<1x10x10x64xbf16, #tpu.memory_space<vmem>>, vector<1x8x8x64xbf16>
    %7 = vector.shape_cast %6 : vector<1x8x8x64xbf16> to vector<8x8x64xbf16>
    %8 = vector.shape_cast %7 : vector<8x8x64xbf16> to vector<64x64xbf16>
    %c0_10 = arith.constant 0 : index
    %c1_11 = arith.constant 1 : index
    %c0_12 = arith.constant 0 : index
    %c0_13 = arith.constant 0 : index
    %9 = vector.load %arg2[%c0_10, %c1_11, %c0_12, %c0_13] : memref<3x3x64x128xbf16, #tpu.memory_space<vmem>>, vector<1x1x64x128xbf16>
    %10 = vector.shape_cast %9 : vector<1x1x64x128xbf16> to vector<64x128xbf16>
    %cst_14 = arith.constant dense<0.000000e+00> : vector<64x128xf32>
    %11 = tpu.matmul %8, %10, %cst_14 {dimension_numbers = #tpu.dot_dimension_numbers<[1], [0], [0], [1], [0, 0, 1, 1], [], []>} : vector<64x64xbf16>, vector<64x128xbf16>, vector<64x128xf32> -> vector<64x128xf32>
    %12 = arith.addf %5, %11 : vector<64x128xf32>
    %c0_15 = arith.constant 0 : index
    %c0_16 = arith.constant 0 : index
    %c2 = arith.constant 2 : index
    %c0_17 = arith.constant 0 : index
    %13 = vector.load %arg1[%c0_15, %c0_16, %c2, %c0_17] : memref<1x10x10x64xbf16, #tpu.memory_space<vmem>>, vector<1x8x8x64xbf16>
    %14 = vector.shape_cast %13 : vector<1x8x8x64xbf16> to vector<8x8x64xbf16>
    %15 = vector.shape_cast %14 : vector<8x8x64xbf16> to vector<64x64xbf16>
    %c0_18 = arith.constant 0 : index
    %c2_19 = arith.constant 2 : index
    %c0_20 = arith.constant 0 : index
    %c0_21 = arith.constant 0 : index
    %16 = vector.load %arg2[%c0_18, %c2_19, %c0_20, %c0_21] : memref<3x3x64x128xbf16, #tpu.memory_space<vmem>>, vector<1x1x64x128xbf16>
    %17 = vector.shape_cast %16 : vector<1x1x64x128xbf16> to vector<64x128xbf16>
    %cst_22 = arith.constant dense<0.000000e+00> : vector<64x128xf32>
    %18 = tpu.matmul %15, %17, %cst_22 {dimension_numbers = #tpu.dot_dimension_numbers<[1], [0], [0], [1], [0, 0, 1, 1], [], []>} : vector<64x64xbf16>, vector<64x128xbf16>, vector<64x128xf32> -> vector<64x128xf32>
    %19 = arith.addf %12, %18 : vector<64x128xf32>
    %c0_23 = arith.constant 0 : index
    %c1_24 = arith.constant 1 : index
    %c0_25 = arith.constant 0 : index
    %c0_26 = arith.constant 0 : index
    %20 = vector.load %arg1[%c0_23, %c1_24, %c0_25, %c0_26] : memref<1x10x10x64xbf16, #tpu.memory_space<vmem>>, vector<1x8x8x64xbf16>
    %21 = vector.shape_cast %20 : vector<1x8x8x64xbf16> to vector<8x8x64xbf16>
    %22 = vector.shape_cast %21 : vector<8x8x64xbf16> to vector<64x64xbf16>
    %c1_27 = arith.constant 1 : index
    %c0_28 = arith.constant 0 : index
    %c0_29 = arith.constant 0 : index
    %c0_30 = arith.constant 0 : index
    %23 = vector.load %arg2[%c1_27, %c0_28, %c0_29, %c0_30] : memref<3x3x64x128xbf16, #tpu.memory_space<vmem>>, vector<1x1x64x128xbf16>
    %24 = vector.shape_cast %23 : vector<1x1x64x128xbf16> to vector<64x128xbf16>
    %cst_31 = arith.constant dense<0.000000e+00> : vector<64x128xf32>
    %25 = tpu.matmul %22, %24, %cst_31 {dimension_numbers = #tpu.dot_dimension_numbers<[1], [0], [0], [1], [0, 0, 1, 1], [], []>} : vector<64x64xbf16>, vector<64x128xbf16>, vector<64x128xf32> -> vector<64x128xf32>
    %26 = arith.addf %19, %25 : vector<64x128xf32>
    %c0_32 = arith.constant 0 : index
    %c1_33 = arith.constant 1 : index
    %c1_34 = arith.constant 1 : index
    %c0_35 = arith.constant 0 : index
    %27 = vector.load %arg1[%c0_32, %c1_33, %c1_34, %c0_35] : memref<1x10x10x64xbf16, #tpu.memory_space<vmem>>, vector<1x8x8x64xbf16>
    %28 = vector.shape_cast %27 : vector<1x8x8x64xbf16> to vector<8x8x64xbf16>
    %29 = vector.shape_cast %28 : vector<8x8x64xbf16> to vector<64x64xbf16>
    %c1_36 = arith.constant 1 : index
    %c1_37 = arith.constant 1 : index
    %c0_38 = arith.constant 0 : index
    %c0_39 = arith.constant 0 : index
    %30 = vector.load %arg2[%c1_36, %c1_37, %c0_38, %c0_39] : memref<3x3x64x128xbf16, #tpu.memory_space<vmem>>, vector<1x1x64x128xbf16>
    %31 = vector.shape_cast %30 : vector<1x1x64x128xbf16> to vector<64x128xbf16>
    %cst_40 = arith.constant dense<0.000000e+00> : vector<64x128xf32>
    %32 = tpu.matmul %29, %31, %cst_40 {dimension_numbers = #tpu.dot_dimension_numbers<[1], [0], [0], [1], [0, 0, 1, 1], [], []>} : vector<64x64xbf16>, vector<64x128xbf16>, vector<64x128xf32> -> vector<64x128xf32>
    %33 = arith.addf %26, %32 : vector<64x128xf32>
    %c0_41 = arith.constant 0 : index
    %c1_42 = arith.constant 1 : index
    %c2_43 = arith.constant 2 : index
    %c0_44 = arith.constant 0 : index
    %34 = vector.load %arg1[%c0_41, %c1_42, %c2_43, %c0_44] : memref<1x10x10x64xbf16, #tpu.memory_space<vmem>>, vector<1x8x8x64xbf16>
    %35 = vector.shape_cast %34 : vector<1x8x8x64xbf16> to vector<8x8x64xbf16>
    %36 = vector.shape_cast %35 : vector<8x8x64xbf16> to vector<64x64xbf16>
    %c1_45 = arith.constant 1 : index
    %c2_46 = arith.constant 2 : index
    %c0_47 = arith.constant 0 : index
    %c0_48 = arith.constant 0 : index
    %37 = vector.load %arg2[%c1_45, %c2_46, %c0_47, %c0_48] : memref<3x3x64x128xbf16, #tpu.memory_space<vmem>>, vector<1x1x64x128xbf16>
    %38 = vector.shape_cast %37 : vector<1x1x64x128xbf16> to vector<64x128xbf16>
    %cst_49 = arith.constant dense<0.000000e+00> : vector<64x128xf32>
    %39 = tpu.matmul %36, %38, %cst_49 {dimension_numbers = #tpu.dot_dimension_numbers<[1], [0], [0], [1], [0, 0, 1, 1], [], []>} : vector<64x64xbf16>, vector<64x128xbf16>, vector<64x128xf32> -> vector<64x128xf32>
    %40 = arith.addf %33, %39 : vector<64x128xf32>
    %c0_50 = arith.constant 0 : index
    %c2_51 = arith.constant 2 : index
    %c0_52 = arith.constant 0 : index
    %c0_53 = arith.constant 0 : index
    %41 = vector.load %arg1[%c0_50, %c2_51, %c0_52, %c0_53] : memref<1x10x10x64xbf16, #tpu.memory_space<vmem>>, vector<1x8x8x64xbf16>
    %42 = vector.shape_cast %41 : vector<1x8x8x64xbf16> to vector<8x8x64xbf16>
    %43 = vector.shape_cast %42 : vector<8x8x64xbf16> to vector<64x64xbf16>
    %c2_54 = arith.constant 2 : index
    %c0_55 = arith.constant 0 : index
    %c0_56 = arith.constant 0 : index
    %c0_57 = arith.constant 0 : index
    %44 = vector.load %arg2[%c2_54, %c0_55, %c0_56, %c0_57] : memref<3x3x64x128xbf16, #tpu.memory_space<vmem>>, vector<1x1x64x128xbf16>
    %45 = vector.shape_cast %44 : vector<1x1x64x128xbf16> to vector<64x128xbf16>
    %cst_58 = arith.constant dense<0.000000e+00> : vector<64x128xf32>
    %46 = tpu.matmul %43, %45, %cst_58 {dimension_numbers = #tpu.dot_dimension_numbers<[1], [0], [0], [1], [0, 0, 1, 1], [], []>} : vector<64x64xbf16>, vector<64x128xbf16>, vector<64x128xf32> -> vector<64x128xf32>
    %47 = arith.addf %40, %46 : vector<64x128xf32>
    %c0_59 = arith.constant 0 : index
    %c2_60 = arith.constant 2 : index
    %c1_61 = arith.constant 1 : index
    %c0_62 = arith.constant 0 : index
    %48 = vector.load %arg1[%c0_59, %c2_60, %c1_61, %c0_62] : memref<1x10x10x64xbf16, #tpu.memory_space<vmem>>, vector<1x8x8x64xbf16>
    %49 = vector.shape_cast %48 : vector<1x8x8x64xbf16> to vector<8x8x64xbf16>
    %50 = vector.shape_cast %49 : vector<8x8x64xbf16> to vector<64x64xbf16>
    %c2_63 = arith.constant 2 : index
    %c1_64 = arith.constant 1 : index
    %c0_65 = arith.constant 0 : index
    %c0_66 = arith.constant 0 : index
    %51 = vector.load %arg2[%c2_63, %c1_64, %c0_65, %c0_66] : memref<3x3x64x128xbf16, #tpu.memory_space<vmem>>, vector<1x1x64x128xbf16>
    %52 = vector.shape_cast %51 : vector<1x1x64x128xbf16> to vector<64x128xbf16>
    %cst_67 = arith.constant dense<0.000000e+00> : vector<64x128xf32>
    %53 = tpu.matmul %50, %52, %cst_67 {dimension_numbers = #tpu.dot_dimension_numbers<[1], [0], [0], [1], [0, 0, 1, 1], [], []>} : vector<64x64xbf16>, vector<64x128xbf16>, vector<64x128xf32> -> vector<64x128xf32>
    %54 = arith.addf %47, %53 : vector<64x128xf32>
    %c0_68 = arith.constant 0 : index
    %c2_69 = arith.constant 2 : index
    %c2_70 = arith.constant 2 : index
    %c0_71 = arith.constant 0 : index
    %55 = vector.load %arg1[%c0_68, %c2_69, %c2_70, %c0_71] : memref<1x10x10x64xbf16, #tpu.memory_space<vmem>>, vector<1x8x8x64xbf16>
    %56 = vector.shape_cast %55 : vector<1x8x8x64xbf16> to vector<8x8x64xbf16>
    %57 = vector.shape_cast %56 : vector<8x8x64xbf16> to vector<64x64xbf16>
    %c2_72 = arith.constant 2 : index
    %c2_73 = arith.constant 2 : index
    %c0_74 = arith.constant 0 : index
    %c0_75 = arith.constant 0 : index
    %58 = vector.load %arg2[%c2_72, %c2_73, %c0_74, %c0_75] : memref<3x3x64x128xbf16, #tpu.memory_space<vmem>>, vector<1x1x64x128xbf16>
    %59 = vector.shape_cast %58 : vector<1x1x64x128xbf16> to vector<64x128xbf16>
    %cst_76 = arith.constant dense<0.000000e+00> : vector<64x128xf32>
    %60 = tpu.matmul %57, %59, %cst_76 {dimension_numbers = #tpu.dot_dimension_numbers<[1], [0], [0], [1], [0, 0, 1, 1], [], []>} : vector<64x64xbf16>, vector<64x128xbf16>, vector<64x128xf32> -> vector<64x128xf32>
    %61 = arith.addf %54, %60 : vector<64x128xf32>
    %c0_77 = arith.constant 0 : index
    %c0_78 = arith.constant 0 : index
    %62 = vector.load %arg3[%c0_77, %c0_78] : memref<1x128xf32, #tpu.memory_space<vmem>>, vector<1x128xf32>
    %63 = vector.broadcast %62 : vector<1x128xf32> to vector<64x128xf32>
    %64 = arith.addf %61, %63 : vector<64x128xf32>
    %cst_79 = arith.constant 0.000000e+00 : f32
    %65 = vector.broadcast %cst_79 : f32 to vector<64x128xf32>
    %66 = arith.maximumf %64, %65 : vector<64x128xf32>
    %67 = vector.shape_cast %66 : vector<64x128xf32> to vector<4x2x8x128xf32>
    %68 = vector.extract_strided_slice %67 {offsets = [0, 0, 0, 0], sizes = [4, 1, 8, 128], strides = [1, 1, 1, 1]} : vector<4x2x8x128xf32> to vector<4x1x8x128xf32>
    %69 = vector.shape_cast %68 : vector<4x1x8x128xf32> to vector<4x8x128xf32>
    %70 = vector.extract_strided_slice %67 {offsets = [0, 1, 0, 0], sizes = [4, 1, 8, 128], strides = [1, 1, 1, 1]} : vector<4x2x8x128xf32> to vector<4x1x8x128xf32>
    %71 = vector.shape_cast %70 : vector<4x1x8x128xf32> to vector<4x8x128xf32>
    %72 = arith.maximumf %69, %71 : vector<4x8x128xf32>
    %c0_80 = arith.constant 0 : index
    %c0_81 = arith.constant 0 : index
    %c0_82 = arith.constant 0 : index
    %73 = vector.load %arg5[%c0_80, %c0_81, %c0_82] : memref<4x8x128xf32, #tpu.memory_space<vmem>>, vector<4x8x128xf32>
    tpu.vector_store %arg5[%c0_80, %c0_81, %c0_82], %72 {strides = array<i32>} : memref<4x8x128xf32, #tpu.memory_space<vmem>>, vector<4x8x128xf32>,
    %c0_83 = arith.constant 0 : index
    %c0_84 = arith.constant 0 : index
    %c0_85 = arith.constant 0 : index
    %74 = tpu.strided_load %arg5[%c0_83, %c0_84, %c0_85] {strides = array<i32: 1, 2, 1>} : memref<4x8x128xf32, #tpu.memory_space<vmem>>, vector<4x4x128xf32>
    %c0_86 = arith.constant 0 : index
    %c1_87 = arith.constant 1 : index
    %c0_88 = arith.constant 0 : index
    %75 = tpu.strided_load %arg5[%c0_86, %c1_87, %c0_88] {strides = array<i32: 1, 2, 1>} : memref<4x8x128xf32, #tpu.memory_space<vmem>>, vector<4x4x128xf32>
    %76 = arith.maximumf %74, %75 : vector<4x4x128xf32>
    %c0_89 = arith.constant 0 : index
    %c0_90 = arith.constant 0 : index
    %c0_91 = arith.constant 0 : index
    %c0_92 = arith.constant 0 : index
    %77 = vector.load %arg4[%c0_89, %c0_90, %c0_91, %c0_92] : memref<1x4x4x128xf32, #tpu.memory_space<vmem>>, vector<1x4x4x128xf32>
    %78 = vector.shape_cast %77 : vector<1x4x4x128xf32> to vector<4x4x128xf32>
    %79 = vector.shape_cast %76 : vector<4x4x128xf32> to vector<1x4x4x128xf32>
    tpu.vector_store %arg4[%c0_89, %c0_90, %c0_91, %c0_92], %79 {strides = array<i32>} : memref<1x4x4x128xf32, #tpu.memory_space<vmem>>, vector<1x4x4x128xf32>,
    return
  }
  func.func @transform_0(%arg0: i32) -> (i32, i32, i32, i32) {
    %c0_i32 = arith.constant 0 : i32
    %c0_i32_0 = arith.constant 0 : i32
    %c0_i32_1 = arith.constant 0 : i32
    %c0_i32_2 = arith.constant 0 : i32
    return %arg0, %c0_i32, %c0_i32_0, %c0_i32_1 : i32, i32, i32, i32
  }
  func.func @transform_1(%arg0: i32) -> (i32, i32, i32, i32) {
    %c0_i32 = arith.constant 0 : i32
    %c0_i32_0 = arith.constant 0 : i32
    %c0_i32_1 = arith.constant 0 : i32
    %c0_i32_2 = arith.constant 0 : i32
    %c0_i32_3 = arith.constant 0 : i32
    return %c0_i32, %c0_i32_0, %c0_i32_1, %c0_i32_2 : i32, i32, i32, i32
  }
  func.func @transform_2(%arg0: i32) -> (i32, i32) {
    %c0_i32 = arith.constant 0 : i32
    %c0_i32_0 = arith.constant 0 : i32
    %c0_i32_1 = arith.constant 0 : i32
    return %c0_i32, %c0_i32_0 : i32, i32
  }
  func.func @transform_3(%arg0: i32) -> (i32, i32, i32, i32) {
    %c0_i32 = arith.constant 0 : i32
    %c0_i32_0 = arith.constant 0 : i32
    %c0_i32_1 = arith.constant 0 : i32
    %c0_i32_2 = arith.constant 0 : i32
    return %arg0, %c0_i32, %c0_i32_0, %c0_i32_1 : i32, i32, i32, i32
  }
}

module attributes {stable_mosaic.version = 11 : i64} {
  func.func @cbam_head_kernel(%arg0: i32, %arg1: memref<2x16x128xf32, #tpu.memory_space<vmem>>, %arg2: memref<128x384xbf16, #tpu.memory_space<vmem>>, %arg3: memref<128x128xbf16, #tpu.memory_space<vmem>>, %arg4: memref<1x128xf32, #tpu.memory_space<vmem>>, %arg5: memref<128x384xbf16, #tpu.memory_space<vmem>>, %arg6: memref<128x128xbf16, #tpu.memory_space<vmem>>, %arg7: memref<1x128xf32, #tpu.memory_space<vmem>>, %arg8: memref<16x16x128xbf16, #tpu.memory_space<vmem>>, %arg9: memref<1x1xf32, #tpu.memory_space<vmem>>, %arg10: memref<128x128xbf16, #tpu.memory_space<vmem>>, %arg11: memref<1x128xf32, #tpu.memory_space<vmem>>, %arg12: memref<2x128xf32, #tpu.memory_space<vmem>>) attributes {dimension_semantics = [#tpu.dimension_semantics<arbitrary>], iteration_bounds = array<i64: 1>, scalar_prefetch = 0 : i64, scratch_operands = 0 : i64, tpu.core_type = #tpu.core_type<tc>, window_params = [{pipeline_mode = #tpu.pipeline_mode<synchronous>, transform_indices = @transform_0, window_bounds = array<i64: 2, 16, 128>}, {pipeline_mode = #tpu.pipeline_mode<synchronous>, transform_indices = @transform_1, window_bounds = array<i64: 128, 384>}, {pipeline_mode = #tpu.pipeline_mode<synchronous>, transform_indices = @transform_2, window_bounds = array<i64: 128, 128>}, {pipeline_mode = #tpu.pipeline_mode<synchronous>, transform_indices = @transform_3, window_bounds = array<i64: 1, 128>}, {pipeline_mode = #tpu.pipeline_mode<synchronous>, transform_indices = @transform_4, window_bounds = array<i64: 128, 384>}, {pipeline_mode = #tpu.pipeline_mode<synchronous>, transform_indices = @transform_5, window_bounds = array<i64: 128, 128>}, {pipeline_mode = #tpu.pipeline_mode<synchronous>, transform_indices = @transform_6, window_bounds = array<i64: 1, 128>}, {pipeline_mode = #tpu.pipeline_mode<synchronous>, transform_indices = @transform_7, window_bounds = array<i64: 16, 16, 128>}, {pipeline_mode = #tpu.pipeline_mode<synchronous>, transform_indices = @transform_8, window_bounds = array<i64: 1, 1>}, {pipeline_mode = #tpu.pipeline_mode<synchronous>, transform_indices = @transform_9, window_bounds = array<i64: 128, 128>}, {pipeline_mode = #tpu.pipeline_mode<synchronous>, transform_indices = @transform_10, window_bounds = array<i64: 1, 128>}, {pipeline_mode = #tpu.pipeline_mode<synchronous>, transform_indices = @transform_11, window_bounds = array<i64: 2, 128>}]} {
    %c0 = arith.constant 0 : index
    %c0_0 = arith.constant 0 : index
    %c0_1 = arith.constant 0 : index
    %0 = vector.load %arg1[%c0, %c0_0, %c0_1] : memref<2x16x128xf32, #tpu.memory_space<vmem>>, vector<2x16x128xf32>
    %1 = vector.shape_cast %0 : vector<2x16x128xf32> to vector<32x128xf32>
    %2 = arith.truncf %1 : vector<32x128xf32> to vector<32x128xbf16>
    %c0_2 = arith.constant 0 : index
    %c0_3 = arith.constant 0 : index
    %3 = vector.load %arg2[%c0_2, %c0_3] : memref<128x384xbf16, #tpu.memory_space<vmem>>, vector<128x384xbf16>
    %cst = arith.constant dense<0.000000e+00> : vector<32x384xf32>
    %4 = tpu.matmul %2, %3, %cst {dimension_numbers = #tpu.dot_dimension_numbers<[1], [0], [0], [1], [0, 0, 1, 1], [], []>} : vector<32x128xbf16>, vector<128x384xbf16>, vector<32x384xf32> -> vector<32x384xf32>
    %5 = vector.shape_cast %4 : vector<32x384xf32> to vector<2x16x384xf32>
    %6 = vector.extract_strided_slice %5 {offsets = [0, 0, 0], sizes = [2, 16, 128], strides = [1, 1, 1]} : vector<2x16x384xf32> to vector<2x16x128xf32>
    %7 = arith.truncf %6 : vector<2x16x128xf32> to vector<2x16x128xbf16>
    %8 = vector.extract_strided_slice %5 {offsets = [0, 0, 128], sizes = [2, 16, 128], strides = [1, 1, 1]} : vector<2x16x384xf32> to vector<2x16x128xf32>
    %9 = arith.truncf %8 : vector<2x16x128xf32> to vector<2x16x128xbf16>
    %10 = vector.extract_strided_slice %5 {offsets = [0, 0, 256], sizes = [2, 16, 128], strides = [1, 1, 1]} : vector<2x16x384xf32> to vector<2x16x128xf32>
    %11 = arith.truncf %10 : vector<2x16x128xf32> to vector<2x16x128xbf16>
    "tpu.trace_start"() <{level = 10 : i32, message = "bqd,bkd->bqk"}> : () -> ()
    %cst_4 = arith.constant dense<0.000000e+00> : vector<2x16x16xf32>
    %12 = tpu.matmul %7, %9, %cst_4 {dimension_numbers = #tpu.dot_dimension_numbers<[2], [2], [1], [1], [0, 0, 0, 1, 1, 1], [0], [0]>} : vector<2x16x128xbf16>, vector<2x16x128xbf16>, vector<2x16x16xf32> -> vector<2x16x16xf32>
    "tpu.trace_stop"() : () -> ()
    %cst_5 = arith.constant 0.176776692 : f32
    %13 = vector.broadcast %cst_5 : f32 to vector<2x16x16xf32>
    %14 = arith.mulf %12, %13 : vector<2x16x16xf32>
    %cst_6 = arith.constant dense<0xFF800000> : vector<2x16xf32>
    %15 = vector.multi_reduction <maximumf>, %14, %cst_6 [2] : vector<2x16x16xf32> to vector<2x16xf32>
    %16 = vector.shape_cast %15 : vector<2x16xf32> to vector<2x16x1xf32>
    %17 = vector.broadcast %16 : vector<2x16x1xf32> to vector<2x16x16xf32>
    %18 = arith.subf %14, %17 : vector<2x16x16xf32>
    %19 = math.exp %18 : vector<2x16x16xf32>
    %cst_7 = arith.constant dense<0.000000e+00> : vector<2x16xf32>
    %20 = vector.multi_reduction <add>, %19, %cst_7 [2] : vector<2x16x16xf32> to vector<2x16xf32>
    %21 = vector.shape_cast %20 : vector<2x16xf32> to vector<2x16x1xf32>
    %22 = vector.broadcast %21 : vector<2x16x1xf32> to vector<2x16x16xf32>
    %23 = arith.divf %19, %22 : vector<2x16x16xf32>
    %24 = arith.truncf %23 : vector<2x16x16xf32> to vector<2x16x16xbf16>
    "tpu.trace_start"() <{level = 10 : i32, message = "bqk,bkd->bqd"}> : () -> ()
    %cst_8 = arith.constant dense<0.000000e+00> : vector<2x16x128xf32>
    %25 = tpu.matmul %24, %11, %cst_8 {dimension_numbers = #tpu.dot_dimension_numbers<[2], [1], [1], [2], [0, 0, 0, 1, 1, 2], [0], [0]>} : vector<2x16x16xbf16>, vector<2x16x128xbf16>, vector<2x16x128xf32> -> vector<2x16x128xf32>
    "tpu.trace_stop"() : () -> ()
    %26 = vector.shape_cast %25 : vector<2x16x128xf32> to vector<32x128xf32>
    %27 = arith.truncf %26 : vector<32x128xf32> to vector<32x128xbf16>
    %c0_9 = arith.constant 0 : index
    %c0_10 = arith.constant 0 : index
    %28 = vector.load %arg3[%c0_9, %c0_10] : memref<128x128xbf16, #tpu.memory_space<vmem>>, vector<128x128xbf16>
    %cst_11 = arith.constant dense<0.000000e+00> : vector<32x128xf32>
    %29 = tpu.matmul %27, %28, %cst_11 {dimension_numbers = #tpu.dot_dimension_numbers<[1], [0], [0], [1], [0, 0, 1, 1], [], []>} : vector<32x128xbf16>, vector<128x128xbf16>, vector<32x128xf32> -> vector<32x128xf32>
    %c0_12 = arith.constant 0 : index
    %c0_13 = arith.constant 0 : index
    %30 = vector.load %arg4[%c0_12, %c0_13] : memref<1x128xf32, #tpu.memory_space<vmem>>, vector<1x128xf32>
    %31 = vector.broadcast %30 : vector<1x128xf32> to vector<32x128xf32>
    %32 = arith.addf %29, %31 : vector<32x128xf32>
    %33 = vector.shape_cast %32 : vector<32x128xf32> to vector<2x16x128xf32>
    %34 = arith.negf %33 : vector<2x16x128xf32>
    %35 = math.exp %34 : vector<2x16x128xf32>
    %cst_14 = arith.constant 1.000000e+00 : f32
    %36 = vector.broadcast %cst_14 : f32 to vector<2x16x128xf32>
    %37 = arith.addf %36, %35 : vector<2x16x128xf32>
    %38 = arith.divf %36, %37 : vector<2x16x128xf32>
    %39 = arith.mulf %38, %0 : vector<2x16x128xf32>
    %40 = vector.shape_cast %39 : vector<2x16x128xf32> to vector<32x128xf32>
    %41 = arith.truncf %40 : vector<32x128xf32> to vector<32x128xbf16>
    %c0_15 = arith.constant 0 : index
    %c0_16 = arith.constant 0 : index
    %42 = vector.load %arg5[%c0_15, %c0_16] : memref<128x384xbf16, #tpu.memory_space<vmem>>, vector<128x384xbf16>
    %cst_17 = arith.constant dense<0.000000e+00> : vector<32x384xf32>
    %43 = tpu.matmul %41, %42, %cst_17 {dimension_numbers = #tpu.dot_dimension_numbers<[1], [0], [0], [1], [0, 0, 1, 1], [], []>} : vector<32x128xbf16>, vector<128x384xbf16>, vector<32x384xf32> -> vector<32x384xf32>
    %44 = vector.shape_cast %43 : vector<32x384xf32> to vector<2x16x384xf32>
    %45 = vector.extract_strided_slice %44 {offsets = [0, 0, 0], sizes = [2, 16, 128], strides = [1, 1, 1]} : vector<2x16x384xf32> to vector<2x16x128xf32>
    %46 = arith.truncf %45 : vector<2x16x128xf32> to vector<2x16x128xbf16>
    %47 = vector.extract_strided_slice %44 {offsets = [0, 0, 128], sizes = [2, 16, 128], strides = [1, 1, 1]} : vector<2x16x384xf32> to vector<2x16x128xf32>
    %48 = arith.truncf %47 : vector<2x16x128xf32> to vector<2x16x128xbf16>
    %49 = vector.extract_strided_slice %44 {offsets = [0, 0, 256], sizes = [2, 16, 128], strides = [1, 1, 1]} : vector<2x16x384xf32> to vector<2x16x128xf32>
    %50 = arith.truncf %49 : vector<2x16x128xf32> to vector<2x16x128xbf16>
    "tpu.trace_start"() <{level = 10 : i32, message = "bqd,bkd->bqk"}> : () -> ()
    %cst_18 = arith.constant dense<0.000000e+00> : vector<2x16x16xf32>
    %51 = tpu.matmul %46, %48, %cst_18 {dimension_numbers = #tpu.dot_dimension_numbers<[2], [2], [1], [1], [0, 0, 0, 1, 1, 1], [0], [0]>} : vector<2x16x128xbf16>, vector<2x16x128xbf16>, vector<2x16x16xf32> -> vector<2x16x16xf32>
    "tpu.trace_stop"() : () -> ()
    %cst_19 = arith.constant 0.176776692 : f32
    %52 = vector.broadcast %cst_19 : f32 to vector<2x16x16xf32>
    %53 = arith.mulf %51, %52 : vector<2x16x16xf32>
    %cst_20 = arith.constant dense<0xFF800000> : vector<2x16xf32>
    %54 = vector.multi_reduction <maximumf>, %53, %cst_20 [2] : vector<2x16x16xf32> to vector<2x16xf32>
    %55 = vector.shape_cast %54 : vector<2x16xf32> to vector<2x16x1xf32>
    %56 = vector.broadcast %55 : vector<2x16x1xf32> to vector<2x16x16xf32>
    %57 = arith.subf %53, %56 : vector<2x16x16xf32>
    %58 = math.exp %57 : vector<2x16x16xf32>
    %cst_21 = arith.constant dense<0.000000e+00> : vector<2x16xf32>
    %59 = vector.multi_reduction <add>, %58, %cst_21 [2] : vector<2x16x16xf32> to vector<2x16xf32>
    %60 = vector.shape_cast %59 : vector<2x16xf32> to vector<2x16x1xf32>
    %61 = vector.broadcast %60 : vector<2x16x1xf32> to vector<2x16x16xf32>
    %62 = arith.divf %58, %61 : vector<2x16x16xf32>
    %63 = arith.truncf %62 : vector<2x16x16xf32> to vector<2x16x16xbf16>
    "tpu.trace_start"() <{level = 10 : i32, message = "bqk,bkd->bqd"}> : () -> ()
    %cst_22 = arith.constant dense<0.000000e+00> : vector<2x16x128xf32>
    %64 = tpu.matmul %63, %50, %cst_22 {dimension_numbers = #tpu.dot_dimension_numbers<[2], [1], [1], [2], [0, 0, 0, 1, 1, 2], [0], [0]>} : vector<2x16x16xbf16>, vector<2x16x128xbf16>, vector<2x16x128xf32> -> vector<2x16x128xf32>
    "tpu.trace_stop"() : () -> ()
    %65 = vector.shape_cast %64 : vector<2x16x128xf32> to vector<32x128xf32>
    %66 = arith.truncf %65 : vector<32x128xf32> to vector<32x128xbf16>
    %c0_23 = arith.constant 0 : index
    %c0_24 = arith.constant 0 : index
    %67 = vector.load %arg6[%c0_23, %c0_24] : memref<128x128xbf16, #tpu.memory_space<vmem>>, vector<128x128xbf16>
    %cst_25 = arith.constant dense<0.000000e+00> : vector<32x128xf32>
    %68 = tpu.matmul %66, %67, %cst_25 {dimension_numbers = #tpu.dot_dimension_numbers<[1], [0], [0], [1], [0, 0, 1, 1], [], []>} : vector<32x128xbf16>, vector<128x128xbf16>, vector<32x128xf32> -> vector<32x128xf32>
    %c0_26 = arith.constant 0 : index
    %c0_27 = arith.constant 0 : index
    %69 = vector.load %arg7[%c0_26, %c0_27] : memref<1x128xf32, #tpu.memory_space<vmem>>, vector<1x128xf32>
    %70 = vector.broadcast %69 : vector<1x128xf32> to vector<32x128xf32>
    %71 = arith.addf %68, %70 : vector<32x128xf32>
    %72 = vector.shape_cast %71 : vector<32x128xf32> to vector<2x16x128xf32>
    %c0_28 = arith.constant 0 : index
    %c0_29 = arith.constant 0 : index
    %c0_30 = arith.constant 0 : index
    %73 = vector.load %arg8[%c0_28, %c0_29, %c0_30] : memref<16x16x128xbf16, #tpu.memory_space<vmem>>, vector<16x16x128xbf16>
    %74 = arith.extf %73 : vector<16x16x128xbf16> to vector<16x16x128xf32>
    %75 = vector.extract_strided_slice %72 {offsets = [0, 0, 0], sizes = [1, 16, 128], strides = [1, 1, 1]} : vector<2x16x128xf32> to vector<1x16x128xf32>
    %76 = vector.shape_cast %75 : vector<1x16x128xf32> to vector<16x128xf32>
    %77 = vector.shape_cast %76 : vector<16x128xf32> to vector<1x16x128xf32>
    %78 = vector.broadcast %77 : vector<1x16x128xf32> to vector<16x16x128xf32>
    %79 = arith.mulf %74, %78 : vector<16x16x128xf32>
    %cst_31 = arith.constant dense<0.000000e+00> : vector<16x128xf32>
    %80 = vector.multi_reduction <add>, %79, %cst_31 [1] : vector<16x16x128xf32> to vector<16x128xf32>
    %cst_32 = arith.constant dense<0.000000e+00> : vector<16xf32>
    %81 = vector.multi_reduction <add>, %80, %cst_32 [1] : vector<16x128xf32> to vector<16xf32>
    %82 = vector.shape_cast %81 : vector<16xf32> to vector<16x1xf32>
    %c0_33 = arith.constant 0 : index
    %c0_34 = arith.constant 0 : index
    %83 = vector.load %arg9[%c0_33, %c0_34] : memref<1x1xf32, #tpu.memory_space<vmem>>, vector<1x1xf32>
    %84 = vector.broadcast %83 : vector<1x1xf32> to vector<16x1xf32>
    %85 = arith.addf %82, %84 : vector<16x1xf32>
    %86 = vector.extract_strided_slice %72 {offsets = [1, 0, 0], sizes = [1, 16, 128], strides = [1, 1, 1]} : vector<2x16x128xf32> to vector<1x16x128xf32>
    %87 = vector.shape_cast %86 : vector<1x16x128xf32> to vector<16x128xf32>
    %88 = vector.shape_cast %87 : vector<16x128xf32> to vector<1x16x128xf32>
    %89 = vector.broadcast %88 : vector<1x16x128xf32> to vector<16x16x128xf32>
    %90 = arith.mulf %74, %89 : vector<16x16x128xf32>
    %cst_35 = arith.constant dense<0.000000e+00> : vector<16x128xf32>
    %91 = vector.multi_reduction <add>, %90, %cst_35 [1] : vector<16x16x128xf32> to vector<16x128xf32>
    %cst_36 = arith.constant dense<0.000000e+00> : vector<16xf32>
    %92 = vector.multi_reduction <add>, %91, %cst_36 [1] : vector<16x128xf32> to vector<16xf32>
    %93 = vector.shape_cast %92 : vector<16xf32> to vector<16x1xf32>
    %c0_37 = arith.constant 0 : index
    %c0_38 = arith.constant 0 : index
    %94 = vector.load %arg9[%c0_37, %c0_38] : memref<1x1xf32, #tpu.memory_space<vmem>>, vector<1x1xf32>
    %95 = vector.broadcast %94 : vector<1x1xf32> to vector<16x1xf32>
    %96 = arith.addf %93, %95 : vector<16x1xf32>
    %97 = vector.shape_cast %85 : vector<16x1xf32> to vector<1x16x1xf32>
    %98 = vector.shape_cast %96 : vector<16x1xf32> to vector<1x16x1xf32>
    %99 = tpu.concatenate %97, %98 in 0 : vector<1x16x1xf32>, vector<1x16x1xf32> -> vector<2x16x1xf32>
    %100 = arith.negf %99 : vector<2x16x1xf32>
    %101 = math.exp %100 : vector<2x16x1xf32>
    %cst_39 = arith.constant 1.000000e+00 : f32
    %102 = vector.broadcast %cst_39 : f32 to vector<2x16x1xf32>
    %103 = arith.addf %102, %101 : vector<2x16x1xf32>
    %104 = arith.divf %102, %103 : vector<2x16x1xf32>
    %105 = vector.broadcast %104 : vector<2x16x1xf32> to vector<2x16x128xf32>
    %106 = arith.mulf %105, %39 : vector<2x16x128xf32>
    %cst_40 = arith.constant dense<0.000000e+00> : vector<2x128xf32>
    %107 = vector.multi_reduction <add>, %106, %cst_40 [1] : vector<2x16x128xf32> to vector<2x128xf32>
    %cst_41 = arith.constant 6.250000e-02 : f32
    %108 = vector.broadcast %cst_41 : f32 to vector<2x128xf32>
    %109 = arith.mulf %107, %108 : vector<2x128xf32>
    %110 = arith.truncf %109 : vector<2x128xf32> to vector<2x128xbf16>
    %c0_42 = arith.constant 0 : index
    %c0_43 = arith.constant 0 : index
    %111 = vector.load %arg10[%c0_42, %c0_43] : memref<128x128xbf16, #tpu.memory_space<vmem>>, vector<128x128xbf16>
    %cst_44 = arith.constant dense<0.000000e+00> : vector<2x128xf32>
    %112 = tpu.matmul %110, %111, %cst_44 {dimension_numbers = #tpu.dot_dimension_numbers<[1], [0], [0], [1], [0, 0, 1, 1], [], []>} : vector<2x128xbf16>, vector<128x128xbf16>, vector<2x128xf32> -> vector<2x128xf32>
    %c0_45 = arith.constant 0 : index
    %c0_46 = arith.constant 0 : index
    %113 = vector.load %arg11[%c0_45, %c0_46] : memref<1x128xf32, #tpu.memory_space<vmem>>, vector<1x128xf32>
    %114 = vector.broadcast %113 : vector<1x128xf32> to vector<2x128xf32>
    %115 = arith.addf %112, %114 : vector<2x128xf32>
    %c0_47 = arith.constant 0 : index
    %c0_48 = arith.constant 0 : index
    %116 = vector.load %arg12[%c0_47, %c0_48] : memref<2x128xf32, #tpu.memory_space<vmem>>, vector<2x128xf32>
    tpu.vector_store %arg12[%c0_47, %c0_48], %115 {strides = array<i32>} : memref<2x128xf32, #tpu.memory_space<vmem>>, vector<2x128xf32>,
    return
  }
  func.func @transform_0(%arg0: i32) -> (i32, i32, i32) {
    %c0_i32 = arith.constant 0 : i32
    %c0_i32_0 = arith.constant 0 : i32
    %c0_i32_1 = arith.constant 0 : i32
    %c0_i32_2 = arith.constant 0 : i32
    return %c0_i32, %c0_i32_0, %c0_i32_1 : i32, i32, i32
  }
  func.func @transform_1(%arg0: i32) -> (i32, i32) {
    %c0_i32 = arith.constant 0 : i32
    %c0_i32_0 = arith.constant 0 : i32
    %c0_i32_1 = arith.constant 0 : i32
    return %c0_i32, %c0_i32_0 : i32, i32
  }
  func.func @transform_2(%arg0: i32) -> (i32, i32) {
    %c0_i32 = arith.constant 0 : i32
    %c0_i32_0 = arith.constant 0 : i32
    %c0_i32_1 = arith.constant 0 : i32
    return %c0_i32, %c0_i32_0 : i32, i32
  }
  func.func @transform_3(%arg0: i32) -> (i32, i32) {
    %c0_i32 = arith.constant 0 : i32
    %c0_i32_0 = arith.constant 0 : i32
    %c0_i32_1 = arith.constant 0 : i32
    return %c0_i32, %c0_i32_0 : i32, i32
  }
  func.func @transform_4(%arg0: i32) -> (i32, i32) {
    %c0_i32 = arith.constant 0 : i32
    %c0_i32_0 = arith.constant 0 : i32
    %c0_i32_1 = arith.constant 0 : i32
    return %c0_i32, %c0_i32_0 : i32, i32
  }
  func.func @transform_5(%arg0: i32) -> (i32, i32) {
    %c0_i32 = arith.constant 0 : i32
    %c0_i32_0 = arith.constant 0 : i32
    %c0_i32_1 = arith.constant 0 : i32
    return %c0_i32, %c0_i32_0 : i32, i32
  }
  func.func @transform_6(%arg0: i32) -> (i32, i32) {
    %c0_i32 = arith.constant 0 : i32
    %c0_i32_0 = arith.constant 0 : i32
    %c0_i32_1 = arith.constant 0 : i32
    return %c0_i32, %c0_i32_0 : i32, i32
  }
  func.func @transform_7(%arg0: i32) -> (i32, i32, i32) {
    %c0_i32 = arith.constant 0 : i32
    %c0_i32_0 = arith.constant 0 : i32
    %c0_i32_1 = arith.constant 0 : i32
    %c0_i32_2 = arith.constant 0 : i32
    return %c0_i32, %c0_i32_0, %c0_i32_1 : i32, i32, i32
  }
  func.func @transform_8(%arg0: i32) -> (i32, i32) {
    %c0_i32 = arith.constant 0 : i32
    %c0_i32_0 = arith.constant 0 : i32
    %c0_i32_1 = arith.constant 0 : i32
    return %c0_i32, %c0_i32_0 : i32, i32
  }
  func.func @transform_9(%arg0: i32) -> (i32, i32) {
    %c0_i32 = arith.constant 0 : i32
    %c0_i32_0 = arith.constant 0 : i32
    %c0_i32_1 = arith.constant 0 : i32
    return %c0_i32, %c0_i32_0 : i32, i32
  }
  func.func @transform_10(%arg0: i32) -> (i32, i32) {
    %c0_i32 = arith.constant 0 : i32
    %c0_i32_0 = arith.constant 0 : i32
    %c0_i32_1 = arith.constant 0 : i32
    return %c0_i32, %c0_i32_0 : i32, i32
  }
  func.func @transform_11(%arg0: i32) -> (i32, i32) {
    %c0_i32 = arith.constant 0 : i32
    %c0_i32_0 = arith.constant 0 : i32
    %c0_i32_1 = arith.constant 0 : i32
    return %c0_i32, %c0_i32_0 : i32, i32
  }
}

</mosaic_0001>

<bundles_post_ra>
// kernel: face_recognition_forward.6
= control target key start
LH: loop header
LB: loop body
LE: loop exit
PB: predicated region body
PF: predicated region fallthrough
CT: control target
= control target key end

     0   :  { %s2197_s12 = smov 0   ;;  %s2686_s0 = inlined_call_operand.vmem [shape: bf16[2,10,10,64], index: 0, kind: input, shape index: {}]   ;;  %s2687_s1 = inlined_call_operand.vmem [shape: bf16[3,3,64,128], index: 1, kind: input, shape index: {}]   ;;  %s2688_s2 = inlined_call_operand.vmem [shape: f32[1,128], index: 2, kind: input, shape index: {}]   ;;  %s2689_s3 = inlined_call_operand.vmem [shape: f32[2,4,4,128], index: 3, kind: output, shape index: {}]  }
   0x1 LB: > { %s1708_s13 = sadd.s32 4294967295, %s2175_s12   ;;  %p1712_p0 = scmp.ge.s32.totalorder %s2175_s12, 1  ;;  %s2175_s12 = sphi %s2197_s12, %s13_s12  }
   0x2   : > { %p137_p1 = scmp.lt.s32.totalorder %s2175_s12, 3 }
   0x4   : > { %p138_p2 = pnand %p1712_p0, %p137_p1 }
   0x5   : > { %p161_p3 = scmp.lt.s32.totalorder (!%p138_p2), %s1708_s13, 1 }
   0x6   : > { %141 = sbr.rel (%p138_p2) target bundleno = 331 (0x14b), region = 32 }
   0xb   : > { %v2110_v0 = vld [vmem:[%s2687_s1 + $0x38] sm:$0xff]  ;;  %v2109_v1 = vld [vmem:[%s2687_s1 + $0x30] sm:$0xff]  ;;  %s2695_s13 = smov (!%p161_p3, %s1708_s13), 1  ;;  %v2108_v2 = vld [vmem:[%s2687_s1 + $0x28] sm:$0xff]  ;;  %vm196_vm0 = vsmask.f32 3328 }
   0xc   : > { %2147 = vmatpush.bf16.msra.mxu1 %v2110_v0  ;;  %2148 = vmatpush.bf16.msra.mxu2 %v2110_v0  ;;  %s2159_s18 = smul.u32 80, %s2695_s13  ;;  %vm197_vm1 = vsmask.f32 7440  ;;  %v2107_v6 = vld [vmem:[%s2687_s1 + $0x20] sm:$0xff]  ;;  %v2114_v21 = vld [vmem:[%s2687_s1 + $0x58] sm:$0xff]  ;;  %vm356_vm2 = vcmask 523264  }
   0xd   : > { %2149 = vmatpush.bf16.msra.mxu3 %v2110_v0  ;;  %373 = vmatpush.bf16.msra.mxu0 %v2110_v0  ;;  %v2106_v32 = vld [vmem:[%s2687_s1 + $0x18] sm:$0xff]  ;;  %vm2253_vm3 = vmor %vm196_vm0, %vm197_vm1  ;;  %v2113_v49 = vld [vmem:[%s2687_s1 + $0x50] sm:$0xff]  ;;  %vm507_vm4 = vcmask 1042432   ;;  %vm508_vm5 = vcmask 1046532  }
   0xe   : > { %s2220_s23 = scalar_lea.vmem %s2686_s0, %s2159_s18  ;;  %v2122_v38 = vld [vmem:[%s2687_s1 + $0x78] sm:$0xff]  ;;  %v2105_v50 = vld [vmem:[%s2687_s1 + $0x10] sm:$0xff]  ;;  %vm2336_vm6 = vmor %vm507_vm4, %vm508_vm5  ;;  %s2098_s18 = sshll.u32 %s2695_s13, 4 }
   0xf   : > { %v174_v3 = vld [vmem:[%s2220_s23 + $0x10] sm:$0xf]  ;;  %v175_v4 = vld [vmem:[%s2220_s23 + $0x18] sm:$0xf]  ;;  %v2225_v5 = vld [vmem:[%s2220_s23 + $0x14] sm:$0x1]  ;;  %s2662_s21 = scalar_lea.vmem %s2689_s3, %s2098_s18 }
  0x10   : > { %2150 = vmatpush.bf16.msra.mxu1 %v2109_v1  ;;  %2151 = vmatpush.bf16.msra.mxu2 %v2109_v1  ;;  %v2231_v7 = vld [vmem:[%s2220_s23 + $0x1c] sm:$0x1]  ;;  %v228_v8 = vshrl.u32 %v174_v3, 16  ;;  %v231_v9 = vshll.u32 %v174_v3, 16  ;;  %v237_v10 = vshll.u32 %v2225_v5, 16  ;;  %v242_v11 = vshrl.u32 %v175_v4, 16 }
  0x11   : > { %2152 = vmatpush.bf16.msra.mxu3 %v2109_v1  ;;  %374 = vmatpush.bf16.msra.mxu0 %v2109_v1  ;;  %v245_v12 = vshll.u32 %v175_v4, 16  ;;  %v251_v13 = vshll.u32 %v2231_v7, 16  ;;  %v176_v14 = vld [vmem:[%s2220_s23 + $0x20] sm:$0xf]  ;;  %v177_v15 = vld [vmem:[%s2220_s23 + $0x28] sm:$0xf] }
  0x12   : > { %v230_v16 = vrot.slane %v228_v8, 4  ;;  %v233_v17 = vrot.slane %v231_v9, 5  ;;  %v239_v18 = vrot.slane %v237_v10, 5  ;;  %v244_v19 = vrot.slane %v242_v11, 4  ;;  %v2238_v20 = vld [vmem:[%s2220_s23 + $0x24] sm:$0x1] }
  0x13   : > { %v247_v22 = vrot.slane %v245_v12, 5  ;;  %v253_v23 = vrot.slane %v251_v13, 5  ;;  %v2244_v24 = vld [vmem:[%s2220_s23 + $0x2c] sm:$0x1]  ;;  %v256_v25 = vshrl.u32 %v176_v14, 16  ;;  %v259_v26 = vshll.u32 %v176_v14, 16 }
  0x14   : > { %2153 = vmatpush.bf16.msra.mxu1 %v2108_v2  ;;  %2154 = vmatpush.bf16.msra.mxu2 %v2108_v2  ;;  %v234_v27 = vor.u32 %v233_v17, %v230_v16  ;;  %v265_v28 = vshll.u32 %v2238_v20, 16  ;;  %v270_v29 = vshrl.u32 %v177_v15, 16  ;;  %v273_v30 = vshll.u32 %v177_v15, 16  ;;  %v178_v31 = vld [vmem:[%s2220_s23 + $0x30] sm:$0xf]  ;;  %v2126_v39 = vld [vmem:[%s2687_s1 + $0x98] sm:$0xff] }
  0x15   : > { %2155 = vmatpush.bf16.msra.mxu3 %v2108_v2  ;;  %375 = vmatpush.bf16.msra.mxu0 %v2108_v2  ;;  %v248_v34 = vor.u32 %v247_v22, %v244_v19  ;;  %v258_v35 = vrot.slane %v256_v25, 4  ;;  %v261_v36 = vrot.slane %v259_v26, 5  ;;  %v279_v37 = vshll.u32 %v2244_v24, 16  ;;  %v2265_v44 = vld [vmem:[%s2220_s23 + $0x34] sm:$0x1]  ;;  %v2112_v16 = vld [vmem:[%s2687_s1 + $0x48] sm:$0xff] }
  0x16   : > { %v235_v40 = vrot.slane %v234_v27, 4  ;;  %v267_v41 = vrot.slane %v265_v28, 5  ;;  %v272_v42 = vrot.slane %v270_v29, 4  ;;  %v275_v43 = vrot.slane %v273_v30, 5  ;;  %v179_v53 = vld [vmem:[%s2220_s23 + $0x38] sm:$0xf] }
  0x17   : > { %v249_v45 = vrot.slane %v248_v34, 4  ;;  %v262_v46 = vor.u32 %v261_v36, %v258_v35  ;;  %v281_v47 = vrot.slane %v279_v37, 5  ;;  %v284_v48 = vshrl.u32 %v178_v31, 16  ;;  %v2277_v54 = vld [vmem:[%s2220_s23 + $0x3c] sm:$0x1]  ;;  %v2121_v61 = vld [vmem:[%s2687_s1 + $0x70] sm:$0xff] }
  0x18   : > { %2156 = vmatpush.bf16.msra.mxu1 %v2107_v6  ;;  %2157 = vmatpush.bf16.msra.mxu2 %v2107_v6  ;;  %v240_v51 = vsel %vm2253_vm3, %v235_v40, %v239_v18  ;;  %v276_v52 = vor.u32 %v275_v43, %v272_v42  ;;  %v287_v55 = vshll.u32 %v178_v31, 16  ;;  %v293_v56 = vshll.u32 %v2265_v44, 16  ;;  %v2125_v62 = vld [vmem:[%s2687_s1 + $0x90] sm:$0xff]  ;;  %v172_v3 = vld [vmem:[%s2220_s23] sm:$0xf]  ;;  %v2104_v17 = vld [vmem:[%s2687_s1 + $0x8] sm:$0xff] }
  0x19   : > { %2158 = vmatpush.bf16.msra.mxu3 %v2107_v6  ;;  %376 = vmatpush.bf16.msra.mxu0 %v2107_v6  ;;  %v254_v57 = vsel %vm2253_vm3, %v249_v45, %v253_v23  ;;  %v322_v58 = vunpack.c.l.b16 %v240_v51  ;;  %v263_v59 = vrot.slane %v262_v46, 4  ;;  %v286_v60 = vrot.slane %v284_v48, 4  ;;  %v2293_v10 = vld [vmem:[%s2220_s23 + $0x4] sm:$0x1]  ;;  %v173_v15 = vld [vmem:[%s2220_s23 + $0x8] sm:$0xf] }
  0x1a   : > { %v323_v63 = vunpack.c.l.b16 %v254_v57  ;;  %v277_v0 = vrot.slane %v276_v52, 4  ;;  %v289_v1 = vrot.slane %v287_v55, 5  ;;  %v295_v2 = vrot.slane %v293_v56, 5  ;;  %v2120_v23 = vld [vmem:[%s2687_s1 + $0x68] sm:$0xff]  ;;  %v2111_v30 = vld [vmem:[%s2687_s1 + $0x40] sm:$0xff]  ;;  %v2138_v51 = vld [vmem:[%s2687_s1 + $0xd8] sm:$0xff] }
  0x1b   : > { %v268_v4 = vsel %vm2253_vm3, %v263_v59, %v267_v41  ;;  %v298_v6 = vshrl.u32 %v179_v53, 16  ;;  %v301_v8 = vshll.u32 %v179_v53, 16  ;;  %v307_v9 = vshll.u32 %v2277_v54, 16  ;;  %v2124_v29 = vld [vmem:[%s2687_s1 + $0x88] sm:$0xff]  ;;  %v2103_v37 = vld [vmem:[%s2687_s1] sm:$0xff]  ;;  %v2130_v59 = vld [vmem:[%s2687_s1 + $0xb8] sm:$0xff] }
  0x1c   : > { %603 = vmatpush.bf16.msrb.mxu2 %v2114_v21  ;;  %458 = vmatpush.bf16.msrb.mxu1 %v2106_v32  ;;  %v329_v11 = vpack.c.b16 %v323_v63, %v322_v58  ;;  %v282_v12 = vsel %vm2253_vm3, %v277_v0, %v281_v47  ;;  %v324_v13 = vunpack.c.l.b16 %v268_v4  ;;  %v290_v14 = vor.u32 %v289_v1, %v286_v60  ;;  %v189_v34 = vld [vmem:[%s2220_s23 + $0xc] sm:$0x1]  ;;  %v2123_v43 = vld [vmem:[%s2687_s1 + $0x80] sm:$0xff]  ;;  %v1868_v58 = vld [vmem:[%s2220_s23 + $0x8] sm:$0xf] }
  0x1d   : > { %714 = vmatpush.bf16.msrb.mxu3 %v2122_v38  ;;  %936 = vmatpush.bf16.msrb.mxu0 %v2126_v39  ;;  %v325_v18 = vunpack.c.l.b16 %v282_v12  ;;  %v300_v19 = vrot.slane %v298_v6, 4  ;;  %v303_v21 = vrot.slane %v301_v8, 5  ;;  %v309_v22 = vrot.slane %v307_v9, 5  ;;  %v2119_v38 = vld [vmem:[%s2687_s1 + $0x60] sm:$0xff]  ;;  %v1870_v6 = vld [vmem:[%s2220_s23 + $0x10] sm:$0xf] }
  0x1e   : > { %1741 = vmatmul.msk.bf16.vlgmr.msra.gmra.mxu1 %vm356_vm2, %v329_v11  ;;  %v291_v25 = vrot.slane %v290_v14, 4  ;;  %v200_v26 = vshrl.u32 %v172_v3, 16  ;;  %v203_v27 = vshll.u32 %v172_v3, 16  ;;  %v209_v28 = vshll.u32 %v2293_v10, 16  ;;  %v483_v45 = vld [vmem:[%s2220_s23] sm:$0xe] }
  0x1f   : > { %v330_v31 = vpack.c.b16 %v325_v18, %v324_v13  ;;  %v304_v32 = vor.u32 %v303_v21, %v300_v19  ;;  %v214_v35 = vshrl.u32 %v173_v15, 16  ;;  %v217_v36 = vshll.u32 %v173_v15, 16  ;;  %v2142_v9 = vld [vmem:[%s2687_s1 + $0xf8] sm:$0xff]  ;;  %v2357_v13 = vld [vmem:[%s2220_s23 + $0xc] sm:$0x1] }
  0x20   : > { %604 = vmatpush.bf16.msrb.mxu2 %v2113_v49  ;;  %459 = vmatpush.bf16.msrb.mxu1 %v2105_v50  ;;  %v296_v39 = vsel %vm2253_vm3, %v291_v25, %v295_v2  ;;  %v202_v40 = vrot.slane %v200_v26, 4  ;;  %v205_v41 = vrot.slane %v203_v27, 5  ;;  %v211_v42 = vrot.slane %v209_v28, 5  ;;  %v484_v50 = vld [vmem:[%s2220_s23 + $0x8] sm:$0xe]  ;;  %v2137_v26 = vld [vmem:[%s2687_s1 + $0xd0] sm:$0xff] }
  0x21   : > { %715 = vmatpush.bf16.msrb.mxu3 %v2121_v61  ;;  %937 = vmatpush.bf16.msrb.mxu0 %v2125_v62  ;;  %v305_v46 = vrot.slane %v304_v32, 4  ;;  %v326_v47 = vunpack.c.l.b16 %v296_v39  ;;  %v216_v48 = vrot.slane %v214_v35, 4  ;;  %v219_v49 = vrot.slane %v217_v36, 5  ;;  %v2360_v14 = vld [vmem:[%s2220_s23 + $0x14] sm:$0x1] }
  0x22   : > { %1742 = vmatmul.msk.bf16.vlgmr.msra.gmra.mxu2 %vm356_vm2, %v330_v31  ;;  %v206_v52 = vor.u32 %v205_v41, %v202_v40  ;;  %v223_v53 = vshll.u32 %v189_v34, 16  ;;  %v512_v55 = vrot.slane %v2293_v10, 5  ;;  %v516_v56 = vrot.slane %v189_v34, 5  ;;  %v2099_v18 = vld [vmem:[%s2220_s23 + $0x4] sm:$0xf0]  ;;  %v2146_v31 = vld [vmem:[%s2687_s1 + $0x118] sm:$0xff] }
  0x23   : > { %v310_v60 = vsel %vm2253_vm3, %v305_v46, %v309_v22  ;;  %v220_v61 = vor.u32 %v219_v49, %v216_v48  ;;  %v1780_v62 = vrot.slane %v483_v45, 9  ;;  %v1781_v2 = vrot.slane %v484_v50, 9  ;;  %v485_v39 = vld [vmem:[%s2220_s23 + $0x10] sm:$0xe]  ;;  %v1874_v50 = vld [vmem:[%s2220_s23 + $0x20] sm:$0xf] }
  0x24   : > { %605 = vmatpush.bf16.msrb.mxu2 %v2112_v16  ;;  %460 = vmatpush.bf16.msrb.mxu1 %v2104_v17  ;;  %v327_v63 = vunpack.c.l.b16 %v310_v60  ;;  %v207_v0 = vrot.slane %v206_v52, 4  ;;  %v225_v1 = vrot.slane %v223_v53, 5  ;;  %v764_v8 = vshrl.u32 %v1868_v58, 16  ;;  %v1746_v17 = vld [vmem:[%s2220_s23] sm:$0xf]  ;;  %v2141_v40 = vld [vmem:[%s2687_s1 + $0xf0] sm:$0xff] }
  0x25   : > { %716 = vmatpush.bf16.msrb.mxu3 %v2120_v23  ;;  %938 = vmatpush.bf16.msrb.mxu0 %v2124_v29  ;;  %v221_v3 = vrot.slane %v220_v61, 4  ;;  %v513_v4 = vsel %vm2336_vm6, %v1780_v62, %v512_v55  ;;  %v517_v12 = vsel %vm2336_vm6, %v1781_v2, %v516_v56  ;;  %v767_v23 = vshll.u32 %v1868_v58, 16  ;;  %v2129_v41 = vld [vmem:[%s2687_s1 + $0xb0] sm:$0xff]  ;;  %v486_v52 = vld [vmem:[%s2220_s23 + $0x18] sm:$0xe] }
  0x26   : > { %v331_v10 = vpack.c.b16 %v327_v63, %v326_v47  ;;  %v212_v11 = vsel %vm2253_vm3, %v207_v0, %v211_v42  ;;  %v551_v19 = vunpack.c.l.b16 %v513_v4  ;;  %v766_v22 = vrot.slane %v764_v8, 4  ;;  %v1872_v47 = vld [vmem:[%s2220_s23 + $0x18] sm:$0xf]  ;;  %v2145_v48 = vld [vmem:[%s2687_s1 + $0x110] sm:$0xff]  ;;  %v2402_v8 = vld [vmem:[%s2220_s23 + $0x1c] sm:$0x1] }
  0x27   : > { %v226_v15 = vsel %vm2253_vm3, %v221_v3, %v225_v1  ;;  %v320_v16 = vunpack.c.l.b16 %v212_v11  ;;  %v778_v25 = vshrl.u32 %v1870_v6, 16  ;;  %v552_v27 = vunpack.c.l.b16 %v517_v12  ;;  %v2115_v60 = vld [vmem:[%s2220_s23 + $0xc] sm:$0xf0] }
  0x28   : > { %606 = vmatpush.bf16.msrb.mxu2 %v2111_v30  ;;  %461 = vmatpush.bf16.msrb.mxu1 %v2103_v37  ;;  %v321_v21 = vunpack.c.l.b16 %v226_v15  ;;  %v773_v28 = vshll.u32 %v2357_v13, 16  ;;  %v781_v29 = vshll.u32 %v1870_v6, 16  ;;  %v787_v30 = vshll.u32 %v2360_v14, 16 }
  0x29   : > { %717 = vmatpush.bf16.msrb.mxu3 %v2119_v38  ;;  %939 = vmatpush.bf16.msrb.mxu0 %v2123_v43  ;;  %v1747_v34 = vor.u32 %v2099_v18, %v1746_v17  ;;  %v769_v35 = vrot.slane %v767_v23, 5  ;;  %v780_v36 = vrot.slane %v778_v25, 4  ;;  %v559_v42 = vpack.c.b16 %v552_v27, %v551_v19  ;;  %v1750_v17 = vld [vmem:[%s2220_s23 + $0x10] sm:$0xf] }
  0x2a   : > { %1743 = vmatmul.msk.bf16.vlgmr.msra.gmra.mxu3 %vm356_vm2, %v331_v10  ;;  %v328_v32 = vpack.c.b16 %v321_v21, %v320_v16  ;;  %v783_v37 = vrot.slane %v781_v29, 5  ;;  %v775_v43 = vrot.slane %v773_v28, 5  ;;  %v789_v46 = vrot.slane %v787_v30, 5  ;;  %v2407_v16 = vld [vmem:[%s2220_s23 + $0x24] sm:$0x1] }
  0x2b   : > { %v770_v38 = vor.u32 %v769_v35, %v766_v22  ;;  %v1782_v53 = vrot.slane %v485_v39, 9  ;;  %v520_v55 = vrot.slane %v2225_v5, 5  ;;  %v792_v56 = vshrl.u32 %v1872_v47, 16  ;;  %v2136_v22 = vld [vmem:[%s2687_s1 + $0xc8] sm:$0xff]  ;;  %v1878_v39 = vld [vmem:[%s2220_s23 + $0x30] sm:$0xf] }
  0x2c   : > { %1197 = vmatpush.bf16.msra.mxu2 %v2138_v51  ;;  %1086 = vmatpush.bf16.msra.mxu1 %v2130_v59  ;;  %v784_v45 = vor.u32 %v783_v37, %v780_v36  ;;  %v795_v58 = vshll.u32 %v1872_v47, 16  ;;  %v1834_v59 = vld [vmem:[%s2220_s23 + $0x8] sm:$0xf]  ;;  %v806_v63 = vshrl.u32 %v1874_v50, 16  ;;  %v809_v0 = vshll.u32 %v1874_v50, 16 }
  0x2d   : > { %1419 = vmatpush.bf16.msra.mxu3 %v2142_v9  ;;  %1740 = vmatmul.msk.bf16.vlgmr.msra.gmra.mxu0 %vm356_vm2, %v328_v32  ;;  %v771_v49 = vrot.slane %v770_v38, 4  ;;  %v1783_v5 = vrot.slane %v486_v52, 9  ;;  %v524_v1 = vrot.slane %v2231_v7, 5  ;;  %v1835_v2 = vor.u32 %v2115_v60, %v1834_v59  ;;  %v2100_v7 = vld [vmem:[%s2220_s23 + $0x14] sm:$0xf0]  ;;  %v2128_v32 = vld [vmem:[%s2687_s1 + $0xa8] sm:$0xff] }
  0x2e   : > { %1569 = vmatpush.bf16.msra.mxu0 %v2146_v31  ;;  %1776 = vmatmul.msk.bf16.vlgmr.msrb.gmra.mxu1 %vm356_vm2, %v1747_v34  ;;  %v785_v51 = vrot.slane %v784_v45, 4  ;;  %v521_v6 = vsel %vm2336_vm6, %v1782_v53, %v520_v55  ;;  %v794_v9 = vrot.slane %v792_v56, 4  ;;  %v797_v10 = vrot.slane %v795_v58, 5  ;;  %v1876_v29 = vld [vmem:[%s2220_s23 + $0x28] sm:$0xf] }
  0x2f   : > { %v776_v61 = vsel %vm2253_vm3, %v771_v49, %v775_v43  ;;  %v808_v11 = vrot.slane %v806_v63, 4  ;;  %v811_v12 = vrot.slane %v809_v0, 5  ;;  %v525_v15 = vsel %vm2336_vm6, %v1783_v5, %v524_v1  ;;  %v2140_v31 = vld [vmem:[%s2687_s1 + $0xe8] sm:$0xff]  ;;  %v1838_v45 = vld [vmem:[%s2220_s23 + $0x18] sm:$0xf] }
  0x30   : > { %1198 = vmatpush.bf16.msra.mxu2 %v2137_v26  ;;  %1087 = vmatpush.bf16.msra.mxu1 %v2129_v41  ;;  %v790_v62 = vsel %vm2253_vm3, %v785_v51, %v789_v46  ;;  %v884_v3 = vunpack.c.l.b16 %v776_v61  ;;  %v553_v19 = vunpack.c.l.b16 %v521_v6  ;;  %v801_v21 = vshll.u32 %v2402_v8, 16  ;;  %v2144_v34 = vld [vmem:[%s2687_s1 + $0x108] sm:$0xff]  ;;  %v2116_v46 = vld [vmem:[%s2220_s23 + $0x1c] sm:$0xf0]  ;;  %v2445_v5 = vld [vmem:[%s2220_s23 + $0x34] sm:$0x1] }
  0x31   : > { %1420 = vmatpush.bf16.msra.mxu3 %v2141_v40  ;;  %v885_v4 = vunpack.c.l.b16 %v790_v62  ;;  %v554_v23 = vunpack.c.l.b16 %v525_v15  ;;  %v798_v25 = vor.u32 %v797_v10, %v794_v9  ;;  %v812_v26 = vor.u32 %v811_v12, %v808_v11  ;;  %v487_v40 = vld [vmem:[%s2220_s23 + $0x20] sm:$0xe]  ;;  %v488_v41 = vld [vmem:[%s2220_s23 + $0x28] sm:$0xe]  ;;  %v2442_v62 = vld [vmem:[%s2220_s23 + $0x2c] sm:$0x1] }
  0x32   : > { %1812 = vmatmul.msk.bf16.vlgmr.msrb.gmra.mxu2 %vm356_vm2, %v559_v42  ;;  %1570 = vmatpush.bf16.msra.mxu0 %v2145_v48  ;;  %v815_v27 = vshll.u32 %v2407_v16, 16  ;;  %v1751_v28 = vor.u32 %v2100_v7, %v1750_v17  ;;  %v803_v30 = vrot.slane %v801_v21, 5  ;;  %v820_v42 = vshrl.u32 %v1876_v29, 16  ;;  %v2135_v11 = vld [vmem:[%s2687_s1 + $0xc0] sm:$0xff]  ;;  %v1880_v21 = vld [vmem:[%s2220_s23 + $0x38] sm:$0xf] }
  0x33   : > { %v892_v18 = vpack.c.b16 %v885_v4, %v884_v3  ;;  %v560_v35 = vpack.c.b16 %v554_v23, %v553_v19  ;;  %v799_v36 = vrot.slane %v798_v25, 4  ;;  %v813_v37 = vrot.slane %v812_v26, 4  ;;  %v489_v19 = vld [vmem:[%s2220_s23 + $0x30] sm:$0xe]  ;;  %v2139_v25 = vld [vmem:[%s2687_s1 + $0xe0] sm:$0xff] }
  0x34   : > { %1199 = vmatpush.bf16.msra.mxu2 %v2136_v22  ;;  %v817_v38 = vrot.slane %v815_v27, 5  ;;  %v823_v43 = vshll.u32 %v1876_v29, 16  ;;  %1088 = vmatpush.bf16.msra.mxu1 %v2128_v32  ;;  %v834_v47 = vshrl.u32 %v1878_v39, 16  ;;  %v837_v48 = vshll.u32 %v1878_v39, 16  ;;  %v2127_v26 = vld [vmem:[%s2687_s1 + $0xa0] sm:$0xff] }
  0x35   : > { %1421 = vmatpush.bf16.msra.mxu3 %v2140_v31  ;;  %v804_v49 = vsel %vm2253_vm3, %v799_v36, %v803_v30  ;;  %v1784_v51 = vrot.slane %v487_v40, 9  ;;  %v528_v52 = vrot.slane %v2238_v20, 5  ;;  %v1785_v53 = vrot.slane %v488_v41, 9  ;;  %v2143_v27 = vld [vmem:[%s2687_s1 + $0x100] sm:$0xff]  ;;  %v490_v30 = vld [vmem:[%s2220_s23 + $0x38] sm:$0xe] }
  0x36   : > { %1571 = vmatpush.bf16.msra.mxu0 %v2144_v34  ;;  %v818_v50 = vsel %vm2253_vm3, %v813_v37, %v817_v38  ;;  %v532_v55 = vrot.slane %v2244_v24, 5  ;;  %v1839_v56 = vor.u32 %v2116_v46, %v1838_v45  ;;  %v822_v58 = vrot.slane %v820_v42, 4  ;;  %v2101_v24 = vld [vmem:[%s2220_s23 + $0x24] sm:$0xf0]  ;;  %v1882_v29 = vld [vmem:[%s2220_s23 + $0x40] sm:$0xf] }
  0x37   : > { %v825_v59 = vrot.slane %v823_v43, 5  ;;  %v886_v60 = vunpack.c.l.b16 %v804_v49  ;;  %v887_v61 = vunpack.c.l.b16 %v818_v50  ;;  %v836_v63 = vrot.slane %v834_v47, 4  ;;  %v1842_v31 = vld [vmem:[%s2220_s23 + $0x28] sm:$0xf]  ;;  %v2117_v37 = vld [vmem:[%s2220_s23 + $0x2c] sm:$0xf0] }
  0x38   : > { %v839_v0 = vrot.slane %v837_v48, 5  ;;  %v529_v1 = vsel %vm2336_vm6, %v1784_v51, %v528_v52  ;;  %v533_v20 = vsel %vm2336_vm6, %v1785_v53, %v532_v55  ;;  %v829_v4 = vshll.u32 %v2442_v62, 16  ;;  %1200 = vmatpush.bf16.msra.mxu2 %v2135_v11  ;;  %1089 = vmatpush.bf16.msra.mxu1 %v2127_v26  ;;  %v2486_v48 = vld [vmem:[%s2220_s23 + $0x3c] sm:$0x1]  ;;  %v2489_v49 = vld [vmem:[%s2220_s23 + $0x44] sm:$0x1] }
  0x39   : > { %v826_v3 = vor.u32 %v825_v59, %v822_v58  ;;  %v893_v6 = vpack.c.b16 %v887_v61, %v886_v60  ;;  %v843_v10 = vshll.u32 %v2445_v5, 16  ;;  %v555_v12 = vunpack.c.l.b16 %v529_v1  ;;  %1422 = vmatpush.bf16.msra.mxu3 %v2139_v25  ;;  %v1912_v11 = vld [vmem:[%s2220_s23 + $0x8] sm:$0xe]  ;;  %v1846_v25 = vld [vmem:[%s2220_s23 + $0x38] sm:$0xf] }
  0x3a   : > { %1864 = vmatmul.msk.bf16.vlgmr.msrb.gmra.mxu3 %vm356_vm2, %v1835_v2  ;;  %v1754_v2 = vld [vmem:[%s2220_s23 + $0x20] sm:$0xf]  ;;  %v840_v9 = vor.u32 %v839_v0, %v836_v63  ;;  %v556_v15 = vunpack.c.l.b16 %v533_v20  ;;  %v1786_v34 = vrot.slane %v489_v19, 9  ;;  %v848_v36 = vshrl.u32 %v1880_v21, 16  ;;  %1572 = vmatpush.bf16.msra.mxu0 %v2143_v27 }
  0x3b   : > { %v1755_v17 = vor.u32 %v2101_v24, %v1754_v2  ;;  %v827_v7 = vrot.slane %v826_v3, 4  ;;  %v845_v23 = vrot.slane %v843_v10, 5  ;;  %v851_v39 = vshll.u32 %v1880_v21, 16  ;;  %v2008_v2 = vld [vmem:[%s2220_s23 + $0x10] sm:$0xf] }
  0x3c   : > { %v841_v22 = vrot.slane %v840_v9, 4  ;;  %v862_v40 = vshrl.u32 %v1882_v29, 16  ;;  %v865_v41 = vshll.u32 %v1882_v29, 16  ;;  %v1787_v42 = vrot.slane %v490_v30, 9  ;;  %v2010_v24 = vld [vmem:[%s2220_s23 + $0x18] sm:$0xf] }
  0x3d   : > { %1908 = vmatmul.msk.bf16.vlgmr.msrb.gmra.mxu0 %vm356_vm2, %v892_v18  ;;  %v831_v18 = vrot.slane %v829_v4, 5  ;;  %v540_v43 = vrot.slane %v2277_v54, 5  ;;  %v850_v50 = vrot.slane %v848_v36, 4  ;;  %v853_v51 = vrot.slane %v851_v39, 5  ;;  %v1758_v54 = vld [vmem:[%s2220_s23 + $0x30] sm:$0xf] }
  0x3e   : > { %1777 = vmatmul.msk.bf16.gmra.mxu1 %vm356_vm2, %v1751_v28  ;;  %v561_v28 = vpack.c.b16 %v556_v15, %v555_v12  ;;  %v846_v38 = vsel %vm2253_vm3, %v841_v22, %v845_v23  ;;  %v864_v52 = vrot.slane %v862_v40, 4  ;;  %v867_v53 = vrot.slane %v865_v41, 5  ;;  %v1913_v12 = vld [vmem:[%s2220_s23 + $0x10] sm:$0xe] }
  0x3f   : > { %v832_v32 = vsel %vm2253_vm3, %v827_v7, %v831_v18  ;;  %v889_v46 = vunpack.c.l.b16 %v846_v38  ;;  %v541_v55 = vsel %vm2336_vm6, %v1787_v42, %v540_v43  ;;  %v857_v59 = vshll.u32 %v2486_v48, 16 }
  0x40   : > { %v888_v45 = vunpack.c.l.b16 %v832_v32  ;;  %v871_v60 = vshll.u32 %v2489_v49, 16  ;;  %v558_v63 = vunpack.c.l.b16 %v541_v55  ;;  %v854_v0 = vor.u32 %v853_v51, %v850_v50  ;;  %v2131_v50 = vld [vmem:[%s2220_s23 + $0x14] sm:$0xf0] }
  0x41   : > { %v868_v1 = vor.u32 %v867_v53, %v864_v52  ;;  %v859_v3 = vrot.slane %v857_v59, 5  ;;  %v1247_v15 = vshrl.u32 %v2008_v2, 16  ;;  %v1261_v7 = vshrl.u32 %v2010_v24, 16  ;;  %v2053_v51 = vld [vmem:[%s2220_s23 + $0x18] sm:$0xe] }
  0x42   : > { %1813 = vmatmul.msk.bf16.gmra.mxu2 %vm356_vm2, %v560_v35  ;;  %v536_v35 = vrot.slane %v2265_v44, 5  ;;  %v1843_v44 = vor.u32 %v2117_v37, %v1842_v31  ;;  %v894_v61 = vpack.c.b16 %v889_v46, %v888_v45  ;;  %v873_v4 = vrot.slane %v871_v60, 5  ;;  %v2052_v45 = vld [vmem:[%s2220_s23 + $0x10] sm:$0xe] }
  0x43   : > { %v855_v9 = vrot.slane %v854_v0, 4  ;;  %v869_v10 = vrot.slane %v868_v1, 4  ;;  %v1264_v18 = vshll.u32 %v2010_v24, 16  ;;  %v995_v19 = vrot.slane %v2357_v13, 5  ;;  %v2009_v13 = vld [vmem:[%s2220_s23 + $0x14] sm:$0x1] }
  0x44   : > { %v537_v47 = vsel %vm2336_vm6, %v1786_v34, %v536_v35  ;;  %v999_v21 = vrot.slane %v2360_v14, 5  ;;  %v1920_v22 = vrot.slane %v1912_v11, 9  ;;  %v1921_v23 = vrot.slane %v1913_v12, 9  ;;  %v2011_v14 = vld [vmem:[%s2220_s23 + $0x1c] sm:$0x1] }
  0x45   : > { %v557_v58 = vunpack.c.l.b16 %v537_v47  ;;  %v860_v26 = vsel %vm2253_vm3, %v855_v9, %v859_v3  ;;  %v874_v27 = vsel %vm2253_vm3, %v869_v10, %v873_v4  ;;  %v1249_v29 = vrot.slane %v1247_v15, 4  ;;  %v1974_v47 = vld [vmem:[%s2220_s23 + $0x10] sm:$0xf] }
  0x46   : > { %v1263_v31 = vrot.slane %v1261_v7, 4  ;;  %v1266_v32 = vrot.slane %v1264_v18, 5  ;;  %v996_v34 = vsel %vm2336_vm6, %v1920_v22, %v995_v19  ;;  %v1000_v35 = vsel %vm2336_vm6, %v1921_v23, %v999_v21 }
  0x47   : > { %v890_v37 = vunpack.c.l.b16 %v860_v26  ;;  %v891_v38 = vunpack.c.l.b16 %v874_v27  ;;  %v1256_v40 = vshll.u32 %v2009_v13, 16  ;;  %v1270_v42 = vshll.u32 %v2011_v14, 16 }
  0x48   : > { %v1267_v41 = vor.u32 %v1266_v32, %v1263_v31  ;;  %v1034_v43 = vunpack.c.l.b16 %v996_v34  ;;  %v2060_v59 = vrot.slane %v2052_v45, 9  ;;  %v1478_v60 = vrot.slane %v2009_v13, 5 }
  0x49   : > { %v895_v46 = vpack.c.b16 %v891_v38, %v890_v37  ;;  %v1258_v53 = vrot.slane %v1256_v40, 5  ;;  %v1482_v0 = vrot.slane %v2011_v14, 5  ;;  %v1975_v1 = vor.u32 %v2131_v50, %v1974_v47  ;;  %v1978_v37 = vld [vmem:[%s2220_s23 + $0x20] sm:$0xf]  ;;  %v2018_v50 = vld [vmem:[%s2220_s23 + $0x38] sm:$0xf] }
  0x4a   : > { %1865 = vmatmul.msk.bf16.gmra.mxu3 %vm356_vm2, %v1839_v56  ;;  %v2102_v56 = vld [vmem:[%s2220_s23 + $0x34] sm:$0xf0]  ;;  %v1268_v55 = vrot.slane %v1267_v41, 4  ;;  %v1479_v11 = vsel %vm2336_vm6, %v2060_v59, %v1478_v60  ;;  %v1003_v15 = vrot.slane %v2402_v8, 5  ;;  %v1007_v7 = vrot.slane %v2407_v16, 5 }
  0x4b   : > { %v1759_v20 = vor.u32 %v2102_v56, %v1758_v54  ;;  %v1272_v54 = vrot.slane %v1270_v42, 5  ;;  %v2012_v56 = vld [vmem:[%s2220_s23 + $0x20] sm:$0xf]  ;;  %v2016_v42 = vld [vmem:[%s2220_s23 + $0x30] sm:$0xf] }
  0x4c   : > { %v1275_v24 = vshrl.u32 %v2012_v56, 16  ;;  %v1278_v3 = vshll.u32 %v2012_v56, 16  ;;  %v2054_v41 = vld [vmem:[%s2220_s23 + $0x20] sm:$0xe]  ;;  %v1916_v59 = vld [vmem:[%s2220_s23 + $0x28] sm:$0xe] }
  0x4d   : > { %1909 = vmatmul.msk.bf16.gmra.mxu0 %vm356_vm2, %v893_v6  ;;  %v562_v6 = vpack.c.b16 %v558_v63, %v557_v58  ;;  %v2061_v63 = vrot.slane %v2053_v51, 9  ;;  %v2062_v51 = vrot.slane %v2054_v41, 9  ;;  %v1917_v60 = vld [vmem:[%s2220_s23 + $0x30] sm:$0xe] }
  0x4e   : > { %1778 = vmatmul.msk.bf16.gmra.mxu1 %vm356_vm2, %v1755_v17  ;;  %v1250_v17 = vshll.u32 %v2008_v2, 16  ;;  %v1915_v2 = vld [vmem:[%s2220_s23 + $0x20] sm:$0xe]  ;;  %v1277_v21 = vrot.slane %v1275_v24, 4  ;;  %v1280_v22 = vrot.slane %v1278_v3, 5  ;;  %v1924_v24 = vrot.slane %v1916_v59, 9 }
  0x4f   : > { %v1483_v23 = vsel %vm2336_vm6, %v2061_v63, %v1482_v0  ;;  %v1317_v0 = vshrl.u32 %v2018_v50, 16  ;;  %v1925_v3 = vrot.slane %v1917_v60, 9  ;;  %v1023_v59 = vrot.slane %v2489_v49, 5 }
  0x50   : > { %v1252_v30 = vrot.slane %v1250_v17, 5  ;;  %v1923_v17 = vrot.slane %v1915_v2, 9  ;;  %v1518_v31 = vunpack.c.l.b16 %v1483_v23  ;;  %v1281_v32 = vor.u32 %v1280_v22, %v1277_v21 }
  0x51   : > { %v1015_v2 = vrot.slane %v2445_v5, 5 }
  0x52   : > { %1814 = vmatmul.msk.bf16.gmra.mxu2 %vm356_vm2, %v561_v28  ;;  %v2118_v28 = vld [vmem:[%s2220_s23 + $0x3c] sm:$0xf0]  ;;  %v1253_v39 = vor.u32 %v1252_v30, %v1249_v29  ;;  %v1517_v29 = vunpack.c.l.b16 %v1479_v11  ;;  %v1008_v16 = vsel %vm2336_vm6, %v1923_v17, %v1007_v7  ;;  %v2017_v11 = vld [vmem:[%s2220_s23 + $0x34] sm:$0x1]  ;;  %v1319_v17 = vrot.slane %v1317_v0, 4 }
  0x53   : > { %v1847_v36 = vor.u32 %v2118_v28, %v1846_v25  ;;  %v2013_v25 = vld [vmem:[%s2220_s23 + $0x24] sm:$0x1]  ;;  %v2015_v28 = vld [vmem:[%s2220_s23 + $0x2c] sm:$0x1]  ;;  %v1312_v21 = vshll.u32 %v2017_v11, 16  ;;  %v1494_v41 = vrot.slane %v2017_v11, 5 }
  0x54   : > { %v1254_v52 = vrot.slane %v1253_v39, 4  ;;  %v1284_v13 = vshll.u32 %v2013_v25, 16  ;;  %v1298_v34 = vshll.u32 %v2015_v28, 16  ;;  %v1525_v38 = vpack.c.b16 %v1518_v31, %v1517_v29  ;;  %v1982_v31 = vld [vmem:[%s2220_s23 + $0x30] sm:$0xf] }
  0x55   : > { %v1282_v39 = vrot.slane %v1281_v32, 4  ;;  %v1486_v56 = vrot.slane %v2013_v25, 5  ;;  %v1490_v63 = vrot.slane %v2015_v28, 5  ;;  %v2056_v32 = vld [vmem:[%s2220_s23 + $0x30] sm:$0xe] }
  0x56   : > { %v1259_v4 = vsel %vm2253_vm3, %v1254_v52, %v1258_v53  ;;  %v1286_v40 = vrot.slane %v1284_v13, 5  ;;  %v1300_v45 = vrot.slane %v1298_v34, 5  ;;  %v1303_v52 = vshrl.u32 %v2016_v42, 16  ;;  %v2057_v13 = vld [vmem:[%s2220_s23 + $0x38] sm:$0xe] }
  0x57   : > { %v1367_v18 = vunpack.c.l.b16 %v1259_v4  ;;  %v1306_v53 = vshll.u32 %v2016_v42, 16  ;;  %v2065_v42 = vrot.slane %v2057_v13, 9 }
  0x58   : > { %v1305_v4 = vrot.slane %v1303_v52, 4 }
  0x5a   : > { %1866 = vmatmul.msk.bf16.gmra.mxu3 %vm356_vm2, %v1843_v44  ;;  %v1035_v44 = vunpack.c.l.b16 %v1000_v35 }
  0x5c   : > { %v1042_v58 = vpack.c.b16 %v1035_v44, %v1034_v43  ;;  %v2132_v43 = vld [vmem:[%s2220_s23 + $0x24] sm:$0xf0] }
  0x5d   : > { %1910 = vmatmul.msk.bf16.gmra.mxu0 %vm356_vm2, %v894_v61  ;;  %v2014_v61 = vld [vmem:[%s2220_s23 + $0x28] sm:$0xf] }
  0x5e   : > { %1779 = vmatmul.msk.bf16.gmra.mxu1 %vm356_vm2, %v1759_v20  ;;  %v1914_v20 = vld [vmem:[%s2220_s23 + $0x18] sm:$0xe]  ;;  %v1289_v9 = vshrl.u32 %v2014_v61, 16  ;;  %v1292_v10 = vshll.u32 %v2014_v61, 16 }
  0x5f   : > { %v1922_v12 = vrot.slane %v1914_v20, 9  ;;  %v1011_v20 = vrot.slane %v2442_v62, 5  ;;  %v2019_v62 = vld [vmem:[%s2220_s23 + $0x3c] sm:$0x1] }
  0x60   : > { %v1291_v26 = vrot.slane %v1289_v9, 4  ;;  %v1294_v27 = vrot.slane %v1292_v10, 5 }
  0x61   : > { %v1004_v8 = vsel %vm2336_vm6, %v1922_v12, %v1003_v15  ;;  %v1487_v12 = vsel %vm2336_vm6, %v2062_v51, %v1486_v56  ;;  %v1012_v5 = vsel %vm2336_vm6, %v1924_v24, %v1011_v20  ;;  %v1498_v51 = vrot.slane %v2019_v62, 5  ;;  %v2021_v20 = vld [vmem:[%s2220_s23 + $0x44] sm:$0x1] }
  0x62   : > { %1815 = vmatmul.msk.bf16.gmra.mxu2 %vm356_vm2, %v562_v6  ;;  %v1273_v6 = vsel %vm2253_vm3, %v1268_v55, %v1272_v54  ;;  %v1295_v14 = vor.u32 %v1294_v27, %v1291_v26  ;;  %v1036_v35 = vunpack.c.l.b16 %v1004_v8  ;;  %v1979_v55 = vor.u32 %v2132_v43, %v1978_v37 }
  0x63   : > { %v1368_v19 = vunpack.c.l.b16 %v1273_v6  ;;  %v1287_v54 = vsel %vm2253_vm3, %v1282_v39, %v1286_v40  ;;  %v1308_v6 = vrot.slane %v1306_v53, 5  ;;  %v1519_v23 = vunpack.c.l.b16 %v1487_v12 }
  0x64   : > { %v1296_v44 = vrot.slane %v1295_v14, 4  ;;  %v1369_v9 = vunpack.c.l.b16 %v1287_v54  ;;  %v1326_v27 = vshll.u32 %v2019_v62, 16  ;;  %v1038_v28 = vunpack.c.l.b16 %v1012_v5  ;;  %v2133_v14 = vld [vmem:[%s2220_s23 + $0x34] sm:$0xf0] }
  0x65   : > { %v1375_v30 = vpack.c.b16 %v1368_v19, %v1367_v18  ;;  %v1016_v18 = vsel %vm2336_vm6, %v1925_v3, %v1015_v2  ;;  %v1309_v19 = vor.u32 %v1308_v6, %v1305_v4  ;;  %v2064_v40 = vrot.slane %v2056_v32, 9  ;;  %v2023_v3 = vld [vmem:[%s2220_s23 + $0x4c] sm:$0x1] }
  0x66   : > { %v1301_v61 = vsel %vm2253_vm3, %v1296_v44, %v1300_v45  ;;  %v1039_v29 = vunpack.c.l.b16 %v1016_v18  ;;  %v1983_v43 = vor.u32 %v2133_v14, %v1982_v31  ;;  %v1918_v44 = vld [vmem:[%s2220_s23 + $0x38] sm:$0xe]  ;;  %v1919_v45 = vld [vmem:[%s2220_s23 + $0x40] sm:$0xe]  ;;  %v1019_v56 = vrot.slane %v2486_v48, 5 }
  0x67   : > { %v1370_v10 = vunpack.c.l.b16 %v1301_v61  ;;  %v1310_v8 = vrot.slane %v1309_v19, 4  ;;  %v1926_v54 = vrot.slane %v1918_v44, 9  ;;  %v1495_v61 = vsel %vm2336_vm6, %v2064_v40, %v1494_v41 }
  0x68   : > { %v1044_v37 = vpack.c.b16 %v1039_v29, %v1038_v28  ;;  %v1521_v4 = vunpack.c.l.b16 %v1495_v61  ;;  %v1340_v11 = vshll.u32 %v2021_v20, 16  ;;  %v1506_v13 = vrot.slane %v2023_v3, 5 }
  0x69   : > { %v1376_v22 = vpack.c.b16 %v1370_v10, %v1369_v9  ;;  %v1020_v48 = vsel %vm2336_vm6, %v1926_v54, %v1019_v56 }
  0x6a   : > { %1867 = vmatmul.msk.bf16.gmra.mxu3 %vm356_vm2, %v1847_v36  ;;  %v1037_v36 = vunpack.c.l.b16 %v1008_v16  ;;  %v1314_v16 = vrot.slane %v1312_v21, 5  ;;  %v1342_v18 = vrot.slane %v1340_v11, 5 }
  0x6c   : > { %v1043_v47 = vpack.c.b16 %v1037_v36, %v1036_v35  ;;  %v1328_v35 = vrot.slane %v1326_v27, 5  ;;  %v2020_v36 = vld [vmem:[%s2220_s23 + $0x40] sm:$0xf]  ;;  %v1315_v39 = vsel %vm2253_vm3, %v1310_v8, %v1314_v16  ;;  %v2059_v27 = vld [vmem:[%s2220_s23 + $0x48] sm:$0xe]  ;;  %v1502_v16 = vrot.slane %v2021_v20, 5 }
  0x6d   : > { %1911 = vmatmul.msk.bf16.gmra.mxu0 %vm356_vm2, %v895_v46  ;;  %v2055_v46 = vld [vmem:[%s2220_s23 + $0x28] sm:$0xe]  ;;  %v2067_v32 = vrot.slane %v2059_v27, 9 }
  0x6e   : > { %1952 = vmatmul.msk.bf16.vlgmr.msra.gmra.mxu1 %vm356_vm2, %v1042_v58  ;;  %v2063_v58 = vrot.slane %v2055_v46, 9  ;;  %v1331_v46 = vshrl.u32 %v2020_v36, 16 }
  0x70   : > { %v1491_v15 = vsel %vm2336_vm6, %v2063_v58, %v1490_v63  ;;  %v1927_v58 = vrot.slane %v1919_v45, 9  ;;  %v1333_v63 = vrot.slane %v1331_v46, 4 }
  0x71   : > { %v1520_v25 = vunpack.c.l.b16 %v1491_v15  ;;  %v1354_v15 = vshll.u32 %v2023_v3, 16 }
  0x72   : > { %2004 = vmatmul.msk.bf16.vlgmr.msra.gmra.mxu2 %vm356_vm2, %v1975_v1  ;;  %v1320_v1 = vshll.u32 %v2018_v50, 16  ;;  %v1024_v49 = vsel %vm2336_vm6, %v1927_v58, %v1023_v59 }
  0x73   : > { %v1356_v21 = vrot.slane %v1354_v15, 5 }
  0x74   : > { %v1322_v7 = vrot.slane %v1320_v1, 5  ;;  %v1499_v1 = vsel %vm2336_vm6, %v2065_v42, %v1498_v51 }
  0x75   : > { %v1522_v9 = vunpack.c.l.b16 %v1499_v1 }
  0x76   : > { %v1323_v26 = vor.u32 %v1322_v7, %v1319_v17  ;;  %v1040_v17 = vunpack.c.l.b16 %v1020_v48  ;;  %v1041_v7 = vunpack.c.l.b16 %v1024_v49 }
  0x77   : > { %v1527_v62 = vpack.c.b16 %v1522_v9, %v1521_v4 }
  0x78   : > { %v1324_v34 = vrot.slane %v1323_v26, 4  ;;  %v2134_v26 = vld [vmem:[%s2220_s23 + $0x44] sm:$0xf0] }
  0x7a   : > { %2048 = vmatmul.msk.bf16.vlgmr.msra.gmra.mxu3 %vm356_vm2, %v1375_v30  ;;  %v1526_v30 = vpack.c.b16 %v1520_v25, %v1519_v23  ;;  %v1329_v50 = vsel %vm2253_vm3, %v1324_v34, %v1328_v35  ;;  %v1045_v23 = vpack.c.b16 %v1041_v7, %v1040_v17  ;;  %v1986_v25 = vld [vmem:[%s2220_s23 + $0x40] sm:$0xf] }
  0x7b   : > { %v1372_v60 = vunpack.c.l.b16 %v1329_v50 }
  0x7d   : > { %2092 = vmatmul.msk.bf16.vlgmr.msra.gmra.mxu0 %vm356_vm2, %v1525_v38  ;;  %v2022_v38 = vld [vmem:[%s2220_s23 + $0x48] sm:$0xf] }
  0x7e   : > { %1953 = vmatmul.msk.bf16.gmra.mxu1 %vm356_vm2, %v1043_v47  ;;  %v1334_v47 = vshll.u32 %v2020_v36, 16  ;;  %v1345_v52 = vshrl.u32 %v2022_v38, 16  ;;  %v1348_v53 = vshll.u32 %v2022_v38, 16  ;;  %v1507_v36 = vsel %vm2336_vm6, %v2067_v32, %v1506_v13 }
  0x7f   : > { %v1524_v33 = vunpack.c.l.b16 %v1507_v36 }
  0x80   : > { %v1336_v0 = vrot.slane %v1334_v47, 5  ;;  %v1347_v2 = vrot.slane %v1345_v52, 4  ;;  %v1350_v24 = vrot.slane %v1348_v53, 5 }
  0x82   : > { %2005 = vmatmul.msk.bf16.gmra.mxu2 %vm356_vm2, %v1979_v55  ;;  %v1371_v55 = vunpack.c.l.b16 %v1315_v39  ;;  %v1337_v10 = vor.u32 %v1336_v0, %v1333_v63  ;;  %v1351_v12 = vor.u32 %v1350_v24, %v1347_v2 }
  0x84   : > { %v1377_v6 = vpack.c.b16 %v1372_v60, %v1371_v55  ;;  %v1338_v5 = vrot.slane %v1337_v10, 4  ;;  %v1352_v19 = vrot.slane %v1351_v12, 4 }
  0x86   : > { %v1343_v29 = vsel %vm2253_vm3, %v1338_v5, %v1342_v18  ;;  %v1357_v31 = vsel %vm2253_vm3, %v1352_v19, %v1356_v21 }
  0x87   : > { %v1373_v14 = vunpack.c.l.b16 %v1343_v29  ;;  %v1374_v34 = vunpack.c.l.b16 %v1357_v31 }
  0x89   : > { %v1378_v38 = vpack.c.b16 %v1374_v34, %v1373_v14 }
  0x8a   : > { %2049 = vmatmul.msk.bf16.gmra.mxu3 %vm356_vm2, %v1376_v22  ;;  %v2058_v22 = vld [vmem:[%s2220_s23 + $0x40] sm:$0xe] }
  0x8b   : > { %v2066_v8 = vrot.slane %v2058_v22, 9 }
  0x8d   : > { %2093 = vmatmul.msk.bf16.gmra.mxu0 %vm356_vm2, %v1526_v30  ;;  %v1987_v30 = vor.u32 %v2134_v26, %v1986_v25  ;;  %v1503_v35 = vsel %vm2336_vm6, %v2066_v8, %v1502_v16 }
  0x8e   : > { %1954 = vmatmul.msk.bf16.gmra.mxu1 %vm356_vm2, %v1044_v37  ;;  %v1523_v39 = vunpack.c.l.b16 %v1503_v35 }
  0x90   : > { %v1528_v41 = vpack.c.b16 %v1524_v33, %v1523_v39 }
  0x92   : > { %2006 = vmatmul.msk.bf16.gmra.mxu2 %vm356_vm2, %v1983_v43 }
  0x9a   : > { %2050 = vmatmul.msk.bf16.gmra.mxu3 %vm356_vm2, %v1377_v6 }
  0x9b   : > { %v383_v28 = vpop.f32.mrf.mxu1 }
  0x9d   : > { %2094 = vmatmul.msk.bf16.gmra.mxu0 %vm356_vm2, %v1527_v62 }
  0x9e   : > { %1955 = vmatmul.msk.bf16.gmra.mxu1 %vm356_vm2, %v1045_v23 }
  0xa2   : > { %2007 = vmatmul.msk.bf16.gmra.mxu2 %vm356_vm2, %v1987_v30 }
  0xa3   : > { %v2619_v37 = vpop.f32.mrf.mxu1 }
  0xa5   : > { %v388_v40 = vpop.f32.mrf.mxu2 }
  0xaa   : > { %2051 = vmatmul.msk.bf16.gmra.mxu3 %vm356_vm2, %v1378_v38  ;;  %v378_v42 = vpop.f32.mrf.mxu0 }
  0xab   : > { %v463_v44 = vpop.f32.mrf.mxu1 }
  0xac   : > { %v464_v46 = vadd.f32 %v463_v44, %v378_v42 }
  0xad   : > { %v393_v43 = vpop.f32.mrf.mxu3  ;;  %2095 = vmatmul.msk.bf16.gmra.mxu0 %vm356_vm2, %v1528_v41  ;;  %v2623_v45 = vpop.f32.mrf.mxu2 }
  0xb2   : > { %v380_v47 = vpop.f32.mrf.mxu0 }
  0xb3   : > { %v465_v50 = vpop.f32.mrf.mxu1 }
  0xb4   : > { %v466_v13 = vadd.f32 %v465_v50, %v380_v47  ;;  %v2651_v50 = vld [vmem:[%s2688_s2] ss:$0 sm:$0xff] }
  0xb5   : > { %v2625_v57 = vpop.f32.mrf.mxu3  ;;  %v608_v51 = vpop.f32.mrf.mxu2 }
  0xb6   : > { %v628_v52 = vadd.f32 %v608_v51, %v464_v46 }
  0xba   : > { %v941_v53 = vpop.f32.mrf.mxu0 }
  0xbb   : > { %v468_v54 = vpop.f32.mrf.mxu1 }
  0xbc   : > { %v469_v59 = vadd.f32 %v468_v54, %v383_v28 }
  0xbd   : > { %v719_v55 = vpop.f32.mrf.mxu3  ;;  %v610_v58 = vpop.f32.mrf.mxu2 }
  0xbe   : > { %v739_v56 = vadd.f32 %v719_v55, %v628_v52  ;;  %v629_v35 = vadd.f32 %v610_v58, %v466_v13 }
  0xc0   : > { %v961_v60 = vadd.f32 %v941_v53, %v739_v56 }
  0xc2   : > { %v943_v61 = vpop.f32.mrf.mxu0 }
  0xc3   : > { %v470_v0 = vpop.f32.mrf.mxu1 }
  0xc4   : > { %v471_v55 = vadd.f32 %v470_v0, %v2619_v37 }
  0xc5   : > { %v721_v63 = vpop.f32.mrf.mxu3  ;;  %v613_v1 = vpop.f32.mrf.mxu2 }
  0xc6   : > { %v630_v20 = vadd.f32 %v613_v1, %v469_v59  ;;  %v740_v38 = vadd.f32 %v721_v63, %v629_v35 }
  0xca   : > { %v946_v2 = vpop.f32.mrf.mxu0 }
  0xcb   : > { %v473_v3 = vpop.f32.mrf.mxu1 }
  0xcc   : > { %v474_v49 = vadd.f32 %v473_v3, %v388_v40 }
  0xcd   : > { %v724_v24 = vpop.f32.mrf.mxu3  ;;  %v615_v48 = vpop.f32.mrf.mxu2 }
  0xce   : > { %v741_v4 = vadd.f32 %v724_v24, %v630_v20  ;;  %v631_v58 = vadd.f32 %v615_v48, %v471_v55 }
  0xd0   : > { %v963_v6 = vadd.f32 %v946_v2, %v741_v4 }
  0xd2   : > { %v948_v9 = vpop.f32.mrf.mxu0 }
  0xd3   : > { %v2627_v11 = vpop.f32.mrf.mxu1 }
  0xd5   : > { %v726_v10 = vpop.f32.mrf.mxu3  ;;  %v618_v12 = vpop.f32.mrf.mxu2 }
  0xd6   : > { %v632_v15 = vadd.f32 %v618_v12, %v474_v49  ;;  %v742_v1 = vadd.f32 %v726_v10, %v631_v58  ;;  %v476_v10 = vadd.f32 %v2627_v11, %v2623_v45 }
  0xd8   : > { %v964_v12 = vadd.f32 %v948_v9, %v742_v1 }
  0xda   : > { %v951_v17 = vpop.f32.mrf.mxu0 }
  0xdb   : > { %v478_v62 = vpop.f32.mrf.mxu1 }
  0xdc   : > { %v479_v19 = vadd.f32 %v478_v62, %v393_v43  ;;  %v962_v43 = vadd.f32 %v943_v61, %v740_v38 }
  0xdd   : > { %v729_v7 = vpop.f32.mrf.mxu3  ;;  %v2629_v18 = vpop.f32.mrf.mxu2 }
  0xde   : > { %v743_v5 = vadd.f32 %v729_v7, %v632_v15 }
  0xe0   : > { %v2631_v21 = vadd.f32 %v951_v17, %v743_v5 }
  0xe2   : > { %v2633_v22 = vpop.f32.mrf.mxu0 }
  0xe3   : > { %v2637_v25 = vpop.f32.mrf.mxu1 }
  0xe5   : > { %v2635_v23 = vpop.f32.mrf.mxu3  ;;  %v623_v26 = vpop.f32.mrf.mxu2 }
  0xe6   : > { %v634_v27 = vadd.f32 %v623_v26, %v479_v19  ;;  %v633_v26 = vadd.f32 %v2629_v18, %v476_v10 }
  0xe8   : > { %v744_v11 = vadd.f32 %v2635_v23, %v633_v26 }
  0xea   : > { %v956_v28 = vpop.f32.mrf.mxu0 }
  0xeb   : > { %v1091_v8 = vpop.f32.mrf.mxu1 }
  0xec   : > { %v1111_v39 = vadd.f32 %v1091_v8, %v961_v60 }
  0xed   : > { %v734_v29 = vpop.f32.mrf.mxu3  ;;  %v2639_v30 = vpop.f32.mrf.mxu2 }
  0xee   : > { %v745_v16 = vadd.f32 %v734_v29, %v634_v27 }
  0xf0   : > { %v2641_v31 = vadd.f32 %v956_v28, %v745_v16 }
  0xf2   : > { %v2643_v32 = vpop.f32.mrf.mxu0 }
  0xf3   : > { %v1093_v34 = vpop.f32.mrf.mxu1 }
  0xf4   : > { %v1112_v51 = vadd.f32 %v1093_v34, %v962_v43 }
  0xf5   : > { %v2645_v14 = vpop.f32.mrf.mxu3  ;;  %v1202_v36 = vpop.f32.mrf.mxu2 }
  0xf6   : > { %v1222_v40 = vadd.f32 %v1202_v36, %v1111_v39 }
  0xfa   : > { %v1574_v33 = vpop.f32.mrf.mxu0 }
  0xfb   : > { %v1096_v42 = vpop.f32.mrf.mxu1 }
  0xfc   : > { %v1113_v2 = vadd.f32 %v1096_v42, %v963_v6 }
  0xfd   : > { %v1424_v41 = vpop.f32.mrf.mxu3  ;;  %v1204_v44 = vpop.f32.mrf.mxu2 }
  0xfe   : > { %v1444_v46 = vadd.f32 %v1424_v41, %v1222_v40  ;;  %v1223_v52 = vadd.f32 %v1204_v44, %v1112_v51  ;;  %v966_v41 = vadd.f32 %v2633_v22, %v744_v11 }
 0x100   : > { %v1594_v47 = vadd.f32 %v1574_v33, %v1444_v46 }
 0x102   : > { %v1576_v53 = vpop.f32.mrf.mxu0  ;;  %v1606_v61 = vadd.f32 %v2651_v50, %v1594_v47 }
 0x103   : > { %v1098_v56 = vpop.f32.mrf.mxu1 }
 0x104   : > { %v1614_v0 = vmax.f32 %v1606_v61, 0.0  ;;  %v1114_v7 = vadd.f32 %v1098_v56, %v964_v12 }
 0x105   : > { %v1426_v54 = vpop.f32.mrf.mxu3  ;;  %v1207_v60 = vpop.f32.mrf.mxu2 }
 0x106   : > { %v1445_v59 = vadd.f32 %v1426_v54, %v1223_v52  ;;  %v1224_v3 = vadd.f32 %v1207_v60, %v1113_v2  ;;  %v481_v52 = vadd.f32 %v2637_v25, %v2625_v57 }
 0x108   : > { %v1595_v63 = vadd.f32 %v1576_v53, %v1445_v59  ;;  %v635_v55 = vadd.f32 %v2639_v30, %v481_v52 }
 0x10a   : > { %v1607_v20 = vadd.f32 %v2651_v50, %v1595_v63  ;;  %v1579_v37 = vpop.f32.mrf.mxu0  ;;  %v746_v61 = vadd.f32 %v2645_v14, %v635_v55 }
 0x10b   : > { %v1101_v17 = vpop.f32.mrf.mxu1 }
 0x10c   : > { %v1615_v24 = vmax.f32 %v1607_v20, 0.0  ;;  %v1115_v34 = vadd.f32 %v1101_v17, %v2631_v21 }
 0x10d   : > { %v1429_v4 = vpop.f32.mrf.mxu3  ;;  %v1209_v15 = vpop.f32.mrf.mxu2 }
 0x10e   : > { %v1622_v49 = vmax.f32 %v1614_v0, %v1615_v24  ;;  %v1446_v48 = vadd.f32 %v1429_v4, %v1224_v3  ;;  %v1225_v62 = vadd.f32 %v1209_v15, %v1114_v7  ;;  %v968_v24 = vadd.f32 %v2643_v32, %v746_v61 }
 0x110   : > { %1626 = vst [vmem:[#allocation2] sm:$0xff] %v1622_v49  ;;  %v1596_v6 = vadd.f32 %v1579_v37, %v1446_v48 }
 0x112   : > { %v1581_v5 = vpop.f32.mrf.mxu0  ;;  %v1608_v16 = vadd.f32 %v2651_v50, %v1596_v6 }
 0x113   : > { %v1103_v45 = vpop.f32.mrf.mxu1 }
 0x114   : > { %v1616_v36 = vmax.f32 %v1608_v16, 0.0  ;;  %v1116_v44 = vadd.f32 %v1103_v45, %v966_v41 }
 0x115   : > { %v1431_v19 = vpop.f32.mrf.mxu3  ;;  %v1212_v28 = vpop.f32.mrf.mxu2 }
 0x116   : > { %v1447_v27 = vadd.f32 %v1431_v19, %v1225_v62  ;;  %v1226_v39 = vadd.f32 %v1212_v28, %v1115_v34 }
 0x117   : > { %v1630_v9 = vld [vmem:[#allocation2] ss:$2 sm:$0xf]  ;;  %v1638_v29 = vld [vmem:[#allocation2 + $0x1] ss:$2 sm:$0xf] }
 0x118   : > { %v1645_v8 = vmax.f32 %v1630_v9, %v1638_v29  ;;  %v1597_v13 = vadd.f32 %v1581_v5, %v1447_v27 }
 0x11a   : > { %1649 = vst [vmem:[%s2662_s21] sm:$0xf] %v1645_v8  ;;  %v1609_v18 = vadd.f32 %v2651_v50, %v1597_v13  ;;  %v1584_v35 = vpop.f32.mrf.mxu0 }
 0x11b   : > { %v1106_v23 = vpop.f32.mrf.mxu1 }
 0x11c   : > { %v1617_v38 = vmax.f32 %v1609_v18, 0.0  ;;  %v1117_v1 = vadd.f32 %v1106_v23, %v2641_v31 }
 0x11d   : > { %v1434_v33 = vpop.f32.mrf.mxu3  ;;  %v1214_v42 = vpop.f32.mrf.mxu2 }
 0x11e   : > { %v1623_v40 = vmax.f32 %v1616_v36, %v1617_v38  ;;  %v1448_v43 = vadd.f32 %v1434_v33, %v1226_v39  ;;  %v1227_v46 = vadd.f32 %v1214_v42, %v1116_v44 }
 0x120   : > { %1627 = vst [vmem:[#allocation2 + $0x8] sm:$0xff] %v1623_v40  ;;  %v1598_v21 = vadd.f32 %v1584_v35, %v1448_v43 }
 0x122   : > { %v1586_v51 = vpop.f32.mrf.mxu0  ;;  %v1610_v59 = vadd.f32 %v2651_v50, %v1598_v21 }
 0x123   : > { %v1108_v2 = vpop.f32.mrf.mxu1 }
 0x124   : > { %v1618_v57 = vmax.f32 %v1610_v59, 0.0  ;;  %v1118_v49 = vadd.f32 %v1108_v2, %v968_v24 }
 0x125   : > { %v1436_v53 = vpop.f32.mrf.mxu3  ;;  %v1217_v54 = vpop.f32.mrf.mxu2 }
 0x126   : > { %v1449_v47 = vadd.f32 %v1436_v53, %v1227_v46  ;;  %v1228_v20 = vadd.f32 %v1217_v54, %v1117_v1 }
 0x127   : > { %v1632_v56 = vld [vmem:[#allocation2 + $0x8] ss:$2 sm:$0xf]  ;;  %v1640_v58 = vld [vmem:[#allocation2 + $0x9] ss:$2 sm:$0xf] }
 0x128   : > { %v1646_v22 = vmax.f32 %v1632_v56, %v1640_v58  ;;  %v1599_v60 = vadd.f32 %v1586_v51, %v1449_v47 }
 0x12a   : > { %1650 = vst [vmem:[%s2662_s21 + $0x4] sm:$0xf] %v1646_v22  ;;  %v1611_v63 = vadd.f32 %v2651_v50, %v1599_v60  ;;  %v1589_v30 = vpop.f32.mrf.mxu0 }
 0x12c   : > { %v1619_v25 = vmax.f32 %v1611_v63, 0.0 }
 0x12d   : > { %v1439_v37 = vpop.f32.mrf.mxu3  ;;  %v1219_v3 = vpop.f32.mrf.mxu2 }
 0x12e   : > { %v1624_v0 = vmax.f32 %v1618_v57, %v1619_v25  ;;  %v1450_v4 = vadd.f32 %v1439_v37, %v1228_v20  ;;  %v1229_v14 = vadd.f32 %v1219_v3, %v1118_v49 }
 0x130   : > { %1628 = vst [vmem:[#allocation2 + $0x10] sm:$0xff] %v1624_v0  ;;  %v1600_v12 = vadd.f32 %v1589_v30, %v1450_v4 }
 0x132   : > { %v1591_v7 = vpop.f32.mrf.mxu0  ;;  %v1612_v5 = vadd.f32 %v2651_v50, %v1600_v12 }
 0x134   : > { %v1620_v32 = vmax.f32 %v1612_v5, 0.0 }
 0x135   : > { %v1441_v15 = vpop.f32.mrf.mxu3 }
 0x136   : > { %v1451_v17 = vadd.f32 %v1441_v15, %v1229_v14 }
 0x137   : > { %v1634_v31 = vld [vmem:[#allocation2 + $0x10] ss:$2 sm:$0xf]  ;;  %v1642_v48 = vld [vmem:[#allocation2 + $0x11] ss:$2 sm:$0xf] }
 0x138   : > { %v1647_v62 = vmax.f32 %v1634_v31, %v1642_v48  ;;  %v1601_v10 = vadd.f32 %v1591_v7, %v1451_v17 }
 0x13a   : > { %1651 = vst [vmem:[%s2662_s21 + $0x8] sm:$0xf] %v1647_v62  ;;  %v1613_v6 = vadd.f32 %v2651_v50, %v1601_v10 }
 0x13c   : > { %v1621_v19 = vmax.f32 %v1613_v6, 0.0 }
 0x13e   : > { %v1625_v26 = vmax.f32 %v1620_v32, %v1621_v19 }
 0x140   : > { %1629 = vst [vmem:[#allocation2 + $0x18] sm:$0xff] %v1625_v26 }
 0x147   : > { %v1636_v27 = vld [vmem:[#allocation2 + $0x18] ss:$2 sm:$0xf]  ;;  %v1644_v28 = vld [vmem:[#allocation2 + $0x19] ss:$2 sm:$0xf] }
 0x148   : > { %v1648_v9 = vmax.f32 %v1636_v27, %v1644_v28 }
 0x14a   : > { %1652 = vst [vmem:[%s2662_s21 + $0xc] sm:$0xf] %v1648_v9 }
 0x14b PF: > { %s13_s12 = sadd.s32 1, %s2175_s12  }
 0x14c   : > { %p10_p4 = scmp.ge.s32.totalorder %s13_s12, 4  }
 0x14e   :  { %12 = sbr.rel (!%p10_p4) target bundleno = 1 (0x1), region = 79 }

// kernel: face_recognition_forward.4
= control target key start
LH: loop header
LB: loop body
LE: loop exit
PB: predicated region body
PF: predicated region fallthrough
CT: control target
= control target key end

     0   :  { %s2693_s12 = smov 0   ;;  %s3706_s0 = inlined_call_operand.vmem [shape: bf16[2,1024,32], index: 0, kind: input, shape index: {}]   ;;  %s3707_s1 = inlined_call_operand.vmem [shape: bf16[32,32], index: 1, kind: input, shape index: {}]   ;;  %s3708_s2 = inlined_call_operand.vmem [shape: f32[1,32], index: 2, kind: input, shape index: {}]   ;;  %s3709_s3 = inlined_call_operand.vmem [shape: bf16[2,18,18,32], index: 3, kind: output, shape index: {}]  }
   0x1 LB: > { %s2161_s13 = sadd.s32 4294967295, %s2670_s12   ;;  %p2165_p0 = scmp.ge.s32.totalorder %s2670_s12, 1  ;;  %s2670_s12 = sphi %s2693_s12, %s13_s12  }
   0x2   : > { %p137_p1 = scmp.lt.s32.totalorder %s2670_s12, 3 }
   0x4   : > { %p138_p2 = pnand %p2165_p0, %p137_p1 }
   0x5   : > { %p161_p3 = scmp.lt.s32.totalorder (!%p138_p2), %s2161_s13, 1 }
   0x6   : > { %141 = sbr.rel (%p138_p2) target bundleno = 429 (0x1ad), region = 32 }
   0xb   : > { %v2645_v0 = vld [vmem:[%s3707_s1 + $0x8] sm:$0xff]  ;;  %v2644_v1 = vld [vmem:[%s3707_s1] sm:$0xff]  ;;  %s3717_s13 = smov (!%p161_p3, %s2161_s13), 1  ;;  %vm640_vm0 = vcmask 261120   ;;  %vm1577_vm1 = vcmask 257024   ;;  %v2672_v56 = vmov 0  }
   0xc   : > { %839 = vmatpush.bf16.msra.mxu0 %v2645_v0  ;;  %2646 = vmatpush.bf16.msra.mxu1 %v2645_v0  ;;  %s2579_s18 = sshll.u32 %s3717_s13, 9  ;;  %s2652_s22 = smul.u32 216, %s3717_s13  ;;  %v2828_v57 = vld [vmem:[%s3708_s2] ss:$0 sm:$0xff]  ;;  %vm1990_vm2 = vsmask.f32 7938 }
   0xd   : > { %2647 = vmatpush.bf16.msra.mxu2 %v2645_v0  ;;  %2648 = vmatpush.bf16.msra.mxu3 %v2645_v0  ;;  %s2713_s21 = scalar_lea.vmem %s3706_s0, %s2579_s18  ;;  %vm2986_vm3 = vmand %vm1577_vm1, %vm1990_vm2  ;;  %vm1580_vm4 = vcmask 253952   ;;  %vm1665_vm5 = vsmask.f32 256  ;;  %vm1666_vm6 = vsmask.f32 4368 }
   0xe   : > { %v2580_v2 = vld [vmem:[%s2713_s21] sm:$0xff]  ;;  %v2581_v6 = vld [vmem:[%s2713_s21 + $0x8] sm:$0xff]  ;;  %v2582_v10 = vld [vmem:[%s2713_s21 + $0x10] sm:$0xff]  ;;  %s2809_s25 = scalar_lea.vmem %s3709_s3, %s2652_s22 }
   0xf   : > { %v2596_v3 = vld [vmem:[%s2713_s21 + $0x80] sm:$0xff]  ;;  %v2597_v7 = vld [vmem:[%s2713_s21 + $0x88] sm:$0xff]  ;;  %v2598_v11 = vld [vmem:[%s2713_s21 + $0x90] sm:$0xff]  ;;  %1582 = vst.msk [vmem:[%s2809_s25 + $0xc] sm:$0xf] %vm1577_vm1, %v2672_v56 }
  0x10   : > { %840 = vmatpush.bf16.msra.mxu0 %v2644_v1  ;;  %2649 = vmatpush.bf16.msra.mxu1 %v2644_v1  ;;  %v2612_v4 = vld [vmem:[%s2713_s21 + $0x100] sm:$0xff]  ;;  %v2613_v8 = vld [vmem:[%s2713_s21 + $0x108] sm:$0xff]  ;;  %v2614_v12 = vld [vmem:[%s2713_s21 + $0x110] sm:$0xff]  ;;  %1578 = vst.msk [vmem:[%s2809_s25] sm:$0xf] %vm1577_vm1, %v2672_v56 }
  0x11   : > { %2650 = vmatpush.bf16.msra.mxu2 %v2644_v1  ;;  %2651 = vmatpush.bf16.msra.mxu3 %v2644_v1  ;;  %v2628_v5 = vld [vmem:[%s2713_s21 + $0x180] sm:$0xff]  ;;  %v2629_v9 = vld [vmem:[%s2713_s21 + $0x188] sm:$0xff]  ;;  %v2630_v13 = vld [vmem:[%s2713_s21 + $0x190] sm:$0xff]  ;;  %1579 = vst.msk [vmem:[%s2809_s25 + $0x4] sm:$0xf] %vm1577_vm1, %v2672_v56 }
  0x12   : > { %v2583_v14 = vld [vmem:[%s2713_s21 + $0x18] sm:$0xff]  ;;  %v2584_v18 = vld [vmem:[%s2713_s21 + $0x20] sm:$0xff]  ;;  %v2585_v22 = vld [vmem:[%s2713_s21 + $0x28] sm:$0xff]  ;;  %1583 = vst.msk [vmem:[%s2809_s25 + $0x10] sm:$0xf] %vm1577_vm1, %v2672_v56 }
  0x13   : > { %2433 = vmatmul.msk.bf16.vlgmr.msra.gmra.mxu0 %vm640_vm0, %v2580_v2  ;;  %2449 = vmatmul.msk.bf16.vlgmr.msra.gmra.mxu1 %vm640_vm0, %v2596_v3  ;;  %v2599_v15 = vld [vmem:[%s2713_s21 + $0x98] sm:$0xff]  ;;  %v2600_v19 = vld [vmem:[%s2713_s21 + $0xa0] sm:$0xff]  ;;  %v2601_v23 = vld [vmem:[%s2713_s21 + $0xa8] sm:$0xff]  ;;  %1585 = vst.msk [vmem:[%s2809_s25 + $0x18] sm:$0xf] %vm1577_vm1, %v2672_v56 }
  0x14   : > { %2465 = vmatmul.msk.bf16.vlgmr.msra.gmra.mxu2 %vm640_vm0, %v2612_v4  ;;  %2481 = vmatmul.msk.bf16.vlgmr.msra.gmra.mxu3 %vm640_vm0, %v2628_v5  ;;  %v2615_v16 = vld [vmem:[%s2713_s21 + $0x118] sm:$0xff]  ;;  %v2616_v20 = vld [vmem:[%s2713_s21 + $0x120] sm:$0xff]  ;;  %v2617_v24 = vld [vmem:[%s2713_s21 + $0x128] sm:$0xff]  ;;  %1586 = vst.msk [vmem:[%s2809_s25 + $0x1c] sm:$0xf] %vm1577_vm1, %v2672_v56 }
  0x15   : > { %v2631_v17 = vld [vmem:[%s2713_s21 + $0x198] sm:$0xff]  ;;  %v2632_v21 = vld [vmem:[%s2713_s21 + $0x1a0] sm:$0xff]  ;;  %v2633_v25 = vld [vmem:[%s2713_s21 + $0x1a8] sm:$0xff]  ;;  %1588 = vst.msk [vmem:[%s2809_s25 + $0x24] sm:$0xf] %vm1577_vm1, %v2672_v56 }
  0x16   : > { %v2586_v26 = vld [vmem:[%s2713_s21 + $0x30] sm:$0xff]  ;;  %v2587_v30 = vld [vmem:[%s2713_s21 + $0x38] sm:$0xff]  ;;  %v2588_v34 = vld [vmem:[%s2713_s21 + $0x40] sm:$0xff]  ;;  %1589 = vst.msk [vmem:[%s2809_s25 + $0x28] sm:$0xf] %vm1577_vm1, %v2672_v56 }
  0x17   : > { %v2602_v27 = vld [vmem:[%s2713_s21 + $0xb0] sm:$0xff]  ;;  %v2603_v31 = vld [vmem:[%s2713_s21 + $0xb8] sm:$0xff]  ;;  %v2604_v35 = vld [vmem:[%s2713_s21 + $0xc0] sm:$0xff]  ;;  %1591 = vst.msk [vmem:[%s2809_s25 + $0x30] sm:$0xf] %vm1577_vm1, %v2672_v56 }
  0x18   : > { %v2618_v28 = vld [vmem:[%s2713_s21 + $0x130] sm:$0xff]  ;;  %v2619_v32 = vld [vmem:[%s2713_s21 + $0x138] sm:$0xff]  ;;  %v2620_v38 = vld [vmem:[%s2713_s21 + $0x140] sm:$0xff]  ;;  %1592 = vst.msk [vmem:[%s2809_s25 + $0x34] sm:$0xf] %vm1577_vm1, %v2672_v56 }
  0x19   : > { %v2634_v29 = vld [vmem:[%s2713_s21 + $0x1b0] sm:$0xff]  ;;  %v2635_v33 = vld [vmem:[%s2713_s21 + $0x1b8] sm:$0xff]  ;;  %v2636_v39 = vld [vmem:[%s2713_s21 + $0x1c0] sm:$0xff]  ;;  %1594 = vst.msk [vmem:[%s2809_s25 + $0x3c] sm:$0xf] %vm1577_vm1, %v2672_v56 }
  0x1a   : > { %v2589_v46 = vld [vmem:[%s2713_s21 + $0x48] sm:$0xff]  ;;  %v2590_v62 = vld [vmem:[%s2713_s21 + $0x50] sm:$0xff]  ;;  %1595 = vst.msk [vmem:[%s2809_s25 + $0x40] sm:$0xf] %vm1577_vm1, %v2672_v56  ;;  %vm3102_vm7 = vmor %vm1665_vm5, %vm1666_vm6 }
  0x1b   : > { %v2605_v47 = vld [vmem:[%s2713_s21 + $0xc8] sm:$0xff]  ;;  %v2606_v63 = vld [vmem:[%s2713_s21 + $0xd0] sm:$0xff]  ;;  %1597 = vst.msk [vmem:[%s2809_s25 + $0x48] sm:$0xf] %vm1577_vm1, %v2672_v56  ;;  %vm3116_vm8 = vmand %vm1580_vm4, %vm1665_vm5 }
  0x1c   : > { %v2621_v50 = vld [vmem:[%s2713_s21 + $0x148] sm:$0xff]  ;;  %v2622_v2 = vld [vmem:[%s2713_s21 + $0x150] sm:$0xff]  ;;  %1598 = vst.msk [vmem:[%s2809_s25 + $0x4c] sm:$0xf] %vm1577_vm1, %v2672_v56 }
  0x1d   : > { %v2637_v51 = vld [vmem:[%s2713_s21 + $0x1c8] sm:$0xff]  ;;  %v2638_v3 = vld [vmem:[%s2713_s21 + $0x1d0] sm:$0xff]  ;;  %1600 = vst.msk [vmem:[%s2809_s25 + $0x54] sm:$0xf] %vm1577_vm1, %v2672_v56 }
  0x1e   : > { %1601 = vst.msk [vmem:[%s2809_s25 + $0x58] sm:$0xf] %vm1577_vm1, %v2672_v56 }
  0x1f   : > { %1603 = vst.msk [vmem:[%s2809_s25 + $0x60] sm:$0xf] %vm1577_vm1, %v2672_v56 }
  0x20   : > { %1604 = vst.msk [vmem:[%s2809_s25 + $0x64] sm:$0xf] %vm1577_vm1, %v2672_v56 }
  0x21   : > { %1606 = vst.msk [vmem:[%s2809_s25 + $0x6c] sm:$0xf] %vm1577_vm1, %v2672_v56 }
  0x22   : > { %1607 = vst.msk [vmem:[%s2809_s25 + $0x70] sm:$0xf] %vm1577_vm1, %v2672_v56 }
  0x23   : > { %2434 = vmatmul.msk.bf16.gmra.mxu0 %vm640_vm0, %v2581_v6  ;;  %2450 = vmatmul.msk.bf16.gmra.mxu1 %vm640_vm0, %v2597_v7  ;;  %1609 = vst.msk [vmem:[%s2809_s25 + $0x78] sm:$0xf] %vm1577_vm1, %v2672_v56 }
  0x24   : > { %2466 = vmatmul.msk.bf16.gmra.mxu2 %vm640_vm0, %v2613_v8  ;;  %2482 = vmatmul.msk.bf16.gmra.mxu3 %vm640_vm0, %v2629_v9  ;;  %1610 = vst.msk [vmem:[%s2809_s25 + $0x7c] sm:$0xf] %vm1577_vm1, %v2672_v56 }
  0x25   : > { %1612 = vst.msk [vmem:[%s2809_s25 + $0x84] sm:$0xf] %vm1577_vm1, %v2672_v56 }
  0x26   : > { %1613 = vst.msk [vmem:[%s2809_s25 + $0x88] sm:$0xf] %vm1577_vm1, %v2672_v56 }
  0x27   : > { %1615 = vst.msk [vmem:[%s2809_s25 + $0x90] sm:$0xf] %vm1577_vm1, %v2672_v56 }
  0x28   : > { %1616 = vst.msk [vmem:[%s2809_s25 + $0x94] sm:$0xf] %vm1577_vm1, %v2672_v56 }
  0x29   : > { %1618 = vst.msk [vmem:[%s2809_s25 + $0x9c] sm:$0xf] %vm1577_vm1, %v2672_v56 }
  0x2a   : > { %1619 = vst.msk [vmem:[%s2809_s25 + $0xa0] sm:$0xf] %vm1577_vm1, %v2672_v56 }
  0x2b   : > { %1621 = vst.msk [vmem:[%s2809_s25 + $0xa8] sm:$0xf] %vm1577_vm1, %v2672_v56 }
  0x2c   : > { %1622 = vst.msk [vmem:[%s2809_s25 + $0xac] sm:$0xf] %vm1577_vm1, %v2672_v56 }
  0x2d   : > { %1624 = vst.msk [vmem:[%s2809_s25 + $0xb4] sm:$0xf] %vm1577_vm1, %v2672_v56 }
  0x2e   : > { %1625 = vst.msk [vmem:[%s2809_s25 + $0xb8] sm:$0xf] %vm1577_vm1, %v2672_v56 }
  0x2f   : > { %1627 = vst.msk [vmem:[%s2809_s25 + $0xc0] sm:$0xf] %vm1577_vm1, %v2672_v56 }
  0x30   : > { %1628 = vst.msk [vmem:[%s2809_s25 + $0xc4] sm:$0xf] %vm1577_vm1, %v2672_v56 }
  0x31   : > { %1630 = vst.msk [vmem:[%s2809_s25 + $0xcc] sm:$0xf] %vm1577_vm1, %v2672_v56 }
  0x32   : > { %1631 = vst.msk [vmem:[%s2809_s25 + $0xd0] sm:$0xf] %vm1577_vm1, %v2672_v56 }
  0x33   : > { %2435 = vmatmul.msk.bf16.gmra.mxu0 %vm640_vm0, %v2582_v10  ;;  %2451 = vmatmul.msk.bf16.gmra.mxu1 %vm640_vm0, %v2598_v11  ;;  %1584 = vst.msk [vmem:[%s2809_s25 + $0x14] sm:$0x1] %vm1580_vm4, %v2672_v56 }
  0x34   : > { %2467 = vmatmul.msk.bf16.gmra.mxu2 %vm640_vm0, %v2614_v12  ;;  %2483 = vmatmul.msk.bf16.gmra.mxu3 %vm640_vm0, %v2630_v13  ;;  %1581 = vst.msk [vmem:[%s2809_s25 + $0x8] sm:$0x1] %vm1580_vm4, %v2672_v56 }
  0x35   : > { %1587 = vst.msk [vmem:[%s2809_s25 + $0x20] sm:$0x1] %vm1580_vm4, %v2672_v56 }
  0x36   : > { %1590 = vst.msk [vmem:[%s2809_s25 + $0x2c] sm:$0x1] %vm1580_vm4, %v2672_v56 }
  0x37   : > { %1593 = vst.msk [vmem:[%s2809_s25 + $0x38] sm:$0x1] %vm1580_vm4, %v2672_v56 }
  0x38   : > { %1596 = vst.msk [vmem:[%s2809_s25 + $0x44] sm:$0x1] %vm1580_vm4, %v2672_v56 }
  0x39   : > { %1599 = vst.msk [vmem:[%s2809_s25 + $0x50] sm:$0x1] %vm1580_vm4, %v2672_v56 }
  0x3a   : > { %1602 = vst.msk [vmem:[%s2809_s25 + $0x5c] sm:$0x1] %vm1580_vm4, %v2672_v56 }
  0x3b   : > { %1605 = vst.msk [vmem:[%s2809_s25 + $0x68] sm:$0x1] %vm1580_vm4, %v2672_v56 }
  0x3c   : > { %1608 = vst.msk [vmem:[%s2809_s25 + $0x74] sm:$0x1] %vm1580_vm4, %v2672_v56 }
  0x3d   : > { %1611 = vst.msk [vmem:[%s2809_s25 + $0x80] sm:$0x1] %vm1580_vm4, %v2672_v56 }
  0x3e   : > { %1614 = vst.msk [vmem:[%s2809_s25 + $0x8c] sm:$0x1] %vm1580_vm4, %v2672_v56 }
  0x3f   : > { %1617 = vst.msk [vmem:[%s2809_s25 + $0x98] sm:$0x1] %vm1580_vm4, %v2672_v56 }
  0x40   : > { %1620 = vst.msk [vmem:[%s2809_s25 + $0xa4] sm:$0x1] %vm1580_vm4, %v2672_v56 }
  0x41   : > { %1623 = vst.msk [vmem:[%s2809_s25 + $0xb0] sm:$0x1] %vm1580_vm4, %v2672_v56 }
  0x42   : > { %1626 = vst.msk [vmem:[%s2809_s25 + $0xbc] sm:$0x1] %vm1580_vm4, %v2672_v56 }
  0x43   : > { %2436 = vmatmul.msk.bf16.gmra.mxu0 %vm640_vm0, %v2583_v14  ;;  %2452 = vmatmul.msk.bf16.gmra.mxu1 %vm640_vm0, %v2599_v15  ;;  %1629 = vst.msk [vmem:[%s2809_s25 + $0xc8] sm:$0x1] %vm1580_vm4, %v2672_v56 }
  0x44   : > { %2468 = vmatmul.msk.bf16.gmra.mxu2 %vm640_vm0, %v2615_v16  ;;  %2484 = vmatmul.msk.bf16.gmra.mxu3 %vm640_vm0, %v2631_v17  ;;  %1632 = vst.msk [vmem:[%s2809_s25 + $0xd4] sm:$0x1] %vm1580_vm4, %v2672_v56 }
  0x53   : > { %2437 = vmatmul.msk.bf16.gmra.mxu0 %vm640_vm0, %v2584_v18  ;;  %2453 = vmatmul.msk.bf16.gmra.mxu1 %vm640_vm0, %v2600_v19 }
  0x54   : > { %2469 = vmatmul.msk.bf16.gmra.mxu2 %vm640_vm0, %v2616_v20  ;;  %2485 = vmatmul.msk.bf16.gmra.mxu3 %vm640_vm0, %v2632_v21 }
  0x63   : > { %2438 = vmatmul.msk.bf16.gmra.mxu0 %vm640_vm0, %v2585_v22  ;;  %2454 = vmatmul.msk.bf16.gmra.mxu1 %vm640_vm0, %v2601_v23 }
  0x64   : > { %2470 = vmatmul.msk.bf16.gmra.mxu2 %vm640_vm0, %v2617_v24  ;;  %2486 = vmatmul.msk.bf16.gmra.mxu3 %vm640_vm0, %v2633_v25 }
  0x73   : > { %2439 = vmatmul.msk.bf16.gmra.mxu0 %vm640_vm0, %v2586_v26  ;;  %2455 = vmatmul.msk.bf16.gmra.mxu1 %vm640_vm0, %v2602_v27 }
  0x74   : > { %2471 = vmatmul.msk.bf16.gmra.mxu2 %vm640_vm0, %v2618_v28  ;;  %2487 = vmatmul.msk.bf16.gmra.mxu3 %vm640_vm0, %v2634_v29 }
  0x83   : > { %2440 = vmatmul.msk.bf16.gmra.mxu0 %vm640_vm0, %v2587_v30  ;;  %2456 = vmatmul.msk.bf16.gmra.mxu1 %vm640_vm0, %v2603_v31 }
  0x84   : > { %2472 = vmatmul.msk.bf16.gmra.mxu2 %vm640_vm0, %v2619_v32  ;;  %2488 = vmatmul.msk.bf16.gmra.mxu3 %vm640_vm0, %v2635_v33  ;;  %v2591_v33 = vld [vmem:[%s2713_s21 + $0x58] sm:$0xff] }
  0x90   : > { %v842_v36 = vpop.f32.mrf.mxu0  ;;  %v922_v37 = vpop.f32.mrf.mxu1 }
  0x91   : > { %v843_v58 = vadd.f32 %v2828_v57, %v842_v36  ;;  %v923_v59 = vadd.f32 %v2828_v57, %v922_v37  ;;  %v2639_v36 = vld [vmem:[%s2713_s21 + $0x1d8] sm:$0xff] }
  0x93   : > { %2441 = vmatmul.msk.bf16.gmra.mxu0 %vm640_vm0, %v2588_v34  ;;  %2457 = vmatmul.msk.bf16.gmra.mxu1 %vm640_vm0, %v2604_v35  ;;  %v1162_v6 = vmax.f32 %v843_v58, 0.0  ;;  %v1194_v7 = vmax.f32 %v923_v59, 0.0  ;;  %v2607_v34 = vld [vmem:[%s2713_s21 + $0xd8] sm:$0xff] }
  0x94   : > { %2473 = vmatmul.msk.bf16.gmra.mxu2 %vm640_vm0, %v2620_v38  ;;  %2489 = vmatmul.msk.bf16.gmra.mxu3 %vm640_vm0, %v2636_v39  ;;  %v2623_v35 = vld [vmem:[%s2713_s21 + $0x158] sm:$0xff] }
  0x97   : > { %v1002_v40 = vpop.f32.mrf.mxu2  ;;  %v1082_v41 = vpop.f32.mrf.mxu3 }
  0x98   : > { %v844_v42 = vpop.f32.mrf.mxu0  ;;  %v2787_v43 = vpop.f32.mrf.mxu1  ;;  %v1003_v12 = vadd.f32 %v2828_v57, %v1002_v40  ;;  %v1083_v13 = vadd.f32 %v2828_v57, %v1082_v41 }
  0x99   : > { %v845_v14 = vadd.f32 %v2828_v57, %v844_v42  ;;  %v925_v40 = vadd.f32 %v2828_v57, %v2787_v43 }
  0x9a   : > { %v1226_v22 = vmax.f32 %v1003_v12, 0.0  ;;  %v1258_v23 = vmax.f32 %v1083_v13, 0.0 }
  0x9b   : > { %v1163_v26 = vmax.f32 %v845_v14, 0.0  ;;  %v1195_v59 = vmax.f32 %v925_v40, 0.0  ;;  %v2608_v40 = vld [vmem:[%s2713_s21 + $0xe0] sm:$0xff] }
  0x9f   : > { %v2789_v44 = vpop.f32.mrf.mxu2  ;;  %v2791_v45 = vpop.f32.mrf.mxu3 }
  0xa0   : > { %v2795_v48 = vpop.f32.mrf.mxu0  ;;  %v2797_v49 = vpop.f32.mrf.mxu1  ;;  %v1005_v41 = vadd.f32 %v2828_v57, %v2789_v44  ;;  %v1085_v42 = vadd.f32 %v2828_v57, %v2791_v45 }
  0xa3   : > { %2442 = vmatmul.msk.bf16.gmra.mxu0 %vm640_vm0, %v2589_v46  ;;  %2458 = vmatmul.msk.bf16.gmra.mxu1 %vm640_vm0, %v2605_v47 }
  0xa4   : > { %2474 = vmatmul.msk.bf16.gmra.mxu2 %vm640_vm0, %v2621_v50  ;;  %2490 = vmatmul.msk.bf16.gmra.mxu3 %vm640_vm0, %v2637_v51 }
  0xa7   : > { %v2811_v52 = vpop.f32.mrf.mxu2  ;;  %v2813_v53 = vpop.f32.mrf.mxu3 }
  0xa8   : > { %v2815_v54 = vpop.f32.mrf.mxu0  ;;  %v2817_v55 = vpop.f32.mrf.mxu1 }
  0xaf   : > { %v2844_v60 = vpop.f32.mrf.mxu2  ;;  %v2846_v61 = vpop.f32.mrf.mxu3 }
  0xb0   : > { %v852_v0 = vpop.f32.mrf.mxu0  ;;  %v932_v1 = vpop.f32.mrf.mxu1 }
  0xb1   : > { %v853_v4 = vadd.f32 %v2828_v57, %v852_v0  ;;  %v933_v5 = vadd.f32 %v2828_v57, %v932_v1  ;;  %v1227_v1 = vmax.f32 %v1005_v41, 0.0  ;;  %v2624_v41 = vld [vmem:[%s2713_s21 + $0x160] sm:$0xff] }
  0xb3   : > { %v1166_v8 = vmax.f32 %v853_v4, 0.0  ;;  %v1198_v9 = vmax.f32 %v933_v5, 0.0  ;;  %2443 = vmatmul.msk.bf16.gmra.mxu0 %vm640_vm0, %v2590_v62  ;;  %2459 = vmatmul.msk.bf16.gmra.mxu1 %vm640_vm0, %v2606_v63  ;;  %v848_v62 = vadd.f32 %v2828_v57, %v2795_v48 }
  0xb4   : > { %2475 = vmatmul.msk.bf16.gmra.mxu2 %vm640_vm0, %v2622_v2  ;;  %2491 = vmatmul.msk.bf16.gmra.mxu3 %vm640_vm0, %v2638_v3  ;;  %v1259_v2 = vmax.f32 %v1085_v42, 0.0  ;;  %v928_v3 = vadd.f32 %v2828_v57, %v2797_v49  ;;  %v1008_v49 = vadd.f32 %v2828_v57, %v2811_v52  ;;  %v1088_v52 = vadd.f32 %v2828_v57, %v2813_v53  ;;  %v2640_v42 = vld [vmem:[%s2713_s21 + $0x1e0] sm:$0xff] }
  0xb5   : > { %v1290_v10 = vmax.f32 %v1162_v6, %v1166_v8  ;;  %v1306_v11 = vmax.f32 %v1194_v7, %v1198_v9 }
  0xb7   : > { %1354 = vst.msk [vmem:[#allocation2] sm:$0xff] %vm640_vm0, %v1290_v10  ;;  %v1012_v15 = vpop.f32.mrf.mxu2  ;;  %v1092_v16 = vpop.f32.mrf.mxu3 }
  0xb8   : > { %1370 = vst.msk [vmem:[#allocation2 + $0x80] sm:$0xff] %vm640_vm0, %v1306_v11  ;;  %v1013_v17 = vadd.f32 %v2828_v57, %v1012_v15  ;;  %v1093_v18 = vadd.f32 %v2828_v57, %v1092_v16  ;;  %v854_v19 = vpop.f32.mrf.mxu0  ;;  %v934_v20 = vpop.f32.mrf.mxu1  ;;  %v1164_v16 = vmax.f32 %v848_v62, 0.0 }
  0xb9   : > { %v855_v21 = vadd.f32 %v2828_v57, %v854_v19  ;;  %v935_v39 = vadd.f32 %v2828_v57, %v934_v20  ;;  %v850_v20 = vadd.f32 %v2828_v57, %v2815_v54 }
  0xba   : > { %v1230_v24 = vmax.f32 %v1013_v17, 0.0  ;;  %v1262_v25 = vmax.f32 %v1093_v18, 0.0  ;;  %v2497_v18 = vld [vmem:[%s2809_s25 + $0xc] sm:$0xf] }
  0xbb   : > { %v1167_v27 = vmax.f32 %v855_v21, 0.0  ;;  %v1199_v44 = vmax.f32 %v935_v39, 0.0  ;;  %v2592_v39 = vld [vmem:[%s2713_s21 + $0x60] sm:$0xff] }
  0xbc   : > { %v1322_v28 = vmax.f32 %v1226_v22, %v1230_v24  ;;  %v1338_v29 = vmax.f32 %v1258_v23, %v1262_v25  ;;  %v1196_v23 = vmax.f32 %v928_v3, 0.0 }
  0xbd   : > { %v1291_v30 = vmax.f32 %v1163_v26, %v1167_v27  ;;  %v1307_v9 = vmax.f32 %v1195_v59, %v1199_v44  ;;  %v1228_v26 = vmax.f32 %v1008_v49, 0.0 }
  0xbe   : > { %1386 = vst.msk [vmem:[#allocation2 + $0x100] sm:$0xff] %vm640_vm0, %v1322_v28 }
  0xbf   : > { %1402 = vst.msk [vmem:[#allocation2 + $0x180] sm:$0xff] %vm640_vm0, %v1338_v29  ;;  %v1014_v31 = vpop.f32.mrf.mxu2  ;;  %v1094_v32 = vpop.f32.mrf.mxu3  ;;  %v1260_v29 = vmax.f32 %v1088_v52, 0.0  ;;  %v2537_v52 = vld [vmem:[%s2809_s25 + $0x6c] sm:$0xf] }
  0xc0   : > { %1355 = vst.msk [vmem:[#allocation2 + $0x8] sm:$0xff] %vm640_vm0, %v1291_v30  ;;  %v857_v37 = vpop.f32.mrf.mxu0  ;;  %v937_v38 = vpop.f32.mrf.mxu1  ;;  %v1015_v43 = vadd.f32 %v2828_v57, %v1014_v31  ;;  %v1095_v51 = vadd.f32 %v2828_v57, %v1094_v32 }
  0xc1   : > { %v858_v0 = vadd.f32 %v2828_v57, %v857_v37  ;;  %v938_v4 = vadd.f32 %v2828_v57, %v937_v38  ;;  %1371 = vst.msk [vmem:[#allocation2 + $0x88] sm:$0xff] %vm640_vm0, %v1307_v9 }
  0xc2   : > { %v1231_v7 = vmax.f32 %v1015_v43, 0.0  ;;  %v1263_v10 = vmax.f32 %v1095_v51, 0.0 }
  0xc3   : > { %2444 = vmatmul.msk.bf16.gmra.mxu0 %vm640_vm0, %v2591_v33  ;;  %2460 = vmatmul.msk.bf16.gmra.mxu1 %vm640_vm0, %v2607_v34  ;;  %v1168_v14 = vmax.f32 %v858_v0, 0.0  ;;  %v1200_v19 = vmax.f32 %v938_v4, 0.0  ;;  %v1165_v33 = vmax.f32 %v850_v20, 0.0 }
  0xc4   : > { %2476 = vmatmul.msk.bf16.gmra.mxu2 %vm640_vm0, %v2623_v35  ;;  %2492 = vmatmul.msk.bf16.gmra.mxu3 %vm640_vm0, %v2639_v36  ;;  %v1323_v53 = vmax.f32 %v1227_v1, %v1231_v7  ;;  %v1339_v24 = vmax.f32 %v1259_v2, %v1263_v10 }
  0xc5   : > { %v1292_v54 = vmax.f32 %v1164_v16, %v1168_v14  ;;  %v1308_v30 = vmax.f32 %v1196_v23, %v1200_v19  ;;  %v2557_v23 = vld [vmem:[%s2809_s25 + $0x9c] sm:$0xf] }
  0xc6   : > { %1387 = vst.msk [vmem:[#allocation2 + $0x108] sm:$0xff] %vm640_vm0, %v1323_v53 }
  0xc7   : > { %v1418_v46 = vld [vmem:[#allocation2] ss:$2 sm:$0xff]  ;;  %v1482_v47 = vld [vmem:[#allocation2 + $0x1] ss:$2 sm:$0xff]  ;;  %v1017_v58 = vpop.f32.mrf.mxu2  ;;  %v1097_v45 = vpop.f32.mrf.mxu3  ;;  %1403 = vst.msk [vmem:[#allocation2 + $0x188] sm:$0xff] %vm640_vm0, %v1339_v24 }
  0xc8   : > { %v1545_v50 = vmax.f32 %v1418_v46, %v1482_v47  ;;  %v859_v5 = vpop.f32.mrf.mxu0  ;;  %v2964_v48 = vpop.f32.mrf.mxu1  ;;  %v1018_v8 = vadd.f32 %v2828_v57, %v1017_v58  ;;  %v1098_v11 = vadd.f32 %v2828_v57, %v1097_v45  ;;  %1356 = vst.msk [vmem:[#allocation2 + $0x10] sm:$0xff] %vm640_vm0, %v1292_v54  ;;  %v1434_v46 = vld [vmem:[#allocation2 + $0x80] ss:$2 sm:$0xff]  ;;  %v1498_v47 = vld [vmem:[#allocation2 + $0x81] ss:$2 sm:$0xff] }
  0xc9   : > { %v860_v15 = vadd.f32 %v2828_v57, %v859_v5  ;;  %1372 = vst.msk [vmem:[#allocation2 + $0x90] sm:$0xff] %vm640_vm0, %v1308_v30  ;;  %v2517_v5 = vld [vmem:[%s2809_s25 + $0x3c] sm:$0xf]  ;;  %v2609_v30 = vld [vmem:[%s2713_s21 + $0xe8] sm:$0xff] }
  0xca   : > { %v1633_v63 = vpack.c.bf16 %v1545_v50, %v1545_v50  ;;  %v1232_v22 = vmax.f32 %v1018_v8, 0.0  ;;  %v1264_v25 = vmax.f32 %v1098_v11, 0.0  ;;  %v1553_v50 = vmax.f32 %v1434_v46, %v1498_v47  ;;  %v2500_v47 = vld [vmem:[%s2809_s25 + $0x14] sm:$0x1] }
  0xcb   : > { %v1169_v28 = vmax.f32 %v860_v15, 0.0 }
  0xcc   : > { %v1669_v6 = vshrl.u32 %v1633_v63, 16  ;;  %v1672_v13 = vshll.u32 %v1633_v63, 16  ;;  %v1324_v34 = vmax.f32 %v1228_v26, %v1232_v22  ;;  %v1340_v35 = vmax.f32 %v1260_v29, %v1264_v25  ;;  %v2593_v29 = vld [vmem:[%s2713_s21 + $0x68] sm:$0xff] }
  0xcd   : > { %v1293_v38 = vmax.f32 %v1165_v33, %v1169_v28  ;;  %v1450_v43 = vld [vmem:[#allocation2 + $0x100] ss:$2 sm:$0xff]  ;;  %v1514_v44 = vld [vmem:[#allocation2 + $0x101] ss:$2 sm:$0xff]  ;;  %v1641_v45 = vpack.c.bf16 %v1553_v50, %v1553_v50  ;;  %v1010_v50 = vadd.f32 %v2828_v57, %v2844_v60 }
  0xce   : > { %v2976_v12 = vrot.slane %v1669_v6, 7  ;;  %1388 = vst.msk [vmem:[#allocation2 + $0x110] sm:$0xff] %vm640_vm0, %v1324_v34  ;;  %v1561_v59 = vmax.f32 %v1450_v43, %v1514_v44  ;;  %v1466_v62 = vld [vmem:[#allocation2 + $0x180] ss:$2 sm:$0xff]  ;;  %v1530_v63 = vld [vmem:[#allocation2 + $0x181] ss:$2 sm:$0xff]  ;;  %v940_v34 = vadd.f32 %v2828_v57, %v2964_v48  ;;  %v930_v48 = vadd.f32 %v2828_v57, %v2817_v55 }
  0xcf   : > { %v3007_v31 = vpop.f32.mrf.mxu2  ;;  %v3009_v32 = vpop.f32.mrf.mxu3  ;;  %1404 = vst.msk [vmem:[#allocation2 + $0x190] sm:$0xff] %vm640_vm0, %v1340_v35  ;;  %v1569_v0 = vmax.f32 %v1466_v62, %v1530_v63  ;;  %v1737_v3 = vshrl.u32 %v1641_v45, 16  ;;  %v1740_v8 = vshll.u32 %v1641_v45, 16  ;;  %v1090_v45 = vadd.f32 %v2828_v57, %v2846_v61 }
  0xd0   : > { %v1674_v21 = vor.u32 %v1672_v13, %v2976_v12  ;;  %v3013_v36 = vpop.f32.mrf.mxu0  ;;  %v3015_v37 = vpop.f32.mrf.mxu1  ;;  %1357 = vst.msk [vmem:[#allocation2 + $0x18] sm:$0xff] %vm640_vm0, %v1293_v38  ;;  %v1649_v4 = vpack.c.bf16 %v1561_v59, %v1561_v59  ;;  %v1675_v43 = vrot.slane %v2976_v12, 4  ;;  %v1201_v60 = vmax.f32 %v940_v34, 0.0 }
  0xd1   : > { %v1657_v6 = vpack.c.bf16 %v1569_v0, %v1569_v0  ;;  %v3054_v7 = vrot.slane %v1737_v3, 7  ;;  %v1197_v63 = vmax.f32 %v930_v48, 0.0 }
  0xd2   : > { %v1993_v27 = vsel %vm2986_vm3, %v1674_v21, %v2497_v18  ;;  %v1805_v49 = vshrl.u32 %v1649_v4, 16  ;;  %v1808_v15 = vshll.u32 %v1649_v4, 16 }
  0xd3   : > { %2498 = vst [vmem:[%s2809_s25 + $0xc] sm:$0xf] %v1993_v27  ;;  %2445 = vmatmul.msk.bf16.gmra.mxu0 %vm640_vm0, %v2592_v39  ;;  %2461 = vmatmul.msk.bf16.gmra.mxu1 %vm640_vm0, %v2608_v40  ;;  %v1873_v9 = vshrl.u32 %v1657_v6, 16  ;;  %v1742_v13 = vor.u32 %v1740_v8, %v3054_v7  ;;  %v1876_v19 = vshll.u32 %v1657_v6, 16  ;;  %v1020_v40 = vadd.f32 %v2828_v57, %v3007_v31 }
  0xd4   : > { %2477 = vmatmul.msk.bf16.gmra.mxu2 %vm640_vm0, %v2624_v41  ;;  %2493 = vmatmul.msk.bf16.gmra.mxu3 %vm640_vm0, %v2640_v42  ;;  %v3060_v14 = vrot.slane %v1805_v49, 7  ;;  %v2625_v41 = vld [vmem:[%s2713_s21 + $0x168] sm:$0xff]  ;;  %v1100_v31 = vadd.f32 %v2828_v57, %v3009_v32  ;;  %v1261_v6 = vmax.f32 %v1090_v45, 0.0  ;;  %v1309_v8 = vmax.f32 %v1197_v63, %v1201_v60 }
  0xd5   : > { %v3066_v18 = vrot.slane %v1873_v9, 7  ;;  %v2023_v53 = vsel %vm2986_vm3, %v1742_v13, %v2517_v5  ;;  %v2641_v42 = vld [vmem:[%s2713_s21 + $0x1e8] sm:$0xff]  ;;  %v1233_v61 = vmax.f32 %v1020_v40, 0.0  ;;  %v1229_v5 = vmax.f32 %v1010_v50, 0.0 }
  0xd6   : > { %v1810_v22 = vor.u32 %v1808_v15, %v3060_v14  ;;  %2518 = vst [vmem:[%s2809_s25 + $0x3c] sm:$0xf] %v2023_v53  ;;  %v1265_v0 = vmax.f32 %v1100_v31, 0.0  ;;  %v863_v13 = vadd.f32 %v2828_v57, %v3013_v36  ;;  %v943_v15 = vadd.f32 %v2828_v57, %v3015_v37 }
  0xd7   : > { %v3033_v51 = vpop.f32.mrf.mxu2  ;;  %v3035_v58 = vpop.f32.mrf.mxu3  ;;  %v1420_v10 = vld [vmem:[#allocation2 + $0x10] ss:$2 sm:$0xff]  ;;  %v1484_v11 = vld [vmem:[#allocation2 + $0x11] ss:$2 sm:$0xff]  ;;  %v1878_v25 = vor.u32 %v1876_v19, %v3066_v18  ;;  %v1325_v49 = vmax.f32 %v1229_v5, %v1233_v61  ;;  %1373 = vst.msk [vmem:[#allocation2 + $0x98] sm:$0xff] %vm640_vm0, %v1309_v8  ;;  %v1743_v34 = vrot.slane %v3054_v7, 4 }
  0xd8   : > { %v3043_v1 = vpop.f32.mrf.mxu0  ;;  %v3045_v2 = vpop.f32.mrf.mxu1  ;;  %v1546_v16 = vmax.f32 %v1420_v10, %v1484_v11  ;;  %v2051_v54 = vsel %vm2986_vm3, %v1810_v22, %v2537_v52  ;;  %v1341_v9 = vmax.f32 %v1261_v6, %v1265_v0  ;;  %v2610_v52 = vld [vmem:[%s2713_s21 + $0xf0] sm:$0xff]  ;;  %v1023_v56 = vadd.f32 %v2828_v57, %v3033_v51 }
  0xd9   : > { %2538 = vst [vmem:[%s2809_s25 + $0x6c] sm:$0xf] %v2051_v54  ;;  %v2079_v33 = vsel %vm2986_vm3, %v1878_v25, %v2557_v23  ;;  %v1103_v19 = vadd.f32 %v2828_v57, %v3035_v58  ;;  %v3188_v23 = vadd.f32 %v2828_v57, %v3043_v1  ;;  %v2642_v25 = vld [vmem:[%s2713_s21 + $0x1f0] sm:$0xff]  ;;  %v3196_v54 = vadd.f32 %v2828_v57, %v3045_v2 }
  0xda   : > { %v1634_v24 = vpack.c.bf16 %v1546_v16, %v1546_v16  ;;  %2558 = vst [vmem:[%s2809_s25 + $0x9c] sm:$0xf] %v2079_v33  ;;  %v2594_v16 = vld [vmem:[%s2713_s21 + $0x70] sm:$0xff]  ;;  %v1170_v51 = vmax.f32 %v863_v13, 0.0  ;;  %v1234_v1 = vmax.f32 %v1023_v56, 0.0 }
  0xdb   : > { %1389 = vst.msk [vmem:[#allocation2 + $0x118] sm:$0xff] %vm640_vm0, %v1325_v49  ;;  %v1171_v2 = vmax.f32 %v3188_v23, 0.0 }
  0xdc   : > { %v1677_v28 = vshrl.u32 %v1634_v24, 16  ;;  %v1680_v39 = vshll.u32 %v1634_v24, 16  ;;  %1405 = vst.msk [vmem:[#allocation2 + $0x198] sm:$0xff] %vm640_vm0, %v1341_v9  ;;  %v2626_v24 = vld [vmem:[%s2713_s21 + $0x170] sm:$0xff] }
  0xde   : > { %v1679_v38 = vrot.slane %v1677_v28, 7  ;;  %v1202_v28 = vmax.f32 %v943_v15, 0.0 }
  0xdf   : > { %v3071_v20 = vpop.f32.mrf.mxu2  ;;  %v3073_v21 = vpop.f32.mrf.mxu3 }
  0xe0   : > { %v3084_v26 = vpop.f32.mrf.mxu0  ;;  %v3086_v27 = vpop.f32.mrf.mxu1  ;;  %v1682_v55 = vor.u32 %v1680_v39, %v1679_v38  ;;  %v1684_v44 = vrot.slane %v1679_v38, 4  ;;  %v3202_v33 = vadd.f32 %v2828_v57, %v3071_v20  ;;  %v1436_v38 = vld [vmem:[#allocation2 + $0x90] ss:$2 sm:$0xff]  ;;  %v1500_v39 = vld [vmem:[#allocation2 + $0x91] ss:$2 sm:$0xff]  ;;  %v1203_v20 = vmax.f32 %v3196_v54, 0.0 }
  0xe1   : > { %v1554_v48 = vmax.f32 %v1436_v38, %v1500_v39  ;;  %v3217_v5 = vadd.f32 %v2828_v57, %v3073_v21  ;;  %v3223_v56 = vadd.f32 %v2828_v57, %v3084_v26  ;;  %v3227_v21 = vadd.f32 %v2828_v57, %v3086_v27 }
  0xe2   : > { %v1683_v59 = vsel %vm3102_vm7, %v1675_v43, %v1682_v55  ;;  %v1999_v62 = vsel %vm3116_vm8, %v1684_v44, %v2500_v47  ;;  %v1452_v47 = vld [vmem:[#allocation2 + $0x110] ss:$2 sm:$0xff]  ;;  %v1516_v31 = vld [vmem:[#allocation2 + $0x111] ss:$2 sm:$0xff]  ;;  %v1879_v55 = vrot.slane %v3066_v18, 4  ;;  %v1235_v0 = vmax.f32 %v3202_v33, 0.0 }
  0xe3   : > { %2446 = vmatmul.msk.bf16.gmra.mxu0 %vm640_vm0, %v2593_v29  ;;  %2462 = vmatmul.msk.bf16.gmra.mxu1 %vm640_vm0, %v2609_v30  ;;  %2499 = vst.msk [vmem:[%s2809_s25 + $0x10] sm:$0xf] %vm1577_vm1, %v1683_v59  ;;  %v1266_v30 = vmax.f32 %v1103_v19, 0.0  ;;  %v1562_v44 = vmax.f32 %v1452_v47, %v1516_v31  ;;  %v1468_v45 = vld [vmem:[#allocation2 + $0x190] ss:$2 sm:$0xff]  ;;  %v1642_v61 = vpack.c.bf16 %v1554_v48, %v1554_v48 }
  0xe4   : > { %2478 = vmatmul.msk.bf16.gmra.mxu2 %vm640_vm0, %v2625_v41  ;;  %2494 = vmatmul.msk.bf16.gmra.mxu3 %vm640_vm0, %v2641_v42  ;;  %2501 = vst [vmem:[%s2809_s25 + $0x14] sm:$0x1] %v1999_v62  ;;  %v1811_v42 = vrot.slane %v3060_v14, 4  ;;  %v1532_v60 = vld [vmem:[#allocation2 + $0x191] ss:$2 sm:$0xff] }
  0xe5   : > { %v1570_v63 = vmax.f32 %v1468_v45, %v1532_v60  ;;  %v1650_v49 = vpack.c.bf16 %v1562_v44, %v1562_v44 }
  0xe7   : > { %v3139_v12 = vpop.f32.mrf.mxu2  ;;  %v3141_v32 = vpop.f32.mrf.mxu3  ;;  %v1813_v19 = vshrl.u32 %v1650_v49, 16 }
  0xe8   : > { %v3152_v3 = vpop.f32.mrf.mxu0  ;;  %v3154_v4 = vpop.f32.mrf.mxu1  ;;  %v3233_v27 = vadd.f32 %v2828_v57, %v3139_v12  ;;  %v2595_v12 = vld [vmem:[%s2713_s21 + $0x78] sm:$0xff]  ;;  %v1108_v14 = vadd.f32 %v2828_v57, %v3141_v32  ;;  %v1172_v32 = vmax.f32 %v3223_v56, 0.0 }
  0xe9   : > { %v870_v54 = vadd.f32 %v2828_v57, %v3152_v3 }
  0xef   : > { %v3170_v10 = vpop.f32.mrf.mxu2  ;;  %v3172_v11 = vpop.f32.mrf.mxu3 }
  0xf0   : > { %v872_v53 = vpop.f32.mrf.mxu0  ;;  %v952_v22 = vpop.f32.mrf.mxu1 }
  0xf1   : > { %v873_v36 = vadd.f32 %v2828_v57, %v872_v53  ;;  %v953_v37 = vadd.f32 %v2828_v57, %v952_v22 }
  0xf3   : > { %v1174_v29 = vmax.f32 %v873_v36, 0.0  ;;  %v1206_v58 = vmax.f32 %v953_v37, 0.0  ;;  %2447 = vmatmul.msk.bf16.gmra.mxu0 %vm640_vm0, %v2594_v16  ;;  %2463 = vmatmul.msk.bf16.gmra.mxu1 %vm640_vm0, %v2610_v52  ;;  %v1745_v16 = vshrl.u32 %v1642_v61, 16  ;;  %v1658_v52 = vpack.c.bf16 %v1570_v63, %v1570_v63 }
  0xf4   : > { %2479 = vmatmul.msk.bf16.gmra.mxu2 %vm640_vm0, %v2626_v24  ;;  %2495 = vmatmul.msk.bf16.gmra.mxu3 %vm640_vm0, %v2642_v25  ;;  %v1748_v37 = vshll.u32 %v1642_v61, 16 }
  0xf5   : > { %v1294_v40 = vmax.f32 %v1170_v51, %v1174_v29  ;;  %v1310_v41 = vmax.f32 %v1202_v28, %v1206_v58  ;;  %v1747_v36 = vrot.slane %v1745_v16, 7  ;;  %v1881_v24 = vshrl.u32 %v1658_v52, 16  ;;  %v2520_v51 = vld [vmem:[%s2809_s25 + $0x44] sm:$0x1] }
  0xf6   : > { %v1815_v28 = vrot.slane %v1813_v19, 7  ;;  %v1816_v29 = vshll.u32 %v1650_v49, 16  ;;  %v1884_v26 = vshll.u32 %v1658_v52, 16  ;;  %v2643_v49 = vld [vmem:[%s2713_s21 + $0x1f8] sm:$0xff]  ;;  %v1267_v16 = vmax.f32 %v3217_v5, 0.0 }
  0xf7   : > { %v1032_v50 = vpop.f32.mrf.mxu2  ;;  %v1112_v43 = vpop.f32.mrf.mxu3  ;;  %1358 = vst.msk [vmem:[#allocation2 + $0x20] sm:$0xff] %vm640_vm0, %v1294_v40  ;;  %v1750_v58 = vor.u32 %v1748_v37, %v1747_v36  ;;  %v1883_v38 = vrot.slane %v1881_v24, 7  ;;  %v1204_v5 = vmax.f32 %v3227_v21, 0.0 }
  0xf8   : > { %v1033_v59 = vadd.f32 %v2828_v57, %v1032_v50  ;;  %v1113_v62 = vadd.f32 %v2828_v57, %v1112_v43  ;;  %1374 = vst.msk [vmem:[#allocation2 + $0xa0] sm:$0xff] %vm640_vm0, %v1310_v41  ;;  %v874_v6 = vpop.f32.mrf.mxu0  ;;  %v954_v8 = vpop.f32.mrf.mxu1  ;;  %v1818_v48 = vor.u32 %v1816_v29, %v1815_v28  ;;  %v1820_v47 = vrot.slane %v1815_v28, 4  ;;  %v2611_v43 = vld [vmem:[%s2713_s21 + $0xf8] sm:$0xff] }
  0xf9   : > { %v875_v15 = vadd.f32 %v2828_v57, %v874_v6  ;;  %v955_v23 = vadd.f32 %v2828_v57, %v954_v8  ;;  %v1751_v44 = vsel %vm3102_vm7, %v1743_v34, %v1750_v58  ;;  %v1886_v45 = vor.u32 %v1884_v26, %v1883_v38  ;;  %v2627_v8 = vld [vmem:[%s2713_s21 + $0x178] sm:$0xff] }
  0xfa   : > { %v1238_v9 = vmax.f32 %v1033_v59, 0.0  ;;  %v1270_v13 = vmax.f32 %v1113_v62, 0.0  ;;  %v1888_v60 = vrot.slane %v1883_v38, 4  ;;  %v2560_v59 = vld [vmem:[%s2809_s25 + $0xa4] sm:$0x1]  ;;  %v1819_v7 = vsel %vm3102_vm7, %v1811_v42, %v1818_v48 }
  0xfb   : > { %v1175_v25 = vmax.f32 %v875_v15, 0.0  ;;  %v1207_v31 = vmax.f32 %v955_v23, 0.0  ;;  %2519 = vst.msk [vmem:[%s2809_s25 + $0x40] sm:$0xf] %vm1577_vm1, %v1751_v44 }
  0xfc   : > { %v1326_v53 = vmax.f32 %v1234_v1, %v1238_v9  ;;  %v1342_v22 = vmax.f32 %v1266_v30, %v1270_v13  ;;  %v1752_v1 = vrot.slane %v1747_v36, 4  ;;  %v2540_v30 = vld [vmem:[%s2809_s25 + $0x74] sm:$0x1]  ;;  %v1887_v9 = vsel %vm3102_vm7, %v1879_v55, %v1886_v45  ;;  %2539 = vst.msk [vmem:[%s2809_s25 + $0x70] sm:$0xf] %vm1577_vm1, %v1819_v7 }
  0xfd   : > { %v1295_v39 = vmax.f32 %v1171_v2, %v1175_v25  ;;  %v2055_v34 = vsel %vm3116_vm8, %v1820_v47, %v2540_v30  ;;  %v2083_v15 = vsel %vm3116_vm8, %v1888_v60, %v2560_v59  ;;  %v1311_v18 = vmax.f32 %v1203_v20, %v1207_v31  ;;  %2559 = vst.msk [vmem:[%s2809_s25 + $0xa0] sm:$0xf] %vm1577_vm1, %v1887_v9 }
  0xfe   : > { %1390 = vst.msk [vmem:[#allocation2 + $0x120] sm:$0xff] %vm640_vm0, %v1326_v53  ;;  %v2027_v2 = vsel %vm3116_vm8, %v1752_v1, %v2520_v51  ;;  %v950_v20 = vadd.f32 %v2828_v57, %v3154_v4  ;;  %v1236_v25 = vmax.f32 %v3233_v27, 0.0  ;;  %v1268_v51 = vmax.f32 %v1108_v14, 0.0 }
  0xff   : > { %1406 = vst.msk [vmem:[#allocation2 + $0x1a0] sm:$0xff] %vm640_vm0, %v1342_v22  ;;  %v1034_v40 = vpop.f32.mrf.mxu2  ;;  %v1114_v41 = vpop.f32.mrf.mxu3  ;;  %v1173_v30 = vmax.f32 %v870_v54, 0.0  ;;  %v1030_v47 = vadd.f32 %v2828_v57, %v3170_v10 }
 0x100   : > { %v1035_v50 = vadd.f32 %v2828_v57, %v1034_v40  ;;  %1359 = vst.msk [vmem:[#allocation2 + $0x28] sm:$0xff] %vm640_vm0, %v1295_v39  ;;  %v877_v62 = vpop.f32.mrf.mxu0  ;;  %v957_v61 = vpop.f32.mrf.mxu1  ;;  %v1115_v6 = vadd.f32 %v2828_v57, %v1114_v41  ;;  %v1205_v38 = vmax.f32 %v950_v20, 0.0 }
 0x101   : > { %2521 = vst [vmem:[%s2809_s25 + $0x44] sm:$0x1] %v2027_v2  ;;  %v878_v42 = vadd.f32 %v2828_v57, %v877_v62  ;;  %v958_v13 = vadd.f32 %v2828_v57, %v957_v61  ;;  %v1110_v2 = vadd.f32 %v2828_v57, %v3172_v11 }
 0x102   : > { %v1239_v63 = vmax.f32 %v1035_v50, 0.0  ;;  %v1271_v55 = vmax.f32 %v1115_v6, 0.0  ;;  %2541 = vst [vmem:[%s2809_s25 + $0x74] sm:$0x1] %v2055_v34 }
 0x103   : > { %2448 = vmatmul.msk.bf16.gmra.mxu0 %vm640_vm0, %v2595_v12  ;;  %2464 = vmatmul.msk.bf16.gmra.mxu1 %vm640_vm0, %v2611_v43  ;;  %v1176_v19 = vmax.f32 %v878_v42, 0.0  ;;  %v1208_v53 = vmax.f32 %v958_v13, 0.0  ;;  %2561 = vst [vmem:[%s2809_s25 + $0xa4] sm:$0x1] %v2083_v15  ;;  %v2502_v12 = vld [vmem:[%s2809_s25 + $0x18] sm:$0xf] }
 0x104   : > { %v1327_v52 = vmax.f32 %v1235_v0, %v1239_v63  ;;  %v1343_v22 = vmax.f32 %v1267_v16, %v1271_v55  ;;  %2480 = vmatmul.msk.bf16.gmra.mxu2 %vm640_vm0, %v2627_v8  ;;  %2496 = vmatmul.msk.bf16.gmra.mxu3 %vm640_vm0, %v2643_v49  ;;  %1375 = vst.msk [vmem:[#allocation2 + $0xa8] sm:$0xff] %vm640_vm0, %v1311_v18  ;;  %v1237_v8 = vmax.f32 %v1030_v47, 0.0 }
 0x105   : > { %v1296_v33 = vmax.f32 %v1172_v32, %v1176_v19  ;;  %v1312_v21 = vmax.f32 %v1204_v5, %v1208_v53 }
 0x106   : > { %1391 = vst.msk [vmem:[#allocation2 + $0x128] sm:$0xff] %vm640_vm0, %v1327_v52 }
 0x107   : > { %v1037_v0 = vpop.f32.mrf.mxu2  ;;  %v1117_v56 = vpop.f32.mrf.mxu3  ;;  %v1422_v23 = vld [vmem:[#allocation2 + $0x20] ss:$2 sm:$0xff]  ;;  %v1486_v36 = vld [vmem:[#allocation2 + $0x21] ss:$2 sm:$0xff]  ;;  %1407 = vst.msk [vmem:[#allocation2 + $0x1a8] sm:$0xff] %vm640_vm0, %v1343_v22 }
 0x108   : > { %v1038_v37 = vadd.f32 %v2828_v57, %v1037_v0  ;;  %v1118_v24 = vadd.f32 %v2828_v57, %v1117_v56  ;;  %v1547_v28 = vmax.f32 %v1422_v23, %v1486_v36  ;;  %v879_v3 = vpop.f32.mrf.mxu0  ;;  %v959_v4 = vpop.f32.mrf.mxu1  ;;  %1360 = vst.msk [vmem:[#allocation2 + $0x30] sm:$0xff] %vm640_vm0, %v1296_v33  ;;  %v2522_v22 = vld [vmem:[%s2809_s25 + $0x48] sm:$0xf]  ;;  %v2542_v23 = vld [vmem:[%s2809_s25 + $0x78] sm:$0xf] }
 0x109   : > { %v880_v58 = vadd.f32 %v2828_v57, %v879_v3  ;;  %v960_v1 = vadd.f32 %v2828_v57, %v959_v4  ;;  %1376 = vst.msk [vmem:[#allocation2 + $0xb0] sm:$0xff] %vm640_vm0, %v1312_v21 }
 0x10a   : > { %v1240_v29 = vmax.f32 %v1038_v37, 0.0  ;;  %v1272_v26 = vmax.f32 %v1118_v24, 0.0  ;;  %v1635_v39 = vpack.c.bf16 %v1547_v28, %v1547_v28 }
 0x10b   : > { %v1177_v41 = vmax.f32 %v880_v58, 0.0  ;;  %v1209_v48 = vmax.f32 %v960_v1, 0.0  ;;  %v1438_v60 = vld [vmem:[#allocation2 + $0xa0] ss:$2 sm:$0xff]  ;;  %v1502_v59 = vld [vmem:[#allocation2 + $0xa1] ss:$2 sm:$0xff] }
 0x10c   : > { %v1328_v27 = vmax.f32 %v1236_v25, %v1240_v29  ;;  %v1344_v40 = vmax.f32 %v1268_v51, %v1272_v26  ;;  %v1686_v31 = vshrl.u32 %v1635_v39, 16  ;;  %v1689_v50 = vshll.u32 %v1635_v39, 16 }
 0x10d   : > { %v1297_v43 = vmax.f32 %v1173_v30, %v1177_v41  ;;  %v1313_v44 = vmax.f32 %v1205_v38, %v1209_v48  ;;  %v1555_v7 = vmax.f32 %v1438_v60, %v1502_v59  ;;  %v1454_v10 = vld [vmem:[#allocation2 + $0x120] ss:$2 sm:$0xff]  ;;  %v1518_v34 = vld [vmem:[#allocation2 + $0x121] ss:$2 sm:$0xff] }
 0x10e   : > { %1392 = vst.msk [vmem:[#allocation2 + $0x130] sm:$0xff] %vm640_vm0, %v1328_v27  ;;  %v3308_v45 = vrot.slane %v1686_v31, 7  ;;  %v1563_v49 = vmax.f32 %v1454_v10, %v1518_v34  ;;  %v1470_v9 = vld [vmem:[#allocation2 + $0x1a0] ss:$2 sm:$0xff]  ;;  %v1534_v14 = vld [vmem:[#allocation2 + $0x1a1] ss:$2 sm:$0xff] }
 0x10f   : > { %1408 = vst.msk [vmem:[#allocation2 + $0x1b0] sm:$0xff] %vm640_vm0, %v1344_v40  ;;  %v1039_v62 = vpop.f32.mrf.mxu2  ;;  %v1119_v61 = vpop.f32.mrf.mxu3  ;;  %v1643_v15 = vpack.c.bf16 %v1555_v7, %v1555_v7  ;;  %v1571_v16 = vmax.f32 %v1470_v9, %v1534_v14  ;;  %v2562_v30 = vld [vmem:[%s2809_s25 + $0xa8] sm:$0xf]  ;;  %v2525_v14 = vld [vmem:[%s2809_s25 + $0x50] sm:$0x1] }
 0x110   : > { %1361 = vst.msk [vmem:[#allocation2 + $0x38] sm:$0xff] %vm640_vm0, %v1297_v43  ;;  %v1040_v63 = vadd.f32 %v2828_v57, %v1039_v62  ;;  %v1120_v6 = vadd.f32 %v2828_v57, %v1119_v61  ;;  %v1691_v11 = vor.u32 %v1689_v50, %v3308_v45  ;;  %v3316_v42 = vpop.f32.mrf.mxu0  ;;  %v3318_v13 = vpop.f32.mrf.mxu1  ;;  %v1269_v57 = vmax.f32 %v1110_v2, 0.0  ;;  %v2505_v61 = vld [vmem:[%s2809_s25 + $0x20] sm:$0x1] }
 0x111   : > { %1377 = vst.msk [vmem:[#allocation2 + $0xb8] sm:$0xff] %vm640_vm0, %v1313_v44  ;;  %v1651_v52 = vpack.c.bf16 %v1563_v49, %v1563_v49  ;;  %v1754_v19 = vshrl.u32 %v1643_v15, 16  ;;  %v1659_v53 = vpack.c.bf16 %v1571_v16, %v1571_v16  ;;  %v1757_v0 = vshll.u32 %v1643_v15, 16 }
 0x112   : > { %v1241_v18 = vmax.f32 %v1040_v63, 0.0  ;;  %v1273_v55 = vmax.f32 %v1120_v6, 0.0  ;;  %v2002_v32 = vsel %vm2986_vm3, %v1691_v11, %v2502_v12  ;;  %v1692_v11 = vrot.slane %v3308_v45, 4 }
 0x113   : > { %2503 = vst [vmem:[%s2809_s25 + $0x18] sm:$0xf] %v2002_v32  ;;  %v1822_v54 = vshrl.u32 %v1651_v52, 16  ;;  %v3324_v33 = vrot.slane %v1754_v19, 7  ;;  %v1825_v56 = vshll.u32 %v1651_v52, 16  ;;  %v1890_v36 = vshrl.u32 %v1659_v53, 16 }
 0x114   : > { %v1329_v5 = vmax.f32 %v1237_v8, %v1241_v18  ;;  %v1345_v20 = vmax.f32 %v1269_v57, %v1273_v55  ;;  %v1893_v4 = vshll.u32 %v1659_v53, 16 }
 0x115   : > { %v3328_v21 = vrot.slane %v1822_v54, 7  ;;  %v1759_v28 = vor.u32 %v1757_v0, %v3324_v33  ;;  %v3336_v3 = vrot.slane %v1890_v36, 7  ;;  %v1760_v16 = vrot.slane %v3324_v33, 4 }
 0x116   : > { %1393 = vst.msk [vmem:[#allocation2 + $0x138] sm:$0xff] %vm640_vm0, %v1329_v5 }
 0x117   : > { %v1424_v37 = vld [vmem:[#allocation2 + $0x30] ss:$2 sm:$0xff]  ;;  %v1488_v24 = vld [vmem:[#allocation2 + $0x31] ss:$2 sm:$0xff]  ;;  %1409 = vst.msk [vmem:[#allocation2 + $0x1b8] sm:$0xff] %vm640_vm0, %v1345_v20  ;;  %v3331_v25 = vpop.f32.mrf.mxu2  ;;  %v3333_v51 = vpop.f32.mrf.mxu3  ;;  %v1827_v1 = vor.u32 %v1825_v56, %v3328_v21  ;;  %v2030_v40 = vsel %vm2986_vm3, %v1759_v28, %v2522_v22  ;;  %v1895_v41 = vor.u32 %v1893_v4, %v3336_v3 }
 0x118   : > { %v1548_v29 = vmax.f32 %v1424_v37, %v1488_v24  ;;  %v1440_v26 = vld [vmem:[#allocation2 + $0xb0] ss:$2 sm:$0xff]  ;;  %v1504_v58 = vld [vmem:[#allocation2 + $0xb1] ss:$2 sm:$0xff]  ;;  %v3340_v39 = vpop.f32.mrf.mxu0  ;;  %v3342_v27 = vpop.f32.mrf.mxu1  ;;  %2523 = vst [vmem:[%s2809_s25 + $0x48] sm:$0xf] %v2030_v40 }
 0x119   : > { %v1556_v38 = vmax.f32 %v1440_v26, %v1504_v58  ;;  %v2058_v47 = vsel %vm2986_vm3, %v1827_v1, %v2542_v23  ;;  %v2086_v50 = vsel %vm2986_vm3, %v1895_v41, %v2562_v30  ;;  %v2545_v56 = vld [vmem:[%s2809_s25 + $0x80] sm:$0x1]  ;;  %v1828_v37 = vrot.slane %v3328_v21, 4  ;;  %v2565_v4 = vld [vmem:[%s2809_s25 + $0xb0] sm:$0x1] }
 0x11a   : > { %v1636_v48 = vpack.c.bf16 %v1548_v29, %v1548_v29  ;;  %2543 = vst [vmem:[%s2809_s25 + $0x78] sm:$0xf] %v2058_v47  ;;  %v1896_v58 = vrot.slane %v3336_v3, 4 }
 0x11b   : > { %v1644_v31 = vpack.c.bf16 %v1556_v38, %v1556_v38  ;;  %2563 = vst [vmem:[%s2809_s25 + $0xa8] sm:$0xf] %v2086_v50  ;;  %v3413_v50 = vld [vmem:[%s3708_s2] ss:$0 sm:$0xff] }
 0x11c   : > { %v1694_v12 = vshrl.u32 %v1636_v48, 16  ;;  %v1697_v60 = vshll.u32 %v1636_v48, 16 }
 0x11d   : > { %v1762_v43 = vshrl.u32 %v1644_v31, 16  ;;  %v1456_v44 = vld [vmem:[#allocation2 + $0x130] ss:$2 sm:$0xff]  ;;  %v1520_v59 = vld [vmem:[#allocation2 + $0x131] ss:$2 sm:$0xff]  ;;  %v1765_v10 = vshll.u32 %v1644_v31, 16 }
 0x11e   : > { %v1696_v2 = vrot.slane %v1694_v12, 7  ;;  %v1472_v62 = vld [vmem:[#allocation2 + $0x1b0] ss:$2 sm:$0xff]  ;;  %v1564_v34 = vmax.f32 %v1456_v44, %v1520_v59  ;;  %v1536_v63 = vld [vmem:[#allocation2 + $0x1b1] ss:$2 sm:$0xff]  ;;  %v883_v12 = vadd.f32 %v3413_v50, %v3316_v42 }
 0x11f   : > { %v1764_v7 = vrot.slane %v1762_v43, 7  ;;  %v3355_v6 = vpop.f32.mrf.mxu2  ;;  %v3357_v8 = vpop.f32.mrf.mxu3  ;;  %v1572_v15 = vmax.f32 %v1472_v62, %v1536_v63  ;;  %v963_v43 = vadd.f32 %v3413_v50, %v3318_v13  ;;  %v1123_v63 = vadd.f32 %v3413_v50, %v3333_v51 }
 0x120   : > { %v1699_v49 = vor.u32 %v1697_v60, %v1696_v2  ;;  %v1701_v9 = vrot.slane %v1696_v2, 4  ;;  %v1652_v57 = vpack.c.bf16 %v1564_v34, %v1564_v34  ;;  %v3362_v32 = vpop.f32.mrf.mxu0  ;;  %v3364_v52 = vpop.f32.mrf.mxu1  ;;  %v1178_v62 = vmax.f32 %v883_v12, 0.0 }
 0x121   : > { %v1767_v18 = vor.u32 %v1765_v10, %v1764_v7  ;;  %v1769_v55 = vrot.slane %v1764_v7, 4  ;;  %v1660_v53 = vpack.c.bf16 %v1572_v15, %v1572_v15  ;;  %v1043_v34 = vadd.f32 %v3413_v50, %v3331_v25 }
 0x122   : > { %v1700_v45 = vsel %vm3102_vm7, %v1692_v11, %v1699_v49  ;;  %v2006_v19 = vsel %vm3116_vm8, %v1701_v9, %v2505_v61  ;;  %v1830_v54 = vshrl.u32 %v1652_v57, 16  ;;  %v1833_v0 = vshll.u32 %v1652_v57, 16 }
 0x123   : > { %2504 = vst.msk [vmem:[%s2809_s25 + $0x1c] sm:$0xf] %vm1577_vm1, %v1700_v45  ;;  %v1768_v5 = vsel %vm3102_vm7, %v1760_v16, %v1767_v18  ;;  %v2034_v22 = vsel %vm3116_vm8, %v1769_v55, %v2525_v14  ;;  %v1898_v20 = vshrl.u32 %v1660_v53, 16  ;;  %v1901_v36 = vshll.u32 %v1660_v53, 16 }
 0x124   : > { %2506 = vst [vmem:[%s2809_s25 + $0x20] sm:$0x1] %v2006_v19  ;;  %v1832_v33 = vrot.slane %v1830_v54, 7  ;;  %v1210_v61 = vmax.f32 %v963_v43, 0.0  ;;  %v885_v13 = vadd.f32 %v3413_v50, %v3340_v39  ;;  %v965_v49 = vadd.f32 %v3413_v50, %v3342_v27 }
 0x125   : > { %2524 = vst.msk [vmem:[%s2809_s25 + $0x4c] sm:$0xf] %vm1577_vm1, %v1768_v5  ;;  %v1900_v23 = vrot.slane %v1898_v20, 7  ;;  %v1242_v25 = vmax.f32 %v1043_v34, 0.0  ;;  %v1274_v18 = vmax.f32 %v1123_v63, 0.0 }
 0x126   : > { %2526 = vst [vmem:[%s2809_s25 + $0x50] sm:$0x1] %v2034_v22  ;;  %v1835_v24 = vor.u32 %v1833_v0, %v1832_v33  ;;  %v1837_v28 = vrot.slane %v1832_v33, 4  ;;  %v1179_v19 = vmax.f32 %v885_v13, 0.0  ;;  %v1211_v53 = vmax.f32 %v965_v49, 0.0 }
 0x127   : > { %v3383_v29 = vpop.f32.mrf.mxu2  ;;  %v3385_v26 = vpop.f32.mrf.mxu3  ;;  %v1903_v1 = vor.u32 %v1901_v36, %v1900_v23  ;;  %v1905_v30 = vrot.slane %v1900_v23, 4  ;;  %v1045_v33 = vadd.f32 %v3413_v50, %v3355_v6  ;;  %v1125_v0 = vadd.f32 %v3413_v50, %v3357_v8 }
 0x128   : > { %v1836_v38 = vsel %vm3102_vm7, %v1828_v37, %v1835_v24  ;;  %v2062_v21 = vsel %vm3116_vm8, %v1837_v28, %v2545_v56  ;;  %v3392_v40 = vpop.f32.mrf.mxu0  ;;  %v3394_v41 = vpop.f32.mrf.mxu1  ;;  %v888_v36 = vadd.f32 %v3413_v50, %v3362_v32  ;;  %v968_v37 = vadd.f32 %v3413_v50, %v3364_v52 }
 0x129   : > { %2544 = vst.msk [vmem:[%s2809_s25 + $0x7c] sm:$0xf] %vm1577_vm1, %v1836_v38  ;;  %v1904_v48 = vsel %vm3102_vm7, %v1896_v58, %v1903_v1  ;;  %v2090_v3 = vsel %vm3116_vm8, %v1905_v30, %v2565_v4  ;;  %v1243_v4 = vmax.f32 %v1045_v33, 0.0  ;;  %v1275_v58 = vmax.f32 %v1125_v0, 0.0 }
 0x12a   : > { %2546 = vst [vmem:[%s2809_s25 + $0x80] sm:$0x1] %v2062_v21 }
 0x12b   : > { %2564 = vst.msk [vmem:[%s2809_s25 + $0xac] sm:$0xf] %vm1577_vm1, %v1904_v48  ;;  %v1180_v48 = vmax.f32 %v888_v36, 0.0 }
 0x12c   : > { %2566 = vst [vmem:[%s2809_s25 + $0xb0] sm:$0x1] %v2090_v3  ;;  %v1212_v3 = vmax.f32 %v968_v37, 0.0 }
 0x12f   : > { %v3406_v47 = vpop.f32.mrf.mxu2  ;;  %v3408_v31 = vpop.f32.mrf.mxu3 }
 0x130   : > { %v892_v44 = vpop.f32.mrf.mxu0  ;;  %v972_v2 = vpop.f32.mrf.mxu1 }
 0x131   : > { %v893_v60 = vadd.f32 %v3413_v50, %v892_v44  ;;  %v973_v59 = vadd.f32 %v3413_v50, %v972_v2 }
 0x133   : > { %v1182_v7 = vmax.f32 %v893_v60, 0.0  ;;  %v1214_v10 = vmax.f32 %v973_v59, 0.0  ;;  %v1048_v60 = vadd.f32 %v3413_v50, %v3383_v29  ;;  %v1128_v59 = vadd.f32 %v3413_v50, %v3385_v26 }
 0x135   : > { %v1298_v42 = vmax.f32 %v1178_v62, %v1182_v7  ;;  %v1314_v11 = vmax.f32 %v1210_v61, %v1214_v10  ;;  %v890_v7 = vadd.f32 %v3413_v50, %v3392_v40 }
 0x137   : > { %v1052_v9 = vpop.f32.mrf.mxu2  ;;  %v1132_v14 = vpop.f32.mrf.mxu3  ;;  %1362 = vst.msk [vmem:[#allocation2 + $0x40] sm:$0xff] %vm640_vm0, %v1298_v42 }
 0x138   : > { %v1053_v15 = vadd.f32 %v3413_v50, %v1052_v9  ;;  %v1133_v16 = vadd.f32 %v3413_v50, %v1132_v14  ;;  %1378 = vst.msk [vmem:[#allocation2 + $0xc0] sm:$0xff] %vm640_vm0, %v1314_v11  ;;  %v894_v51 = vpop.f32.mrf.mxu0  ;;  %v974_v55 = vpop.f32.mrf.mxu1  ;;  %v1244_v9 = vmax.f32 %v1048_v60, 0.0  ;;  %v1276_v14 = vmax.f32 %v1128_v59, 0.0 }
 0x139   : > { %v895_v39 = vadd.f32 %v3413_v50, %v894_v51  ;;  %v975_v27 = vadd.f32 %v3413_v50, %v974_v55 }
 0x13a   : > { %v1246_v57 = vmax.f32 %v1053_v15, 0.0  ;;  %v1278_v45 = vmax.f32 %v1133_v16, 0.0 }
 0x13b   : > { %v1183_v54 = vmax.f32 %v895_v39, 0.0  ;;  %v1215_v20 = vmax.f32 %v975_v27, 0.0 }
 0x13c   : > { %v1330_v5 = vmax.f32 %v1242_v25, %v1246_v57  ;;  %v1346_v22 = vmax.f32 %v1274_v18, %v1278_v45  ;;  %v970_v25 = vadd.f32 %v3413_v50, %v3394_v41  ;;  %v1181_v57 = vmax.f32 %v890_v7, 0.0 }
 0x13d   : > { %v1299_v56 = vmax.f32 %v1179_v19, %v1183_v54  ;;  %v1315_v23 = vmax.f32 %v1211_v53, %v1215_v20  ;;  %v1050_v41 = vadd.f32 %v3413_v50, %v3406_v47 }
 0x13e   : > { %1394 = vst.msk [vmem:[#allocation2 + $0x140] sm:$0xff] %vm640_vm0, %v1330_v5  ;;  %v1213_v47 = vmax.f32 %v970_v25, 0.0 }
 0x13f   : > { %1410 = vst.msk [vmem:[#allocation2 + $0x1c0] sm:$0xff] %vm640_vm0, %v1346_v22  ;;  %v1054_v24 = vpop.f32.mrf.mxu2  ;;  %v1134_v28 = vpop.f32.mrf.mxu3 }
 0x140   : > { %1363 = vst.msk [vmem:[#allocation2 + $0x48] sm:$0xff] %vm640_vm0, %v1299_v56  ;;  %v1055_v6 = vadd.f32 %v3413_v50, %v1054_v24  ;;  %v1135_v8 = vadd.f32 %v3413_v50, %v1134_v28  ;;  %v897_v1 = vpop.f32.mrf.mxu0  ;;  %v977_v30 = vpop.f32.mrf.mxu1  ;;  %v2507_v24 = vld [vmem:[%s2809_s25 + $0x24] sm:$0xf] }
 0x141   : > { %1379 = vst.msk [vmem:[#allocation2 + $0xc8] sm:$0xff] %vm640_vm0, %v1315_v23  ;;  %v898_v52 = vadd.f32 %v3413_v50, %v897_v1  ;;  %v978_v21 = vadd.f32 %v3413_v50, %v977_v30 }
 0x142   : > { %v1247_v32 = vmax.f32 %v1055_v6, 0.0  ;;  %v1279_v38 = vmax.f32 %v1135_v8, 0.0 }
 0x143   : > { %v1184_v44 = vmax.f32 %v898_v52, 0.0  ;;  %v1216_v2 = vmax.f32 %v978_v21, 0.0 }
 0x144   : > { %v1331_v12 = vmax.f32 %v1243_v4, %v1247_v32  ;;  %v1347_v43 = vmax.f32 %v1275_v58, %v1279_v38  ;;  %v2527_v32 = vld [vmem:[%s2809_s25 + $0x54] sm:$0xf] }
 0x145   : > { %v1300_v62 = vmax.f32 %v1180_v48, %v1184_v44  ;;  %v1316_v61 = vmax.f32 %v1212_v3, %v1216_v2  ;;  %v1130_v44 = vadd.f32 %v3413_v50, %v3408_v31  ;;  %v2547_v31 = vld [vmem:[%s2809_s25 + $0x84] sm:$0xf] }
 0x146   : > { %1395 = vst.msk [vmem:[#allocation2 + $0x148] sm:$0xff] %vm640_vm0, %v1331_v12 }
 0x147   : > { %v1426_v10 = vld [vmem:[#allocation2 + $0x40] ss:$2 sm:$0xff]  ;;  %v1490_v34 = vld [vmem:[#allocation2 + $0x41] ss:$2 sm:$0xff]  ;;  %1411 = vst.msk [vmem:[#allocation2 + $0x1c8] sm:$0xff] %vm640_vm0, %v1347_v43  ;;  %v1057_v63 = vpop.f32.mrf.mxu2  ;;  %v1137_v42 = vpop.f32.mrf.mxu3 }
 0x148   : > { %v1549_v11 = vmax.f32 %v1426_v10, %v1490_v34  ;;  %v1442_v13 = vld [vmem:[#allocation2 + $0xc0] ss:$2 sm:$0xff]  ;;  %v1506_v49 = vld [vmem:[#allocation2 + $0xc1] ss:$2 sm:$0xff]  ;;  %1364 = vst.msk [vmem:[#allocation2 + $0x50] sm:$0xff] %vm640_vm0, %v1300_v62  ;;  %v1058_v29 = vadd.f32 %v3413_v50, %v1057_v63  ;;  %v1138_v26 = vadd.f32 %v3413_v50, %v1137_v42  ;;  %v899_v40 = vpop.f32.mrf.mxu0  ;;  %v979_v16 = vpop.f32.mrf.mxu1  ;;  %v1245_v62 = vmax.f32 %v1050_v41, 0.0 }
 0x149   : > { %v1557_v15 = vmax.f32 %v1442_v13, %v1506_v49  ;;  %1380 = vst.msk [vmem:[#allocation2 + $0xd0] sm:$0xff] %vm640_vm0, %v1316_v61  ;;  %v900_v39 = vadd.f32 %v3413_v50, %v899_v40  ;;  %v980_v27 = vadd.f32 %v3413_v50, %v979_v16 }
 0x14a   : > { %v1637_v18 = vpack.c.bf16 %v1549_v11, %v1549_v11  ;;  %v1248_v51 = vmax.f32 %v1058_v29, 0.0  ;;  %v1280_v55 = vmax.f32 %v1138_v26, 0.0  ;;  %v1277_v29 = vmax.f32 %v1130_v44, 0.0 }
 0x14b   : > { %v1645_v45 = vpack.c.bf16 %v1557_v15, %v1557_v15  ;;  %v1185_v8 = vmax.f32 %v900_v39, 0.0  ;;  %v1217_v4 = vmax.f32 %v980_v27, 0.0 }
 0x14c   : > { %v1703_v19 = vshrl.u32 %v1637_v18, 16  ;;  %v1706_v53 = vshll.u32 %v1637_v18, 16  ;;  %v1332_v5 = vmax.f32 %v1244_v9, %v1248_v51  ;;  %v1348_v22 = vmax.f32 %v1276_v14, %v1280_v55  ;;  %v2567_v9 = vld [vmem:[%s2809_s25 + $0xb4] sm:$0xf] }
 0x14d   : > { %v1771_v54 = vshrl.u32 %v1645_v45, 16  ;;  %v1774_v20 = vshll.u32 %v1645_v45, 16  ;;  %v1458_v33 = vld [vmem:[#allocation2 + $0x140] ss:$2 sm:$0xff]  ;;  %v1522_v0 = vld [vmem:[#allocation2 + $0x141] ss:$2 sm:$0xff]  ;;  %v1301_v3 = vmax.f32 %v1181_v57, %v1185_v8  ;;  %v1317_v59 = vmax.f32 %v1213_v47, %v1217_v4 }
 0x14e   : > { %v3469_v56 = vrot.slane %v1703_v19, 7  ;;  %v1565_v23 = vmax.f32 %v1458_v33, %v1522_v0  ;;  %v1474_v36 = vld [vmem:[#allocation2 + $0x1c0] ss:$2 sm:$0xff]  ;;  %v1538_v37 = vld [vmem:[#allocation2 + $0x1c1] ss:$2 sm:$0xff]  ;;  %1396 = vst.msk [vmem:[#allocation2 + $0x150] sm:$0xff] %vm640_vm0, %v1332_v5 }
 0x14f   : > { %v3473_v28 = vrot.slane %v1771_v54, 7  ;;  %v1573_v6 = vmax.f32 %v1474_v36, %v1538_v37  ;;  %1412 = vst.msk [vmem:[#allocation2 + $0x1d0] sm:$0xff] %vm640_vm0, %v1348_v22  ;;  %v1059_v58 = vpop.f32.mrf.mxu2  ;;  %v1139_v1 = vpop.f32.mrf.mxu3 }
 0x150   : > { %v1708_v30 = vor.u32 %v1706_v53, %v3469_v56  ;;  %v1653_v38 = vpack.c.bf16 %v1565_v23, %v1565_v23  ;;  %v1060_v52 = vadd.f32 %v3413_v50, %v1059_v58  ;;  %v3480_v12 = vpop.f32.mrf.mxu0  ;;  %v3482_v43 = vpop.f32.mrf.mxu1  ;;  %v1140_v42 = vadd.f32 %v3413_v50, %v1139_v1  ;;  %1365 = vst.msk [vmem:[#allocation2 + $0x58] sm:$0xff] %vm640_vm0, %v1301_v3 }
 0x151   : > { %v1776_v21 = vor.u32 %v1774_v20, %v3473_v28  ;;  %v1661_v48 = vpack.c.bf16 %v1573_v6, %v1573_v6  ;;  %1381 = vst.msk [vmem:[#allocation2 + $0xd8] sm:$0xff] %vm640_vm0, %v1317_v59 }
 0x152   : > { %v2009_v2 = vsel %vm2986_vm3, %v1708_v30, %v2507_v24  ;;  %v1839_v60 = vshrl.u32 %v1653_v38, 16  ;;  %v1249_v10 = vmax.f32 %v1060_v52, 0.0  ;;  %v1842_v63 = vshll.u32 %v1653_v38, 16  ;;  %v2510_v52 = vld [vmem:[%s2809_s25 + $0x2c] sm:$0x1] }
 0x153   : > { %2508 = vst [vmem:[%s2809_s25 + $0x24] sm:$0xf] %v2009_v2  ;;  %v2037_v61 = vsel %vm2986_vm3, %v1776_v21, %v2527_v32  ;;  %v1907_v7 = vshrl.u32 %v1661_v48, 16  ;;  %v1910_v13 = vshll.u32 %v1661_v48, 16  ;;  %v1281_v14 = vmax.f32 %v1140_v42, 0.0 }
 0x154   : > { %2528 = vst [vmem:[%s2809_s25 + $0x54] sm:$0xf] %v2037_v61  ;;  %v3492_v34 = vrot.slane %v1839_v60, 7  ;;  %v1333_v49 = vmax.f32 %v1245_v62, %v1249_v10  ;;  %v1709_v38 = vrot.slane %v3469_v56, 4  ;;  %v2530_v60 = vld [vmem:[%s2809_s25 + $0x5c] sm:$0x1] }
 0x155   : > { %v3496_v11 = vrot.slane %v1907_v7, 7  ;;  %v1349_v16 = vmax.f32 %v1277_v29, %v1281_v14  ;;  %v1777_v61 = vrot.slane %v3473_v28, 4 }
 0x156   : > { %v1844_v26 = vor.u32 %v1842_v63, %v3492_v34  ;;  %1397 = vst.msk [vmem:[#allocation2 + $0x158] sm:$0xff] %vm640_vm0, %v1333_v49  ;;  %v1845_v7 = vrot.slane %v3492_v34, 4  ;;  %v2550_v49 = vld [vmem:[%s2809_s25 + $0x8c] sm:$0x1] }
 0x157   : > { %v1912_v15 = vor.u32 %v1910_v13, %v3496_v11  ;;  %v3506_v25 = vpop.f32.mrf.mxu2  ;;  %v3508_v18 = vpop.f32.mrf.mxu3  ;;  %1413 = vst.msk [vmem:[#allocation2 + $0x1d8] sm:$0xff] %vm640_vm0, %v1349_v16  ;;  %v1428_v45 = vld [vmem:[#allocation2 + $0x50] ss:$2 sm:$0xff]  ;;  %v1492_v39 = vld [vmem:[#allocation2 + $0x51] ss:$2 sm:$0xff] }
 0x158   : > { %v2065_v40 = vsel %vm2986_vm3, %v1844_v26, %v2547_v31  ;;  %v3513_v55 = vpop.f32.mrf.mxu0  ;;  %v3515_v57 = vpop.f32.mrf.mxu1  ;;  %v1550_v27 = vmax.f32 %v1428_v45, %v1492_v39  ;;  %v1444_v19 = vld [vmem:[#allocation2 + $0xd0] ss:$2 sm:$0xff]  ;;  %v1508_v53 = vld [vmem:[#allocation2 + $0xd1] ss:$2 sm:$0xff] }
 0x159   : > { %2548 = vst [vmem:[%s2809_s25 + $0x84] sm:$0xf] %v2065_v40  ;;  %v2093_v51 = vsel %vm2986_vm3, %v1912_v15, %v2567_v9  ;;  %v1558_v5 = vmax.f32 %v1444_v19, %v1508_v53  ;;  %v2570_v39 = vld [vmem:[%s2809_s25 + $0xbc] sm:$0x1] }
 0x15a   : > { %2568 = vst [vmem:[%s2809_s25 + $0xb4] sm:$0xf] %v2093_v51  ;;  %v1638_v20 = vpack.c.bf16 %v1550_v27, %v1550_v27  ;;  %v1913_v27 = vrot.slane %v3496_v11, 4  ;;  %v983_v11 = vadd.f32 %v3413_v50, %v3482_v43  ;;  %v1143_v43 = vadd.f32 %v3413_v50, %v3508_v18 }
 0x15b   : > { %v1646_v0 = vpack.c.bf16 %v1558_v5, %v1558_v5 }
 0x15c   : > { %v1711_v36 = vshrl.u32 %v1638_v20, 16  ;;  %v1714_v47 = vshll.u32 %v1638_v20, 16 }
 0x15d   : > { %v1460_v22 = vld [vmem:[#allocation2 + $0x150] ss:$2 sm:$0xff]  ;;  %v1524_v54 = vld [vmem:[#allocation2 + $0x151] ss:$2 sm:$0xff]  ;;  %v1779_v8 = vshrl.u32 %v1646_v0, 16  ;;  %v1782_v48 = vshll.u32 %v1646_v0, 16 }
 0x15e   : > { %v1566_v33 = vmax.f32 %v1460_v22, %v1524_v54  ;;  %v1476_v4 = vld [vmem:[#allocation2 + $0x1d0] ss:$2 sm:$0xff]  ;;  %v1540_v58 = vld [vmem:[#allocation2 + $0x1d1] ss:$2 sm:$0xff]  ;;  %v1713_v1 = vrot.slane %v1711_v36, 7  ;;  %v903_v54 = vadd.f32 %v3413_v50, %v3480_v12  ;;  %v1063_v12 = vadd.f32 %v3413_v50, %v3506_v25 }
 0x15f   : > { %v3519_v41 = vpop.f32.mrf.mxu2  ;;  %v3521_v23 = vpop.f32.mrf.mxu3  ;;  %v1574_v32 = vmax.f32 %v1476_v4, %v1540_v58  ;;  %v1781_v21 = vrot.slane %v1779_v8, 7  ;;  %v1218_v58 = vmax.f32 %v983_v11, 0.0 }
 0x160   : > { %v1654_v37 = vpack.c.bf16 %v1566_v33, %v1566_v33  ;;  %v3523_v24 = vpop.f32.mrf.mxu0  ;;  %v3525_v6 = vpop.f32.mrf.mxu1  ;;  %v1716_v44 = vor.u32 %v1714_v47, %v1713_v1  ;;  %v1718_v2 = vrot.slane %v1713_v1, 4  ;;  %v1186_v4 = vmax.f32 %v903_v54, 0.0 }
 0x161   : > { %v1662_v62 = vpack.c.bf16 %v1574_v32, %v1574_v32  ;;  %v1784_v10 = vor.u32 %v1782_v48, %v1781_v21  ;;  %v1786_v63 = vrot.slane %v1781_v21, 4 }
 0x162   : > { %v1847_v30 = vshrl.u32 %v1654_v37, 16  ;;  %v1850_v3 = vshll.u32 %v1654_v37, 16  ;;  %v1717_v56 = vsel %vm3102_vm7, %v1709_v38, %v1716_v44  ;;  %v2013_v42 = vsel %vm3116_vm8, %v1718_v2, %v2510_v52 }
 0x163   : > { %2509 = vst.msk [vmem:[%s2809_s25 + $0x28] sm:$0xf] %vm1577_vm1, %v1717_v56  ;;  %v1785_v28 = vsel %vm3102_vm7, %v1777_v61, %v1784_v10  ;;  %v2041_v34 = vsel %vm3116_vm8, %v1786_v63, %v2530_v60  ;;  %v1915_v29 = vshrl.u32 %v1662_v62, 16  ;;  %v1918_v16 = vshll.u32 %v1662_v62, 16 }
 0x164   : > { %v1849_v59 = vrot.slane %v1847_v30, 7  ;;  %2511 = vst [vmem:[%s2809_s25 + $0x2c] sm:$0x1] %v2013_v42  ;;  %v905_v38 = vadd.f32 %v3413_v50, %v3513_v55  ;;  %v985_v52 = vadd.f32 %v3413_v50, %v3515_v57  ;;  %v1250_v55 = vmax.f32 %v1063_v12, 0.0 }
 0x165   : > { %2529 = vst.msk [vmem:[%s2809_s25 + $0x58] sm:$0xf] %vm1577_vm1, %v1785_v28  ;;  %v1917_v40 = vrot.slane %v1915_v29, 7  ;;  %v1145_v28 = vadd.f32 %v3413_v50, %v3521_v23  ;;  %v988_v29 = vadd.f32 %v3413_v50, %v3525_v6 }
 0x166   : > { %v1852_v31 = vor.u32 %v1850_v3, %v1849_v59  ;;  %v1854_v13 = vrot.slane %v1849_v59, 4  ;;  %2531 = vst [vmem:[%s2809_s25 + $0x5c] sm:$0x1] %v2041_v34  ;;  %v1282_v59 = vmax.f32 %v1143_v43, 0.0  ;;  %v1187_v61 = vmax.f32 %v905_v38, 0.0 }
 0x167   : > { %v3546_v9 = vpop.f32.mrf.mxu2  ;;  %v3548_v14 = vpop.f32.mrf.mxu3  ;;  %v1920_v19 = vor.u32 %v1918_v16, %v1917_v40  ;;  %v1922_v53 = vrot.slane %v1917_v40, 4  ;;  %v908_v34 = vadd.f32 %v3413_v50, %v3523_v24  ;;  %v1283_v6 = vmax.f32 %v1145_v28, 0.0 }
 0x168   : > { %v1853_v26 = vsel %vm3102_vm7, %v1845_v7, %v1852_v31  ;;  %v2069_v15 = vsel %vm3116_vm8, %v1854_v13, %v2550_v49  ;;  %v3554_v51 = vpop.f32.mrf.mxu0  ;;  %v3556_v45 = vpop.f32.mrf.mxu1  ;;  %v1219_v7 = vmax.f32 %v985_v52, 0.0  ;;  %v1065_v49 = vadd.f32 %v3413_v50, %v3519_v41 }
 0x169   : > { %2549 = vst.msk [vmem:[%s2809_s25 + $0x88] sm:$0xf] %vm1577_vm1, %v1853_v26  ;;  %v1921_v5 = vsel %vm3102_vm7, %v1913_v27, %v1920_v19  ;;  %v2097_v22 = vsel %vm3116_vm8, %v1922_v53, %v2570_v39 }
 0x16a   : > { %2551 = vst [vmem:[%s2809_s25 + $0x8c] sm:$0x1] %v2069_v15  ;;  %v1251_v27 = vmax.f32 %v1065_v49, 0.0 }
 0x16b   : > { %2569 = vst.msk [vmem:[%s2809_s25 + $0xb8] sm:$0xf] %vm1577_vm1, %v1921_v5  ;;  %v1188_v5 = vmax.f32 %v908_v34, 0.0 }
 0x16c   : > { %2571 = vst [vmem:[%s2809_s25 + $0xbc] sm:$0x1] %v2097_v22  ;;  %v1220_v22 = vmax.f32 %v988_v29, 0.0 }
 0x16f   : > { %v3575_v20 = vpop.f32.mrf.mxu2  ;;  %v3577_v33 = vpop.f32.mrf.mxu3 }
 0x170   : > { %v912_v0 = vpop.f32.mrf.mxu0  ;;  %v992_v36 = vpop.f32.mrf.mxu1  ;;  %v1070_v29 = vadd.f32 %v3413_v50, %v3575_v20 }
 0x171   : > { %v913_v37 = vadd.f32 %v3413_v50, %v912_v0  ;;  %v993_v8 = vadd.f32 %v3413_v50, %v992_v36  ;;  %v1068_v0 = vadd.f32 %v3413_v50, %v3546_v9 }
 0x173   : > { %v1190_v1 = vmax.f32 %v913_v37, 0.0  ;;  %v1222_v47 = vmax.f32 %v993_v8, 0.0  ;;  %v1148_v8 = vadd.f32 %v3413_v50, %v3548_v14  ;;  %v1252_v43 = vmax.f32 %v1068_v0, 0.0 }
 0x174   : > { %v1253_v0 = vmax.f32 %v1070_v29, 0.0 }
 0x175   : > { %v1302_v30 = vmax.f32 %v1186_v4, %v1190_v1  ;;  %v1318_v32 = vmax.f32 %v1218_v58, %v1222_v47  ;;  %v910_v1 = vadd.f32 %v3413_v50, %v3554_v51  ;;  %v990_v47 = vadd.f32 %v3413_v50, %v3556_v45 }
 0x177   : > { %1366 = vst.msk [vmem:[#allocation2 + $0x60] sm:$0xff] %vm640_vm0, %v1302_v30  ;;  %v1072_v21 = vpop.f32.mrf.mxu2  ;;  %v1152_v48 = vpop.f32.mrf.mxu3 }
 0x178   : > { %1382 = vst.msk [vmem:[#allocation2 + $0xe0] sm:$0xff] %vm640_vm0, %v1318_v32  ;;  %v1073_v3 = vadd.f32 %v3413_v50, %v1072_v21  ;;  %v1153_v44 = vadd.f32 %v3413_v50, %v1152_v48  ;;  %v914_v25 = vpop.f32.mrf.mxu0  ;;  %v994_v2 = vpop.f32.mrf.mxu1 }
 0x179   : > { %v915_v18 = vadd.f32 %v3413_v50, %v914_v25  ;;  %v995_v60 = vadd.f32 %v3413_v50, %v994_v2 }
 0x17a   : > { %v1254_v62 = vmax.f32 %v1073_v3, 0.0  ;;  %v1286_v57 = vmax.f32 %v1153_v44, 0.0  ;;  %v1284_v44 = vmax.f32 %v1148_v8, 0.0 }
 0x17b   : > { %v1191_v10 = vmax.f32 %v915_v18, 0.0  ;;  %v1223_v63 = vmax.f32 %v995_v60, 0.0  ;;  %v1189_v18 = vmax.f32 %v910_v1, 0.0 }
 0x17c   : > { %v1334_v56 = vmax.f32 %v1250_v55, %v1254_v62  ;;  %v1350_v42 = vmax.f32 %v1282_v59, %v1286_v57  ;;  %v1221_v62 = vmax.f32 %v990_v47, 0.0 }
 0x17d   : > { %v1303_v31 = vmax.f32 %v1187_v61, %v1191_v10  ;;  %v1319_v13 = vmax.f32 %v1219_v7, %v1223_v63 }
 0x17e   : > { %1398 = vst.msk [vmem:[#allocation2 + $0x160] sm:$0xff] %vm640_vm0, %v1334_v56 }
 0x17f   : > { %1414 = vst.msk [vmem:[#allocation2 + $0x1e0] sm:$0xff] %vm640_vm0, %v1350_v42  ;;  %v1074_v26 = vpop.f32.mrf.mxu2  ;;  %v1154_v15 = vpop.f32.mrf.mxu3 }
 0x180   : > { %1367 = vst.msk [vmem:[#allocation2 + $0x68] sm:$0xff] %vm640_vm0, %v1303_v31  ;;  %v1075_v40 = vadd.f32 %v3413_v50, %v1074_v26  ;;  %v1155_v41 = vadd.f32 %v3413_v50, %v1154_v15  ;;  %v917_v16 = vpop.f32.mrf.mxu0  ;;  %v997_v23 = vpop.f32.mrf.mxu1 }
 0x181   : > { %1383 = vst.msk [vmem:[#allocation2 + $0xe8] sm:$0xff] %vm640_vm0, %v1319_v13  ;;  %v918_v39 = vadd.f32 %v3413_v50, %v917_v16  ;;  %v998_v24 = vadd.f32 %v3413_v50, %v997_v23  ;;  %v1150_v16 = vadd.f32 %v3413_v50, %v3577_v33  ;;  %v2512_v23 = vld [vmem:[%s2809_s25 + $0x30] sm:$0xf] }
 0x182   : > { %v1255_v19 = vmax.f32 %v1075_v40, 0.0  ;;  %v1287_v53 = vmax.f32 %v1155_v41, 0.0 }
 0x183   : > { %v1192_v54 = vmax.f32 %v918_v39, 0.0  ;;  %v1224_v11 = vmax.f32 %v998_v24, 0.0 }
 0x184   : > { %v1335_v36 = vmax.f32 %v1251_v27, %v1255_v19  ;;  %v1351_v37 = vmax.f32 %v1283_v6, %v1287_v53  ;;  %v2532_v53 = vld [vmem:[%s2809_s25 + $0x60] sm:$0xf] }
 0x185   : > { %v1304_v4 = vmax.f32 %v1188_v5, %v1192_v54  ;;  %v1320_v58 = vmax.f32 %v1220_v22, %v1224_v11 }
 0x186   : > { %1399 = vst.msk [vmem:[#allocation2 + $0x168] sm:$0xff] %vm640_vm0, %v1335_v36 }
 0x187   : > { %v1430_v30 = vld [vmem:[#allocation2 + $0x60] ss:$2 sm:$0xff]  ;;  %v1494_v32 = vld [vmem:[#allocation2 + $0x61] ss:$2 sm:$0xff]  ;;  %1415 = vst.msk [vmem:[#allocation2 + $0x1e8] sm:$0xff] %vm640_vm0, %v1351_v37  ;;  %v1077_v9 = vpop.f32.mrf.mxu2  ;;  %v1157_v12 = vpop.f32.mrf.mxu3 }
 0x188   : > { %v1551_v38 = vmax.f32 %v1430_v30, %v1494_v32  ;;  %v1446_v52 = vld [vmem:[#allocation2 + $0xe0] ss:$2 sm:$0xff]  ;;  %v1510_v14 = vld [vmem:[#allocation2 + $0xe1] ss:$2 sm:$0xff]  ;;  %1368 = vst.msk [vmem:[#allocation2 + $0x70] sm:$0xff] %vm640_vm0, %v1304_v4  ;;  %v1078_v21 = vadd.f32 %v3413_v50, %v1077_v9  ;;  %v1158_v51 = vadd.f32 %v3413_v50, %v1157_v12  ;;  %v919_v48 = vpop.f32.mrf.mxu0  ;;  %v999_v3 = vpop.f32.mrf.mxu1  ;;  %v1285_v4 = vmax.f32 %v1150_v16, 0.0 }
 0x189   : > { %v1559_v45 = vmax.f32 %v1446_v52, %v1510_v14  ;;  %1384 = vst.msk [vmem:[#allocation2 + $0xf0] sm:$0xff] %vm640_vm0, %v1320_v58  ;;  %v920_v25 = vadd.f32 %v3413_v50, %v919_v48  ;;  %v1000_v2 = vadd.f32 %v3413_v50, %v999_v3  ;;  %v2572_v14 = vld [vmem:[%s2809_s25 + $0xc0] sm:$0xf] }
 0x18a   : > { %v1639_v60 = vpack.c.bf16 %v1551_v38, %v1551_v38  ;;  %v1256_v55 = vmax.f32 %v1078_v21, 0.0  ;;  %v1288_v59 = vmax.f32 %v1158_v51, 0.0 }
 0x18b   : > { %v1647_v57 = vpack.c.bf16 %v1559_v45, %v1559_v45  ;;  %v1193_v61 = vmax.f32 %v920_v25, 0.0  ;;  %v1225_v7 = vmax.f32 %v1000_v2, 0.0 }
 0x18c   : > { %v1720_v10 = vshrl.u32 %v1639_v60, 16  ;;  %v1336_v63 = vmax.f32 %v1252_v43, %v1256_v55  ;;  %v1352_v56 = vmax.f32 %v1284_v44, %v1288_v59  ;;  %v1723_v42 = vshll.u32 %v1639_v60, 16 }
 0x18d   : > { %v1788_v31 = vshrl.u32 %v1647_v57, 16  ;;  %v1462_v13 = vld [vmem:[#allocation2 + $0x160] ss:$2 sm:$0xff]  ;;  %v1526_v49 = vld [vmem:[#allocation2 + $0x161] ss:$2 sm:$0xff]  ;;  %v1305_v28 = vmax.f32 %v1189_v18, %v1193_v61  ;;  %v1321_v34 = vmax.f32 %v1221_v62, %v1225_v7  ;;  %v1791_v24 = vshll.u32 %v1647_v57, 16 }
 0x18e   : > { %v3629_v26 = vrot.slane %v1720_v10, 7  ;;  %v1567_v15 = vmax.f32 %v1462_v13, %v1526_v49  ;;  %v1478_v40 = vld [vmem:[#allocation2 + $0x1e0] ss:$2 sm:$0xff]  ;;  %v1542_v41 = vld [vmem:[#allocation2 + $0x1e1] ss:$2 sm:$0xff]  ;;  %1400 = vst.msk [vmem:[#allocation2 + $0x170] sm:$0xff] %vm640_vm0, %v1336_v63 }
 0x18f   : > { %v3635_v39 = vrot.slane %v1788_v31, 7  ;;  %v1575_v27 = vmax.f32 %v1478_v40, %v1542_v41  ;;  %1416 = vst.msk [vmem:[#allocation2 + $0x1f0] sm:$0xff] %vm640_vm0, %v1352_v56  ;;  %v1079_v6 = vpop.f32.mrf.mxu2  ;;  %v1159_v20 = vpop.f32.mrf.mxu3  ;;  %v2515_v31 = vld [vmem:[%s2809_s25 + $0x38] sm:$0x1] }
 0x190   : > { %v1725_v19 = vor.u32 %v1723_v42, %v3629_v26  ;;  %v1655_v5 = vpack.c.bf16 %v1567_v15, %v1567_v15  ;;  %1369 = vst.msk [vmem:[#allocation2 + $0x78] sm:$0xff] %vm640_vm0, %v1305_v28  ;;  %v1080_v22 = vadd.f32 %v3413_v50, %v1079_v6  ;;  %v1160_v11 = vadd.f32 %v3413_v50, %v1159_v20  ;;  %v2552_v50 = vld [vmem:[%s2809_s25 + $0x90] sm:$0xf]  ;;  %v2535_v15 = vld [vmem:[%s2809_s25 + $0x68] sm:$0x1] }
 0x191   : > { %v1793_v33 = vor.u32 %v1791_v24, %v3635_v39  ;;  %v1663_v54 = vpack.c.bf16 %v1575_v27, %v1575_v27  ;;  %1385 = vst.msk [vmem:[#allocation2 + $0xf8] sm:$0xff] %vm640_vm0, %v1321_v34  ;;  %v1726_v28 = vrot.slane %v3629_v26, 4  ;;  %v1794_v41 = vrot.slane %v3635_v39, 4 }
 0x192   : > { %v2016_v36 = vsel %vm2986_vm3, %v1725_v19, %v2512_v23  ;;  %v1856_v37 = vshrl.u32 %v1655_v5, 16  ;;  %v1257_v8 = vmax.f32 %v1080_v22, 0.0  ;;  %v1289_v47 = vmax.f32 %v1160_v11, 0.0  ;;  %v2555_v22 = vld [vmem:[%s2809_s25 + $0x98] sm:$0x1] }
 0x193   : > { %2513 = vst [vmem:[%s2809_s25 + $0x30] sm:$0xf] %v2016_v36  ;;  %v2044_v58 = vsel %vm2986_vm3, %v1793_v33, %v2532_v53  ;;  %v1924_v1 = vshrl.u32 %v1663_v54, 16  ;;  %v1859_v32 = vshll.u32 %v1655_v5, 16  ;;  %v1927_v43 = vshll.u32 %v1663_v54, 16 }
 0x194   : > { %2533 = vst [vmem:[%s2809_s25 + $0x60] sm:$0xf] %v2044_v58  ;;  %v3651_v30 = vrot.slane %v1856_v37, 7  ;;  %v1337_v9 = vmax.f32 %v1253_v0, %v1257_v8  ;;  %v1353_v38 = vmax.f32 %v1285_v4, %v1289_v47  ;;  %v2575_v37 = vld [vmem:[%s2809_s25 + $0xc8] sm:$0x1] }
 0x195   : > { %v3654_v12 = vrot.slane %v1924_v1, 7 }
 0x196   : > { %v1861_v52 = vor.u32 %v1859_v32, %v3651_v30  ;;  %1401 = vst.msk [vmem:[#allocation2 + $0x178] sm:$0xff] %vm640_vm0, %v1337_v9  ;;  %v1862_v11 = vrot.slane %v3651_v30, 4 }
 0x197   : > { %v1929_v21 = vor.u32 %v1927_v43, %v3654_v12  ;;  %v1432_v51 = vld [vmem:[#allocation2 + $0x70] ss:$2 sm:$0xff]  ;;  %v1496_v48 = vld [vmem:[#allocation2 + $0x71] ss:$2 sm:$0xff]  ;;  %1417 = vst.msk [vmem:[#allocation2 + $0x1f8] sm:$0xff] %vm640_vm0, %v1353_v38  ;;  %v1930_v8 = vrot.slane %v3654_v12, 4 }
 0x198   : > { %v2072_v3 = vsel %vm2986_vm3, %v1861_v52, %v2552_v50  ;;  %v1552_v44 = vmax.f32 %v1432_v51, %v1496_v48  ;;  %v1448_v45 = vld [vmem:[#allocation2 + $0xf0] ss:$2 sm:$0xff]  ;;  %v1512_v25 = vld [vmem:[#allocation2 + $0xf1] ss:$2 sm:$0xff] }
 0x199   : > { %2553 = vst [vmem:[%s2809_s25 + $0x90] sm:$0xf] %v2072_v3  ;;  %v2100_v2 = vsel %vm2986_vm3, %v1929_v21, %v2572_v14  ;;  %v1560_v18 = vmax.f32 %v1448_v45, %v1512_v25 }
 0x19a   : > { %2573 = vst [vmem:[%s2809_s25 + $0xc0] sm:$0xf] %v2100_v2  ;;  %v1640_v60 = vpack.c.bf16 %v1552_v44, %v1552_v44 }
 0x19b   : > { %v1648_v55 = vpack.c.bf16 %v1560_v18, %v1560_v18 }
 0x19c   : > { %v1728_v59 = vshrl.u32 %v1640_v60, 16  ;;  %v1731_v10 = vshll.u32 %v1640_v60, 16 }
 0x19d   : > { %v1796_v62 = vshrl.u32 %v1648_v55, 16  ;;  %v1464_v57 = vld [vmem:[#allocation2 + $0x170] ss:$2 sm:$0xff]  ;;  %v1528_v61 = vld [vmem:[#allocation2 + $0x171] ss:$2 sm:$0xff]  ;;  %v1799_v49 = vshll.u32 %v1648_v55, 16 }
 0x19e   : > { %v1730_v7 = vrot.slane %v1728_v59, 7  ;;  %v1568_v63 = vmax.f32 %v1464_v57, %v1528_v61  ;;  %v1480_v56 = vld [vmem:[#allocation2 + $0x1f0] ss:$2 sm:$0xff]  ;;  %v1544_v42 = vld [vmem:[#allocation2 + $0x1f1] ss:$2 sm:$0xff] }
 0x19f   : > { %v1798_v13 = vrot.slane %v1796_v62, 7  ;;  %v1576_v17 = vmax.f32 %v1480_v56, %v1544_v42 }
 0x1a0   : > { %v1733_v34 = vor.u32 %v1731_v10, %v1730_v7  ;;  %v1735_v29 = vrot.slane %v1730_v7, 4  ;;  %v1656_v40 = vpack.c.bf16 %v1568_v63, %v1568_v63 }
 0x1a1   : > { %v1801_v16 = vor.u32 %v1799_v49, %v1798_v13  ;;  %v1803_v23 = vrot.slane %v1798_v13, 4  ;;  %v1664_v24 = vpack.c.bf16 %v1576_v17, %v1576_v17 }
 0x1a2   : > { %v1734_v27 = vsel %vm3102_vm7, %v1726_v28, %v1733_v34  ;;  %v2020_v6 = vsel %vm3116_vm8, %v1735_v29, %v2515_v31  ;;  %v1864_v26 = vshrl.u32 %v1656_v40, 16  ;;  %v1867_v5 = vshll.u32 %v1656_v40, 16 }
 0x1a3   : > { %2514 = vst.msk [vmem:[%s2809_s25 + $0x34] sm:$0xf] %vm1577_vm1, %v1734_v27  ;;  %v1802_v20 = vsel %vm3102_vm7, %v1794_v41, %v1801_v16  ;;  %v2048_v39 = vsel %vm3116_vm8, %v1803_v23, %v2535_v15  ;;  %v1932_v19 = vshrl.u32 %v1664_v24, 16  ;;  %v1935_v54 = vshll.u32 %v1664_v24, 16 }
 0x1a4   : > { %2516 = vst [vmem:[%s2809_s25 + $0x38] sm:$0x1] %v2020_v6  ;;  %v1866_v53 = vrot.slane %v1864_v26, 7 }
 0x1a5   : > { %2534 = vst.msk [vmem:[%s2809_s25 + $0x64] sm:$0xf] %vm1577_vm1, %v1802_v20  ;;  %v1934_v33 = vrot.slane %v1932_v19, 7 }
 0x1a6   : > { %2536 = vst [vmem:[%s2809_s25 + $0x68] sm:$0x1] %v2048_v39  ;;  %v1869_v0 = vor.u32 %v1867_v5, %v1866_v53  ;;  %v1871_v36 = vrot.slane %v1866_v53, 4 }
 0x1a7   : > { %v1937_v4 = vor.u32 %v1935_v54, %v1934_v33  ;;  %v1939_v58 = vrot.slane %v1934_v33, 4 }
 0x1a8   : > { %v1870_v1 = vsel %vm3102_vm7, %v1862_v11, %v1869_v0  ;;  %v2076_v47 = vsel %vm3116_vm8, %v1871_v36, %v2555_v22 }
 0x1a9   : > { %2554 = vst.msk [vmem:[%s2809_s25 + $0x94] sm:$0xf] %vm1577_vm1, %v1870_v1  ;;  %v1938_v32 = vsel %vm3102_vm7, %v1930_v8, %v1937_v4  ;;  %v2104_v30 = vsel %vm3116_vm8, %v1939_v58, %v2575_v37 }
 0x1aa   : > { %2556 = vst [vmem:[%s2809_s25 + $0x98] sm:$0x1] %v2076_v47 }
 0x1ab   : > { %2574 = vst.msk [vmem:[%s2809_s25 + $0xc4] sm:$0xf] %vm1577_vm1, %v1938_v32 }
 0x1ac   : > { %2576 = vst [vmem:[%s2809_s25 + $0xc8] sm:$0x1] %v2104_v30 }
 0x1ad PF: > { %s13_s12 = sadd.s32 1, %s2670_s12  }
 0x1ae   : > { %p10_p4 = scmp.ge.s32.totalorder %s13_s12, 4  }
 0x1b0   :  { %12 = sbr.rel (!%p10_p4) target bundleno = 1 (0x1), region = 126 }

// kernel: face_recognition_forward.5
= control target key start
LH: loop header
LB: loop body
LE: loop exit
PB: predicated region body
PF: predicated region fallthrough
CT: control target
= control target key end

     0   :  { %s5435_s12 = smov 0   ;;  %s6997_s0 = inlined_call_operand.vmem [shape: bf16[2,18,18,32], index: 0, kind: input, shape index: {}]   ;;  %s6998_s1 = inlined_call_operand.vmem [shape: bf16[3,3,32,64], index: 1, kind: input, shape index: {}]   ;;  %s6999_s2 = inlined_call_operand.vmem [shape: f32[1,64], index: 2, kind: input, shape index: {}]   ;;  %s7000_s3 = inlined_call_operand.vmem [shape: bf16[2,10,10,64], index: 3, kind: output, shape index: {}]  }
   0x1 LB: > { %s4550_s13 = sadd.s32 4294967295, %s5412_s12   ;;  %p4554_p0 = scmp.ge.s32.totalorder %s5412_s12, 1  ;;  %s5412_s12 = sphi %s5435_s12, %s13_s12  }
   0x2   : > { %p137_p1 = scmp.lt.s32.totalorder %s5412_s12, 3 }
   0x4   : > { %p138_p2 = pnand %p4554_p0, %p137_p1 }
   0x6   : > { %141 = sbr.rel (%p138_p2) target bundleno = 780 (0x30c), region = 32 }
   0xb   : > { %v5290_v0 = vld [vmem:[%s6998_s1 + $0x18] sm:$0xff]  ;;  %p161_p3 = scmp.lt.s32.totalorder %s4550_s13, 1  ;;  %v5289_v1 = vld [vmem:[%s6998_s1 + $0x10] sm:$0xff]  ;;  %v5292_v2 = vld [vmem:[%s6998_s1 + $0x28] sm:$0xff]  ;;  %vm224_vm0 = vsmask.f32 3328 }
   0xc   : > { %5337 = vmatpush.bf16.msra.mxu1 %v5290_v0  ;;  %5338 = vmatpush.bf16.msra.mxu2 %v5290_v0  ;;  %v5310_v3 = vld [vmem:[%s6998_s1 + $0x38] sm:$0xff]  ;;  %v5288_v4 = vld [vmem:[%s6998_s1 + $0x8] sm:$0xff]  ;;  %vm225_vm1 = vsmask.f32 7440  ;;  %vm676_vm3 = vcmask 261120   ;;  %vm1091_vm4 = vcmask 1042432  }
   0xd   : > { %s7018_s13 = smov (!%p161_p3, %s4550_s13), 1  ;;  %5339 = vmatpush.bf16.msra.mxu3 %v5290_v0  ;;  %731 = vmatpush.bf16.msra.mxu0 %v5290_v0  ;;  %v5312_v5 = vld [vmem:[%s6998_s1 + $0x48] sm:$0xff]  ;;  %vm5479_vm2 = vmor %vm224_vm0, %vm225_vm1  ;;  %vm1092_vm5 = vcmask 1046532   ;;  %vm4330_vm7 = vcmask 519168   ;;  %vm4332_vm8 = vcmask 516096   ;;  %vm4274_vm9 = vcmask 523264  }
   0xe   : > { %s5343_s18 = smul.u32 216, %s7018_s13  ;;  %vm5674_vm6 = vmor %vm1091_vm4, %vm1092_vm5  ;;  %vm4442_vm10 = vsmask.f32 7938  ;;  %vm4448_vm11 = vsmask.f32 256 }
   0xf   : > { %s5344_s30 = smul.u32 80, %s7018_s13  ;;  %vm6725_vm12 = vmand %vm4330_vm7, %vm4442_vm10 }
  0x10   : > { %5340 = vmatpush.bf16.msra.mxu1 %v5289_v1  ;;  %5341 = vmatpush.bf16.msra.mxu2 %v5289_v1  ;;  %s5467_s29 = scalar_lea.vmem %s6997_s0, %s5343_s18  ;;  %vm6733_vm13 = vmand %vm4332_vm8, %vm4448_vm11 }
  0x11   : > { %5342 = vmatpush.bf16.msra.mxu3 %v5289_v1  ;;  %732 = vmatpush.bf16.msra.mxu0 %v5289_v1  ;;  %v180_v6 = vld [vmem:[%s5467_s29 + $0x30] sm:$0xf]  ;;  %v181_v7 = vld [vmem:[%s5467_s29 + $0x34] sm:$0xf]  ;;  %v212_v8 = vld [vmem:[%s5467_s29 + $0x38] sm:$0x1]  ;;  %s6536_s5 = scalar_lea.vmem %s7000_s3, %s5344_s30 }
  0x12   : > { %v324_v9 = vshrl.u32 %v180_v6, 16  ;;  %v327_v10 = vshll.u32 %v180_v6, 16  ;;  %v333_v11 = vshll.u32 %v181_v7, 16  ;;  %v337_v12 = vshrl.u32 %v181_v7, 16  ;;  %v188_v13 = vld [vmem:[%s5467_s29 + $0x60] sm:$0xf] }
  0x13   : > { %v343_v14 = vshll.u32 %v212_v8, 16  ;;  %v189_v15 = vld [vmem:[%s5467_s29 + $0x64] sm:$0xf]  ;;  %v216_v16 = vld [vmem:[%s5467_s29 + $0x68] sm:$0x1]  ;;  %v420_v17 = vshrl.u32 %v188_v13, 16 }
  0x14   : > { %1325 = vmatpush.bf16.msrb.mxu2 %v5292_v2  ;;  %960 = vmatpush.bf16.msrb.mxu1 %v5288_v4  ;;  %v326_v18 = vrot.slane %v324_v9, 4  ;;  %v329_v19 = vrot.slane %v327_v10, 5  ;;  %v335_v20 = vrot.slane %v333_v11, 5  ;;  %v339_v21 = vrot.slane %v337_v12, 4  ;;  %v196_v22 = vld [vmem:[%s5467_s29 + $0x90] sm:$0xf] }
  0x15   : > { %1624 = vmatpush.bf16.msrb.mxu3 %v5310_v3  ;;  %2290 = vmatpush.bf16.msrb.mxu0 %v5312_v5  ;;  %v345_v23 = vrot.slane %v343_v14, 5  ;;  %v422_v24 = vrot.slane %v420_v17, 4  ;;  %v423_v25 = vshll.u32 %v188_v13, 16  ;;  %v429_v26 = vshll.u32 %v189_v15, 16  ;;  %v197_v31 = vld [vmem:[%s5467_s29 + $0x94] sm:$0xf] }
  0x16   : > { %v330_v27 = vor.u32 %v329_v19, %v326_v18  ;;  %v340_v28 = vor.u32 %v339_v21, %v335_v20  ;;  %v433_v29 = vshrl.u32 %v189_v15, 16  ;;  %v439_v30 = vshll.u32 %v216_v16, 16  ;;  %v220_v41 = vld [vmem:[%s5467_s29 + $0x98] sm:$0x1]  ;;  %v172_v57 = vld [vmem:[%s5467_s29] sm:$0xf] }
  0x17   : > { %v425_v33 = vrot.slane %v423_v25, 5  ;;  %v431_v34 = vrot.slane %v429_v26, 5  ;;  %v516_v35 = vshrl.u32 %v196_v22, 16  ;;  %v519_v43 = vshll.u32 %v196_v22, 16  ;;  %v5492_v61 = vld [vmem:[%s5467_s29 + $0x4] sm:$0xf] }
  0x18   : > { %v331_v36 = vrot.slane %v330_v27, 4  ;;  %v341_v37 = vrot.slane %v340_v28, 4  ;;  %v435_v38 = vrot.slane %v433_v29, 4  ;;  %v441_v39 = vrot.slane %v439_v30, 5  ;;  %v5495_v62 = vld [vmem:[%s5467_s29 + $0x8] sm:$0x1] }
  0x19   : > { %v426_v40 = vor.u32 %v425_v33, %v422_v24  ;;  %v518_v42 = vrot.slane %v516_v35, 4  ;;  %v525_v44 = vshll.u32 %v197_v31, 16  ;;  %v529_v48 = vshrl.u32 %v197_v31, 16  ;;  %v182_v15 = vld [vmem:[%s5467_s29 + $0x3c] sm:$0xf] }
  0x1a   : > { %v336_v45 = vsel %vm5479_vm2, %v331_v36, %v335_v20  ;;  %v346_v46 = vsel %vm5479_vm2, %v341_v37, %v345_v23  ;;  %v436_v47 = vor.u32 %v435_v38, %v431_v34  ;;  %v521_v52 = vrot.slane %v519_v43, 5  ;;  %v5507_v16 = vld [vmem:[%s5467_s29 + $0x40] sm:$0xf]  ;;  %v5512_v21 = vld [vmem:[%s5467_s29 + $0x44] sm:$0x1] }
  0x1b   : > { %v624_v49 = vunpack.c.l.b16 %v336_v45  ;;  %v625_v50 = vunpack.c.l.b16 %v346_v46  ;;  %v427_v51 = vrot.slane %v426_v40, 4  ;;  %v527_v54 = vrot.slane %v525_v44, 5  ;;  %v190_v29 = vld [vmem:[%s5467_s29 + $0x6c] sm:$0xf]  ;;  %v217_v43 = vld [vmem:[%s5467_s29 + $0x74] sm:$0x1] }
  0x1c   : > { %v437_v53 = vrot.slane %v436_v47, 4  ;;  %v531_v55 = vrot.slane %v529_v48, 4  ;;  %v535_v56 = vshll.u32 %v220_v41, 16  ;;  %v522_v60 = vor.u32 %v521_v52, %v518_v42 }
  0x1d   : > { %v652_v58 = vpack.c.b16 %v625_v50, %v624_v49  ;;  %v432_v59 = vsel %vm5479_vm2, %v427_v51, %v431_v34  ;;  %v228_v5 = vshrl.u32 %v172_v57, 16  ;;  %v231_v6 = vshll.u32 %v172_v57, 16  ;;  %v198_v57 = vld [vmem:[%s5467_s29 + $0x9c] sm:$0xf] }
  0x1e   : > { %v442_v63 = vsel %vm5479_vm2, %v437_v53, %v441_v39  ;;  %v632_v0 = vunpack.c.l.b16 %v432_v59  ;;  %v532_v1 = vor.u32 %v531_v55, %v527_v54  ;;  %v537_v2 = vrot.slane %v535_v56, 5  ;;  %v191_v39 = vld [vmem:[%s5467_s29 + $0x70] sm:$0xf] }
  0x1f   : > { %4573 = vmatmul.msk.bf16.vlgmr.msra.gmra.mxu1 %vm676_vm3, %v652_v58  ;;  %v633_v3 = vunpack.c.l.b16 %v442_v63  ;;  %v523_v4 = vrot.slane %v522_v60, 4  ;;  %v237_v8 = vshll.u32 %v5492_v61, 16  ;;  %v241_v9 = vshrl.u32 %v5492_v61, 16  ;;  %v199_v63 = vld [vmem:[%s5467_s29 + $0xa0] sm:$0xf] }
  0x20   : > { %v533_v7 = vrot.slane %v532_v1, 4  ;;  %v247_v10 = vshll.u32 %v5495_v62, 16  ;;  %v230_v13 = vrot.slane %v228_v5, 4  ;;  %v233_v14 = vrot.slane %v231_v6, 5 }
  0x21   : > { %v656_v11 = vpack.c.b16 %v633_v3, %v632_v0  ;;  %v528_v12 = vsel %vm5479_vm2, %v523_v4, %v527_v54  ;;  %v239_v19 = vrot.slane %v237_v8, 5  ;;  %v243_v20 = vrot.slane %v241_v9, 4  ;;  %v221_v4 = vld [vmem:[%s5467_s29 + $0xa4] sm:$0x1] }
  0x22   : > { %v538_v17 = vsel %vm5479_vm2, %v533_v7, %v537_v2  ;;  %v640_v18 = vunpack.c.l.b16 %v528_v12  ;;  %v234_v23 = vor.u32 %v233_v14, %v230_v13  ;;  %v249_v24 = vrot.slane %v247_v10, 5  ;;  %v174_v13 = vld [vmem:[%s5467_s29 + $0xc] sm:$0xf] }
  0x23   : > { %4577 = vmatmul.msk.bf16.vlgmr.msra.gmra.mxu2 %vm676_vm3, %v656_v11  ;;  %v641_v22 = vunpack.c.l.b16 %v538_v17  ;;  %v244_v25 = vor.u32 %v243_v20, %v239_v19  ;;  %v348_v26 = vshrl.u32 %v182_v15, 16  ;;  %v351_v27 = vshll.u32 %v182_v15, 16 }
  0x24   : > { %v357_v28 = vshll.u32 %v5507_v16, 16  ;;  %v235_v31 = vrot.slane %v234_v23, 4  ;;  %v361_v33 = vshrl.u32 %v5507_v16, 16  ;;  %v367_v34 = vshll.u32 %v5512_v21, 16 }
  0x25   : > { %v660_v30 = vpack.c.b16 %v641_v22, %v640_v18  ;;  %v245_v35 = vrot.slane %v244_v25, 4  ;;  %v350_v36 = vrot.slane %v348_v26, 4  ;;  %v353_v37 = vrot.slane %v351_v27, 5  ;;  %v5541_v25 = vld [vmem:[%s5467_s29 + $0x10] sm:$0xf] }
  0x26   : > { %v359_v38 = vrot.slane %v357_v28, 5  ;;  %v240_v40 = vsel %vm5479_vm2, %v235_v31, %v239_v19  ;;  %v363_v41 = vrot.slane %v361_v33, 4  ;;  %v369_v42 = vrot.slane %v367_v34, 5  ;;  %v5291_v19 = vld [vmem:[%s6998_s1 + $0x20] sm:$0xff] }
  0x27   : > { %4581 = vmatmul.msk.bf16.vlgmr.msra.gmra.mxu3 %vm676_vm3, %v660_v30  ;;  %v444_v44 = vshrl.u32 %v190_v29, 16  ;;  %v250_v45 = vsel %vm5479_vm2, %v245_v35, %v249_v24  ;;  %v616_v46 = vunpack.c.l.b16 %v240_v40  ;;  %v354_v47 = vor.u32 %v353_v37, %v350_v36  ;;  %1326 = vmatpush.bf16.msrb.mxu2 %v5291_v19  ;;  %v5552_v40 = vld [vmem:[%s5467_s29 + $0x4c] sm:$0xf] }
  0x28   : > { %v447_v48 = vshll.u32 %v190_v29, 16  ;;  %v617_v49 = vunpack.c.l.b16 %v250_v45  ;;  %v364_v50 = vor.u32 %v363_v41, %v359_v38  ;;  %v453_v52 = vshll.u32 %v191_v39, 16  ;;  %v5544_v29 = vld [vmem:[%s5467_s29 + $0x14] sm:$0x1] }
  0x29   : > { %v446_v51 = vrot.slane %v444_v44, 4  ;;  %v355_v53 = vrot.slane %v354_v47, 4  ;;  %v457_v55 = vshrl.u32 %v191_v39, 16  ;;  %v463_v56 = vshll.u32 %v217_v43, 16  ;;  %v184_v39 = vld [vmem:[%s5467_s29 + $0x48] sm:$0xf] }
  0x2a   : > { %v449_v54 = vrot.slane %v447_v48, 5  ;;  %v648_v58 = vpack.c.b16 %v617_v49, %v616_v46  ;;  %v365_v59 = vrot.slane %v364_v50, 4  ;;  %v455_v60 = vrot.slane %v453_v52, 5  ;;  %v5309_v45 = vld [vmem:[%s6998_s1 + $0x30] sm:$0xff]  ;;  %v5287_v46 = vld [vmem:[%s6998_s1] sm:$0xff] }
  0x2b   : > { %v360_v0 = vsel %vm5479_vm2, %v355_v53, %v359_v38  ;;  %v459_v2 = vrot.slane %v457_v55, 4  ;;  %v465_v3 = vrot.slane %v463_v56, 5  ;;  %v540_v7 = vshrl.u32 %v198_v57, 16  ;;  %v5568_v56 = vld [vmem:[%s5467_s29 + $0x50] sm:$0x1]  ;;  %1625 = vmatpush.bf16.msrb.mxu3 %v5309_v45  ;;  %961 = vmatpush.bf16.msrb.mxu1 %v5287_v46 }
  0x2c   : > { %v450_v1 = vor.u32 %v449_v54, %v446_v51  ;;  %4569 = vmatmul.msk.bf16.vlgmr.msra.gmra.mxu0 %vm676_vm3, %v648_v58  ;;  %v370_v5 = vsel %vm5479_vm2, %v365_v59, %v369_v42  ;;  %v626_v6 = vunpack.c.l.b16 %v360_v0  ;;  %v543_v8 = vshll.u32 %v198_v57, 16  ;;  %v5311_v51 = vld [vmem:[%s6998_s1 + $0x40] sm:$0xff] }
  0x2d   : > { %v627_v9 = vunpack.c.l.b16 %v370_v5  ;;  %v460_v11 = vor.u32 %v459_v2, %v455_v60  ;;  %v549_v12 = vshll.u32 %v199_v63, 16  ;;  %v542_v14 = vrot.slane %v540_v7, 4  ;;  %2291 = vmatpush.bf16.msrb.mxu0 %v5311_v51 }
  0x2e   : > { %v451_v10 = vrot.slane %v450_v1, 4  ;;  %v545_v15 = vrot.slane %v543_v8, 5  ;;  %v553_v17 = vshrl.u32 %v199_v63, 16  ;;  %v559_v18 = vshll.u32 %v221_v4, 16  ;;  %v193_v8 = vld [vmem:[%s5467_s29 + $0x7c] sm:$0xf] }
  0x2f   : > { %v653_v20 = vpack.c.b16 %v627_v9, %v626_v6  ;;  %v461_v23 = vrot.slane %v460_v11, 4  ;;  %v551_v24 = vrot.slane %v549_v12, 5  ;;  %v252_v33 = vshrl.u32 %v174_v13, 16 }
  0x30   : > { %v456_v22 = vsel %vm5479_vm2, %v451_v10, %v455_v60  ;;  %v546_v27 = vor.u32 %v545_v15, %v542_v14  ;;  %v555_v28 = vrot.slane %v553_v17, 4  ;;  %v561_v31 = vrot.slane %v559_v18, 5  ;;  %v218_v17 = vld [vmem:[%s5467_s29 + $0x80] sm:$0x1] }
  0x31   : > { %v634_v26 = vunpack.c.l.b16 %v456_v22  ;;  %4574 = vmatmul.msk.bf16.gmra.mxu1 %vm676_vm3, %v653_v20  ;;  %v466_v30 = vsel %vm5479_vm2, %v461_v23, %v465_v3  ;;  %v255_v34 = vshll.u32 %v174_v13, 16  ;;  %v261_v38 = vshll.u32 %v5541_v25, 16  ;;  %v192_v3 = vld [vmem:[%s5467_s29 + $0x78] sm:$0xf] }
  0x32   : > { %v635_v35 = vunpack.c.l.b16 %v466_v30  ;;  %v547_v36 = vrot.slane %v546_v27, 4  ;;  %v556_v37 = vor.u32 %v555_v28, %v551_v24  ;;  %v254_v41 = vrot.slane %v252_v33, 4 }
  0x33   : > { %v257_v42 = vrot.slane %v255_v34, 5  ;;  %v265_v43 = vshrl.u32 %v5541_v25, 16  ;;  %v271_v44 = vshll.u32 %v5544_v29, 16  ;;  %v263_v50 = vrot.slane %v261_v38, 5 }
  0x34   : > { %v657_v47 = vpack.c.b16 %v635_v35, %v634_v26  ;;  %v552_v48 = vsel %vm5479_vm2, %v547_v36, %v551_v24  ;;  %v557_v49 = vrot.slane %v556_v37, 4  ;;  %v372_v58 = vshrl.u32 %v184_v39, 16  ;;  %v200_v35 = vld [vmem:[%s5467_s29 + $0xa8] sm:$0xf] }
  0x35   : > { %v642_v52 = vunpack.c.l.b16 %v552_v48  ;;  %v258_v53 = vor.u32 %v257_v42, %v254_v41  ;;  %v267_v54 = vrot.slane %v265_v43, 4  ;;  %v273_v55 = vrot.slane %v271_v44, 5  ;;  %v222_v41 = vld [vmem:[%s5467_s29 + $0xb0] sm:$0x1] }
  0x36   : > { %4578 = vmatmul.msk.bf16.gmra.mxu2 %vm676_vm3, %v657_v47  ;;  %v562_v57 = vsel %vm5479_vm2, %v557_v49, %v561_v31  ;;  %v375_v59 = vshll.u32 %v184_v39, 16  ;;  %v381_v60 = vshll.u32 %v5552_v40, 16  ;;  %v385_v2 = vshrl.u32 %v5552_v40, 16  ;;  %v201_v39 = vld [vmem:[%s5467_s29 + $0xac] sm:$0xf] }
  0x37   : > { %v643_v63 = vunpack.c.l.b16 %v562_v57  ;;  %v259_v0 = vrot.slane %v258_v53, 4  ;;  %v268_v1 = vor.u32 %v267_v54, %v263_v50  ;;  %v374_v4 = vrot.slane %v372_v58, 4 }
  0x38   : > { %v377_v5 = vrot.slane %v375_v59, 5  ;;  %v383_v6 = vrot.slane %v381_v60, 5  ;;  %v391_v7 = vshll.u32 %v5568_v56, 16  ;;  %v387_v12 = vrot.slane %v385_v2, 4  ;;  %v176_v59 = vld [vmem:[%s5467_s29 + $0x18] sm:$0xf] }
  0x39   : > { %v661_v9 = vpack.c.b16 %v643_v63, %v642_v52  ;;  %v264_v10 = vsel %vm5479_vm2, %v259_v0, %v263_v50  ;;  %v269_v11 = vrot.slane %v268_v1, 4  ;;  %v468_v18 = vshrl.u32 %v192_v3, 16  ;;  %v5596_v1 = vld [vmem:[%s5467_s29 + $0x1c] sm:$0xf]  ;;  %v5599_v2 = vld [vmem:[%s5467_s29 + $0x20] sm:$0x1] }
  0x3a   : > { %v618_v13 = vunpack.c.l.b16 %v264_v10  ;;  %v378_v14 = vor.u32 %v377_v5, %v374_v4  ;;  %v393_v15 = vrot.slane %v391_v7, 5  ;;  %v388_v20 = vor.u32 %v387_v12, %v383_v6 }
  0x3b   : > { %4582 = vmatmul.msk.bf16.gmra.mxu3 %vm676_vm3, %v661_v9  ;;  %v274_v19 = vsel %vm5479_vm2, %v269_v11, %v273_v55  ;;  %v471_v22 = vshll.u32 %v192_v3, 16  ;;  %v477_v23 = vshll.u32 %v193_v8, 16  ;;  %v470_v27 = vrot.slane %v468_v18, 4 }
  0x3c   : > { %v619_v24 = vunpack.c.l.b16 %v274_v19  ;;  %v379_v26 = vrot.slane %v378_v14, 4  ;;  %v481_v28 = vshrl.u32 %v193_v8, 16  ;;  %v389_v30 = vrot.slane %v388_v20, 4 }
  0x3d   : > { %v473_v31 = vrot.slane %v471_v22, 5  ;;  %v479_v33 = vrot.slane %v477_v23, 5  ;;  %v487_v34 = vshll.u32 %v218_v17, 16  ;;  %v564_v48 = vshrl.u32 %v200_v35, 16  ;;  %v5609_v22 = vld [vmem:[%s5467_s29 + $0x58] sm:$0xf] }
  0x3e   : > { %v649_v36 = vpack.c.b16 %v619_v24, %v618_v13  ;;  %v384_v37 = vsel %vm5479_vm2, %v379_v26, %v383_v6  ;;  %v483_v38 = vrot.slane %v481_v28, 4  ;;  %v394_v42 = vsel %vm5479_vm2, %v389_v30, %v393_v15  ;;  %v186_v15 = vld [vmem:[%s5467_s29 + $0x54] sm:$0xf]  ;;  %v5614_v28 = vld [vmem:[%s5467_s29 + $0x5c] sm:$0x1] }
  0x3f   : > { %v628_v43 = vunpack.c.l.b16 %v384_v37  ;;  %v474_v44 = vor.u32 %v473_v31, %v470_v27  ;;  %v489_v45 = vrot.slane %v487_v34, 5  ;;  %v629_v46 = vunpack.c.l.b16 %v394_v42 }
  0x40   : > { %4570 = vmatmul.msk.bf16.gmra.mxu0 %vm676_vm3, %v649_v36  ;;  %v484_v47 = vor.u32 %v483_v38, %v479_v33  ;;  %v567_v49 = vshll.u32 %v200_v35, 16  ;;  %v573_v51 = vshll.u32 %v201_v39, 16  ;;  %v577_v52 = vshrl.u32 %v201_v39, 16  ;;  %v194_v39 = vld [vmem:[%s5467_s29 + $0x84] sm:$0xf] }
  0x41   : > { %v475_v50 = vrot.slane %v474_v44, 4  ;;  %v583_v53 = vshll.u32 %v222_v41, 16  ;;  %v654_v54 = vpack.c.b16 %v629_v46, %v628_v43  ;;  %v566_v57 = vrot.slane %v564_v48, 4 }
  0x42   : > { %v485_v55 = vrot.slane %v484_v47, 4  ;;  %v569_v58 = vrot.slane %v567_v49, 5  ;;  %v575_v63 = vrot.slane %v573_v51, 5  ;;  %v579_v0 = vrot.slane %v577_v52, 4  ;;  %v195_v49 = vld [vmem:[%s5467_s29 + $0x88] sm:$0xf] }
  0x43   : > { %v480_v60 = vsel %vm5479_vm2, %v475_v50, %v479_v33  ;;  %4575 = vmatmul.msk.bf16.gmra.mxu1 %vm676_vm3, %v654_v54  ;;  %v585_v6 = vrot.slane %v583_v53, 5  ;;  %v276_v9 = vshrl.u32 %v176_v59, 16  ;;  %v279_v10 = vshll.u32 %v176_v59, 16  ;;  %v219_v53 = vld [vmem:[%s5467_s29 + $0x8c] sm:$0x1] }
  0x44   : > { %v490_v3 = vsel %vm5479_vm2, %v485_v55, %v489_v45  ;;  %v636_v4 = vunpack.c.l.b16 %v480_v60  ;;  %v570_v5 = vor.u32 %v569_v58, %v566_v57  ;;  %v580_v8 = vor.u32 %v579_v0, %v575_v63 }
  0x45   : > { %v637_v7 = vunpack.c.l.b16 %v490_v3  ;;  %v285_v12 = vshll.u32 %v5596_v1, 16  ;;  %v289_v13 = vshrl.u32 %v5596_v1, 16  ;;  %v295_v14 = vshll.u32 %v5599_v2, 16 }
  0x46   : > { %v571_v11 = vrot.slane %v570_v5, 4  ;;  %v581_v18 = vrot.slane %v580_v8, 4  ;;  %v278_v19 = vrot.slane %v276_v9, 4  ;;  %v281_v20 = vrot.slane %v279_v10, 5  ;;  %v202_v8 = vld [vmem:[%s5467_s29 + $0xb4] sm:$0xf] }
  0x47   : > { %v658_v17 = vpack.c.b16 %v637_v7, %v636_v4  ;;  %v287_v24 = vrot.slane %v285_v12, 5  ;;  %v291_v26 = vrot.slane %v289_v13, 4  ;;  %v297_v27 = vrot.slane %v295_v14, 5  ;;  %v203_v12 = vld [vmem:[%s5467_s29 + $0xb8] sm:$0xf] }
  0x48   : > { %v576_v23 = vsel %vm5479_vm2, %v571_v11, %v575_v63  ;;  %v586_v30 = vsel %vm5479_vm2, %v581_v18, %v585_v6  ;;  %v282_v33 = vor.u32 %v281_v20, %v278_v19  ;;  %v396_v34 = vshrl.u32 %v186_v15, 16  ;;  %v223_v18 = vld [vmem:[%s5467_s29 + $0xbc] sm:$0x1]  ;;  %v5332_v19 = vld [vmem:[%s6998_s1 + $0x68] sm:$0xff] }
  0x49   : > { %4579 = vmatmul.msk.bf16.gmra.mxu2 %vm676_vm3, %v658_v17  ;;  %v644_v31 = vunpack.c.l.b16 %v576_v23  ;;  %v645_v35 = vunpack.c.l.b16 %v586_v30  ;;  %v292_v36 = vor.u32 %v291_v26, %v287_v24  ;;  %v399_v37 = vshll.u32 %v186_v15, 16 }
  0x4a   : > { %v405_v38 = vshll.u32 %v5609_v22, 16  ;;  %v283_v41 = vrot.slane %v282_v33, 4  ;;  %v398_v42 = vrot.slane %v396_v34, 4  ;;  %v409_v43 = vshrl.u32 %v5609_v22, 16  ;;  %2999 = vmatpush.bf16.msra.mxu2 %v5332_v19 }
  0x4b   : > { %v415_v44 = vshll.u32 %v5614_v28, 16  ;;  %v662_v45 = vpack.c.b16 %v645_v35, %v644_v31  ;;  %v293_v46 = vrot.slane %v292_v36, 4  ;;  %v401_v47 = vrot.slane %v399_v37, 5 }
  0x4c   : > { %v407_v48 = vrot.slane %v405_v38, 5  ;;  %v288_v50 = vsel %vm5479_vm2, %v283_v41, %v287_v24  ;;  %v411_v51 = vrot.slane %v409_v43, 4  ;;  %v492_v54 = vshrl.u32 %v194_v39, 16  ;;  %v178_v38 = vld [vmem:[%s5467_s29 + $0x24] sm:$0xf] }
  0x4d   : > { %v417_v52 = vrot.slane %v415_v44, 5  ;;  %4583 = vmatmul.msk.bf16.gmra.mxu3 %vm676_vm3, %v662_v45  ;;  %v298_v55 = vsel %vm5479_vm2, %v293_v46, %v297_v27  ;;  %v620_v57 = vunpack.c.l.b16 %v288_v50  ;;  %v402_v58 = vor.u32 %v401_v47, %v398_v42  ;;  %v5645_v44 = vld [vmem:[%s5467_s29 + $0x28] sm:$0xf]  ;;  %v5648_v45 = vld [vmem:[%s5467_s29 + $0x2c] sm:$0x1]  ;;  %v5334_v50 = vld [vmem:[%s6998_s1 + $0x78] sm:$0xff] }
  0x4e   : > { %v495_v59 = vshll.u32 %v194_v39, 16  ;;  %v621_v60 = vunpack.c.l.b16 %v298_v55  ;;  %v412_v63 = vor.u32 %v411_v51, %v407_v48  ;;  %v494_v0 = vrot.slane %v492_v54, 4  ;;  %v5314_v51 = vld [vmem:[%s6998_s1 + $0x58] sm:$0xff]  ;;  %3665 = vmatpush.bf16.msra.mxu3 %v5334_v50 }
  0x4f   : > { %v501_v3 = vshll.u32 %v195_v49, 16  ;;  %v403_v4 = vrot.slane %v402_v58, 4  ;;  %v505_v6 = vshrl.u32 %v195_v49, 16  ;;  %v511_v7 = vshll.u32 %v219_v53, 16  ;;  %2700 = vmatpush.bf16.msra.mxu1 %v5314_v51 }
  0x50   : > { %v497_v5 = vrot.slane %v495_v59, 5  ;;  %v650_v9 = vpack.c.b16 %v621_v60, %v620_v57  ;;  %v413_v10 = vrot.slane %v412_v63, 4  ;;  %v588_v24 = vshrl.u32 %v202_v8, 16 }
  0x51   : > { %v503_v11 = vrot.slane %v501_v3, 5  ;;  %v408_v13 = vsel %vm5479_vm2, %v403_v4, %v407_v48  ;;  %v507_v15 = vrot.slane %v505_v6, 4  ;;  %v513_v17 = vrot.slane %v511_v7, 5  ;;  %v1043_v6 = vld [vmem:[%s5467_s29] sm:$0xe] }
  0x52   : > { %v498_v14 = vor.u32 %v497_v5, %v494_v0  ;;  %4571 = vmatmul.msk.bf16.gmra.mxu0 %vm676_vm3, %v650_v9  ;;  %v418_v20 = vsel %vm5479_vm2, %v413_v10, %v417_v52  ;;  %v630_v23 = vunpack.c.l.b16 %v408_v13  ;;  %v591_v26 = vshll.u32 %v202_v8, 16  ;;  %v5336_v52 = vld [vmem:[%s6998_s1 + $0x88] sm:$0xff] }
  0x53   : > { %v631_v27 = vunpack.c.l.b16 %v418_v20  ;;  %v508_v31 = vor.u32 %v507_v15, %v503_v11  ;;  %v597_v33 = vshll.u32 %v203_v12, 16  ;;  %v590_v34 = vrot.slane %v588_v24, 4  ;;  %4075 = vmatpush.bf16.msra.mxu0 %v5336_v52  ;;  %v4841_v15 = vld [vmem:[%s5467_s29 + $0xc] sm:$0xf] }
  0x54   : > { %v499_v30 = vrot.slane %v498_v14, 4  ;;  %v593_v35 = vrot.slane %v591_v26, 5  ;;  %v601_v36 = vshrl.u32 %v203_v12, 16  ;;  %v607_v37 = vshll.u32 %v223_v18, 16 }
  0x55   : > { %v655_v39 = vpack.c.b16 %v631_v27, %v630_v23  ;;  %v509_v42 = vrot.slane %v508_v31, 4  ;;  %v599_v43 = vrot.slane %v597_v33, 5  ;;  %v1099_v46 = vrot.slane %v5495_v62, 5  ;;  %v4844_v62 = vld [vmem:[%s5467_s29 + $0x18] sm:$0xf] }
  0x56   : > { %v504_v41 = vsel %vm5479_vm2, %v499_v30, %v503_v11  ;;  %v594_v48 = vor.u32 %v593_v35, %v590_v34  ;;  %v603_v49 = vrot.slane %v601_v36, 4  ;;  %v609_v54 = vrot.slane %v607_v37, 5 }
  0x57   : > { %v638_v47 = vunpack.c.l.b16 %v504_v41  ;;  %4576 = vmatmul.msk.bf16.gmra.mxu1 %vm676_vm3, %v655_v39  ;;  %v514_v53 = vsel %vm5479_vm2, %v509_v42, %v513_v17  ;;  %v300_v55 = vshrl.u32 %v178_v38, 16  ;;  %v303_v57 = vshll.u32 %v178_v38, 16  ;;  %v4842_v17 = vld [vmem:[%s5467_s29 + $0x10] sm:$0xf] }
  0x58   : > { %v639_v58 = vunpack.c.l.b16 %v514_v53  ;;  %v595_v59 = vrot.slane %v594_v48, 4  ;;  %v604_v60 = vor.u32 %v603_v49, %v599_v43  ;;  %v309_v63 = vshll.u32 %v5645_v44, 16  ;;  %v5271_v53 = vld [vmem:[%s5467_s29] sm:$0xff] }
  0x59   : > { %v302_v0 = vrot.slane %v300_v55, 4  ;;  %v305_v3 = vrot.slane %v303_v57, 5  ;;  %v313_v4 = vshrl.u32 %v5645_v44, 16  ;;  %v319_v5 = vshll.u32 %v5648_v45, 16 }
  0x5a   : > { %v659_v7 = vpack.c.b16 %v639_v58, %v638_v47  ;;  %v600_v8 = vsel %vm5479_vm2, %v595_v59, %v599_v43  ;;  %v605_v9 = vrot.slane %v604_v60, 4  ;;  %v311_v10 = vrot.slane %v309_v63, 5  ;;  %v4843_v43 = vld [vmem:[%s5467_s29 + $0x14] sm:$0x1] }
  0x5b   : > { %v646_v11 = vunpack.c.l.b16 %v600_v8  ;;  %v306_v12 = vor.u32 %v305_v3, %v302_v0  ;;  %v315_v13 = vrot.slane %v313_v4, 4  ;;  %v321_v14 = vrot.slane %v319_v5, 5  ;;  %v4845_v4 = vld [vmem:[%s5467_s29 + $0x1c] sm:$0xf]  ;;  %v1044_v5 = vld [vmem:[%s5467_s29 + $0xc] sm:$0xe] }
  0x5c   : > { %4580 = vmatmul.msk.bf16.gmra.mxu2 %vm676_vm3, %v659_v7  ;;  %v610_v18 = vsel %vm5479_vm2, %v605_v9, %v609_v54  ;;  %v4673_v19 = vrot.slane %v1043_v6, 9  ;;  %v1096_v27 = vrot.slane %v5492_v61, 5  ;;  %v1788_v30 = vshrl.u32 %v4841_v15, 16 }
  0x5d   : > { %v647_v20 = vunpack.c.l.b16 %v610_v18  ;;  %v307_v23 = vrot.slane %v306_v12, 4  ;;  %v316_v24 = vor.u32 %v315_v13, %v311_v10  ;;  %v1791_v31 = vshll.u32 %v4841_v15, 16  ;;  %v5293_v12 = vld [vmem:[%s5467_s29 + $0xc] sm:$0xff] }
  0x5e   : > { %v1797_v33 = vshll.u32 %v4842_v17, 16  ;;  %v1801_v34 = vshrl.u32 %v4842_v17, 16  ;;  %v1097_v38 = vsel %vm5674_vm6, %v4673_v19, %v1096_v27  ;;  %v1098_v41 = vrot.slane %v1096_v27, 4 }
  0x5f   : > { %v663_v35 = vpack.c.b16 %v647_v20, %v646_v11  ;;  %v312_v36 = vsel %vm5479_vm2, %v307_v23, %v311_v10  ;;  %v317_v37 = vrot.slane %v316_v24, 4  ;;  %v1211_v42 = vunpack.c.l.b16 %v1097_v38  ;;  %v4846_v24 = vld [vmem:[%s5467_s29 + $0x20] sm:$0x1] }
  0x60   : > { %v622_v39 = vunpack.c.l.b16 %v312_v36  ;;  %v1790_v47 = vrot.slane %v1788_v30, 4  ;;  %v1793_v48 = vrot.slane %v1791_v31, 5  ;;  %v1799_v49 = vrot.slane %v1797_v33, 5 }
  0x61   : > { %4584 = vmatmul.msk.bf16.gmra.mxu3 %vm676_vm3, %v663_v35  ;;  %v322_v61 = vsel %vm5479_vm2, %v317_v37, %v321_v14  ;;  %v1803_v50 = vrot.slane %v1801_v34, 4  ;;  %v1100_v52 = vsel %vm5674_vm6, %v1098_v41, %v1099_v46  ;;  %v1807_v58 = vshll.u32 %v4843_v43, 16 }
  0x62   : > { %v623_v51 = vunpack.c.l.b16 %v322_v61  ;;  %v1212_v54 = vunpack.c.l.b16 %v1100_v52  ;;  %v1794_v55 = vor.u32 %v1793_v48, %v1790_v47  ;;  %v1103_v46 = vrot.slane %v5541_v25, 5  ;;  %v4848_v47 = vld [vmem:[%s5467_s29 + $0x28] sm:$0xf]  ;;  %v1045_v48 = vld [vmem:[%s5467_s29 + $0x18] sm:$0xe] }
  0x63   : > { %v1804_v57 = vor.u32 %v1803_v50, %v1799_v49  ;;  %v1809_v3 = vrot.slane %v1807_v58, 5  ;;  %v1812_v6 = vshrl.u32 %v4844_v62, 16  ;;  %v1815_v7 = vshll.u32 %v4844_v62, 16 }
  0x64   : > { %v651_v59 = vpack.c.b16 %v623_v51, %v622_v39  ;;  %v1243_v60 = vpack.c.b16 %v1212_v54, %v1211_v42  ;;  %v1795_v63 = vrot.slane %v1794_v55, 4  ;;  %v1821_v10 = vshll.u32 %v4845_v4, 16  ;;  %v4847_v42 = vld [vmem:[%s5467_s29 + $0x24] sm:$0xf]  ;;  %v5294_v55 = vld [vmem:[%s5467_s29 + $0x18] sm:$0xff] }
  0x65   : > { %v1805_v0 = vrot.slane %v1804_v57, 4  ;;  %v1825_v11 = vshrl.u32 %v4845_v4, 16  ;;  %v4674_v13 = vrot.slane %v1044_v5, 9  ;;  %v1105_v14 = vrot.slane %v1103_v46, 4  ;;  %v4849_v4 = vld [vmem:[%s5467_s29 + $0x2c] sm:$0x1] }
  0x66   : > { %4572 = vmatmul.msk.bf16.gmra.mxu0 %vm676_vm3, %v651_v59  ;;  %v1800_v8 = vsel %vm5479_vm2, %v1795_v63, %v1799_v49  ;;  %v1106_v25 = vrot.slane %v5544_v29, 5  ;;  %v1814_v18 = vrot.slane %v1812_v6, 4  ;;  %v1817_v19 = vrot.slane %v1815_v7, 5  ;;  %v5272_v29 = vld [vmem:[%s5467_s29 + $0xc] sm:$0xff] }
  0x67   : > { %4657 = vmatmul.msk.bf16.vlgmr.msrb.gmra.mxu1 %vm676_vm3, %v5271_v53  ;;  %v1810_v9 = vsel %vm5479_vm2, %v1805_v0, %v1809_v3  ;;  %v2176_v15 = vunpack.c.l.b16 %v1800_v8  ;;  %v1823_v20 = vrot.slane %v1821_v10, 5  ;;  %v1827_v23 = vrot.slane %v1825_v11, 4 }
  0x68   : > { %v2177_v17 = vunpack.c.l.b16 %v1810_v9  ;;  %v1104_v27 = vsel %vm5674_vm6, %v4674_v13, %v1103_v46  ;;  %v1107_v30 = vsel %vm5674_vm6, %v1105_v14, %v1106_v25  ;;  %v1818_v33 = vor.u32 %v1817_v19, %v1814_v18  ;;  %v4851_v13 = vld [vmem:[%s5467_s29 + $0x34] sm:$0xf]  ;;  %v1046_v19 = vld [vmem:[%s5467_s29 + $0x24] sm:$0xe] }
  0x69   : > { %v1828_v34 = vor.u32 %v1827_v23, %v1823_v20  ;;  %v1831_v35 = vshll.u32 %v4846_v24, 16  ;;  %v1213_v36 = vunpack.c.l.b16 %v1104_v27  ;;  %v1214_v37 = vunpack.c.l.b16 %v1107_v30 }
  0x6a   : > { %v2208_v31 = vpack.c.b16 %v2177_v17, %v2176_v15  ;;  %v1819_v38 = vrot.slane %v1818_v33, 4  ;;  %v1110_v61 = vrot.slane %v5596_v1, 5  ;;  %v1836_v49 = vshrl.u32 %v4847_v42, 16 }
  0x6b   : > { %v1829_v39 = vrot.slane %v1828_v34, 4  ;;  %v1833_v41 = vrot.slane %v1831_v35, 5  ;;  %v1244_v43 = vpack.c.b16 %v1214_v37, %v1213_v36  ;;  %v1839_v50 = vshll.u32 %v4847_v42, 16  ;;  %v4852_v42 = vld [vmem:[%s5467_s29 + $0x38] sm:$0x1] }
  0x6c   : > { %4701 = vmatmul.msk.bf16.vlgmr.msrb.gmra.mxu2 %vm676_vm3, %v1243_v60  ;;  %v1824_v51 = vsel %vm5479_vm2, %v1819_v38, %v1823_v20  ;;  %v1845_v53 = vshll.u32 %v4848_v47, 16  ;;  %v1849_v54 = vshrl.u32 %v4848_v47, 16  ;;  %v4675_v57 = vrot.slane %v1045_v48, 9 }
  0x6d   : > { %v1834_v52 = vsel %vm5479_vm2, %v1829_v39, %v1833_v41  ;;  %v1112_v58 = vrot.slane %v1110_v61, 4  ;;  %v1113_v1 = vrot.slane %v5599_v2, 5  ;;  %v2178_v59 = vunpack.c.l.b16 %v1824_v51  ;;  %v5273_v2 = vld [vmem:[%s5467_s29 + $0x18] sm:$0xff] }
  0x6e   : > { %v2179_v60 = vunpack.c.l.b16 %v1834_v52  ;;  %v1838_v63 = vrot.slane %v1836_v49, 4  ;;  %v1841_v0 = vrot.slane %v1839_v50, 5  ;;  %v1847_v3 = vrot.slane %v1845_v53, 5  ;;  %v5274_v50 = vld [vmem:[%s5467_s29 + $0x24] sm:$0xff] }
  0x6f   : > { %v1851_v62 = vrot.slane %v1849_v54, 4  ;;  %v1111_v46 = vsel %vm5674_vm6, %v4675_v57, %v1110_v61  ;;  %v1114_v5 = vsel %vm5674_vm6, %v1112_v58, %v1113_v1  ;;  %v1855_v9 = vshll.u32 %v4849_v4, 16  ;;  %v4853_v57 = vld [vmem:[%s5467_s29 + $0x3c] sm:$0xf]  ;;  %v4854_v58 = vld [vmem:[%s5467_s29 + $0x40] sm:$0xf] }
  0x70   : > { %v2209_v6 = vpack.c.b16 %v2179_v60, %v2178_v59  ;;  %v1842_v7 = vor.u32 %v1841_v0, %v1838_v63  ;;  %v1215_v10 = vunpack.c.l.b16 %v1111_v46  ;;  %v1216_v11 = vunpack.c.l.b16 %v1114_v5  ;;  %v5355_v63 = vld [vmem:[%s5467_s29 + $0x34] sm:$0xf] }
  0x71   : > { %4825 = vmatmul.msk.bf16.vlgmr.msrb.gmra.mxu3 %vm676_vm3, %v5293_v12  ;;  %v1852_v8 = vor.u32 %v1851_v62, %v1847_v3  ;;  %v4850_v12 = vld [vmem:[%s5467_s29 + $0x30] sm:$0xf]  ;;  %v1857_v15 = vrot.slane %v1855_v9, 5  ;;  %v1117_v18 = vrot.slane %v5645_v44, 5  ;;  %v1869_v24 = vshll.u32 %v4851_v13, 16  ;;  %v5295_v44 = vld [vmem:[%s5467_s29 + $0x24] sm:$0xff] }
  0x72   : > { %v1843_v14 = vrot.slane %v1842_v7, 4  ;;  %v1245_v17 = vpack.c.b16 %v1216_v11, %v1215_v10  ;;  %v1860_v20 = vshrl.u32 %v4850_v12, 16  ;;  %v1863_v23 = vshll.u32 %v4850_v12, 16  ;;  %v1047_v62 = vld [vmem:[%s5467_s29 + $0x30] sm:$0xe] }
  0x73   : > { %v1853_v25 = vrot.slane %v1852_v8, 4  ;;  %v1873_v27 = vshrl.u32 %v4851_v13, 16  ;;  %v1119_v33 = vrot.slane %v1117_v18, 4  ;;  %v1120_v34 = vrot.slane %v5648_v45, 5  ;;  %v5296_v7 = vld [vmem:[%s5467_s29 + $0x30] sm:$0xff] }
  0x74   : > { %v1848_v30 = vsel %vm5479_vm2, %v1843_v14, %v1847_v3  ;;  %v1862_v35 = vrot.slane %v1860_v20, 4  ;;  %v1865_v36 = vrot.slane %v1863_v23, 5  ;;  %v1871_v37 = vrot.slane %v1869_v24, 5  ;;  %v5356_v11 = vld [vmem:[%s5467_s29 + $0x38] sm:$0x1] }
  0x75   : > { %v1875_v38 = vrot.slane %v1873_v27, 4  ;;  %v2180_v39 = vunpack.c.l.b16 %v1848_v30  ;;  %v1121_v47 = vsel %vm5674_vm6, %v1119_v33, %v1120_v34  ;;  %v1879_v48 = vshll.u32 %v4852_v42, 16  ;;  %v5275_v30 = vld [vmem:[%s5467_s29 + $0x30] sm:$0xff] }
  0x76   : > { %4901 = vmatmul.msk.bf16.vlgmr.msrb.gmra.mxu0 %vm676_vm3, %v2208_v31  ;;  %v1858_v31 = vsel %vm5479_vm2, %v1853_v25, %v1857_v15  ;;  %v1866_v45 = vor.u32 %v1865_v36, %v1862_v35  ;;  %v1218_v52 = vunpack.c.l.b16 %v1121_v47  ;;  %v1124_v0 = vrot.slane %v5355_v63, 5 }
  0x77   : > { %4658 = vmatmul.msk.bf16.gmra.mxu1 %vm676_vm3, %v5272_v29  ;;  %v4676_v29 = vrot.slane %v1046_v19, 9  ;;  %v2181_v41 = vunpack.c.l.b16 %v1858_v31  ;;  %v1876_v61 = vor.u32 %v1875_v38, %v1871_v37  ;;  %v1884_v4 = vshrl.u32 %v4853_v57, 16 }
  0x78   : > { %v1867_v53 = vrot.slane %v1866_v45, 4  ;;  %v1887_v46 = vshll.u32 %v4853_v57, 16  ;;  %v1893_v5 = vshll.u32 %v4854_v58, 16  ;;  %v4677_v9 = vrot.slane %v1047_v62, 9  ;;  %v4858_v62 = vld [vmem:[%s5467_s29 + $0x50] sm:$0x1] }
  0x79   : > { %v2210_v49 = vpack.c.b16 %v2181_v41, %v2180_v39  ;;  %v1877_v54 = vrot.slane %v1876_v61, 4  ;;  %v1126_v10 = vrot.slane %v1124_v0, 4  ;;  %v1127_v12 = vrot.slane %v5356_v11, 5  ;;  %v4856_v39 = vld [vmem:[%s5467_s29 + $0x48] sm:$0xf] }
  0x7a   : > { %v1872_v59 = vsel %vm5479_vm2, %v1867_v53, %v1871_v37  ;;  %v1886_v13 = vrot.slane %v1884_v4, 4  ;;  %v1889_v14 = vrot.slane %v1887_v46, 5  ;;  %v1895_v25 = vrot.slane %v1893_v5, 5  ;;  %v4857_v41 = vld [vmem:[%s5467_s29 + $0x4c] sm:$0xf] }
  0x7b   : > { %v1128_v19 = vsel %vm5674_vm6, %v1126_v10, %v1127_v12  ;;  %v1048_v61 = vld [vmem:[%s5467_s29 + $0x3c] sm:$0xe]  ;;  %v4859_v12 = vld [vmem:[%s5467_s29 + $0x54] sm:$0xf] }
  0x7c   : > { %4702 = vmatmul.msk.bf16.gmra.mxu2 %vm676_vm3, %v1244_v43  ;;  %v1118_v43 = vsel %vm5674_vm6, %v4676_v29, %v1117_v18  ;;  %v1125_v18 = vsel %vm5674_vm6, %v4677_v9, %v1124_v0  ;;  %v1890_v23 = vor.u32 %v1889_v14, %v1886_v13  ;;  %v1220_v33 = vunpack.c.l.b16 %v1128_v19  ;;  %v4860_v13 = vld [vmem:[%s5467_s29 + $0x58] sm:$0xf] }
  0x7d   : > { %v1217_v51 = vunpack.c.l.b16 %v1118_v43  ;;  %v1219_v29 = vunpack.c.l.b16 %v1125_v18  ;;  %v1131_v43 = vrot.slane %v5507_v16, 5  ;;  %v1134_v16 = vrot.slane %v5512_v21, 5 }
  0x7e   : > { %v1927_v9 = vshll.u32 %v4858_v62, 16 }
  0x7f   : > { %v1246_v1 = vpack.c.b16 %v1218_v52, %v1217_v51  ;;  %v1247_v38 = vpack.c.b16 %v1220_v33, %v1219_v29  ;;  %v1921_v51 = vshrl.u32 %v4857_v41, 16  ;;  %v5297_v52 = vld [vmem:[%s5467_s29 + $0x3c] sm:$0xff]  ;;  %v1049_v29 = vld [vmem:[%s5467_s29 + $0x48] sm:$0xe] }
  0x81   : > { %4826 = vmatmul.msk.bf16.gmra.mxu3 %vm676_vm3, %v5294_v55  ;;  %v1881_v55 = vrot.slane %v1879_v48, 5  ;;  %v1908_v48 = vshrl.u32 %v4856_v39, 16  ;;  %v1923_v0 = vrot.slane %v1921_v51, 4 }
  0x83   : > { %v1882_v60 = vsel %vm5479_vm2, %v1877_v54, %v1881_v55  ;;  %v4678_v54 = vrot.slane %v1048_v61, 9  ;;  %v1133_v55 = vrot.slane %v1131_v43, 4 }
  0x84   : > { %v2183_v8 = vunpack.c.l.b16 %v1882_v60 }
  0x85   : > { %v1132_v4 = vsel %vm5674_vm6, %v4678_v54, %v1131_v43  ;;  %v1135_v46 = vsel %vm5674_vm6, %v1133_v55, %v1134_v16 }
  0x86   : > { %4902 = vmatmul.msk.bf16.gmra.mxu0 %vm676_vm3, %v2209_v6  ;;  %v1897_v6 = vshrl.u32 %v4854_v58, 16  ;;  %v1221_v10 = vunpack.c.l.b16 %v1132_v4  ;;  %v1222_v11 = vunpack.c.l.b16 %v1135_v46 }
  0x87   : > { %4659 = vmatmul.msk.bf16.gmra.mxu1 %vm676_vm3, %v5273_v2  ;;  %v2182_v2 = vunpack.c.l.b16 %v1872_v59  ;;  %v1910_v59 = vrot.slane %v1908_v48, 4 }
  0x88   : > { %v1899_v15 = vrot.slane %v1897_v6, 4  ;;  %v1248_v18 = vpack.c.b16 %v1222_v11, %v1221_v10  ;;  %v1145_v11 = vrot.slane %v5609_v22, 5  ;;  %v1148_v22 = vrot.slane %v5614_v28, 5 }
  0x89   : > { %v2211_v20 = vpack.c.b16 %v2183_v8, %v2182_v2  ;;  %v5276_v2 = vld [vmem:[%s5467_s29 + $0x3c] sm:$0xff] }
  0x8a   : > { %v1900_v24 = vor.u32 %v1899_v15, %v1895_v25 }
  0x8c   : > { %4703 = vmatmul.msk.bf16.gmra.mxu2 %vm676_vm3, %v1245_v17  ;;  %v4855_v17 = vld [vmem:[%s5467_s29 + $0x44] sm:$0x1]  ;;  %v1901_v35 = vrot.slane %v1900_v24, 4  ;;  %v1941_v24 = vshll.u32 %v4860_v13, 16 }
  0x8d   : > { %v1903_v27 = vshll.u32 %v4855_v17, 16  ;;  %v1929_v17 = vrot.slane %v1927_v9, 5 }
  0x8f   : > { %v1905_v36 = vrot.slane %v1903_v27, 5  ;;  %v1138_v27 = vrot.slane %v5552_v40, 5  ;;  %v4679_v40 = vrot.slane %v1049_v29, 9  ;;  %v1147_v29 = vrot.slane %v1145_v11, 4 }
  0x91   : > { %4827 = vmatmul.msk.bf16.gmra.mxu3 %vm676_vm3, %v5295_v44  ;;  %v1891_v44 = vrot.slane %v1890_v23, 4  ;;  %v1906_v45 = vsel %vm5479_vm2, %v1901_v35, %v1905_v36  ;;  %v1935_v23 = vshll.u32 %v4859_v12, 16  ;;  %v1139_v55 = vsel %vm5674_vm6, %v4679_v40, %v1138_v27 }
  0x92   : > { %v2185_v58 = vunpack.c.l.b16 %v1906_v45  ;;  %v1141_v45 = vrot.slane %v5568_v56, 5 }
  0x93   : > { %v1896_v47 = vsel %vm5479_vm2, %v1891_v44, %v1895_v25 }
  0x94   : > { %v2184_v57 = vunpack.c.l.b16 %v1896_v47  ;;  %v1140_v47 = vrot.slane %v1138_v27, 4 }
  0x96   : > { %4903 = vmatmul.msk.bf16.gmra.mxu0 %vm676_vm3, %v2210_v49  ;;  %v1911_v49 = vshll.u32 %v4856_v39, 16  ;;  %v2212_v21 = vpack.c.b16 %v2185_v58, %v2184_v57  ;;  %v1943_v39 = vrot.slane %v1941_v24, 5  ;;  %v1142_v16 = vsel %vm5674_vm6, %v1140_v47, %v1141_v45  ;;  %v5299_v24 = vld [vmem:[%s5467_s29 + $0x54] sm:$0xff] }
  0x97   : > { %4660 = vmatmul.msk.bf16.gmra.mxu1 %vm676_vm3, %v5274_v50  ;;  %v1917_v50 = vshll.u32 %v4857_v41, 16  ;;  %v5298_v41 = vld [vmem:[%s5467_s29 + $0x48] sm:$0xff]  ;;  %v1149_v45 = vsel %vm5674_vm6, %v1147_v29, %v1148_v22  ;;  %v5300_v22 = vld [vmem:[%s5467_s29 + $0x60] sm:$0xff] }
  0x98   : > { %v1913_v60 = vrot.slane %v1911_v49, 5 }
  0x99   : > { %v1919_v63 = vrot.slane %v1917_v50, 5  ;;  %v4861_v50 = vld [vmem:[%s5467_s29 + $0x5c] sm:$0x1] }
  0x9a   : > { %v1951_v57 = vshll.u32 %v4861_v50, 16  ;;  %v5278_v50 = vld [vmem:[%s5467_s29 + $0x54] sm:$0xff] }
  0x9b   : > { %v1924_v8 = vor.u32 %v1923_v0, %v1919_v63 }
  0x9c   : > { %v5761_v3 = vpop.f32.mrf.mxu1  ;;  %4704 = vmatmul.msk.bf16.gmra.mxu2 %vm676_vm3, %v1246_v1  ;;  %v1953_v46 = vrot.slane %v1951_v57, 5 }
  0x9d   : > { %v1925_v15 = vrot.slane %v1924_v8, 4 }
  0x9f   : > { %v1930_v44 = vsel %vm5479_vm2, %v1925_v15, %v1929_v17 }
  0xa0   : > { %v2187_v49 = vunpack.c.l.b16 %v1930_v44 }
  0xa1   : > { %4828 = vmatmul.msk.bf16.gmra.mxu3 %vm676_vm3, %v5296_v7  ;;  %v1914_v7 = vor.u32 %v1913_v60, %v1910_v59  ;;  %v5277_v59 = vld [vmem:[%s5467_s29 + $0x48] sm:$0xff]  ;;  %v1223_v60 = vunpack.c.l.b16 %v1139_v55 }
  0xa3   : > { %v1915_v25 = vrot.slane %v1914_v7, 4  ;;  %v4863_v7 = vld [vmem:[%s5467_s29 + $0x64] sm:$0xf] }
  0xa4   : > { %v5774_v31 = vpop.f32.mrf.mxu1  ;;  %v1965_v17 = vshll.u32 %v4863_v7, 16 }
  0xa5   : > { %v1920_v33 = vsel %vm5479_vm2, %v1915_v25, %v1919_v63  ;;  %v1224_v63 = vunpack.c.l.b16 %v1142_v16 }
  0xa6   : > { %v5776_v34 = vpop.f32.mrf.mxu2  ;;  %4904 = vmatmul.msk.bf16.gmra.mxu0 %vm676_vm3, %v2211_v20  ;;  %v1932_v20 = vshrl.u32 %v4859_v12, 16  ;;  %v2186_v48 = vunpack.c.l.b16 %v1920_v33 }
  0xa7   : > { %4661 = vmatmul.msk.bf16.gmra.mxu1 %vm676_vm3, %v5275_v30  ;;  %v1945_v30 = vshrl.u32 %v4860_v13, 16  ;;  %v1249_v8 = vpack.c.b16 %v1224_v63, %v1223_v60  ;;  %v1050_v13 = vld [vmem:[%s5467_s29 + $0x54] sm:$0xe] }
  0xa8   : > { %v1934_v36 = vrot.slane %v1932_v20, 4  ;;  %v2213_v58 = vpack.c.b16 %v2187_v49, %v2186_v48  ;;  %v5333_v63 = vld [vmem:[%s6998_s1 + $0x70] sm:$0xff] }
  0xa9   : > { %v5780_v37 = vpop.f32.mrf.mxu0  ;;  %v1947_v61 = vrot.slane %v1945_v30, 4  ;;  %v4680_v30 = vrot.slane %v1050_v13, 9  ;;  %3666 = vmatpush.bf16.msra.mxu3 %v5333_v63 }
  0xaa   : > { %v5784_v42 = vpop.f32.mrf.mxu3 }
  0xab   : > { %v1948_v56 = vor.u32 %v1947_v61, %v1943_v39  ;;  %v1146_v47 = vsel %vm5674_vm6, %v4680_v30, %v1145_v11  ;;  %v5358_v30 = vld [vmem:[%s5467_s29 + $0x68] sm:$0x1] }
  0xac   : > { %4705 = vmatmul.msk.bf16.gmra.mxu2 %vm676_vm3, %v1247_v38  ;;  %v1937_v38 = vrot.slane %v1935_v23, 5  ;;  %v1225_v16 = vunpack.c.l.b16 %v1146_v47  ;;  %v1155_v29 = vrot.slane %v5358_v30, 5 }
  0xad   : > { %v1949_v4 = vrot.slane %v1948_v56, 4  ;;  %v1226_v56 = vunpack.c.l.b16 %v1149_v45 }
  0xae   : > { %v5794_v53 = vpop.f32.mrf.mxu1  ;;  %v5797_v1 = vpop.f32.mrf.mxu2 }
  0xaf   : > { %v1954_v10 = vsel %vm5479_vm2, %v1949_v4, %v1953_v46  ;;  %v1250_v4 = vpack.c.b16 %v1226_v56, %v1225_v16  ;;  %v4865_v46 = vld [vmem:[%s5467_s29 + $0x6c] sm:$0xf]  ;;  %v5279_v56 = vld [vmem:[%s5467_s29 + $0x60] sm:$0xff] }
  0xb0   : > { %v2189_v27 = vunpack.c.l.b16 %v1954_v10 }
  0xb1   : > { %4829 = vmatmul.msk.bf16.gmra.mxu3 %vm676_vm3, %v5297_v52  ;;  %v5805_v5 = vpop.f32.mrf.mxu0  ;;  %v1938_v52 = vor.u32 %v1937_v38, %v1934_v36  ;;  %v1967_v36 = vrot.slane %v1965_v17, 5  ;;  %v1983_v17 = vshll.u32 %v4865_v46, 16 }
  0xb2   : > { %v5807_v6 = vpop.f32.mrf.mxu3 }
  0xb3   : > { %v1939_v62 = vrot.slane %v1938_v52, 4  ;;  %v5331_v52 = vld [vmem:[%s6998_s1 + $0x60] sm:$0xff]  ;;  %v1985_v45 = vrot.slane %v1983_v17, 5  ;;  %v4869_v17 = vld [vmem:[%s5467_s29 + $0x7c] sm:$0xf] }
  0xb4   : > { %3000 = vmatpush.bf16.msra.mxu2 %v5331_v52 }
  0xb5   : > { %v1944_v9 = vsel %vm5479_vm2, %v1939_v62, %v1943_v39  ;;  %v5313_v62 = vld [vmem:[%s6998_s1 + $0x50] sm:$0xff] }
  0xb6   : > { %4905 = vmatmul.msk.bf16.gmra.mxu0 %vm676_vm3, %v2212_v21  ;;  %v5813_v14 = vpop.f32.mrf.mxu1  ;;  %v2188_v23 = vunpack.c.l.b16 %v1944_v9  ;;  %2701 = vmatpush.bf16.msra.mxu1 %v5313_v62 }
  0xb7   : > { %4662 = vmatmul.msk.bf16.gmra.mxu1 %vm676_vm3, %v5276_v2  ;;  %v4862_v2 = vld [vmem:[%s5467_s29 + $0x60] sm:$0xf] }
  0xb8   : > { %v1956_v25 = vshrl.u32 %v4862_v2, 16  ;;  %v1959_v15 = vshll.u32 %v4862_v2, 16  ;;  %v2214_v61 = vpack.c.b16 %v2189_v27, %v2188_v23  ;;  %v4866_v2 = vld [vmem:[%s5467_s29 + $0x70] sm:$0xf] }
  0xb9   : > { %v5816_v19 = vpop.f32.mrf.mxu2  ;;  %v1993_v23 = vshrl.u32 %v4866_v2, 16 }
  0xba   : > { %v1958_v33 = vrot.slane %v1956_v25, 4  ;;  %v1961_v44 = vrot.slane %v1959_v15, 5  ;;  %v1051_v25 = vld [vmem:[%s5467_s29 + $0x60] sm:$0xe]  ;;  %v1980_v15 = vshrl.u32 %v4865_v46, 16 }
  0xbc   : > { %4706 = vmatmul.msk.bf16.gmra.mxu2 %vm676_vm3, %v1248_v18  ;;  %v1969_v18 = vshrl.u32 %v4863_v7, 16  ;;  %v1962_v48 = vor.u32 %v1961_v44, %v1958_v33  ;;  %v4681_v33 = vrot.slane %v1051_v25, 9  ;;  %v1982_v47 = vrot.slane %v1980_v15, 4  ;;  %v4868_v25 = vld [vmem:[%s5467_s29 + $0x78] sm:$0xf] }
  0xbd   : > { %v5824_v35 = vpop.f32.mrf.mxu0  ;;  %v2004_v30 = vshrl.u32 %v4868_v25, 16 }
  0xbe   : > { %v5828_v43 = vpop.f32.mrf.mxu3  ;;  %v1971_v38 = vrot.slane %v1969_v18, 4  ;;  %v1989_v18 = vshll.u32 %v4866_v2, 16 }
  0xc0   : > { %v5832_v51 = vpop.f32.mrf.mxu1  ;;  %v1972_v28 = vor.u32 %v1971_v38, %v1967_v36 }
  0xc1   : > { %4830 = vmatmul.msk.bf16.gmra.mxu3 %vm676_vm3, %v5298_v41  ;;  %v5835_v54 = vpop.f32.mrf.mxu2  ;;  %v4864_v41 = vld [vmem:[%s5467_s29 + $0x68] sm:$0x1] }
  0xc2   : > { %v1975_v49 = vshll.u32 %v4864_v41, 16 }
  0xc4   : > { %v1977_v60 = vrot.slane %v1975_v49, 5 }
  0xc5   : > { %v5842_v0 = vpop.f32.mrf.mxu0 }
  0xc6   : > { %4906 = vmatmul.msk.bf16.gmra.mxu0 %vm676_vm3, %v2213_v58  ;;  %v5845_v21 = vpop.f32.mrf.mxu3  ;;  %v1963_v58 = vrot.slane %v1962_v48, 4  ;;  %v1995_v48 = vrot.slane %v1993_v23, 4 }
  0xc7   : > { %4663 = vmatmul.msk.bf16.gmra.mxu1 %vm676_vm3, %v5277_v59  ;;  %v1973_v59 = vrot.slane %v1972_v28, 4  ;;  %v4867_v28 = vld [vmem:[%s5467_s29 + $0x74] sm:$0x1] }
  0xc8   : > { %v5855_v12 = vpop.f32.mrf.mxu1  ;;  %v1968_v11 = vsel %vm5479_vm2, %v1963_v58, %v1967_v36  ;;  %v1986_v58 = vor.u32 %v1985_v45, %v1982_v47  ;;  %v5360_v45 = vld [vmem:[%s5467_s29 + $0x74] sm:$0x1] }
  0xc9   : > { %v1978_v13 = vsel %vm5479_vm2, %v1973_v59, %v1977_v60  ;;  %v2190_v36 = vunpack.c.l.b16 %v1968_v11  ;;  %v1999_v60 = vshll.u32 %v4867_v28, 16  ;;  %v5301_v28 = vld [vmem:[%s5467_s29 + $0x6c] sm:$0xff] }
  0xca   : > { %v2191_v38 = vunpack.c.l.b16 %v1978_v13 }
  0xcb   : > { %v2001_v13 = vrot.slane %v1999_v60, 5 }
  0xcc   : > { %v5858_v20 = vpop.f32.mrf.mxu2  ;;  %4707 = vmatmul.msk.bf16.gmra.mxu2 %vm676_vm3, %v1249_v8  ;;  %v5357_v8 = vld [vmem:[%s5467_s29 + $0x64] sm:$0xf]  ;;  %v2215_v52 = vpack.c.b16 %v2191_v38, %v2190_v36  ;;  %v2017_v36 = vshrl.u32 %v4869_v17, 16 }
  0xcd   : > { %v1152_v9 = vrot.slane %v5357_v8, 5 }
  0xcf   : > { %v5863_v39 = vpop.f32.mrf.mxu0  ;;  %v1154_v44 = vrot.slane %v1152_v9, 4  ;;  %v1153_v49 = vsel %vm5674_vm6, %v4681_v33, %v1152_v9  ;;  %v1987_v9 = vrot.slane %v1986_v58, 4  ;;  %v2006_v58 = vrot.slane %v2004_v30, 4 }
  0xd0   : > { %v5866_v40 = vpop.f32.mrf.mxu3 }
  0xd1   : > { %4831 = vmatmul.msk.bf16.gmra.mxu3 %vm676_vm3, %v5299_v24  ;;  %v5335_v24 = vld [vmem:[%s6998_s1 + $0x80] sm:$0xff] }
  0xd2   : > { %4076 = vmatpush.bf16.msra.mxu0 %v5335_v24  ;;  %v1052_v24 = vld [vmem:[%s5467_s29 + $0x6c] sm:$0xe] }
  0xd4   : > { %v5877_v55 = vpop.f32.mrf.mxu1  ;;  %v5879_v57 = vpop.f32.mrf.mxu2 }
  0xd6   : > { %4907 = vmatmul.msk.bf16.gmra.mxu0 %vm676_vm3, %v2214_v61  ;;  %v1991_v61 = vrot.slane %v1989_v18, 5  ;;  %v5359_v18 = vld [vmem:[%s5467_s29 + $0x70] sm:$0xf] }
  0xd7   : > { %4664 = vmatmul.msk.bf16.gmra.mxu1 %vm676_vm3, %v5278_v50  ;;  %v5891_v7 = vpop.f32.mrf.mxu0  ;;  %v1156_v50 = vsel %vm5674_vm6, %v1154_v44, %v1155_v29  ;;  %v1159_v23 = vrot.slane %v5359_v18, 5  ;;  %v2007_v29 = vshll.u32 %v4868_v25, 16  ;;  %v2013_v44 = vshll.u32 %v4869_v17, 16  ;;  %v5280_v17 = vld [vmem:[%s5467_s29 + $0x6c] sm:$0xff] }
  0xd8   : > { %v5894_v10 = vpop.f32.mrf.mxu3  ;;  %v1996_v59 = vor.u32 %v1995_v48, %v1991_v61  ;;  %v1228_v46 = vunpack.c.l.b16 %v1156_v50  ;;  %v1162_v48 = vrot.slane %v5360_v45, 5  ;;  %v4682_v50 = vrot.slane %v1052_v24, 9 }
  0xda   : > { %v1997_v11 = vrot.slane %v1996_v59, 4  ;;  %v2009_v59 = vrot.slane %v2007_v29, 5 }
  0xdc   : > { %4708 = vmatmul.msk.bf16.gmra.mxu2 %vm676_vm3, %v1250_v4  ;;  %v5905_v27 = vpop.f32.mrf.mxu1  ;;  %v1227_v4 = vunpack.c.l.b16 %v1153_v49  ;;  %v2002_v33 = vsel %vm5479_vm2, %v1997_v11, %v2001_v13  ;;  %v1160_v11 = vsel %vm5674_vm6, %v4682_v50, %v1159_v23  ;;  %v2010_v25 = vor.u32 %v2009_v59, %v2006_v58  ;;  %v1053_v59 = vld [vmem:[%s5467_s29 + $0x78] sm:$0xe] }
  0xde   : > { %v1251_v15 = vpack.c.b16 %v1228_v46, %v1227_v4  ;;  %v2019_v4 = vrot.slane %v2017_v36, 4 }
  0xdf   : > { %v5909_v41 = vpop.f32.mrf.mxu2 }
  0xe1   : > { %4832 = vmatmul.msk.bf16.gmra.mxu3 %vm676_vm3, %v5300_v22  ;;  %v1992_v22 = vsel %vm5479_vm2, %v1987_v9, %v1991_v61  ;;  %v4870_v9 = vld [vmem:[%s5467_s29 + $0x80] sm:$0x1] }
  0xe2   : > { %v2192_v61 = vunpack.c.l.b16 %v1992_v22  ;;  %v2023_v24 = vshll.u32 %v4870_v9, 16 }
  0xe3   : > { %v5917_v16 = vpop.f32.mrf.mxu0 }
  0xe4   : > { %v5920_v63 = vpop.f32.mrf.mxu3  ;;  %v963_v62 = vpop.f32.mrf.mxu1  ;;  %v2025_v45 = vrot.slane %v2023_v24, 5  ;;  %v4683_v24 = vrot.slane %v1053_v59, 9 }
  0xe5   : > { %v964_v2 = vadd.f32 %v963_v62, %v5780_v37  ;;  %v2015_v62 = vrot.slane %v2013_v44, 5  ;;  %v2011_v44 = vrot.slane %v2010_v25, 4 }
  0xe6   : > { %4908 = vmatmul.msk.bf16.gmra.mxu0 %vm676_vm3, %v2215_v52  ;;  %v1161_v52 = vrot.slane %v1159_v23, 4 }
  0xe7   : > { %v5924_v8 = vpop.f32.mrf.mxu2  ;;  %4665 = vmatmul.msk.bf16.gmra.mxu1 %vm676_vm3, %v5279_v56  ;;  %v2193_v56 = vunpack.c.l.b16 %v2002_v33  ;;  %v2020_v18 = vor.u32 %v2019_v4, %v2015_v62 }
  0xe9   : > { %v2216_v13 = vpack.c.b16 %v2193_v56, %v2192_v61  ;;  %v4872_v61 = vld [vmem:[%s5467_s29 + $0x88] sm:$0xf]  ;;  %v5361_v56 = vld [vmem:[%s5467_s29 + $0x7c] sm:$0xf] }
  0xea   : > { %v1166_v58 = vrot.slane %v5361_v56, 5 }
  0xeb   : > { %v5931_v37 = vpop.f32.mrf.mxu0 }
  0xec   : > { %v5937_v38 = vpop.f32.mrf.mxu3  ;;  %4709 = vmatmul.msk.bf16.gmra.mxu2 %vm676_vm3, %v1251_v15  ;;  %v965_v47 = vpop.f32.mrf.mxu1 }
  0xed   : > { %v966_v49 = vadd.f32 %v965_v47, %v5805_v5  ;;  %v1163_v5 = vsel %vm5674_vm6, %v1161_v52, %v1162_v48  ;;  %v2021_v47 = vrot.slane %v2020_v18, 4  ;;  %v4871_v48 = vld [vmem:[%s5467_s29 + $0x84] sm:$0xf]  ;;  %v5302_v18 = vld [vmem:[%s5467_s29 + $0x78] sm:$0xff] }
  0xee   : > { %v1230_v22 = vunpack.c.l.b16 %v1163_v5  ;;  %v2031_v9 = vshll.u32 %v4871_v48, 16  ;;  %v2041_v5 = vshrl.u32 %v4872_v61, 16 }
  0xef   : > { %v1328_v60 = vpop.f32.mrf.mxu2 }
  0xf0   : > { %v1408_v46 = vadd.f32 %v1328_v60, %v964_v2  ;;  %v1229_v2 = vunpack.c.l.b16 %v1160_v11  ;;  %v2028_v60 = vshrl.u32 %v4871_v48, 16  ;;  %v2037_v11 = vshll.u32 %v4872_v61, 16 }
  0xf1   : > { %4833 = vmatmul.msk.bf16.gmra.mxu3 %vm676_vm3, %v5301_v28 }
  0xf2   : > { %v1252_v52 = vpack.c.b16 %v1230_v22, %v1229_v2  ;;  %v2030_v22 = vrot.slane %v2028_v60, 4 }
  0xf3   : > { %v2293_v15 = vpop.f32.mrf.mxu0 }
  0xf4   : > { %v1627_v30 = vpop.f32.mrf.mxu3  ;;  %v968_v29 = vpop.f32.mrf.mxu1 }
  0xf5   : > { %v1707_v33 = vadd.f32 %v1627_v30, %v1408_v46  ;;  %v969_v23 = vadd.f32 %v968_v29, %v5824_v35  ;;  %v2016_v35 = vsel %vm5479_vm2, %v2011_v44, %v2015_v62  ;;  %v2026_v46 = vsel %vm5479_vm2, %v2021_v47, %v2025_v45 }
  0xf6   : > { %4909 = vmatmul.msk.bf16.gmra.mxu0 %vm676_vm3, %v2216_v13  ;;  %v5362_v13 = vld [vmem:[%s5467_s29 + $0x80] sm:$0x1]  ;;  %v1168_v30 = vrot.slane %v1166_v58, 4  ;;  %v2194_v29 = vunpack.c.l.b16 %v2016_v35  ;;  %v2195_v2 = vunpack.c.l.b16 %v2026_v46  ;;  %v2033_v44 = vrot.slane %v2031_v9, 5  ;;  %v5281_v35 = vld [vmem:[%s5467_s29 + $0x78] sm:$0xff] }
  0xf7   : > { %v1330_v36 = vpop.f32.mrf.mxu2  ;;  %4666 = vmatmul.msk.bf16.gmra.mxu1 %vm676_vm3, %v5280_v17  ;;  %v5954_v28 = vadd.f32 %v2293_v15, %v1707_v33  ;;  %v1169_v25 = vrot.slane %v5362_v13, 5  ;;  %v2043_v47 = vrot.slane %v2041_v5, 4 }
  0xf8   : > { %v1409_v50 = vadd.f32 %v1330_v36, %v966_v49  ;;  %v2039_v36 = vrot.slane %v2037_v11, 5  ;;  %v2217_v61 = vpack.c.b16 %v2195_v2, %v2194_v29  ;;  %v2034_v59 = vor.u32 %v2033_v44, %v2030_v22  ;;  %v4875_v29 = vld [vmem:[%s5467_s29 + $0x94] sm:$0xf]  ;;  %v5363_v2 = vld [vmem:[%s5467_s29 + $0x88] sm:$0xf] }
  0xf9   : > { %v1173_v22 = vrot.slane %v5363_v2, 5 }
  0xfa   : > { %v2044_v60 = vor.u32 %v2043_v47, %v2039_v36 }
  0xfb   : > { %v2295_v4 = vpop.f32.mrf.mxu0 }
  0xfc   : > { %v1629_v49 = vpop.f32.mrf.mxu3  ;;  %4710 = vmatmul.msk.bf16.gmra.mxu2 %vm676_vm3, %v1252_v52  ;;  %v970_v15 = vpop.f32.mrf.mxu1  ;;  %v4873_v52 = vld [vmem:[%s5467_s29 + $0x8c] sm:$0x1] }
  0xfd   : > { %v1708_v17 = vadd.f32 %v1629_v49, %v1409_v50  ;;  %v971_v62 = vadd.f32 %v970_v15, %v5842_v0  ;;  %v1167_v50 = vsel %vm5674_vm6, %v4683_v24, %v1166_v58  ;;  %v1170_v0 = vsel %vm5674_vm6, %v1168_v30, %v1169_v25 }
  0xfe   : > { %v2047_v46 = vshll.u32 %v4873_v52, 16  ;;  %v1232_v11 = vunpack.c.l.b16 %v1170_v0  ;;  %v2035_v25 = vrot.slane %v2034_v59, 4  ;;  %v2045_v49 = vrot.slane %v2044_v60, 4  ;;  %v5303_v60 = vld [vmem:[%s5467_s29 + $0x84] sm:$0xff] }
  0xff   : > { %v1333_v33 = vpop.f32.mrf.mxu2  ;;  %v5967_v45 = vadd.f32 %v2295_v4, %v1708_v17  ;;  %v4874_v17 = vld [vmem:[%s5467_s29 + $0x90] sm:$0xf]  ;;  %v2065_v0 = vshrl.u32 %v4875_v29, 16 }
 0x100   : > { %v1410_v48 = vadd.f32 %v1333_v33, %v969_v23  ;;  %v1231_v23 = vunpack.c.l.b16 %v1167_v50  ;;  %v2049_v15 = vrot.slane %v2047_v46, 5  ;;  %v1054_v33 = vld [vmem:[%s5467_s29 + $0x84] sm:$0xe]  ;;  %v2055_v44 = vshll.u32 %v4874_v17, 16 }
 0x101   : > { %4834 = vmatmul.msk.bf16.gmra.mxu3 %vm676_vm3, %v5302_v18  ;;  %v2061_v50 = vshll.u32 %v4875_v29, 16 }
 0x102   : > { %v1253_v30 = vpack.c.b16 %v1232_v11, %v1231_v23  ;;  %v2050_v52 = vsel %vm5479_vm2, %v2045_v49, %v2049_v15  ;;  %v2067_v49 = vrot.slane %v2065_v0, 4 }
 0x103   : > { %v2298_v56 = vpop.f32.mrf.mxu0 }
 0x104   : > { %v1632_v9 = vpop.f32.mrf.mxu3  ;;  %v973_v4 = vpop.f32.mrf.mxu1 }
 0x105   : > { %v1709_v5 = vadd.f32 %v1632_v9, %v1410_v48  ;;  %v974_v58 = vadd.f32 %v973_v4, %v5863_v39  ;;  %v2052_v39 = vshrl.u32 %v4874_v17, 16  ;;  %v2040_v48 = vsel %vm5479_vm2, %v2035_v25, %v2039_v36 }
 0x106   : > { %4910 = vmatmul.msk.bf16.gmra.mxu0 %vm676_vm3, %v2217_v61  ;;  %v5364_v61 = vld [vmem:[%s5467_s29 + $0x8c] sm:$0x1]  ;;  %v4684_v9 = vrot.slane %v1054_v33, 9  ;;  %v1175_v4 = vrot.slane %v1173_v22, 4  ;;  %v2196_v23 = vunpack.c.l.b16 %v2040_v48  ;;  %v2197_v36 = vunpack.c.l.b16 %v2050_v52 }
 0x107   : > { %v1335_v13 = vpop.f32.mrf.mxu2  ;;  %4667 = vmatmul.msk.bf16.gmra.mxu1 %vm676_vm3, %v5281_v35  ;;  %v5980_v18 = vadd.f32 %v2298_v56, %v1709_v5  ;;  %v1176_v56 = vrot.slane %v5364_v61, 5  ;;  %v2054_v11 = vrot.slane %v2052_v39, 4  ;;  %v2057_v5 = vrot.slane %v2055_v44, 5  ;;  %v5282_v39 = vld [vmem:[%s5467_s29 + $0x84] sm:$0xff] }
 0x108   : > { %v1411_v24 = vadd.f32 %v1335_v13, %v971_v62  ;;  %v2063_v25 = vrot.slane %v2061_v50, 5  ;;  %v2218_v29 = vpack.c.b16 %v2197_v36, %v2196_v23  ;;  %v4878_v23 = vld [vmem:[%s5467_s29 + $0xa0] sm:$0xf]  ;;  %v5365_v36 = vld [vmem:[%s5467_s29 + $0x94] sm:$0xf] }
 0x109   : > { %v2058_v2 = vor.u32 %v2057_v5, %v2054_v11  ;;  %v1180_v11 = vrot.slane %v5365_v36, 5  ;;  %v1055_v5 = vld [vmem:[%s5467_s29 + $0x90] sm:$0xe] }
 0x10a   : > { %v2068_v44 = vor.u32 %v2067_v49, %v2063_v25 }
 0x10b   : > { %v2300_v47 = vpop.f32.mrf.mxu0  ;;  %v2059_v61 = vrot.slane %v2058_v2, 4 }
 0x10c   : > { %v1634_v62 = vpop.f32.mrf.mxu3  ;;  %4711 = vmatmul.msk.bf16.gmra.mxu2 %vm676_vm3, %v1253_v30  ;;  %v975_v35 = vpop.f32.mrf.mxu1  ;;  %v4876_v30 = vld [vmem:[%s5467_s29 + $0x98] sm:$0x1] }
 0x10d   : > { %v1710_v59 = vadd.f32 %v1634_v62, %v1411_v24  ;;  %v976_v46 = vadd.f32 %v975_v35, %v5891_v7  ;;  %v1174_v24 = vsel %vm5674_vm6, %v4684_v9, %v1173_v22  ;;  %v1177_v7 = vsel %vm5674_vm6, %v1175_v4, %v1176_v56 }
 0x10e   : > { %v2071_v48 = vshll.u32 %v4876_v30, 16  ;;  %v1234_v50 = vunpack.c.l.b16 %v1177_v7  ;;  %v2069_v62 = vrot.slane %v2068_v44, 4  ;;  %v2089_v7 = vshrl.u32 %v4878_v23, 16  ;;  %v5304_v44 = vld [vmem:[%s5467_s29 + $0x90] sm:$0xff] }
 0x10f   : > { %v1338_v13 = vpop.f32.mrf.mxu2  ;;  %v5993_v15 = vadd.f32 %v2300_v47, %v1710_v59  ;;  %v4877_v59 = vld [vmem:[%s5467_s29 + $0x9c] sm:$0xf] }
 0x110   : > { %v1412_v17 = vadd.f32 %v1338_v13, %v974_v58  ;;  %v1233_v58 = vunpack.c.l.b16 %v1174_v24  ;;  %v2073_v35 = vrot.slane %v2071_v48, 5  ;;  %v2076_v13 = vshrl.u32 %v4877_v59, 16 }
 0x111   : > { %4835 = vmatmul.msk.bf16.gmra.mxu3 %vm676_vm3, %v5303_v60  ;;  %v2079_v30 = vshll.u32 %v4877_v59, 16  ;;  %v2085_v24 = vshll.u32 %v4878_v23, 16  ;;  %v4685_v48 = vrot.slane %v1055_v5, 9 }
 0x112   : > { %v1254_v4 = vpack.c.b16 %v1234_v50, %v1233_v58  ;;  %v2078_v50 = vrot.slane %v2076_v13, 4 }
 0x113   : > { %v2303_v33 = vpop.f32.mrf.mxu0 }
 0x114   : > { %v1637_v52 = vpop.f32.mrf.mxu3  ;;  %v978_v47 = vpop.f32.mrf.mxu1 }
 0x115   : > { %v1711_v0 = vadd.f32 %v1637_v52, %v1412_v17  ;;  %v979_v22 = vadd.f32 %v978_v47, %v5917_v16  ;;  %v2064_v16 = vsel %vm5479_vm2, %v2059_v61, %v2063_v25  ;;  %v2074_v17 = vsel %vm5479_vm2, %v2069_v62, %v2073_v35 }
 0x116   : > { %4911 = vmatmul.msk.bf16.gmra.mxu0 %vm676_vm3, %v2218_v29  ;;  %v5366_v29 = vld [vmem:[%s5467_s29 + $0x98] sm:$0x1]  ;;  %v1182_v52 = vrot.slane %v1180_v11, 4  ;;  %v2198_v47 = vunpack.c.l.b16 %v2064_v16  ;;  %v2199_v58 = vunpack.c.l.b16 %v2074_v17  ;;  %v2081_v61 = vrot.slane %v2079_v30, 5  ;;  %v5283_v16 = vld [vmem:[%s5467_s29 + $0x90] sm:$0xff] }
 0x117   : > { %v1340_v56 = vpop.f32.mrf.mxu2  ;;  %4668 = vmatmul.msk.bf16.gmra.mxu1 %vm676_vm3, %v5282_v39  ;;  %v6006_v60 = vadd.f32 %v2303_v33, %v1711_v0  ;;  %v1183_v2 = vrot.slane %v5366_v29, 5  ;;  %v2091_v62 = vrot.slane %v2089_v7, 4  ;;  %v4880_v29 = vld [vmem:[%s5467_s29 + $0xa8] sm:$0xf] }
 0x118   : > { %v1413_v9 = vadd.f32 %v1340_v56, %v976_v46  ;;  %v2087_v56 = vrot.slane %v2085_v24, 5  ;;  %v2219_v23 = vpack.c.b16 %v2199_v58, %v2198_v47  ;;  %v2082_v5 = vor.u32 %v2081_v61, %v2078_v50  ;;  %v5367_v58 = vld [vmem:[%s5467_s29 + $0xa0] sm:$0xf]  ;;  %v1056_v61 = vld [vmem:[%s5467_s29 + $0x9c] sm:$0xe] }
 0x119   : > { %v2100_v47 = vshrl.u32 %v4880_v29, 16  ;;  %v1187_v50 = vrot.slane %v5367_v58, 5 }
 0x11a   : > { %v2092_v13 = vor.u32 %v2091_v62, %v2087_v56 }
 0x11b   : > { %v2305_v49 = vpop.f32.mrf.mxu0 }
 0x11c   : > { %v1639_v46 = vpop.f32.mrf.mxu3  ;;  %4712 = vmatmul.msk.bf16.gmra.mxu2 %vm676_vm3, %v1254_v4  ;;  %v980_v33 = vpop.f32.mrf.mxu1  ;;  %v4879_v4 = vld [vmem:[%s5467_s29 + $0xa4] sm:$0x1] }
 0x11d   : > { %v1712_v39 = vadd.f32 %v1639_v46, %v1413_v9  ;;  %v981_v25 = vadd.f32 %v980_v33, %v5931_v37  ;;  %v1181_v37 = vsel %vm5674_vm6, %v4685_v48, %v1180_v11  ;;  %v1184_v9 = vsel %vm5674_vm6, %v1182_v52, %v1183_v2  ;;  %v4881_v52 = vld [vmem:[%s5467_s29 + $0xac] sm:$0xf] }
 0x11e   : > { %v2095_v17 = vshll.u32 %v4879_v4, 16  ;;  %v1236_v24 = vunpack.c.l.b16 %v1184_v9  ;;  %v2083_v2 = vrot.slane %v2082_v5, 4  ;;  %v2093_v46 = vrot.slane %v2092_v13, 4 }
 0x11f   : > { %v1343_v0 = vpop.f32.mrf.mxu2  ;;  %v6019_v35 = vadd.f32 %v2305_v49, %v1712_v39  ;;  %v2113_v9 = vshrl.u32 %v4881_v52, 16  ;;  %v2102_v5 = vrot.slane %v2100_v47, 4 }
 0x120   : > { %v1414_v59 = vadd.f32 %v1343_v0, %v979_v22  ;;  %v1235_v22 = vunpack.c.l.b16 %v1181_v37  ;;  %v2097_v33 = vrot.slane %v2095_v17, 5  ;;  %v2103_v0 = vshll.u32 %v4880_v29, 16  ;;  %v5305_v17 = vld [vmem:[%s5467_s29 + $0x9c] sm:$0xff] }
 0x121   : > { %4836 = vmatmul.msk.bf16.gmra.mxu3 %vm676_vm3, %v5304_v44  ;;  %v2109_v37 = vshll.u32 %v4881_v52, 16 }
 0x122   : > { %v1255_v48 = vpack.c.b16 %v1236_v24, %v1235_v22  ;;  %v2098_v4 = vsel %vm5479_vm2, %v2093_v46, %v2097_v33  ;;  %v1189_v22 = vrot.slane %v1187_v50, 4  ;;  %v2105_v24 = vrot.slane %v2103_v0, 5  ;;  %v5284_v0 = vld [vmem:[%s5467_s29 + $0x9c] sm:$0xff] }
 0x123   : > { %v2308_v36 = vpop.f32.mrf.mxu0  ;;  %v2201_v29 = vunpack.c.l.b16 %v2098_v4  ;;  %v2115_v46 = vrot.slane %v2113_v9, 4 }
 0x124   : > { %v1642_v49 = vpop.f32.mrf.mxu3  ;;  %v983_v30 = vpop.f32.mrf.mxu1  ;;  %v2106_v58 = vor.u32 %v2105_v24, %v2102_v5 }
 0x125   : > { %v1713_v7 = vadd.f32 %v1642_v49, %v1414_v59  ;;  %v2088_v59 = vsel %vm5479_vm2, %v2083_v2, %v2087_v56  ;;  %v4686_v49 = vrot.slane %v1056_v61, 9  ;;  %v984_v56 = vadd.f32 %v983_v30, %v5761_v3 }
 0x126   : > { %4912 = vmatmul.msk.bf16.gmra.mxu0 %vm676_vm3, %v2219_v23  ;;  %v5368_v23 = vld [vmem:[%s5467_s29 + $0xa4] sm:$0x1]  ;;  %v2111_v2 = vrot.slane %v2109_v37, 5 }
 0x127   : > { %v1345_v11 = vpop.f32.mrf.mxu2  ;;  %4669 = vmatmul.msk.bf16.gmra.mxu1 %vm676_vm3, %v5283_v16  ;;  %v6031_v39 = vadd.f32 %v2308_v36, %v1713_v7  ;;  %v1190_v36 = vrot.slane %v5368_v23, 5  ;;  %v2200_v7 = vunpack.c.l.b16 %v2088_v59 }
 0x128   : > { %v1415_v44 = vadd.f32 %v1345_v11, %v981_v25  ;;  %v2116_v61 = vor.u32 %v2115_v46, %v2111_v2 }
 0x129   : > { %v1191_v47 = vsel %vm5674_vm6, %v1189_v22, %v1190_v36  ;;  %v2220_v3 = vpack.c.b16 %v2201_v29, %v2200_v7 }
 0x12a   : > { %v1238_v9 = vunpack.c.l.b16 %v1191_v47  ;;  %v2117_v5 = vrot.slane %v2116_v61, 4 }
 0x12b   : > { %v2310_v62 = vpop.f32.mrf.mxu0 }
 0x12c   : > { %v1644_v25 = vpop.f32.mrf.mxu3  ;;  %4713 = vmatmul.msk.bf16.gmra.mxu2 %vm676_vm3, %v1255_v48  ;;  %v985_v16 = vpop.f32.mrf.mxu1  ;;  %v4882_v48 = vld [vmem:[%s5467_s29 + $0xb0] sm:$0x1] }
 0x12d   : > { %v1714_v13 = vadd.f32 %v1644_v25, %v1415_v44  ;;  %v1188_v44 = vsel %vm5674_vm6, %v4686_v49, %v1187_v50  ;;  %v2119_v59 = vshll.u32 %v4882_v48, 16  ;;  %v2107_v25 = vrot.slane %v2106_v58, 4  ;;  %v4884_v49 = vld [vmem:[%s5467_s29 + $0xb8] sm:$0xf]  ;;  %v5370_v58 = vld [vmem:[%s5467_s29 + $0xb0] sm:$0x1] }
 0x12e   : > { %v1237_v37 = vunpack.c.l.b16 %v1188_v44  ;;  %v986_v50 = vadd.f32 %v985_v16, %v5774_v31  ;;  %v1057_v31 = vld [vmem:[%s5467_s29 + $0xa8] sm:$0xe]  ;;  %v2133_v16 = vshll.u32 %v4884_v49, 16  ;;  %v2137_v48 = vshrl.u32 %v4884_v49, 16 }
 0x12f   : > { %v1348_v11 = vpop.f32.mrf.mxu2  ;;  %v6044_v33 = vadd.f32 %v2310_v62, %v1714_v13  ;;  %v4883_v13 = vld [vmem:[%s5467_s29 + $0xb4] sm:$0xf]  ;;  %v2112_v29 = vsel %vm5479_vm2, %v2107_v25, %v2111_v2 }
 0x130   : > { %v1416_v52 = vadd.f32 %v1348_v11, %v984_v56  ;;  %v1256_v56 = vpack.c.b16 %v1238_v9, %v1237_v37  ;;  %v2124_v7 = vshrl.u32 %v4883_v13, 16  ;;  %v5369_v11 = vld [vmem:[%s5467_s29 + $0xac] sm:$0xf]  ;;  %v4687_v37 = vrot.slane %v1057_v31, 9 }
 0x131   : > { %4837 = vmatmul.msk.bf16.gmra.mxu3 %vm676_vm3, %v5305_v17  ;;  %v2121_v17 = vrot.slane %v2119_v59, 5  ;;  %v1194_v46 = vrot.slane %v5369_v11, 5  ;;  %v5285_v31 = vld [vmem:[%s5467_s29 + $0xa8] sm:$0xff] }
 0x132   : > { %v2126_v2 = vrot.slane %v2124_v7, 4 }
 0x133   : > { %v2313_v30 = vpop.f32.mrf.mxu0  ;;  %v2122_v47 = vsel %vm5479_vm2, %v2117_v5, %v2121_v17  ;;  %v1196_v9 = vrot.slane %v1194_v46, 4  ;;  %v4885_v17 = vld [vmem:[%s5467_s29 + $0xbc] sm:$0x1] }
 0x134   : > { %v1647_v62 = vpop.f32.mrf.mxu3  ;;  %v988_v4 = vpop.f32.mrf.mxu1 }
 0x135   : > { %v1715_v23 = vadd.f32 %v1647_v62, %v1416_v52  ;;  %v2127_v52 = vshll.u32 %v4883_v13, 16  ;;  %v5306_v62 = vld [vmem:[%s5467_s29 + $0xa8] sm:$0xff]  ;;  %v989_v25 = vadd.f32 %v988_v4, %v5794_v53  ;;  %v2203_v13 = vunpack.c.l.b16 %v2122_v47 }
 0x136   : > { %4913 = vmatmul.msk.bf16.gmra.mxu0 %vm676_vm3, %v2220_v3  ;;  %v1197_v3 = vrot.slane %v5370_v58, 5 }
 0x137   : > { %v1350_v36 = vpop.f32.mrf.mxu2  ;;  %4670 = vmatmul.msk.bf16.gmra.mxu1 %vm676_vm3, %v5284_v0  ;;  %v6058_v22 = vadd.f32 %v2313_v30, %v1715_v23  ;;  %v2202_v0 = vunpack.c.l.b16 %v2112_v29  ;;  %v2129_v23 = vrot.slane %v2127_v52, 5  ;;  %v2143_v29 = vshll.u32 %v4885_v17, 16 }
 0x138   : > { %v1417_v24 = vadd.f32 %v1350_v36, %v986_v50  ;;  %v2135_v50 = vrot.slane %v2133_v16, 5  ;;  %v2139_v36 = vrot.slane %v2137_v48, 4 }
 0x139   : > { %v2130_v7 = vor.u32 %v2129_v23, %v2126_v2  ;;  %v2221_v53 = vpack.c.b16 %v2203_v13, %v2202_v0  ;;  %v2145_v0 = vrot.slane %v2143_v29, 5  ;;  %v5371_v2 = vld [vmem:[%s5467_s29 + $0x10] sm:$0xf]  ;;  %v1058_v13 = vld [vmem:[%s5467_s29 + $0xb4] sm:$0xe] }
 0x13a   : > { %v2140_v4 = vor.u32 %v2139_v36, %v2135_v50  ;;  %v5372_v36 = vld [vmem:[%s5467_s29 + $0xb8] sm:$0xf] }
 0x13b   : > { %v2315_v44 = vpop.f32.mrf.mxu0 }
 0x13c   : > { %v1649_v30 = vpop.f32.mrf.mxu3  ;;  %4714 = vmatmul.msk.bf16.gmra.mxu2 %vm676_vm3, %v1256_v56  ;;  %v990_v61 = vpop.f32.mrf.mxu1  ;;  %v1198_v56 = vsel %vm5674_vm6, %v1196_v9, %v1197_v3  ;;  %v4887_v9 = vld [vmem:[%s5467_s29 + $0xc4] sm:$0xf] }
 0x13d   : > { %v1716_v59 = vadd.f32 %v1649_v30, %v1417_v24  ;;  %v1195_v24 = vsel %vm5674_vm6, %v4687_v37, %v1194_v46  ;;  %v1240_v47 = vunpack.c.l.b16 %v1198_v56  ;;  %v2131_v46 = vrot.slane %v2130_v7, 4  ;;  %v4886_v37 = vld [vmem:[%s5467_s29 + $0xc0] sm:$0xf] }
 0x13e   : > { %v991_v3 = vadd.f32 %v990_v61, %v5813_v14  ;;  %v2141_v30 = vrot.slane %v2140_v4, 4  ;;  %v2157_v56 = vshll.u32 %v4887_v9, 16 }
 0x13f   : > { %v1353_v5 = vpop.f32.mrf.mxu2  ;;  %v6071_v49 = vadd.f32 %v2315_v44, %v1716_v59  ;;  %v1239_v44 = vunpack.c.l.b16 %v1195_v24  ;;  %v2471_v59 = vrot.slane %v5371_v2, 5  ;;  %v2136_v14 = vsel %vm5479_vm2, %v2131_v46, %v2135_v50  ;;  %v4917_v46 = vld [vmem:[%s5467_s29 + $0xc] sm:$0xe] }
 0x140   : > { %v1418_v11 = vadd.f32 %v1353_v5, %v989_v25  ;;  %v1201_v5 = vrot.slane %v5372_v36, 5  ;;  %v2146_v61 = vsel %vm5479_vm2, %v2141_v30, %v2145_v0  ;;  %v2151_v24 = vshll.u32 %v4886_v37, 16  ;;  %v5307_v30 = vld [vmem:[%s5467_s29 + $0xb4] sm:$0xff] }
 0x141   : > { %4838 = vmatmul.msk.bf16.gmra.mxu3 %vm676_vm3, %v5306_v62  ;;  %v1257_v25 = vpack.c.b16 %v1240_v47, %v1239_v44  ;;  %v2473_v7 = vrot.slane %v2471_v59, 4  ;;  %v5374_v44 = vld [vmem:[%s5467_s29 + $0xbc] sm:$0x1]  ;;  %v2204_v0 = vunpack.c.l.b16 %v2136_v14  ;;  %v2205_v2 = vunpack.c.l.b16 %v2146_v61 }
 0x143   : > { %v2318_v52 = vpop.f32.mrf.mxu0 }
 0x144   : > { %v1652_v16 = vpop.f32.mrf.mxu3  ;;  %v993_v48 = vpop.f32.mrf.mxu1 }
 0x145   : > { %v1717_v58 = vadd.f32 %v1652_v16, %v1418_v11  ;;  %v2148_v11 = vshrl.u32 %v4886_v37, 16  ;;  %v2161_v16 = vshrl.u32 %v4887_v9, 16  ;;  %v994_v37 = vadd.f32 %v993_v48, %v5832_v51  ;;  %v4888_v51 = vld [vmem:[%s5467_s29 + $0xc8] sm:$0x1] }
 0x146   : > { %4914 = vmatmul.msk.bf16.gmra.mxu0 %vm676_vm3, %v2221_v53  ;;  %v5373_v53 = vld [vmem:[%s5467_s29 + $0x14] sm:$0x1]  ;;  %v2159_v9 = vrot.slane %v2157_v56, 5 }
 0x147   : > { %v1355_v62 = vpop.f32.mrf.mxu2  ;;  %4671 = vmatmul.msk.bf16.gmra.mxu1 %vm676_vm3, %v5285_v31  ;;  %v6087_v17 = vadd.f32 %v2318_v52, %v1717_v58  ;;  %v2474_v4 = vrot.slane %v5373_v53, 5  ;;  %v4688_v31 = vrot.slane %v1058_v13, 9  ;;  %v1204_v52 = vrot.slane %v5374_v44, 5 }
 0x148   : > { %v1419_v23 = vadd.f32 %v1355_v62, %v991_v3  ;;  %v1203_v58 = vrot.slane %v1201_v5, 4  ;;  %v4933_v62 = vrot.slane %v4917_v46, 9  ;;  %v2150_v36 = vrot.slane %v2148_v11, 4  ;;  %v5286_v46 = vld [vmem:[%s5467_s29 + $0xb4] sm:$0xff] }
 0x149   : > { %v2153_v13 = vrot.slane %v2151_v24, 5  ;;  %v1202_v44 = vsel %vm5674_vm6, %v4688_v31, %v1201_v5  ;;  %v2475_v14 = vsel %vm5674_vm6, %v2473_v7, %v2474_v4  ;;  %v5101_v24 = vld [vmem:[%s5467_s29 + $0x18] sm:$0xf]  ;;  %v2222_v5 = vpack.c.b16 %v2205_v2, %v2204_v0 }
 0x14a   : > { %v2587_v11 = vunpack.c.l.b16 %v2475_v14  ;;  %v1241_v7 = vunpack.c.l.b16 %v1202_v44  ;;  %v3166_v14 = vshll.u32 %v5101_v24, 16 }
 0x14b   : > { %v2320_v29 = vpop.f32.mrf.mxu0  ;;  %v2154_v56 = vor.u32 %v2153_v13, %v2150_v36 }
 0x14c   : > { %v1654_v47 = vpop.f32.mrf.mxu3  ;;  %4715 = vmatmul.msk.bf16.gmra.mxu2 %vm676_vm3, %v1257_v25  ;;  %v995_v50 = vpop.f32.mrf.mxu1  ;;  %v2163_v25 = vrot.slane %v2161_v16, 4 }
 0x14d   : > { %v1718_v3 = vadd.f32 %v1654_v47, %v1419_v23  ;;  %v2472_v23 = vsel %vm5674_vm6, %v4933_v62, %v2471_v59  ;;  %v1205_v47 = vsel %vm5674_vm6, %v1203_v58, %v1204_v52  ;;  %v6116_v52 = vld [vmem:[%s5467_s29 + $0x1c] sm:$0xf]  ;;  %v996_v0 = vadd.f32 %v995_v50, %v5855_v12 }
 0x14e   : > { %v2586_v48 = vunpack.c.l.b16 %v2472_v23  ;;  %v1242_v4 = vunpack.c.l.b16 %v1205_v47  ;;  %v2164_v62 = vor.u32 %v2163_v25, %v2159_v9  ;;  %v3163_v23 = vshrl.u32 %v5101_v24, 16 }
 0x14f   : > { %v1358_v53 = vpop.f32.mrf.mxu2  ;;  %v6112_v16 = vadd.f32 %v2320_v29, %v1718_v3  ;;  %v2155_v2 = vrot.slane %v2154_v56, 4  ;;  %v3172_v29 = vshll.u32 %v6116_v52, 16  ;;  %v3176_v3 = vshrl.u32 %v6116_v52, 16  ;;  %v5103_v56 = vld [vmem:[%s5467_s29 + $0x20] sm:$0x1] }
 0x150   : > { %v1420_v61 = vadd.f32 %v1358_v53, %v994_v37  ;;  %v6110_v31 = vpack.c.b16 %v2587_v11, %v2586_v48  ;;  %v2167_v37 = vshll.u32 %v4888_v51, 16  ;;  %v1258_v13 = vpack.c.b16 %v1242_v4, %v1241_v7 }
 0x151   : > { %4839 = vmatmul.msk.bf16.gmra.mxu3 %vm676_vm3, %v5307_v30  ;;  %v2165_v44 = vrot.slane %v2164_v62, 4  ;;  %v3165_v51 = vrot.slane %v3163_v23, 4  ;;  %v2160_v12 = vsel %vm5479_vm2, %v2155_v2, %v2159_v9  ;;  %v3174_v50 = vrot.slane %v3172_v29, 5 }
 0x152   : > { %v2169_v25 = vrot.slane %v2167_v37, 5  ;;  %v3178_v11 = vrot.slane %v3176_v3, 4  ;;  %v2206_v37 = vunpack.c.l.b16 %v2160_v12 }
 0x153   : > { %v2323_v59 = vpop.f32.mrf.mxu0 }
 0x154   : > { %v1657_v58 = vpop.f32.mrf.mxu3  ;;  %v998_v53 = vpop.f32.mrf.mxu1  ;;  %v3179_v23 = vor.u32 %v3178_v11, %v3174_v50  ;;  %v5375_v11 = vld [vmem:[%s5467_s29 + $0x1c] sm:$0xf] }
 0x155   : > { %v1719_v30 = vadd.f32 %v1657_v58, %v1420_v61  ;;  %v3168_v61 = vrot.slane %v3166_v14, 5  ;;  %v999_v58 = vadd.f32 %v998_v53, %v5877_v55  ;;  %v3182_v14 = vshll.u32 %v5103_v56, 16  ;;  %v6140_v53 = vld [vmem:[%s5467_s29 + $0x28] sm:$0xf] }
 0x156   : > { %4915 = vmatmul.msk.bf16.gmra.mxu0 %vm676_vm3, %v2222_v5  ;;  %v2170_v5 = vsel %vm5479_vm2, %v2165_v44, %v2169_v25  ;;  %v3180_v3 = vrot.slane %v3179_v23, 4  ;;  %v5104_v44 = vld [vmem:[%s5467_s29 + $0x24] sm:$0xf]  ;;  %v3846_v55 = vrot.slane %v6116_v52, 5 }
 0x157   : > { %v1360_v36 = vpop.f32.mrf.mxu2  ;;  %4672 = vmatmul.msk.bf16.gmra.mxu1 %vm676_vm3, %v5286_v46  ;;  %v6123_v48 = vadd.f32 %v2323_v59, %v1719_v30  ;;  %v3169_v4 = vor.u32 %v3168_v61, %v3165_v51  ;;  %v5308_v59 = vld [vmem:[%s5467_s29 + $0xc0] sm:$0xff]  ;;  %v2207_v9 = vunpack.c.l.b16 %v2170_v5  ;;  %v2478_v5 = vrot.slane %v5375_v11, 5 }
 0x158   : > { %v1421_v47 = vadd.f32 %v1360_v36, %v996_v0  ;;  %v3184_v36 = vrot.slane %v3182_v14, 5 }
 0x159   : > { %7005 = vst [vmem:[#allocation3_spill] sm:$0xff] %v6123_v48  ;;  %v3170_v2 = vrot.slane %v3169_v4, 4  ;;  %v2223_v29 = vpack.c.b16 %v2207_v9, %v2206_v37  ;;  %v3187_v37 = vshrl.u32 %v5104_v44, 16  ;;  %v3200_v9 = vshrl.u32 %v6140_v53, 16 }
 0x15b   : > { %v2325_v24 = vpop.f32.mrf.mxu0  ;;  %v3175_v12 = vsel %vm5479_vm2, %v3170_v2, %v3174_v50  ;;  %v5376_v50 = vld [vmem:[%s5467_s29 + $0x20] sm:$0x1] }
 0x15c   : > { %v1659_v46 = vpop.f32.mrf.mxu3  ;;  %4716 = vmatmul.msk.bf16.gmra.mxu2 %vm676_vm3, %v1258_v13  ;;  %v1000_v7 = vpop.f32.mrf.mxu1  ;;  %v5177_v13 = vld [vmem:[%s5467_s29 + $0x18] sm:$0xe]  ;;  %v2481_v23 = vrot.slane %v5376_v50, 5 }
 0x15d   : > { %v1720_v62 = vadd.f32 %v1659_v46, %v1421_v47  ;;  %v5193_v4 = vrot.slane %v5177_v13, 9  ;;  %v1001_v52 = vadd.f32 %v1000_v7, %v5905_v27  ;;  %v2480_v27 = vrot.slane %v2478_v5, 4 }
 0x15f   : > { %v1363_v30 = vpop.f32.mrf.mxu2  ;;  %v6136_v25 = vadd.f32 %v2325_v24, %v1720_v62  ;;  %v3190_v24 = vshll.u32 %v5104_v44, 16  ;;  %v3185_v62 = vsel %vm5479_vm2, %v3180_v3, %v3184_v36  ;;  %v3551_v3 = vunpack.c.l.b16 %v3175_v12 }
 0x160   : > { %v1422_v0 = vadd.f32 %v1363_v30, %v999_v58  ;;  %v3196_v58 = vshll.u32 %v6140_v53, 16  ;;  %v3848_v30 = vrot.slane %v3846_v55, 4  ;;  %v3552_v36 = vunpack.c.l.b16 %v3185_v62 }
 0x161   : > { %4840 = vmatmul.msk.bf16.gmra.mxu3 %vm676_vm3, %v5308_v59  ;;  %7006 = vst [vmem:[#allocation4_spill] sm:$0xff] %v6136_v25  ;;  %v4918_v59 = vld [vmem:[%s5467_s29 + $0x18] sm:$0xe]  ;;  %v3189_v44 = vrot.slane %v3187_v37, 4  ;;  %v3847_v11 = vsel %vm5674_vm6, %v5193_v4, %v3846_v55  ;;  %v3202_v25 = vrot.slane %v3200_v9, 4 }
 0x162   : > { %v4934_v13 = vrot.slane %v4918_v59, 9  ;;  %v3198_v50 = vrot.slane %v3196_v58, 5  ;;  %v3583_v4 = vpack.c.b16 %v3552_v36, %v3551_v3  ;;  %v3961_v59 = vunpack.c.l.b16 %v3847_v11  ;;  %v5107_v3 = vld [vmem:[%s5467_s29 + $0x30] sm:$0xf] }
 0x163   : > { %v2328_v47 = vpop.f32.mrf.mxu0  ;;  %v3853_v36 = vrot.slane %v6140_v53, 5 }
 0x164   : > { %v1662_v51 = vpop.f32.mrf.mxu3  ;;  %v1003_v61 = vpop.f32.mrf.mxu1  ;;  %v2479_v12 = vsel %vm5674_vm6, %v4934_v13, %v2478_v5  ;;  %v3203_v58 = vor.u32 %v3202_v25, %v3198_v50 }
 0x165   : > { %v1721_v46 = vadd.f32 %v1662_v51, %v1422_v0  ;;  %v3849_v0 = vrot.slane %v5103_v56, 5  ;;  %v3192_v51 = vrot.slane %v3190_v24, 5  ;;  %v6163_v56 = vld [vmem:[%s5467_s29 + $0x2c] sm:$0x1]  ;;  %v1004_v24 = vadd.f32 %v1003_v61, %v5776_v34 }
 0x166   : > { %4916 = vmatmul.msk.bf16.gmra.mxu0 %vm676_vm3, %v2223_v29  ;;  %v5315_v29 = vld [vmem:[%s5467_s29 + $0x18] sm:$0xff]  ;;  %v3206_v9 = vshll.u32 %v6163_v56, 16  ;;  %v3204_v13 = vrot.slane %v3203_v58, 4  ;;  %v5378_v58 = vld [vmem:[%s5467_s29 + $0x2c] sm:$0x1] }
 0x167   : > { %v1365_v14 = vpop.f32.mrf.mxu2  ;;  %4961 = vmatmul.msk.bf16.vlgmr.msra.gmra.mxu1 %vm676_vm3, %v6110_v31  ;;  %v6156_v7 = vadd.f32 %v2328_v47, %v1721_v46  ;;  %v3850_v31 = vsel %vm5674_vm6, %v3848_v30, %v3849_v0  ;;  %v2482_v46 = vsel %vm5674_vm6, %v2480_v27, %v2481_v23  ;;  %v3193_v37 = vor.u32 %v3192_v51, %v3189_v44  ;;  %v6179_v44 = vld [vmem:[%s5467_s29 + $0x34] sm:$0xf] }
 0x168   : > { %v1423_v2 = vadd.f32 %v1365_v14, %v1001_v52  ;;  %v3962_v62 = vunpack.c.l.b16 %v3850_v31  ;;  %v2588_v30 = vunpack.c.l.b16 %v2479_v12  ;;  %v2589_v0 = vunpack.c.l.b16 %v2482_v46 }
 0x169   : > { %v3194_v23 = vrot.slane %v3193_v37, 4  ;;  %v3208_v27 = vrot.slane %v3206_v9, 5  ;;  %v2488_v9 = vrot.slane %v5378_v58, 5 }
 0x16a   : > { %v2619_v61 = vpack.c.b16 %v2589_v0, %v2588_v30  ;;  %v3856_v30 = vrot.slane %v6163_v56, 5  ;;  %v6202_v56 = vld [vmem:[%s5467_s29 + $0x38] sm:$0x1] }
 0x16b   : > { %v2330_v48 = vpop.f32.mrf.mxu0  ;;  %v3209_v37 = vsel %vm5479_vm2, %v3204_v13, %v3208_v27 }
 0x16c   : > { %v1664_v52 = vpop.f32.mrf.mxu3  ;;  %5085 = vmatmul.msk.bf16.vlgmr.msra.gmra.mxu2 %vm676_vm3, %v5315_v29  ;;  %v1005_v47 = vpop.f32.mrf.mxu1  ;;  %v3993_v29 = vpack.c.b16 %v3962_v62, %v3961_v59  ;;  %v4919_v59 = vld [vmem:[%s5467_s29 + $0x24] sm:$0xe]  ;;  %v3224_v62 = vshrl.u32 %v6179_v44, 16 }
 0x16d   : > { %v1722_v55 = vadd.f32 %v1664_v52, %v1423_v2  ;;  %v5178_v2 = vld [vmem:[%s5467_s29 + $0x24] sm:$0xe]  ;;  %v5377_v52 = vld [vmem:[%s5467_s29 + $0x28] sm:$0xf]  ;;  %v1006_v53 = vadd.f32 %v1005_v47, %v5797_v1 }
 0x16e   : > { %v5194_v31 = vrot.slane %v5178_v2, 9  ;;  %v2485_v12 = vrot.slane %v5377_v52, 5  ;;  %v3226_v52 = vrot.slane %v3224_v62, 4  ;;  %v3230_v62 = vshll.u32 %v6202_v56, 16 }
 0x16f   : > { %v1368_v14 = vpop.f32.mrf.mxu2  ;;  %v6175_v34 = vadd.f32 %v2330_v48, %v1722_v55  ;;  %v3211_v48 = vshrl.u32 %v5107_v3, 16  ;;  %v3214_v55 = vshll.u32 %v5107_v3, 16 }
 0x170   : > { %v1424_v5 = vadd.f32 %v1368_v14, %v1004_v24  ;;  %v3220_v24 = vshll.u32 %v6179_v44, 16  ;;  %v2487_v1 = vrot.slane %v2485_v12, 4  ;;  %v3854_v3 = vsel %vm5674_vm6, %v5194_v31, %v3853_v36 }
 0x171   : > { %5161 = vmatmul.msk.bf16.vlgmr.msra.gmra.mxu3 %vm676_vm3, %v3583_v4  ;;  %v3199_v4 = vsel %vm5479_vm2, %v3194_v23, %v3198_v50  ;;  %v3855_v50 = vrot.slane %v3853_v36, 4  ;;  %v4935_v23 = vrot.slane %v4919_v59, 9  ;;  %v3213_v13 = vrot.slane %v3211_v48, 4 }
 0x172   : > { %v3553_v2 = vunpack.c.l.b16 %v3199_v4  ;;  %v3216_v27 = vrot.slane %v3214_v55, 5  ;;  %v2489_v4 = vsel %vm5674_vm6, %v2487_v1, %v2488_v9  ;;  %v3963_v59 = vunpack.c.l.b16 %v3854_v3 }
 0x173   : > { %v2333_v25 = vpop.f32.mrf.mxu0  ;;  %v3857_v58 = vsel %vm5674_vm6, %v3855_v50, %v3856_v30  ;;  %v2591_v30 = vunpack.c.l.b16 %v2489_v4  ;;  %v3232_v1 = vrot.slane %v3230_v62, 5 }
 0x174   : > { %v1667_v51 = vpop.f32.mrf.mxu3  ;;  %v1008_v11 = vpop.f32.mrf.mxu1  ;;  %v3217_v48 = vor.u32 %v3216_v27, %v3213_v13  ;;  %v3860_v13 = vrot.slane %v6179_v44, 5  ;;  %v6218_v27 = vld [vmem:[%s5467_s29 + $0x40] sm:$0xf] }
 0x175   : > { %v1723_v46 = vadd.f32 %v1667_v51, %v1424_v5  ;;  %v5316_v5 = vld [vmem:[%s5467_s29 + $0x24] sm:$0xff]  ;;  %v3222_v51 = vrot.slane %v3220_v24, 5  ;;  %v1009_v55 = vadd.f32 %v1008_v11, %v5816_v19 }
 0x176   : > { %5221 = vmatmul.msk.bf16.vlgmr.msra.gmra.mxu0 %vm676_vm3, %v3993_v29  ;;  %v3554_v29 = vunpack.c.l.b16 %v3209_v37  ;;  %v3964_v37 = vunpack.c.l.b16 %v3857_v58  ;;  %v3218_v9 = vrot.slane %v3217_v48, 4 }
 0x177   : > { %v1370_v14 = vpop.f32.mrf.mxu2  ;;  %4962 = vmatmul.msk.bf16.gmra.mxu1 %vm676_vm3, %v2619_v61  ;;  %v6195_v47 = vadd.f32 %v2333_v25, %v1723_v46  ;;  %v2486_v46 = vsel %vm5674_vm6, %v4935_v23, %v2485_v12  ;;  %v3227_v24 = vor.u32 %v3226_v52, %v3222_v51 }
 0x178   : > { %v1425_v0 = vadd.f32 %v1370_v14, %v1006_v53  ;;  %v3584_v31 = vpack.c.b16 %v3554_v29, %v3553_v2  ;;  %v2590_v50 = vunpack.c.l.b16 %v2486_v46  ;;  %v5110_v2 = vld [vmem:[%s5467_s29 + $0x3c] sm:$0xf] }
 0x179   : > { %v3228_v23 = vrot.slane %v3227_v24, 4  ;;  %v5380_v24 = vld [vmem:[%s5467_s29 + $0x38] sm:$0x1] }
 0x17a   : > { %v2620_v29 = vpack.c.b16 %v2591_v30, %v2590_v50  ;;  %v2495_v62 = vrot.slane %v5380_v24, 5  ;;  %v3863_v50 = vrot.slane %v6202_v56, 5  ;;  %v6241_v56 = vld [vmem:[%s5467_s29 + $0x44] sm:$0x1] }
 0x17b   : > { %v2335_v61 = vpop.f32.mrf.mxu0  ;;  %v3233_v48 = vsel %vm5479_vm2, %v3228_v23, %v3232_v1 }
 0x17c   : > { %v1669_v53 = vpop.f32.mrf.mxu3  ;;  %5086 = vmatmul.msk.bf16.gmra.mxu2 %vm676_vm3, %v5316_v5  ;;  %v1010_v25 = vpop.f32.mrf.mxu1  ;;  %v3994_v5 = vpack.c.b16 %v3964_v37, %v3963_v59  ;;  %v4920_v59 = vld [vmem:[%s5467_s29 + $0x30] sm:$0xe]  ;;  %v3248_v37 = vshrl.u32 %v6218_v27, 16 }
 0x17d   : > { %v1724_v36 = vadd.f32 %v1669_v53, %v1425_v0  ;;  %v5179_v0 = vld [vmem:[%s5467_s29 + $0x30] sm:$0xe]  ;;  %v5379_v53 = vld [vmem:[%s5467_s29 + $0x34] sm:$0xf]  ;;  %v1011_v44 = vadd.f32 %v1010_v25, %v5835_v54 }
 0x17e   : > { %v5195_v58 = vrot.slane %v5179_v0, 9  ;;  %v2492_v46 = vrot.slane %v5379_v53, 5  ;;  %v3250_v53 = vrot.slane %v3248_v37, 4  ;;  %v3254_v37 = vshll.u32 %v6241_v56, 16 }
 0x17f   : > { %v1373_v14 = vpop.f32.mrf.mxu2  ;;  %v6214_v19 = vadd.f32 %v2335_v61, %v1724_v36  ;;  %v3235_v61 = vshrl.u32 %v5110_v2, 16  ;;  %v3238_v36 = vshll.u32 %v5110_v2, 16 }
 0x180   : > { %v1426_v12 = vadd.f32 %v1373_v14, %v1009_v55  ;;  %v3244_v55 = vshll.u32 %v6218_v27, 16  ;;  %v2494_v54 = vrot.slane %v2492_v46, 4  ;;  %v3861_v2 = vsel %vm5674_vm6, %v5195_v58, %v3860_v13 }
 0x181   : > { %5162 = vmatmul.msk.bf16.gmra.mxu3 %vm676_vm3, %v3584_v31  ;;  %v3223_v31 = vsel %vm5479_vm2, %v3218_v9, %v3222_v51  ;;  %v3862_v51 = vrot.slane %v3860_v13, 4  ;;  %v4936_v9 = vrot.slane %v4920_v59, 9  ;;  %v3237_v23 = vrot.slane %v3235_v61, 4 }
 0x182   : > { %v3555_v0 = vunpack.c.l.b16 %v3223_v31  ;;  %v3240_v1 = vrot.slane %v3238_v36, 5  ;;  %v2496_v31 = vsel %vm5674_vm6, %v2494_v54, %v2495_v62  ;;  %v3965_v59 = vunpack.c.l.b16 %v3861_v2 }
 0x183   : > { %v2338_v11 = vpop.f32.mrf.mxu0  ;;  %v3864_v24 = vsel %vm5674_vm6, %v3862_v51, %v3863_v50  ;;  %v2593_v50 = vunpack.c.l.b16 %v2496_v31  ;;  %v3256_v54 = vrot.slane %v3254_v37, 5 }
 0x184   : > { %v1672_v3 = vpop.f32.mrf.mxu3  ;;  %v1013_v52 = vpop.f32.mrf.mxu1  ;;  %v3241_v61 = vor.u32 %v3240_v1, %v3237_v23  ;;  %v3867_v23 = vrot.slane %v6218_v27, 5  ;;  %v6257_v1 = vld [vmem:[%s5467_s29 + $0x4c] sm:$0xf] }
 0x185   : > { %v1725_v4 = vadd.f32 %v1672_v3, %v1426_v12  ;;  %v5317_v12 = vld [vmem:[%s5467_s29 + $0x30] sm:$0xff]  ;;  %v3246_v3 = vrot.slane %v3244_v55, 5  ;;  %v1014_v36 = vadd.f32 %v1013_v52, %v5858_v20 }
 0x186   : > { %5222 = vmatmul.msk.bf16.gmra.mxu0 %vm676_vm3, %v3994_v5  ;;  %v3556_v5 = vunpack.c.l.b16 %v3233_v48  ;;  %v3966_v48 = vunpack.c.l.b16 %v3864_v24  ;;  %v3242_v62 = vrot.slane %v3241_v61, 4 }
 0x187   : > { %v1375_v14 = vpop.f32.mrf.mxu2  ;;  %4963 = vmatmul.msk.bf16.gmra.mxu1 %vm676_vm3, %v2620_v29  ;;  %v6234_v25 = vadd.f32 %v2338_v11, %v1725_v4  ;;  %v2493_v4 = vsel %vm5674_vm6, %v4936_v9, %v2492_v46  ;;  %v3251_v55 = vor.u32 %v3250_v53, %v3246_v3 }
 0x188   : > { %v1427_v30 = vadd.f32 %v1375_v14, %v1011_v44  ;;  %v3585_v58 = vpack.c.b16 %v3556_v5, %v3555_v0  ;;  %v2592_v51 = vunpack.c.l.b16 %v2493_v4  ;;  %v5113_v0 = vld [vmem:[%s5467_s29 + $0x48] sm:$0xf] }
 0x189   : > { %v3252_v9 = vrot.slane %v3251_v55, 4  ;;  %v5382_v55 = vld [vmem:[%s5467_s29 + $0x44] sm:$0x1] }
 0x18a   : > { %v2621_v5 = vpack.c.b16 %v2593_v50, %v2592_v51  ;;  %v2502_v37 = vrot.slane %v5382_v55, 5  ;;  %v3870_v51 = vrot.slane %v6241_v56, 5  ;;  %v6280_v56 = vld [vmem:[%s5467_s29 + $0x50] sm:$0x1] }
 0x18b   : > { %v2340_v29 = vpop.f32.mrf.mxu0  ;;  %v3257_v61 = vsel %vm5479_vm2, %v3252_v9, %v3256_v54 }
 0x18c   : > { %v1674_v44 = vpop.f32.mrf.mxu3  ;;  %5087 = vmatmul.msk.bf16.gmra.mxu2 %vm676_vm3, %v5317_v12  ;;  %v1015_v11 = vpop.f32.mrf.mxu1  ;;  %v3995_v12 = vpack.c.b16 %v3966_v48, %v3965_v59  ;;  %v4921_v59 = vld [vmem:[%s5467_s29 + $0x3c] sm:$0xe]  ;;  %v3272_v48 = vshrl.u32 %v6257_v1, 16 }
 0x18d   : > { %v1726_v13 = vadd.f32 %v1674_v44, %v1427_v30  ;;  %v5180_v30 = vld [vmem:[%s5467_s29 + $0x3c] sm:$0xe]  ;;  %v5381_v44 = vld [vmem:[%s5467_s29 + $0x40] sm:$0xf]  ;;  %v1016_v27 = vadd.f32 %v1015_v11, %v5879_v57 }
 0x18e   : > { %v5196_v24 = vrot.slane %v5180_v30, 9  ;;  %v2499_v4 = vrot.slane %v5381_v44, 5  ;;  %v3274_v44 = vrot.slane %v3272_v48, 4  ;;  %v3278_v48 = vshll.u32 %v6280_v56, 16 }
 0x18f   : > { %v1378_v14 = vpop.f32.mrf.mxu2  ;;  %v6253_v20 = vadd.f32 %v2340_v29, %v1726_v13  ;;  %v3259_v29 = vshrl.u32 %v5113_v0, 16  ;;  %v3262_v13 = vshll.u32 %v5113_v0, 16 }
 0x190   : > { %v1428_v46 = vadd.f32 %v1378_v14, %v1014_v36  ;;  %v3268_v36 = vshll.u32 %v6257_v1, 16  ;;  %v2501_v57 = vrot.slane %v2499_v4, 4  ;;  %v3868_v0 = vsel %vm5674_vm6, %v5196_v24, %v3867_v23 }
 0x191   : > { %5163 = vmatmul.msk.bf16.gmra.mxu3 %vm676_vm3, %v3585_v58  ;;  %v3247_v58 = vsel %vm5479_vm2, %v3242_v62, %v3246_v3  ;;  %v3869_v3 = vrot.slane %v3867_v23, 4  ;;  %v4937_v62 = vrot.slane %v4921_v59, 9  ;;  %v3261_v9 = vrot.slane %v3259_v29, 4 }
 0x192   : > { %v3557_v30 = vunpack.c.l.b16 %v3247_v58  ;;  %v3264_v54 = vrot.slane %v3262_v13, 5  ;;  %v2503_v58 = vsel %vm5674_vm6, %v2501_v57, %v2502_v37  ;;  %v3967_v59 = vunpack.c.l.b16 %v3868_v0 }
 0x193   : > { %v2343_v52 = vpop.f32.mrf.mxu0  ;;  %v3871_v55 = vsel %vm5674_vm6, %v3869_v3, %v3870_v51  ;;  %v2595_v51 = vunpack.c.l.b16 %v2503_v58  ;;  %v3280_v57 = vrot.slane %v3278_v48, 5 }
 0x194   : > { %v1677_v2 = vpop.f32.mrf.mxu3  ;;  %v1018_v53 = vpop.f32.mrf.mxu1  ;;  %v3265_v29 = vor.u32 %v3264_v54, %v3261_v9  ;;  %v3874_v9 = vrot.slane %v6257_v1, 5  ;;  %v6296_v54 = vld [vmem:[%s5467_s29 + $0x58] sm:$0xf] }
 0x195   : > { %v1727_v31 = vadd.f32 %v1677_v2, %v1428_v46  ;;  %v5318_v46 = vld [vmem:[%s5467_s29 + $0x3c] sm:$0xff]  ;;  %v3270_v2 = vrot.slane %v3268_v36, 5  ;;  %v1019_v13 = vadd.f32 %v1018_v53, %v5909_v41 }
 0x196   : > { %5223 = vmatmul.msk.bf16.gmra.mxu0 %vm676_vm3, %v3995_v12  ;;  %v3558_v12 = vunpack.c.l.b16 %v3257_v61  ;;  %v3968_v61 = vunpack.c.l.b16 %v3871_v55  ;;  %v3266_v37 = vrot.slane %v3265_v29, 4 }
 0x197   : > { %v1380_v14 = vpop.f32.mrf.mxu2  ;;  %4964 = vmatmul.msk.bf16.gmra.mxu1 %vm676_vm3, %v2621_v5  ;;  %v6273_v11 = vadd.f32 %v2343_v52, %v1727_v31  ;;  %v2500_v31 = vsel %vm5674_vm6, %v4937_v62, %v2499_v4  ;;  %v3275_v36 = vor.u32 %v3274_v44, %v3270_v2 }
 0x198   : > { %v1429_v50 = vadd.f32 %v1380_v14, %v1016_v27  ;;  %v3586_v24 = vpack.c.b16 %v3558_v12, %v3557_v30  ;;  %v2594_v3 = vunpack.c.l.b16 %v2500_v31  ;;  %v5116_v30 = vld [vmem:[%s5467_s29 + $0x54] sm:$0xf] }
 0x199   : > { %v3276_v62 = vrot.slane %v3275_v36, 4  ;;  %v5384_v36 = vld [vmem:[%s5467_s29 + $0x50] sm:$0x1] }
 0x19a   : > { %v2622_v12 = vpack.c.b16 %v2595_v51, %v2594_v3  ;;  %v2509_v48 = vrot.slane %v5384_v36, 5  ;;  %v3877_v3 = vrot.slane %v6280_v56, 5  ;;  %v6319_v56 = vld [vmem:[%s5467_s29 + $0x5c] sm:$0x1] }
 0x19b   : > { %v2345_v5 = vpop.f32.mrf.mxu0  ;;  %v3281_v29 = vsel %vm5479_vm2, %v3276_v62, %v3280_v57 }
 0x19c   : > { %v1679_v27 = vpop.f32.mrf.mxu3  ;;  %5088 = vmatmul.msk.bf16.gmra.mxu2 %vm676_vm3, %v5318_v46  ;;  %v1020_v52 = vpop.f32.mrf.mxu1  ;;  %v3996_v46 = vpack.c.b16 %v3968_v61, %v3967_v59  ;;  %v4922_v59 = vld [vmem:[%s5467_s29 + $0x48] sm:$0xe]  ;;  %v3296_v61 = vshrl.u32 %v6296_v54, 16 }
 0x19d   : > { %v1728_v23 = vadd.f32 %v1679_v27, %v1429_v50  ;;  %v5181_v50 = vld [vmem:[%s5467_s29 + $0x48] sm:$0xe]  ;;  %v5383_v27 = vld [vmem:[%s5467_s29 + $0x4c] sm:$0xf]  ;;  %v1021_v1 = vadd.f32 %v1020_v52, %v5924_v8 }
 0x19e   : > { %v5197_v55 = vrot.slane %v5181_v50, 9  ;;  %v2506_v31 = vrot.slane %v5383_v27, 5  ;;  %v3298_v27 = vrot.slane %v3296_v61, 4  ;;  %v3302_v61 = vshll.u32 %v6319_v56, 16 }
 0x19f   : > { %v1383_v14 = vpop.f32.mrf.mxu2  ;;  %v6292_v41 = vadd.f32 %v2345_v5, %v1728_v23  ;;  %v3283_v5 = vshrl.u32 %v5116_v30, 16  ;;  %v3286_v23 = vshll.u32 %v5116_v30, 16 }
 0x1a0   : > { %v1430_v4 = vadd.f32 %v1383_v14, %v1019_v13  ;;  %v3292_v13 = vshll.u32 %v6296_v54, 16  ;;  %v2508_v8 = vrot.slane %v2506_v31, 4  ;;  %v3875_v30 = vsel %vm5674_vm6, %v5197_v55, %v3874_v9 }
 0x1a1   : > { %5164 = vmatmul.msk.bf16.gmra.mxu3 %vm676_vm3, %v3586_v24  ;;  %v3271_v24 = vsel %vm5479_vm2, %v3266_v37, %v3270_v2  ;;  %v3876_v2 = vrot.slane %v3874_v9, 4  ;;  %v4938_v37 = vrot.slane %v4922_v59, 9  ;;  %v3285_v62 = vrot.slane %v3283_v5, 4 }
 0x1a2   : > { %v3559_v50 = vunpack.c.l.b16 %v3271_v24  ;;  %v3288_v57 = vrot.slane %v3286_v23, 5  ;;  %v2510_v24 = vsel %vm5674_vm6, %v2508_v8, %v2509_v48  ;;  %v3969_v59 = vunpack.c.l.b16 %v3875_v30 }
 0x1a3   : > { %v2348_v53 = vpop.f32.mrf.mxu0  ;;  %v3878_v36 = vsel %vm5674_vm6, %v3876_v2, %v3877_v3  ;;  %v2597_v3 = vunpack.c.l.b16 %v2510_v24  ;;  %v3304_v8 = vrot.slane %v3302_v61, 5 }
 0x1a4   : > { %v1682_v0 = vpop.f32.mrf.mxu3  ;;  %v1023_v44 = vpop.f32.mrf.mxu1  ;;  %v3289_v5 = vor.u32 %v3288_v57, %v3285_v62  ;;  %v3881_v62 = vrot.slane %v6296_v54, 5  ;;  %v6335_v57 = vld [vmem:[%s5467_s29 + $0x64] sm:$0xf] }
 0x1a5   : > { %v1729_v58 = vadd.f32 %v1682_v0, %v1430_v4  ;;  %v5319_v4 = vld [vmem:[%s5467_s29 + $0x48] sm:$0xff]  ;;  %v3294_v0 = vrot.slane %v3292_v13, 5  ;;  %v1024_v23 = vadd.f32 %v1023_v44, %v5784_v42 }
 0x1a6   : > { %5224 = vmatmul.msk.bf16.gmra.mxu0 %vm676_vm3, %v3996_v46  ;;  %v3560_v46 = vunpack.c.l.b16 %v3281_v29  ;;  %v3970_v29 = vunpack.c.l.b16 %v3878_v36  ;;  %v3290_v48 = vrot.slane %v3289_v5, 4 }
 0x1a7   : > { %v1385_v14 = vpop.f32.mrf.mxu2  ;;  %4965 = vmatmul.msk.bf16.gmra.mxu1 %vm676_vm3, %v2622_v12  ;;  %v6312_v52 = vadd.f32 %v2348_v53, %v1729_v58  ;;  %v2507_v58 = vsel %vm5674_vm6, %v4938_v37, %v2506_v31  ;;  %v3299_v13 = vor.u32 %v3298_v27, %v3294_v0 }
 0x1a8   : > { %v1431_v51 = vadd.f32 %v1385_v14, %v1021_v1  ;;  %v3587_v55 = vpack.c.b16 %v3560_v46, %v3559_v50  ;;  %v2596_v2 = vunpack.c.l.b16 %v2507_v58  ;;  %v5119_v50 = vld [vmem:[%s5467_s29 + $0x60] sm:$0xf] }
 0x1a9   : > { %v3300_v37 = vrot.slane %v3299_v13, 4  ;;  %v5386_v13 = vld [vmem:[%s5467_s29 + $0x5c] sm:$0x1] }
 0x1aa   : > { %v2623_v46 = vpack.c.b16 %v2597_v3, %v2596_v2  ;;  %v2516_v61 = vrot.slane %v5386_v13, 5  ;;  %v3884_v2 = vrot.slane %v6319_v56, 5  ;;  %v6358_v56 = vld [vmem:[%s5467_s29 + $0x68] sm:$0x1] }
 0x1ab   : > { %v2350_v12 = vpop.f32.mrf.mxu0  ;;  %v3305_v5 = vsel %vm5479_vm2, %v3300_v37, %v3304_v8 }
 0x1ac   : > { %v1684_v1 = vpop.f32.mrf.mxu3  ;;  %5089 = vmatmul.msk.bf16.gmra.mxu2 %vm676_vm3, %v5319_v4  ;;  %v1025_v53 = vpop.f32.mrf.mxu1  ;;  %v3997_v4 = vpack.c.b16 %v3970_v29, %v3969_v59  ;;  %v4923_v59 = vld [vmem:[%s5467_s29 + $0x54] sm:$0xe]  ;;  %v3320_v29 = vshrl.u32 %v6335_v57, 16 }
 0x1ad   : > { %v1730_v9 = vadd.f32 %v1684_v1, %v1431_v51  ;;  %v5182_v51 = vld [vmem:[%s5467_s29 + $0x54] sm:$0xe]  ;;  %v5385_v1 = vld [vmem:[%s5467_s29 + $0x58] sm:$0xf]  ;;  %v1026_v54 = vadd.f32 %v1025_v53, %v5807_v6 }
 0x1ae   : > { %v5198_v36 = vrot.slane %v5182_v51, 9  ;;  %v2513_v58 = vrot.slane %v5385_v1, 5  ;;  %v3322_v1 = vrot.slane %v3320_v29, 4  ;;  %v3326_v29 = vshll.u32 %v6358_v56, 16 }
 0x1af   : > { %v1388_v14 = vpop.f32.mrf.mxu2  ;;  %v6331_v42 = vadd.f32 %v2350_v12, %v1730_v9  ;;  %v3307_v12 = vshrl.u32 %v5119_v50, 16  ;;  %v3310_v9 = vshll.u32 %v5119_v50, 16 }
 0x1b0   : > { %v1432_v31 = vadd.f32 %v1388_v14, %v1024_v23  ;;  %v3316_v23 = vshll.u32 %v6335_v57, 16  ;;  %v2515_v6 = vrot.slane %v2513_v58, 4  ;;  %v3882_v50 = vsel %vm5674_vm6, %v5198_v36, %v3881_v62 }
 0x1b1   : > { %5165 = vmatmul.msk.bf16.gmra.mxu3 %vm676_vm3, %v3587_v55  ;;  %v3295_v55 = vsel %vm5479_vm2, %v3290_v48, %v3294_v0  ;;  %v3883_v0 = vrot.slane %v3881_v62, 4  ;;  %v4939_v48 = vrot.slane %v4923_v59, 9  ;;  %v3309_v37 = vrot.slane %v3307_v12, 4 }
 0x1b2   : > { %v3561_v51 = vunpack.c.l.b16 %v3295_v55  ;;  %v3312_v8 = vrot.slane %v3310_v9, 5  ;;  %v2517_v55 = vsel %vm5674_vm6, %v2515_v6, %v2516_v61  ;;  %v3971_v59 = vunpack.c.l.b16 %v3882_v50 }
 0x1b3   : > { %v2353_v44 = vpop.f32.mrf.mxu0  ;;  %v3885_v13 = vsel %vm5674_vm6, %v3883_v0, %v3884_v2  ;;  %v2599_v2 = vunpack.c.l.b16 %v2517_v55  ;;  %v3328_v6 = vrot.slane %v3326_v29, 5 }
 0x1b4   : > { %v1687_v30 = vpop.f32.mrf.mxu3  ;;  %v1028_v27 = vpop.f32.mrf.mxu1  ;;  %v3313_v12 = vor.u32 %v3312_v8, %v3309_v37  ;;  %v3888_v37 = vrot.slane %v6335_v57, 5  ;;  %v6374_v8 = vld [vmem:[%s5467_s29 + $0x70] sm:$0xf] }
 0x1b5   : > { %v1731_v24 = vadd.f32 %v1687_v30, %v1432_v31  ;;  %v5320_v31 = vld [vmem:[%s5467_s29 + $0x54] sm:$0xff]  ;;  %v3318_v30 = vrot.slane %v3316_v23, 5  ;;  %v1029_v9 = vadd.f32 %v1028_v27, %v5828_v43 }
 0x1b6   : > { %5225 = vmatmul.msk.bf16.gmra.mxu0 %vm676_vm3, %v3997_v4  ;;  %v3562_v4 = vunpack.c.l.b16 %v3305_v5  ;;  %v3972_v5 = vunpack.c.l.b16 %v3885_v13  ;;  %v3314_v61 = vrot.slane %v3313_v12, 4 }
 0x1b7   : > { %v1390_v14 = vpop.f32.mrf.mxu2  ;;  %4966 = vmatmul.msk.bf16.gmra.mxu1 %vm676_vm3, %v2623_v46  ;;  %v6351_v53 = vadd.f32 %v2353_v44, %v1731_v24  ;;  %v2514_v24 = vsel %vm5674_vm6, %v4939_v48, %v2513_v58  ;;  %v3323_v23 = vor.u32 %v3322_v1, %v3318_v30 }
 0x1b8   : > { %v1433_v3 = vadd.f32 %v1390_v14, %v1026_v54  ;;  %v3588_v36 = vpack.c.b16 %v3562_v4, %v3561_v51  ;;  %v2598_v0 = vunpack.c.l.b16 %v2514_v24  ;;  %v5122_v51 = vld [vmem:[%s5467_s29 + $0x6c] sm:$0xf] }
 0x1b9   : > { %v3324_v48 = vrot.slane %v3323_v23, 4  ;;  %v5388_v23 = vld [vmem:[%s5467_s29 + $0x68] sm:$0x1] }
 0x1ba   : > { %v2624_v4 = vpack.c.b16 %v2599_v2, %v2598_v0  ;;  %v2523_v29 = vrot.slane %v5388_v23, 5  ;;  %v3891_v0 = vrot.slane %v6358_v56, 5  ;;  %v6397_v56 = vld [vmem:[%s5467_s29 + $0x74] sm:$0x1] }
 0x1bb   : > { %v2355_v46 = vpop.f32.mrf.mxu0  ;;  %v3329_v12 = vsel %vm5479_vm2, %v3324_v48, %v3328_v6 }
 0x1bc   : > { %v1689_v54 = vpop.f32.mrf.mxu3  ;;  %5090 = vmatmul.msk.bf16.gmra.mxu2 %vm676_vm3, %v5320_v31  ;;  %v1030_v44 = vpop.f32.mrf.mxu1  ;;  %v3998_v31 = vpack.c.b16 %v3972_v5, %v3971_v59  ;;  %v4924_v59 = vld [vmem:[%s5467_s29 + $0x60] sm:$0xe]  ;;  %v3344_v5 = vshrl.u32 %v6374_v8, 16 }
 0x1bd   : > { %v1732_v62 = vadd.f32 %v1689_v54, %v1433_v3  ;;  %v5183_v3 = vld [vmem:[%s5467_s29 + $0x60] sm:$0xe]  ;;  %v5387_v54 = vld [vmem:[%s5467_s29 + $0x64] sm:$0xf]  ;;  %v1031_v57 = vadd.f32 %v1030_v44, %v5845_v21 }
 0x1be   : > { %v5199_v13 = vrot.slane %v5183_v3, 9  ;;  %v2520_v24 = vrot.slane %v5387_v54, 5  ;;  %v3346_v54 = vrot.slane %v3344_v5, 4  ;;  %v3350_v5 = vshll.u32 %v6397_v56, 16 }
 0x1bf   : > { %v1393_v14 = vpop.f32.mrf.mxu2  ;;  %v6370_v43 = vadd.f32 %v2355_v46, %v1732_v62  ;;  %v3331_v46 = vshrl.u32 %v5122_v51, 16  ;;  %v3334_v62 = vshll.u32 %v5122_v51, 16 }
 0x1c0   : > { %v1434_v58 = vadd.f32 %v1393_v14, %v1029_v9  ;;  %v3340_v9 = vshll.u32 %v6374_v8, 16  ;;  %v2522_v21 = vrot.slane %v2520_v24, 4  ;;  %v3889_v51 = vsel %vm5674_vm6, %v5199_v13, %v3888_v37 }
 0x1c1   : > { %5166 = vmatmul.msk.bf16.gmra.mxu3 %vm676_vm3, %v3588_v36  ;;  %v3319_v36 = vsel %vm5479_vm2, %v3314_v61, %v3318_v30  ;;  %v3890_v30 = vrot.slane %v3888_v37, 4  ;;  %v4940_v61 = vrot.slane %v4924_v59, 9  ;;  %v3333_v48 = vrot.slane %v3331_v46, 4 }
 0x1c2   : > { %v3563_v3 = vunpack.c.l.b16 %v3319_v36  ;;  %v3336_v6 = vrot.slane %v3334_v62, 5  ;;  %v2524_v36 = vsel %vm5674_vm6, %v2522_v21, %v2523_v29  ;;  %v3973_v59 = vunpack.c.l.b16 %v3889_v51 }
 0x1c3   : > { %v2358_v27 = vpop.f32.mrf.mxu0  ;;  %v3892_v23 = vsel %vm5674_vm6, %v3890_v30, %v3891_v0  ;;  %v2601_v0 = vunpack.c.l.b16 %v2524_v36  ;;  %v3352_v21 = vrot.slane %v3350_v5, 5  ;;  %v5389_v36 = vld [vmem:[%s5467_s29 + $0x70] sm:$0xf] }
 0x1c4   : > { %v1692_v50 = vpop.f32.mrf.mxu3  ;;  %v1033_v1 = vpop.f32.mrf.mxu1  ;;  %v3337_v46 = vor.u32 %v3336_v6, %v3333_v48  ;;  %v3895_v6 = vrot.slane %v6374_v8, 5 }
 0x1c5   : > { %v1733_v55 = vadd.f32 %v1692_v50, %v1434_v58  ;;  %v5321_v58 = vld [vmem:[%s5467_s29 + $0x60] sm:$0xff]  ;;  %v3342_v50 = vrot.slane %v3340_v9, 5  ;;  %v1034_v62 = vadd.f32 %v1033_v1, %v5866_v40 }
 0x1c6   : > { %5226 = vmatmul.msk.bf16.gmra.mxu0 %vm676_vm3, %v3998_v31  ;;  %v3564_v31 = vunpack.c.l.b16 %v3329_v12  ;;  %v3974_v12 = vunpack.c.l.b16 %v3892_v23  ;;  %v3338_v29 = vrot.slane %v3337_v46, 4 }
 0x1c7   : > { %v1395_v14 = vpop.f32.mrf.mxu2  ;;  %4967 = vmatmul.msk.bf16.gmra.mxu1 %vm676_vm3, %v2624_v4  ;;  %v6390_v44 = vadd.f32 %v2358_v27, %v1733_v55  ;;  %v2521_v55 = vsel %vm5674_vm6, %v4940_v61, %v2520_v24  ;;  %v3347_v9 = vor.u32 %v3346_v54, %v3342_v50  ;;  %v5125_v24 = vld [vmem:[%s5467_s29 + $0x78] sm:$0xf] }
 0x1c8   : > { %v1435_v2 = vadd.f32 %v1395_v14, %v1031_v57  ;;  %v3589_v13 = vpack.c.b16 %v3564_v31, %v3563_v3  ;;  %v2600_v30 = vunpack.c.l.b16 %v2521_v55  ;;  %v5184_v3 = vld [vmem:[%s5467_s29 + $0x6c] sm:$0xe]  ;;  %v6410_v31 = vld [vmem:[%s5467_s29 + $0x7c] sm:$0xf]  ;;  %v3355_v51 = vshrl.u32 %v5125_v24, 16 }
 0x1c9   : > { %v3348_v61 = vrot.slane %v3347_v9, 4  ;;  %v3358_v54 = vshll.u32 %v5125_v24, 16  ;;  %v4925_v55 = vld [vmem:[%s5467_s29 + $0x6c] sm:$0xe]  ;;  %v3343_v8 = vsel %vm5479_vm2, %v3338_v29, %v3342_v50  ;;  %v3898_v9 = vrot.slane %v6397_v56, 5 }
 0x1ca   : > { %v2625_v48 = vpack.c.b16 %v2601_v0, %v2600_v30  ;;  %v4941_v30 = vrot.slane %v4925_v55, 9  ;;  %v3357_v0 = vrot.slane %v3355_v51, 4  ;;  %v3565_v50 = vunpack.c.l.b16 %v3343_v8  ;;  %v6432_v56 = vld [vmem:[%s5467_s29 + $0x80] sm:$0x1] }
 0x1cb   : > { %v2360_v4 = vpop.f32.mrf.mxu0 }
 0x1cc   : > { %v1694_v57 = vpop.f32.mrf.mxu3  ;;  %5091 = vmatmul.msk.bf16.gmra.mxu2 %vm676_vm3, %v5321_v58  ;;  %v1035_v27 = vpop.f32.mrf.mxu1 }
 0x1cd   : > { %v1734_v37 = vadd.f32 %v1694_v57, %v1435_v2  ;;  %v3999_v2 = vpack.c.b16 %v3974_v12, %v3973_v59  ;;  %v5200_v59 = vrot.slane %v5184_v3, 9  ;;  %v3353_v12 = vsel %vm5479_vm2, %v3348_v61, %v3352_v21 }
 0x1ce   : > { %v3566_v29 = vunpack.c.l.b16 %v3353_v12 }
 0x1cf   : > { %v1398_v14 = vpop.f32.mrf.mxu2  ;;  %v6412_v40 = vadd.f32 %v2360_v4, %v1734_v37  ;;  %v3368_v4 = vshrl.u32 %v6410_v31, 16  ;;  %v1036_v37 = vadd.f32 %v1035_v27, %v5894_v10  ;;  %v5390_v10 = vld [vmem:[%s5467_s29 + $0x74] sm:$0x1] }
 0x1d0   : > { %v1436_v58 = vadd.f32 %v1398_v14, %v1034_v62  ;;  %v3364_v62 = vshll.u32 %v6410_v31, 16  ;;  %v3897_v14 = vrot.slane %v3895_v6, 4  ;;  %v2530_v27 = vrot.slane %v5390_v10, 5 }
 0x1d1   : > { %5167 = vmatmul.msk.bf16.gmra.mxu3 %vm676_vm3, %v3589_v13  ;;  %v2527_v13 = vrot.slane %v5389_v36, 5  ;;  %v3370_v21 = vrot.slane %v3368_v4, 4  ;;  %v3902_v10 = vrot.slane %v6410_v31, 5 }
 0x1d2   : > { %v3366_v61 = vrot.slane %v3364_v62, 5  ;;  %v3899_v51 = vsel %vm5674_vm6, %v3897_v14, %v3898_v9 }
 0x1d3   : > { %v2363_v1 = vpop.f32.mrf.mxu0  ;;  %v2529_v3 = vrot.slane %v2527_v13, 4  ;;  %v3976_v9 = vunpack.c.l.b16 %v3899_v51 }
 0x1d4   : > { %v1697_v23 = vpop.f32.mrf.mxu3  ;;  %v1038_v57 = vpop.f32.mrf.mxu1  ;;  %v3371_v8 = vor.u32 %v3370_v21, %v3366_v61 }
 0x1d5   : > { %v1735_v46 = vadd.f32 %v1697_v23, %v1436_v58  ;;  %v3360_v58 = vrot.slane %v3358_v54, 5 }
 0x1d6   : > { %5227 = vmatmul.msk.bf16.gmra.mxu0 %vm676_vm3, %v3999_v2  ;;  %v5322_v2 = vld [vmem:[%s5467_s29 + $0x6c] sm:$0xff] }
 0x1d7   : > { %v1400_v5 = vpop.f32.mrf.mxu2  ;;  %4968 = vmatmul.msk.bf16.gmra.mxu1 %vm676_vm3, %v2625_v48  ;;  %v6429_v23 = vadd.f32 %v2363_v1, %v1735_v46  ;;  %v3896_v48 = vsel %vm5674_vm6, %v5200_v59, %v3895_v6  ;;  %v2528_v1 = vsel %vm5674_vm6, %v4941_v30, %v2527_v13  ;;  %v2531_v46 = vsel %vm5674_vm6, %v2529_v3, %v2530_v27  ;;  %v5128_v27 = vld [vmem:[%s5467_s29 + $0x84] sm:$0xf] }
 0x1d8   : > { %v1437_v24 = vadd.f32 %v1400_v5, %v1036_v37  ;;  %v3361_v62 = vor.u32 %v3360_v58, %v3357_v0  ;;  %v3590_v37 = vpack.c.b16 %v3566_v29, %v3565_v50  ;;  %v3374_v6 = vshll.u32 %v6432_v56, 16  ;;  %v6452_v29 = vld [vmem:[%s5467_s29 + $0x88] sm:$0xf] }
 0x1d9   : > { %v1039_v59 = vadd.f32 %v1038_v57, %v5920_v63  ;;  %v3975_v12 = vunpack.c.l.b16 %v3896_v48  ;;  %v2602_v14 = vunpack.c.l.b16 %v2528_v1  ;;  %v3372_v0 = vrot.slane %v3371_v8, 4 }
 0x1da   : > { %v3362_v30 = vrot.slane %v3361_v62, 4  ;;  %v3376_v58 = vrot.slane %v3374_v6, 5  ;;  %v3905_v1 = vrot.slane %v6432_v56, 5  ;;  %v5391_v62 = vld [vmem:[%s5467_s29 + $0x7c] sm:$0xf]  ;;  %v3382_v8 = vshll.u32 %v5128_v27, 16 }
 0x1db   : > { %v2365_v36 = vpop.f32.mrf.mxu0  ;;  %v4000_v3 = vpack.c.b16 %v3976_v9, %v3975_v12  ;;  %v2534_v31 = vrot.slane %v5391_v62, 5  ;;  %v3392_v56 = vshrl.u32 %v6452_v29, 16 }
 0x1dc   : > { %v1699_v54 = vpop.f32.mrf.mxu3  ;;  %5092 = vmatmul.msk.bf16.gmra.mxu2 %vm676_vm3, %v5322_v2  ;;  %v1040_v55 = vpop.f32.mrf.mxu1  ;;  %v2603_v2 = vunpack.c.l.b16 %v2531_v46  ;;  %v3367_v51 = vsel %vm5479_vm2, %v3362_v30, %v3366_v61  ;;  %v4926_v46 = vld [vmem:[%s5467_s29 + $0x78] sm:$0xe]  ;;  %v3388_v61 = vshll.u32 %v6452_v29, 16  ;;  %v5392_v30 = vld [vmem:[%s5467_s29 + $0x80] sm:$0x1] }
 0x1dd   : > { %v1736_v4 = vadd.f32 %v1699_v54, %v1437_v24  ;;  %v5185_v24 = vld [vmem:[%s5467_s29 + $0x78] sm:$0xe]  ;;  %v1041_v6 = vadd.f32 %v1040_v55, %v5937_v38  ;;  %v3567_v9 = vunpack.c.l.b16 %v3367_v51 }
 0x1de   : > { %v2626_v50 = vpack.c.b16 %v2603_v2, %v2602_v14  ;;  %v5201_v54 = vrot.slane %v5185_v24, 9  ;;  %v5323_v2 = vld [vmem:[%s5467_s29 + $0x78] sm:$0xff] }
 0x1df   : > { %v1403_v5 = vpop.f32.mrf.mxu2  ;;  %v6449_v63 = vadd.f32 %v2365_v36, %v1736_v4  ;;  %v3377_v36 = vsel %vm5479_vm2, %v3372_v0, %v3376_v58  ;;  %v3379_v4 = vshrl.u32 %v5128_v27, 16  ;;  %v2537_v0 = vrot.slane %v5392_v30, 5  ;;  %v6489_v30 = vld [vmem:[%s5467_s29 + $0x94] sm:$0xf] }
 0x1e0   : > { %v1438_v13 = vadd.f32 %v1403_v5, %v1039_v59  ;;  %v3904_v59 = vrot.slane %v3902_v10, 4  ;;  %v4942_v5 = vrot.slane %v4926_v46, 9  ;;  %v3568_v24 = vunpack.c.l.b16 %v3377_v36  ;;  %v6477_v46 = vld [vmem:[%s5467_s29 + $0x8c] sm:$0x1] }
 0x1e1   : > { %5168 = vmatmul.msk.bf16.gmra.mxu3 %vm676_vm3, %v3590_v37  ;;  %7007 = vst [vmem:[#allocation5_spill] sm:$0xff] %v6449_v63  ;;  %v3903_v38 = vsel %vm5674_vm6, %v5201_v54, %v3902_v10  ;;  %v3381_v55 = vrot.slane %v3379_v4, 4 }
 0x1e2   : > { %v3906_v27 = vsel %vm5674_vm6, %v3904_v59, %v3905_v1  ;;  %v2535_v10 = vsel %vm5674_vm6, %v4942_v5, %v2534_v31  ;;  %v3591_v36 = vpack.c.b16 %v3568_v24, %v3567_v9  ;;  %v3398_v59 = vshll.u32 %v6477_v46, 16  ;;  %v5186_v24 = vld [vmem:[%s5467_s29 + $0x84] sm:$0xe] }
 0x1e3   : > { %v2368_v57 = vpop.f32.mrf.mxu0  ;;  %v3978_v4 = vunpack.c.l.b16 %v3906_v27 }
 0x1e4   : > { %v1702_v21 = vpop.f32.mrf.mxu3  ;;  %v6454_v48 = vpop.f32.mrf.mxu1 }
 0x1e5   : > { %v1737_v37 = vadd.f32 %v1702_v21, %v1438_v13  ;;  %v2536_v13 = vrot.slane %v2534_v31, 4  ;;  %v3394_v21 = vrot.slane %v3392_v56, 4 }
 0x1e6   : > { %5228 = vmatmul.msk.bf16.gmra.mxu0 %vm676_vm3, %v4000_v3  ;;  %v3384_v3 = vrot.slane %v3382_v8, 5 }
 0x1e7   : > { %v1405_v12 = vpop.f32.mrf.mxu2  ;;  %4969 = vmatmul.msk.bf16.gmra.mxu1 %vm676_vm3, %v2626_v50  ;;  %v6470_v58 = vadd.f32 %v2368_v57, %v1737_v37  ;;  %v3390_v50 = vrot.slane %v3388_v61, 5  ;;  %v3977_v57 = vunpack.c.l.b16 %v3903_v38  ;;  %v2538_v54 = vsel %vm5674_vm6, %v2536_v13, %v2537_v0  ;;  %v5131_v61 = vld [vmem:[%s5467_s29 + $0x90] sm:$0xf] }
 0x1e8   : > { %v1439_v14 = vadd.f32 %v1405_v12, %v1041_v6  ;;  %v3385_v8 = vor.u32 %v3384_v3, %v3381_v55  ;;  %v2604_v12 = vunpack.c.l.b16 %v2535_v10  ;;  %v3406_v9 = vshll.u32 %v5131_v61, 16 }
 0x1e9   : > { %v3395_v6 = vor.u32 %v3394_v21, %v3390_v50  ;;  %v4001_v31 = vpack.c.b16 %v3978_v4, %v3977_v57  ;;  %v3400_v0 = vrot.slane %v3398_v59, 5  ;;  %v3412_v38 = vshll.u32 %v6489_v30, 16 }
 0x1ea   : > { %v3386_v5 = vrot.slane %v3385_v8, 4  ;;  %v3416_v55 = vshrl.u32 %v6489_v30, 16  ;;  %v3909_v21 = vrot.slane %v6452_v29, 5  ;;  %v5202_v8 = vrot.slane %v5186_v24, 9 }
 0x1eb   : > { %v2370_v51 = vpop.f32.mrf.mxu0  ;;  %v3396_v13 = vrot.slane %v3395_v6, 4  ;;  %v3408_v59 = vrot.slane %v3406_v9, 5  ;;  %v3912_v24 = vrot.slane %v6477_v46, 5  ;;  %v5324_v9 = vld [vmem:[%s5467_s29 + $0x84] sm:$0xff] }
 0x1ec   : > { %v1704_v62 = vpop.f32.mrf.mxu3  ;;  %5093 = vmatmul.msk.bf16.gmra.mxu2 %vm676_vm3, %v5323_v2  ;;  %v6480_v37 = vpop.f32.mrf.mxu1  ;;  %v2605_v2 = vunpack.c.l.b16 %v2538_v54  ;;  %v4927_v54 = vld [vmem:[%s5467_s29 + $0x84] sm:$0xe] }
 0x1ed   : > { %v1738_v1 = vadd.f32 %v1704_v62, %v1439_v14  ;;  %v3403_v14 = vshrl.u32 %v5131_v61, 16  ;;  %v3391_v61 = vsel %vm5479_vm2, %v3386_v5, %v3390_v50  ;;  %v3401_v29 = vsel %vm5479_vm2, %v3396_v13, %v3400_v0  ;;  %v5394_v5 = vld [vmem:[%s5467_s29 + $0x8c] sm:$0x1]  ;;  %v6516_v0 = vld [vmem:[%s5467_s29 + $0x98] sm:$0x1] }
 0x1ee   : > { %v2627_v27 = vpack.c.b16 %v2605_v2, %v2604_v12  ;;  %v3911_v2 = vrot.slane %v3909_v21, 4  ;;  %v3570_v13 = vunpack.c.l.b16 %v3401_v29 }
 0x1ef   : > { %v3002_v56 = vpop.f32.mrf.mxu2  ;;  %v6498_v62 = vadd.f32 %v2370_v51, %v1738_v1  ;;  %v3405_v6 = vrot.slane %v3403_v14, 4  ;;  %v6507_v51 = vrot.slane %v3412_v38, 5  ;;  %v3418_v1 = vrot.slane %v3416_v55, 4 }
 0x1f0   : > { %v4943_v14 = vrot.slane %v4927_v54, 9 }
 0x1f1   : > { %5169 = vmatmul.msk.bf16.gmra.mxu3 %vm676_vm3, %v3591_v36  ;;  %7008 = vst [vmem:[#allocation6_spill] sm:$0xff] %v6498_v62  ;;  %v5393_v36 = vld [vmem:[%s5467_s29 + $0x88] sm:$0xf]  ;;  %v3569_v62 = vunpack.c.l.b16 %v3391_v61  ;;  %v3409_v38 = vor.u32 %v3408_v59, %v3405_v6  ;;  %v3419_v46 = vor.u32 %v3418_v1, %v6507_v51 }
 0x1f2   : > { %v2541_v4 = vrot.slane %v5393_v36, 5  ;;  %v2544_v36 = vrot.slane %v5394_v5, 5 }
 0x1f3   : > { %v6495_v3 = vpop.f32.mrf.mxu0  ;;  %v3410_v59 = vrot.slane %v3409_v38, 4 }
 0x1f4   : > { %v3668_v10 = vpop.f32.mrf.mxu3  ;;  %v2708_v57 = vpop.f32.mrf.mxu1  ;;  %v2543_v50 = vrot.slane %v2541_v4, 4 }
 0x1f6   : > { %5229 = vmatmul.msk.bf16.gmra.mxu0 %vm676_vm3, %v4001_v31  ;;  %v2783_v31 = vadd.f32 %v6454_v48, %v5954_v28  ;;  %v3913_v28 = vsel %vm5674_vm6, %v3911_v2, %v3912_v24  ;;  %v2542_v48 = vsel %vm5674_vm6, %v4943_v14, %v2541_v4  ;;  %v3420_v24 = vrot.slane %v3419_v46, 4 }
 0x1f7   : > { %v3004_v12 = vpop.f32.mrf.mxu2  ;;  %4970 = vmatmul.msk.bf16.gmra.mxu1 %vm676_vm3, %v2627_v27  ;;  %v3910_v27 = vsel %vm5674_vm6, %v5202_v8, %v3909_v21  ;;  %v3422_v21 = vshll.u32 %v6516_v0, 16  ;;  %v3592_v8 = vpack.c.b16 %v3570_v13, %v3569_v62  ;;  %v3980_v1 = vunpack.c.l.b16 %v3913_v28 }
 0x1f8   : > { %v3082_v55 = vadd.f32 %v3002_v56, %v2783_v31  ;;  %v2545_v56 = vsel %vm5674_vm6, %v2543_v50, %v2544_v36  ;;  %v3979_v6 = vunpack.c.l.b16 %v3910_v27  ;;  %v2606_v2 = vunpack.c.l.b16 %v2542_v48  ;;  %v5134_v50 = vld [vmem:[%s5467_s29 + $0x9c] sm:$0xf]  ;;  %v6557_v36 = vld [vmem:[%s6999_s2] ss:$0 sm:$0xff]  ;;  %v5395_v27 = vld [vmem:[%s5467_s29 + $0x94] sm:$0xf] }
 0x1f9   : > { %v2785_v31 = vadd.f32 %v2708_v57, %v5980_v18  ;;  %v2607_v62 = vunpack.c.l.b16 %v2545_v56  ;;  %v2784_v14 = vadd.f32 %v6480_v37, %v5967_v45  ;;  %v3424_v18 = vrot.slane %v3422_v21, 5  ;;  %v5187_v57 = vld [vmem:[%s5467_s29 + $0x90] sm:$0xe] }
 0x1fa   : > { %v3748_v29 = vadd.f32 %v3668_v10, %v3082_v55  ;;  %v5414_v10 = vmov 0   ;;  %v3415_v45 = vsel %vm5479_vm2, %v3410_v59, %v6507_v51  ;;  %v3916_v37 = vrot.slane %v6489_v30, 5  ;;  %v6563_v55 = vld [vmem:[%s5467_s29 + $0xa0] sm:$0xf]  ;;  %v4928_v21 = vld [vmem:[%s5467_s29 + $0x90] sm:$0xe] }
 0x1fb   : > { %v6521_v63 = vpop.f32.mrf.mxu0  ;;  %4331 = vst.msk [vmem:[%s6536_s5] sm:$0xf] %vm4330_vm7, %v5414_v10  ;;  %v3083_v13 = vadd.f32 %v3004_v12, %v2784_v14  ;;  %v4002_v38 = vpack.c.b16 %v3980_v1, %v3979_v6  ;;  %v2628_v30 = vpack.c.b16 %v2607_v62, %v2606_v2  ;;  %v2548_v46 = vrot.slane %v5395_v27, 5 }
 0x1fc   : > { %v3670_v54 = vpop.f32.mrf.mxu3  ;;  %5094 = vmatmul.msk.bf16.gmra.mxu2 %vm676_vm3, %v5324_v9  ;;  %v2710_v61 = vpop.f32.mrf.mxu1  ;;  %4333 = vst.msk [vmem:[%s6536_s5 + $0x4] sm:$0x1] %vm4332_vm8, %v5414_v10  ;;  %v4158_v5 = vadd.f32 %v6495_v3, %v3748_v29  ;;  %v5203_v3 = vrot.slane %v5187_v57, 9  ;;  %v3425_v48 = vsel %vm5479_vm2, %v3420_v24, %v3424_v18  ;;  %v6576_v56 = vunpack.c.l.b16 %v3415_v45 }
 0x1fd   : > { %4334 = vst.msk [vmem:[%s6536_s5 + $0x8] sm:$0xf] %vm4330_vm7, %v5414_v10  ;;  %v3430_v6 = vshll.u32 %v5134_v50, 16  ;;  %v3918_v29 = vrot.slane %v3916_v37, 4  ;;  %v3436_v1 = vshll.u32 %v6563_v55, 16  ;;  %v3440_v2 = vshrl.u32 %v6563_v55, 16 }
 0x1fe   : > { %4335 = vst.msk [vmem:[%s6536_s5 + $0xc] sm:$0x1] %vm4332_vm8, %v5414_v10  ;;  %v4194_v24 = vadd.f32 %v6557_v36, %v4158_v5  ;;  %v3919_v62 = vrot.slane %v6516_v0, 5  ;;  %v4944_v57 = vrot.slane %v4928_v21, 9  ;;  %v3917_v0 = vsel %vm5674_vm6, %v5203_v3, %v3916_v37  ;;  %v6615_v3 = vld [vmem:[%s5467_s29 + $0xa4] sm:$0x1] }
 0x1ff   : > { %v3007_v4 = vpop.f32.mrf.mxu2  ;;  %4350 = vst.msk [vmem:[%s6536_s5 + $0x48] sm:$0xf] %vm4330_vm7, %v5414_v10  ;;  %v3432_v5 = vrot.slane %v3430_v6, 5 }
 0x200   : > { %v3084_v9 = vadd.f32 %v3007_v4, %v2785_v31  ;;  %4351 = vst.msk [vmem:[%s6536_s5 + $0x4c] sm:$0x1] %vm4332_vm8, %v5414_v10  ;;  %v3749_v31 = vadd.f32 %v3670_v54, %v3083_v13  ;;  %v2786_v4 = vadd.f32 %v2710_v61, %v5993_v15  ;;  %v2550_v54 = vrot.slane %v2548_v46, 4  ;;  %v5325_v15 = vld [vmem:[%s5467_s29 + $0x90] sm:$0xff] }
 0x201   : > { %5170 = vmatmul.msk.bf16.gmra.mxu3 %vm676_vm3, %v3592_v8  ;;  %v3427_v8 = vshrl.u32 %v5134_v50, 16  ;;  %4336 = vst.msk [vmem:[%s6536_s5 + $0x10] sm:$0xf] %vm4330_vm7, %v5414_v10  ;;  %v3572_v61 = vunpack.c.l.b16 %v3425_v48  ;;  %v3920_v37 = vsel %vm5674_vm6, %v3918_v29, %v3919_v62  ;;  %v3981_v29 = vunpack.c.l.b16 %v3917_v0  ;;  %v5137_v62 = vld [vmem:[%s5467_s29 + $0xa8] sm:$0xf] }
 0x202   : > { %4337 = vst.msk [vmem:[%s6536_s5 + $0x14] sm:$0x1] %vm4332_vm8, %v5414_v10  ;;  %v4159_v27 = vadd.f32 %v6521_v63, %v3749_v31 }
 0x203   : > { %v4083_v51 = vpop.f32.mrf.mxu0  ;;  %4338 = vst.msk [vmem:[%s6536_s5 + $0x18] sm:$0xf] %vm4330_vm7, %v5414_v10  ;;  %v3429_v50 = vrot.slane %v3427_v8, 4  ;;  %v2549_v8 = vsel %vm5674_vm6, %v4944_v57, %v2548_v46 }
 0x204   : > { %v3673_v28 = vpop.f32.mrf.mxu3  ;;  %v6572_v12 = vpop.f32.mrf.mxu1  ;;  %4339 = vst.msk [vmem:[%s6536_s5 + $0x1c] sm:$0x1] %vm4332_vm8, %v5414_v10 }
 0x205   : > { %v3750_v59 = vadd.f32 %v3673_v28, %v3084_v9  ;;  %v5396_v9 = vld [vmem:[%s5467_s29 + $0x98] sm:$0x1]  ;;  %4340 = vst.msk [vmem:[%s6536_s5 + $0x20] sm:$0xf] %vm4330_vm7, %v5414_v10  ;;  %v4226_v28 = vmax.f32 %v4194_v24, 0.0 }
 0x206   : > { %5230 = vmatmul.msk.bf16.gmra.mxu0 %vm676_vm3, %v4002_v38  ;;  %v2551_v45 = vrot.slane %v5396_v9, 5  ;;  %4341 = vst.msk [vmem:[%s6536_s5 + $0x24] sm:$0x1] %vm4332_vm8, %v5414_v10 }
 0x207   : > { %v4160_v14 = vadd.f32 %v4083_v51, %v3750_v59  ;;  %v3009_v18 = vpop.f32.mrf.mxu2  ;;  %4971 = vmatmul.msk.bf16.gmra.mxu1 %vm676_vm3, %v2628_v30  ;;  %v6606_v51 = vrot.slane %v3436_v1, 5  ;;  %v3442_v30 = vrot.slane %v3440_v2, 4  ;;  %4342 = vst.msk [vmem:[%s6536_s5 + $0x28] sm:$0xf] %vm4330_vm7, %v5414_v10  ;;  %v3593_v59 = vpack.c.b16 %v3572_v61, %v6576_v56 }
 0x208   : > { %v3085_v38 = vadd.f32 %v3009_v18, %v2786_v4  ;;  %v2552_v63 = vsel %vm5674_vm6, %v2550_v54, %v2551_v45  ;;  %v3433_v2 = vor.u32 %v3432_v5, %v3429_v50  ;;  %4343 = vst.msk [vmem:[%s6536_s5 + $0x2c] sm:$0x1] %vm4332_vm8, %v5414_v10  ;;  %v3446_v4 = vshll.u32 %v6615_v3, 16  ;;  %v6646_v45 = vld [vmem:[%s5467_s29 + $0xac] sm:$0xf] }
 0x209   : > { %v4196_v13 = vadd.f32 %v6557_v36, %v4160_v14  ;;  %v3443_v31 = vor.u32 %v3442_v30, %v6606_v51  ;;  %v4195_v14 = vadd.f32 %v6557_v36, %v4159_v27  ;;  %4344 = vst.msk [vmem:[%s6536_s5 + $0x30] sm:$0xf] %vm4330_vm7, %v5414_v10  ;;  %v3982_v56 = vunpack.c.l.b16 %v3920_v37  ;;  %v5188_v37 = vld [vmem:[%s5467_s29 + $0x9c] sm:$0xe] }
 0x20a   : > { %v2608_v18 = vunpack.c.l.b16 %v2549_v8  ;;  %v2609_v57 = vunpack.c.l.b16 %v2552_v63  ;;  %4345 = vst.msk [vmem:[%s6536_s5 + $0x34] sm:$0x1] %vm4332_vm8, %v5414_v10  ;;  %v3454_v61 = vshll.u32 %v5137_v62, 16  ;;  %v3434_v50 = vrot.slane %v3433_v2, 4  ;;  %v5397_v8 = vld [vmem:[%s5467_s29 + $0xa0] sm:$0xf] }
 0x20b   : > { %v4228_v48 = vmax.f32 %v4196_v13, 0.0  ;;  %v4085_v21 = vpop.f32.mrf.mxu0  ;;  %4346 = vst.msk [vmem:[%s6536_s5 + $0x38] sm:$0xf] %vm4330_vm7, %v5414_v10  ;;  %v3444_v5 = vrot.slane %v3443_v31, 4  ;;  %v3448_v13 = vrot.slane %v3446_v4, 5  ;;  %v4003_v30 = vpack.c.b16 %v3982_v56, %v3981_v29 }
 0x20c   : > { %v3675_v6 = vpop.f32.mrf.mxu3  ;;  %5095 = vmatmul.msk.bf16.gmra.mxu2 %vm676_vm3, %v5325_v15  ;;  %v6629_v1 = vpop.f32.mrf.mxu1  ;;  %v3451_v15 = vshrl.u32 %v5137_v62, 16  ;;  %4347 = vst.msk [vmem:[%s6536_s5 + $0x3c] sm:$0x1] %vm4332_vm8, %v5414_v10  ;;  %v2629_v27 = vpack.c.b16 %v2609_v57, %v2608_v18  ;;  %v2555_v63 = vrot.slane %v5397_v8, 5  ;;  %v3439_v4 = vsel %vm5479_vm2, %v3434_v50, %v6606_v51  ;;  %v5139_v50 = vld [vmem:[%s5467_s29 + $0xb0] sm:$0x1] }
 0x20d   : > { %v4258_v46 = vmax.f32 %v4226_v28, %v4228_v48  ;;  %v3751_v24 = vadd.f32 %v3675_v6, %v3085_v38  ;;  %v4227_v38 = vmax.f32 %v4195_v14, 0.0  ;;  %v3923_v28 = vrot.slane %v6563_v55, 5  ;;  %4348 = vst.msk [vmem:[%s6536_s5 + $0x40] sm:$0xf] %vm4330_vm7, %v5414_v10 }
 0x20e   : > { %v3460_v6 = vshll.u32 %v6646_v45, 16  ;;  %4349 = vst.msk [vmem:[%s6536_s5 + $0x44] sm:$0x1] %vm4332_vm8, %v5414_v10  ;;  %v3453_v55 = vrot.slane %v3451_v15, 4  ;;  %v3449_v62 = vsel %vm5479_vm2, %v3444_v5, %v3448_v13  ;;  %v5204_v14 = vrot.slane %v5188_v37, 9 }
 0x20f   : > { %4275 = vst.msk [vmem:[#allocation2] sm:$0xff] %vm4274_vm9, %v4258_v46  ;;  %v4161_v54 = vadd.f32 %v4085_v21, %v3751_v24  ;;  %v3012_v9 = vpop.f32.mrf.mxu2  ;;  %v4929_v46 = vld [vmem:[%s5467_s29 + $0x9c] sm:$0xe]  ;;  %v3456_v24 = vrot.slane %v3454_v61, 5  ;;  %v3925_v10 = vrot.slane %v3923_v28, 4  ;;  %v3926_v56 = vrot.slane %v6615_v3, 5 }
 0x210   : > { %v4945_v57 = vrot.slane %v4929_v46, 9  ;;  %v5398_v15 = vld [vmem:[%s5467_s29 + $0xa4] sm:$0x1]  ;;  %v2787_v51 = vadd.f32 %v6572_v12, %v6006_v60  ;;  %v3462_v5 = vrot.slane %v3460_v6, 5  ;;  %v3574_v3 = vunpack.c.l.b16 %v3449_v62 }
 0x211   : > { %v4197_v0 = vadd.f32 %v6557_v36, %v4161_v54  ;;  %5171 = vmatmul.msk.bf16.gmra.mxu3 %vm676_vm3, %v3593_v59  ;;  %v3464_v59 = vshrl.u32 %v6646_v45, 16  ;;  %v2557_v54 = vrot.slane %v2555_v63, 4  ;;  %v2558_v61 = vrot.slane %v5398_v15, 5 }
 0x212   : > { %v3086_v37 = vadd.f32 %v3012_v9, %v2787_v51  ;;  %v2556_v60 = vsel %vm5674_vm6, %v4945_v57, %v2555_v63  ;;  %v3470_v6 = vshll.u32 %v5139_v50, 16  ;;  %v2788_v63 = vadd.f32 %v6629_v1, %v6019_v35  ;;  %v5140_v1 = vld [vmem:[%s5467_s29 + $0xb4] sm:$0xf] }
 0x213   : > { %v4229_v48 = vmax.f32 %v4197_v0, 0.0  ;;  %v6661_v21 = vpop.f32.mrf.mxu0  ;;  %v5326_v0 = vld [vmem:[%s5467_s29 + $0x9c] sm:$0xff]  ;;  %v3466_v13 = vrot.slane %v3464_v59, 4  ;;  %v2559_v12 = vsel %vm5674_vm6, %v2557_v54, %v2558_v61  ;;  %v2610_v57 = vunpack.c.l.b16 %v2556_v60 }
 0x214   : > { %v3678_v29 = vpop.f32.mrf.mxu3  ;;  %v2718_v2 = vpop.f32.mrf.mxu1  ;;  %v2611_v54 = vunpack.c.l.b16 %v2559_v12  ;;  %v6712_v12 = vld [vmem:[%s5467_s29 + $0xb8] sm:$0xf] }
 0x215   : > { %v4259_v31 = vmax.f32 %v4227_v38, %v4229_v48  ;;  %v3457_v38 = vor.u32 %v3456_v24, %v3453_v55  ;;  %v3924_v48 = vsel %vm5674_vm6, %v5204_v14, %v3923_v28  ;;  %v3467_v55 = vor.u32 %v3466_v13, %v3462_v5  ;;  %v5189_v24 = vld [vmem:[%s5467_s29 + $0xa8] sm:$0xe] }
 0x216   : > { %5231 = vmatmul.msk.bf16.gmra.mxu0 %vm676_vm3, %v4003_v30  ;;  %v3573_v30 = vunpack.c.l.b16 %v3439_v4  ;;  %v3930_v28 = vrot.slane %v6646_v45, 5  ;;  %v3983_v4 = vunpack.c.l.b16 %v3924_v48  ;;  %v2789_v61 = vadd.f32 %v2718_v2, %v6031_v39 }
 0x217   : > { %4276 = vst.msk [vmem:[#allocation2 + $0x8] sm:$0xff] %vm4274_vm9, %v4259_v31  ;;  %v3014_v18 = vpop.f32.mrf.mxu2  ;;  %4972 = vmatmul.msk.bf16.gmra.mxu1 %vm676_vm3, %v2629_v27  ;;  %v3927_v27 = vsel %vm5674_vm6, %v3925_v10, %v3926_v56  ;;  %v3458_v9 = vrot.slane %v3457_v38, 4  ;;  %v3752_v56 = vadd.f32 %v3678_v29, %v3086_v37  ;;  %v5205_v38 = vrot.slane %v5189_v24, 9 }
 0x218   : > { %v3594_v31 = vpack.c.b16 %v3574_v3, %v3573_v30  ;;  %v3984_v62 = vunpack.c.l.b16 %v3927_v27  ;;  %v3468_v13 = vrot.slane %v3467_v55, 4  ;;  %v3932_v30 = vrot.slane %v3930_v28, 4  ;;  %v5399_v55 = vld [vmem:[%s5467_s29 + $0xac] sm:$0xf] }
 0x219   : > { %v3463_v45 = vsel %vm5479_vm2, %v3458_v9, %v3462_v5  ;;  %v3933_v3 = vrot.slane %v5139_v50, 5  ;;  %v4162_v39 = vadd.f32 %v6661_v21, %v3752_v56  ;;  %v3087_v2 = vadd.f32 %v3014_v18, %v2788_v63  ;;  %v5237_v63 = vld [vmem:[%s6536_s5 + $0x8] sm:$0xf] }
 0x21a   : > { %v4004_v37 = vpack.c.b16 %v3984_v62, %v3983_v4  ;;  %v2630_v5 = vpack.c.b16 %v2611_v54, %v2610_v57  ;;  %v6705_v60 = vunpack.c.l.b16 %v3463_v45  ;;  %v6709_v50 = vsel %vm5674_vm6, %v5205_v38, %v3930_v28  ;;  %v5239_v54 = vld [vmem:[%s6536_s5 + $0xc] sm:$0x1] }
 0x21b   : > { %v6688_v8 = vpop.f32.mrf.mxu0  ;;  %v6720_v18 = vsel %vm5674_vm6, %v3932_v30, %v3933_v3  ;;  %v2562_v24 = vrot.slane %v5399_v55, 5  ;;  %v3478_v56 = vshll.u32 %v5140_v1, 16 }
 0x21c   : > { %v3680_v46 = vpop.f32.mrf.mxu3  ;;  %5096 = vmatmul.msk.bf16.gmra.mxu2 %vm676_vm3, %v5326_v0  ;;  %v2720_v59 = vpop.f32.mrf.mxu1  ;;  %v3472_v0 = vrot.slane %v3470_v6, 5 }
 0x21d   : > { %v2790_v30 = vadd.f32 %v2720_v59, %v6044_v33 }
 0x21e   : > { %v4291_v14 = vld [vmem:[#allocation2] ss:$2 sm:$0xff]  ;;  %v4307_v10 = vld [vmem:[#allocation2 + $0x1] ss:$2 sm:$0xff]  ;;  %v3473_v21 = vsel %vm5479_vm2, %v3468_v13, %v3472_v0  ;;  %v3488_v0 = vshrl.u32 %v6712_v12, 16 }
 0x21f   : > { %v4322_v15 = vmax.f32 %v4291_v14, %v4307_v10  ;;  %v3017_v51 = vpop.f32.mrf.mxu2  ;;  %v4930_v10 = vld [vmem:[%s5467_s29 + $0xa8] sm:$0xe] }
 0x220   : > { %v3088_v35 = vadd.f32 %v3017_v51, %v2789_v61  ;;  %v3753_v61 = vadd.f32 %v3680_v46, %v3087_v2  ;;  %v3484_v51 = vshll.u32 %v6712_v12, 16  ;;  %v2564_v46 = vrot.slane %v2562_v24, 4 }
 0x221   : > { %v4352_v29 = vpack.c.bf16 %v4322_v15, %v4322_v15  ;;  %5172 = vmatmul.msk.bf16.gmra.mxu3 %vm676_vm3, %v3594_v31  ;;  %v3475_v31 = vshrl.u32 %v5140_v1, 16  ;;  %v4198_v15 = vadd.f32 %v6557_v36, %v4162_v39  ;;  %v4946_v1 = vrot.slane %v4930_v10, 9  ;;  %v5400_v39 = vld [vmem:[%s5467_s29 + $0xb0] sm:$0x1]  ;;  %v6757_v10 = vld [vmem:[%s5467_s29 + $0xbc] sm:$0x1] }
 0x222   : > { %v2565_v2 = vrot.slane %v5400_v39, 5 }
 0x223   : > { %v4361_v48 = vshrl.u32 %v4352_v29, 16  ;;  %v4093_v27 = vpop.f32.mrf.mxu0  ;;  %v4364_v62 = vshll.u32 %v4352_v29, 16  ;;  %v5327_v29 = vld [vmem:[%s5467_s29 + $0xa8] sm:$0xff]  ;;  %v3477_v59 = vrot.slane %v3475_v31, 4  ;;  %v4230_v55 = vmax.f32 %v4198_v15, 0.0 }
 0x224   : > { %v3683_v6 = vpop.f32.mrf.mxu3  ;;  %v6714_v9 = vpop.f32.mrf.mxu1  ;;  %v2563_v31 = vsel %vm5674_vm6, %v4946_v1, %v2562_v24 }
 0x225   : > { %v4363_v4 = vrot.slane %v4361_v48, 7  ;;  %v3754_v14 = vadd.f32 %v3683_v6, %v3088_v35  ;;  %v3576_v35 = vunpack.c.l.b16 %v3473_v21  ;;  %v6752_v6 = vrot.slane %v3484_v51, 5 }
 0x226   : > { %5232 = vmatmul.msk.bf16.gmra.mxu0 %vm676_vm3, %v4004_v37  ;;  %v3490_v21 = vrot.slane %v3488_v0, 4  ;;  %v3986_v51 = vunpack.c.l.b16 %v6720_v18  ;;  %v5143_v0 = vld [vmem:[%s5467_s29 + $0xc0] sm:$0xf] }
 0x227   : > { %v4366_v38 = vor.u32 %v4364_v62, %v4363_v4  ;;  %v4367_v45 = vrot.slane %v4363_v4, 4  ;;  %v4164_v13 = vadd.f32 %v4093_v27, %v3754_v14  ;;  %v3019_v3 = vpop.f32.mrf.mxu2  ;;  %4973 = vmatmul.msk.bf16.gmra.mxu1 %vm676_vm3, %v2630_v5  ;;  %v3480_v5 = vrot.slane %v3478_v56, 5 }
 0x228   : > { %v3089_v33 = vadd.f32 %v3019_v3, %v2790_v30  ;;  %v4163_v4 = vadd.f32 %v6688_v8, %v3753_v61  ;;  %v2566_v56 = vsel %vm5674_vm6, %v2564_v46, %v2565_v2  ;;  %v3595_v61 = vpack.c.b16 %v3576_v35, %v6705_v60  ;;  %v6775_v46 = vld [vmem:[%s5467_s29 + $0xc4] sm:$0xf] }
 0x229   : > { %v4445_v37 = vsel %vm6725_vm12, %v4366_v38, %v5237_v63  ;;  %v4451_v48 = vsel %vm6733_vm13, %v4367_v45, %v5239_v54  ;;  %v4200_v27 = vadd.f32 %v6557_v36, %v4164_v13  ;;  %v3985_v54 = vunpack.c.l.b16 %v6709_v50 }
 0x22a   : > { %5238 = vst [vmem:[%s6536_s5 + $0x8] sm:$0xf] %v4445_v37  ;;  %v3481_v45 = vor.u32 %v3480_v5, %v3477_v59  ;;  %v3491_v13 = vor.u32 %v3490_v21, %v6752_v6  ;;  %v3494_v50 = vshll.u32 %v6757_v10, 16  ;;  %v4199_v30 = vadd.f32 %v6557_v36, %v4163_v4 }
 0x22b   : > { %5240 = vst [vmem:[%s6536_s5 + $0xc] sm:$0x1] %v4451_v48  ;;  %v4232_v62 = vmax.f32 %v4200_v27, 0.0  ;;  %v4095_v14 = vpop.f32.mrf.mxu0  ;;  %v2613_v1 = vunpack.c.l.b16 %v2566_v56  ;;  %v3499_v60 = vshrl.u32 %v5143_v0, 16  ;;  %v3502_v35 = vshll.u32 %v5143_v0, 16 }
 0x22c   : > { %v3685_v63 = vpop.f32.mrf.mxu3  ;;  %5097 = vmatmul.msk.bf16.gmra.mxu2 %vm676_vm3, %v5327_v29  ;;  %v6761_v38 = vpop.f32.mrf.mxu1  ;;  %v2612_v29 = vunpack.c.l.b16 %v2563_v31  ;;  %v4005_v39 = vpack.c.b16 %v3986_v51, %v3985_v54  ;;  %v3482_v2 = vrot.slane %v3481_v45, 4  ;;  %v3492_v37 = vrot.slane %v3491_v13, 4  ;;  %v5401_v31 = vld [vmem:[%s5467_s29 + $0xb8] sm:$0xf] }
 0x22d   : > { %v4260_v15 = vmax.f32 %v4230_v55, %v4232_v62  ;;  %v3755_v8 = vadd.f32 %v3685_v63, %v3089_v33  ;;  %v3496_v48 = vrot.slane %v3494_v50, 5  ;;  %v3937_v27 = vrot.slane %v6712_v12, 5  ;;  %v5190_v55 = vld [vmem:[%s5467_s29 + $0xb4] sm:$0xe] }
 0x22e   : > { %v4231_v33 = vmax.f32 %v4199_v30, 0.0  ;;  %v2631_v21 = vpack.c.b16 %v2613_v1, %v2612_v29  ;;  %v3508_v4 = vshll.u32 %v6775_v46, 16  ;;  %v4931_v63 = vld [vmem:[%s5467_s29 + $0xb4] sm:$0xe]  ;;  %v2569_v56 = vrot.slane %v5401_v31, 5 }
 0x22f   : > { %4277 = vst.msk [vmem:[#allocation2 + $0x10] sm:$0xff] %vm4274_vm9, %v4260_v15  ;;  %v4165_v24 = vadd.f32 %v4095_v14, %v3755_v8  ;;  %v3022_v3 = vpop.f32.mrf.mxu2  ;;  %v3501_v15 = vrot.slane %v3499_v60, 4  ;;  %v3504_v54 = vrot.slane %v3502_v35, 5  ;;  %v3512_v8 = vshrl.u32 %v6775_v46, 16  ;;  %v5328_v1 = vld [vmem:[%s5467_s29 + $0xb4] sm:$0xff] }
 0x230   : > { %v3497_v51 = vsel %vm5479_vm2, %v3492_v37, %v3496_v48  ;;  %v5206_v0 = vrot.slane %v5190_v55, 9  ;;  %v3940_v45 = vrot.slane %v6757_v10, 5  ;;  %v2791_v13 = vadd.f32 %v6714_v9, %v6058_v22  ;;  %v5402_v60 = vld [vmem:[%s5467_s29 + $0xbc] sm:$0x1] }
 0x231   : > { %v4201_v18 = vadd.f32 %v6557_v36, %v4165_v24  ;;  %5173 = vmatmul.msk.bf16.gmra.mxu3 %vm676_vm3, %v3595_v61  ;;  %v3487_v61 = vsel %vm5479_vm2, %v3482_v2, %v6752_v6  ;;  %v3939_v30 = vrot.slane %v3937_v27, 4  ;;  %v4947_v24 = vrot.slane %v4931_v63, 9 }
 0x232   : > { %v3510_v29 = vrot.slane %v3508_v4, 5  ;;  %v2571_v6 = vrot.slane %v2569_v56, 4  ;;  %v2572_v35 = vrot.slane %v5402_v60, 5  ;;  %v3514_v10 = vrot.slane %v3512_v8, 4 }
 0x233   : > { %v4233_v59 = vmax.f32 %v4201_v18, 0.0  ;;  %v6780_v5 = vpop.f32.mrf.mxu0  ;;  %v6801_v18 = vld [vmem:[%s5467_s29 + $0xc8] sm:$0x1]  ;;  %v3577_v2 = vunpack.c.l.b16 %v3487_v61  ;;  %v3578_v37 = vunpack.c.l.b16 %v3497_v51  ;;  %v3090_v48 = vadd.f32 %v3022_v3, %v2791_v13 }
 0x234   : > { %v3688_v62 = vpop.f32.mrf.mxu3  ;;  %v2728_v14 = vpop.f32.mrf.mxu1  ;;  %v3938_v22 = vsel %vm5674_vm6, %v5206_v0, %v3937_v27  ;;  %v2570_v63 = vsel %vm5674_vm6, %v4947_v24, %v2569_v56  ;;  %v2573_v3 = vsel %vm5674_vm6, %v2571_v6, %v2572_v35  ;;  %v3515_v27 = vor.u32 %v3514_v10, %v3510_v29 }
 0x235   : > { %v4261_v12 = vmax.f32 %v4231_v33, %v4233_v59  ;;  %v3941_v33 = vsel %vm5674_vm6, %v3939_v30, %v3940_v45  ;;  %v3518_v59 = vshll.u32 %v6801_v18, 16  ;;  %v3756_v61 = vadd.f32 %v3688_v62, %v3090_v48 }
 0x236   : > { %5233 = vmatmul.msk.bf16.gmra.mxu0 %vm676_vm3, %v4005_v39  ;;  %v3505_v39 = vor.u32 %v3504_v54, %v3501_v15  ;;  %v3596_v15 = vpack.c.b16 %v3578_v37, %v3577_v2  ;;  %v3987_v54 = vunpack.c.l.b16 %v3938_v22  ;;  %v2792_v51 = vadd.f32 %v6761_v38, %v6071_v49  ;;  %v5146_v38 = vld [vmem:[%s5467_s29 + $0xcc] sm:$0xf] }
 0x237   : > { %4278 = vst.msk [vmem:[#allocation2 + $0x18] sm:$0xff] %vm4274_vm9, %v4261_v12  ;;  %v3024_v50 = vpop.f32.mrf.mxu2  ;;  %4974 = vmatmul.msk.bf16.gmra.mxu1 %vm676_vm3, %v2631_v21  ;;  %v5191_v21 = vld [vmem:[%s5467_s29 + $0xc0] sm:$0xe]  ;;  %v3988_v0 = vunpack.c.l.b16 %v3941_v33  ;;  %v2793_v30 = vadd.f32 %v2728_v14, %v6087_v17  ;;  %v2614_v24 = vunpack.c.l.b16 %v2570_v63  ;;  %v3516_v60 = vrot.slane %v3515_v27, 4  ;;  %v6833_v33 = vld [vmem:[%s5467_s29 + $0xd0] sm:$0xf] }
 0x238   : > { %v3506_v31 = vrot.slane %v3505_v39, 4  ;;  %v5207_v45 = vrot.slane %v5191_v21, 9  ;;  %v3520_v35 = vrot.slane %v3518_v59, 5  ;;  %v3944_v62 = vrot.slane %v6775_v46, 5  ;;  %v5403_v21 = vld [vmem:[%s5467_s29 + $0xc4] sm:$0xf] }
 0x239   : > { %v4166_v10 = vadd.f32 %v6780_v5, %v3756_v61  ;;  %v3091_v17 = vadd.f32 %v3024_v50, %v2792_v51  ;;  %v4006_v14 = vpack.c.b16 %v3988_v0, %v3987_v54  ;;  %v3947_v2 = vrot.slane %v6801_v18, 5  ;;  %v4932_v54 = vld [vmem:[%s5467_s29 + $0xc0] sm:$0xe]  ;;  %v5243_v61 = vld [vmem:[%s6536_s5 + $0x14] sm:$0x1] }
 0x23a   : > { %v3511_v6 = vsel %vm5479_vm2, %v3506_v31, %v3510_v29  ;;  %v6830_v46 = vsel %vm5674_vm6, %v5207_v45, %v3944_v62  ;;  %v3521_v50 = vsel %vm5479_vm2, %v3516_v60, %v3520_v35  ;;  %v3946_v18 = vrot.slane %v3944_v62, 4  ;;  %v5329_v60 = vld [vmem:[%s5467_s29 + $0xc0] sm:$0xff] }
 0x23b   : > { %v6805_v9 = vpop.f32.mrf.mxu0  ;;  %v6826_v22 = vunpack.c.l.b16 %v3511_v6  ;;  %v2576_v63 = vrot.slane %v5403_v21, 5  ;;  %v4202_v51 = vadd.f32 %v6557_v36, %v4166_v10  ;;  %v3532_v45 = vshll.u32 %v6833_v33, 16 }
 0x23c   : > { %v3690_v55 = vpop.f32.mrf.mxu3  ;;  %5098 = vmatmul.msk.bf16.gmra.mxu2 %vm676_vm3, %v5328_v1  ;;  %v2730_v4 = vpop.f32.mrf.mxu1  ;;  %v2615_v1 = vunpack.c.l.b16 %v2573_v3  ;;  %v3523_v3 = vshrl.u32 %v5146_v38, 16  ;;  %v3580_v35 = vunpack.c.l.b16 %v3521_v50  ;;  %v4948_v62 = vrot.slane %v4932_v54, 9 }
 0x23d   : > { %v3757_v0 = vadd.f32 %v3690_v55, %v3091_v17  ;;  %v2578_v55 = vrot.slane %v2576_v63, 4 }
 0x23e   : > { %v4293_v8 = vld [vmem:[#allocation2 + $0x10] ss:$2 sm:$0xff]  ;;  %v4309_v12 = vld [vmem:[#allocation2 + $0x11] ss:$2 sm:$0xff]  ;;  %v2632_v48 = vpack.c.b16 %v2615_v1, %v2614_v24  ;;  %v2794_v1 = vadd.f32 %v2730_v4, %v6112_v16  ;;  %v3525_v4 = vrot.slane %v3523_v3, 4  ;;  %v2577_v3 = vsel %vm5674_vm6, %v4948_v62, %v2576_v63 }
 0x23f   : > { %v4323_v13 = vmax.f32 %v4293_v8, %v4309_v12  ;;  %v3027_v56 = vpop.f32.mrf.mxu2  ;;  %v3526_v8 = vshll.u32 %v5146_v38, 16  ;;  %v5241_v12 = vld [vmem:[%s6536_s5 + $0x10] sm:$0xf]  ;;  %v2616_v63 = vunpack.c.l.b16 %v2577_v3 }
 0x240   : > { %v3092_v49 = vadd.f32 %v3027_v56, %v2793_v30 }
 0x241   : > { %v4353_v39 = vpack.c.bf16 %v4323_v13, %v4323_v13  ;;  %5174 = vmatmul.msk.bf16.gmra.mxu3 %vm676_vm3, %v3596_v15  ;;  %v3536_v13 = vshrl.u32 %v6833_v33, 16 }
 0x243   : > { %v4369_v37 = vshrl.u32 %v4353_v39, 16  ;;  %v4103_v29 = vpop.f32.mrf.mxu0  ;;  %v4372_v27 = vshll.u32 %v4353_v39, 16  ;;  %v5404_v39 = vld [vmem:[%s5467_s29 + $0xc8] sm:$0x1] }
 0x244   : > { %v3693_v59 = vpop.f32.mrf.mxu3  ;;  %v6835_v5 = vpop.f32.mrf.mxu1 }
 0x245   : > { %v4371_v31 = vrot.slane %v4369_v37, 7  ;;  %v3758_v15 = vadd.f32 %v3693_v59, %v3092_v49  ;;  %v2579_v49 = vrot.slane %v5404_v39, 5  ;;  %v3534_v37 = vrot.slane %v3532_v45, 5 }
 0x246   : > { %5234 = vmatmul.msk.bf16.gmra.mxu0 %vm676_vm3, %v4006_v14  ;;  %v3528_v14 = vrot.slane %v3526_v8, 5  ;;  %v4167_v59 = vadd.f32 %v6805_v9, %v3757_v0  ;;  %v3597_v9 = vpack.c.b16 %v3580_v35, %v6826_v22 }
 0x247   : > { %v4374_v30 = vor.u32 %v4372_v27, %v4371_v31  ;;  %v4375_v56 = vrot.slane %v4371_v31, 4  ;;  %v4168_v24 = vadd.f32 %v4103_v29, %v3758_v15  ;;  %v3029_v6 = vpop.f32.mrf.mxu2  ;;  %4975 = vmatmul.msk.bf16.gmra.mxu1 %vm676_vm3, %v2632_v48  ;;  %v3538_v29 = vrot.slane %v3536_v13, 4  ;;  %v5148_v27 = vld [vmem:[%s5467_s29 + $0xd4] sm:$0x1] }
 0x248   : > { %v3093_v16 = vadd.f32 %v3029_v6, %v2794_v1  ;;  %v4234_v48 = vmax.f32 %v4202_v51, 0.0  ;;  %v3948_v31 = vsel %vm5674_vm6, %v3946_v18, %v3947_v2  ;;  %v2580_v8 = vsel %vm5674_vm6, %v2578_v55, %v2579_v49 }
 0x249   : > { %v4454_v38 = vsel %vm6725_vm12, %v4374_v30, %v5241_v12  ;;  %v4457_v10 = vsel %vm6733_vm13, %v4375_v56, %v5243_v61  ;;  %v4204_v17 = vadd.f32 %v6557_v36, %v4168_v24  ;;  %v3989_v51 = vunpack.c.l.b16 %v6830_v46 }
 0x24a   : > { %5242 = vst [vmem:[%s6536_s5 + $0x10] sm:$0xf] %v4454_v38  ;;  %v3990_v0 = vunpack.c.l.b16 %v3948_v31  ;;  %v3529_v45 = vor.u32 %v3528_v14, %v3525_v4  ;;  %v3539_v2 = vor.u32 %v3538_v29, %v3534_v37  ;;  %v3542_v18 = vshll.u32 %v5148_v27, 16  ;;  %v5330_v31 = vld [vmem:[%s5467_s29 + $0xcc] sm:$0xff] }
 0x24b   : > { %5244 = vst [vmem:[%s6536_s5 + $0x14] sm:$0x1] %v4457_v10  ;;  %v4236_v50 = vmax.f32 %v4204_v17, 0.0  ;;  %v4105_v21 = vpop.f32.mrf.mxu0  ;;  %v4203_v13 = vadd.f32 %v6557_v36, %v4167_v59  ;;  %v2617_v24 = vunpack.c.l.b16 %v2580_v8  ;;  %v3951_v49 = vrot.slane %v6833_v33, 5  ;;  %v5192_v17 = vld [vmem:[%s5467_s29 + $0xcc] sm:$0xe] }
 0x24c   : > { %v3695_v15 = vpop.f32.mrf.mxu3  ;;  %5099 = vmatmul.msk.bf16.gmra.mxu2 %vm676_vm3, %v5329_v60  ;;  %v2735_v54 = vpop.f32.mrf.mxu1  ;;  %v4007_v22 = vpack.c.b16 %v3990_v0, %v3989_v51  ;;  %v3530_v6 = vrot.slane %v3529_v45, 4  ;;  %v3540_v46 = vrot.slane %v3539_v2, 4  ;;  %v3544_v60 = vrot.slane %v3542_v18, 5 }
 0x24d   : > { %v4262_v12 = vmax.f32 %v4234_v48, %v4236_v50  ;;  %v3759_v61 = vadd.f32 %v3695_v15, %v3093_v16  ;;  %v4235_v35 = vmax.f32 %v4203_v13, 0.0  ;;  %v2633_v39 = vpack.c.b16 %v2617_v24, %v2616_v63  ;;  %v7013_v50 = vld [vmem:[#allocation3_spill] sm:$0xff] }
 0x24e   : > { %v3535_v4 = vsel %vm5479_vm2, %v3530_v6, %v3534_v37  ;;  %v3545_v14 = vsel %vm5479_vm2, %v3540_v46, %v3544_v60  ;;  %v5208_v48 = vrot.slane %v5192_v17, 9  ;;  %v3953_v59 = vrot.slane %v3951_v49, 4 }
 0x24f   : > { %4279 = vst.msk [vmem:[#allocation2 + $0x20] sm:$0xff] %vm4274_vm9, %v4262_v12  ;;  %v4169_v30 = vadd.f32 %v4105_v21, %v3759_v61  ;;  %v3032_v56 = vpop.f32.mrf.mxu2  ;;  %v3954_v33 = vrot.slane %v5148_v27, 5  ;;  %v2795_v21 = vadd.f32 %v6835_v5, %v7013_v50  ;;  %v3581_v15 = vunpack.c.l.b16 %v3535_v4 }
 0x250   : > { %v3582_v3 = vunpack.c.l.b16 %v3545_v14  ;;  %v3952_v32 = vsel %vm5674_vm6, %v5208_v48, %v3951_v49 }
 0x251   : > { %v4205_v1 = vadd.f32 %v6557_v36, %v4169_v30  ;;  %5175 = vmatmul.msk.bf16.gmra.mxu3 %vm676_vm3, %v3597_v9  ;;  %v3094_v8 = vadd.f32 %v3032_v56, %v2795_v21  ;;  %v3955_v37 = vsel %vm5674_vm6, %v3953_v59, %v3954_v33  ;;  %v3991_v5 = vunpack.c.l.b16 %v3952_v32  ;;  %v7014_v56 = vld [vmem:[#allocation4_spill] sm:$0xff] }
 0x252   : > { %v3598_v51 = vpack.c.b16 %v3582_v3, %v3581_v15  ;;  %v3992_v2 = vunpack.c.l.b16 %v3955_v37  ;;  %v2796_v63 = vadd.f32 %v2735_v54, %v7014_v56 }
 0x253   : > { %v4237_v62 = vmax.f32 %v4205_v1, 0.0  ;;  %v4108_v55 = vpop.f32.mrf.mxu0 }
 0x254   : > { %v3698_v38 = vpop.f32.mrf.mxu3  ;;  %v2738_v10 = vpop.f32.mrf.mxu1  ;;  %v4008_v6 = vpack.c.b16 %v3992_v2, %v3991_v5 }
 0x255   : > { %v4263_v16 = vmax.f32 %v4235_v35, %v4237_v62  ;;  %v3760_v45 = vadd.f32 %v3698_v38, %v3094_v8  ;;  %v2797_v13 = vadd.f32 %v2738_v10, %v6156_v7  ;;  %v5245_v38 = vld [vmem:[%s6536_s5 + $0x18] sm:$0xf]  ;;  %v5247_v10 = vld [vmem:[%s6536_s5 + $0x1c] sm:$0x1] }
 0x256   : > { %5235 = vmatmul.msk.bf16.gmra.mxu0 %vm676_vm3, %v4007_v22 }
 0x257   : > { %4280 = vst.msk [vmem:[#allocation2 + $0x28] sm:$0xff] %vm4274_vm9, %v4263_v16  ;;  %v3034_v29 = vpop.f32.mrf.mxu2  ;;  %4976 = vmatmul.msk.bf16.gmra.mxu1 %vm676_vm3, %v2633_v39  ;;  %v4170_v1 = vadd.f32 %v4108_v55, %v3760_v45 }
 0x258   : > { %v3095_v22 = vadd.f32 %v3034_v29, %v2796_v63 }
 0x259   : > { %v4206_v54 = vadd.f32 %v6557_v36, %v4170_v1 }
 0x25b   : > { %v4110_v12 = vpop.f32.mrf.mxu0  ;;  %v4238_v21 = vmax.f32 %v4206_v54, 0.0 }
 0x25c   : > { %v3700_v61 = vpop.f32.mrf.mxu3  ;;  %5100 = vmatmul.msk.bf16.gmra.mxu2 %vm676_vm3, %v5330_v31  ;;  %v2740_v9 = vpop.f32.mrf.mxu1 }
 0x25d   : > { %v3761_v17 = vadd.f32 %v3700_v61, %v3095_v22  ;;  %v2798_v14 = vadd.f32 %v2740_v9, %v6175_v34 }
 0x25e   : > { %v4295_v27 = vld [vmem:[#allocation2 + $0x20] ss:$2 sm:$0xff]  ;;  %v4311_v0 = vld [vmem:[#allocation2 + $0x21] ss:$2 sm:$0xff] }
 0x25f   : > { %v4324_v18 = vmax.f32 %v4295_v27, %v4311_v0  ;;  %v3037_v30 = vpop.f32.mrf.mxu2  ;;  %v4171_v31 = vadd.f32 %v4110_v12, %v3761_v17 }
 0x260   : > { %v3096_v24 = vadd.f32 %v3037_v30, %v2797_v13 }
 0x261   : > { %v4354_v26 = vpack.c.bf16 %v4324_v18, %v4324_v18  ;;  %5176 = vmatmul.msk.bf16.gmra.mxu3 %vm676_vm3, %v3598_v51  ;;  %v4207_v61 = vadd.f32 %v6557_v36, %v4171_v31 }
 0x263   : > { %v4377_v46 = vshrl.u32 %v4354_v26, 16  ;;  %v4113_v60 = vpop.f32.mrf.mxu0  ;;  %v4380_v49 = vshll.u32 %v4354_v26, 16  ;;  %v4239_v0 = vmax.f32 %v4207_v61, 0.0 }
 0x264   : > { %v3703_v35 = vpop.f32.mrf.mxu3  ;;  %v2743_v62 = vpop.f32.mrf.mxu1 }
 0x265   : > { %v4379_v39 = vrot.slane %v4377_v46, 7  ;;  %v3762_v7 = vadd.f32 %v3703_v35, %v3096_v24  ;;  %v2799_v30 = vadd.f32 %v2743_v62, %v6195_v47 }
 0x266   : > { %5236 = vmatmul.msk.bf16.gmra.mxu0 %vm676_vm3, %v4008_v6 }
 0x267   : > { %v4382_v16 = vor.u32 %v4380_v49, %v4379_v39  ;;  %v4383_v55 = vrot.slane %v4379_v39, 4  ;;  %v4172_v4 = vadd.f32 %v4113_v60, %v3762_v7  ;;  %v3039_v29 = vpop.f32.mrf.mxu2 }
 0x268   : > { %v3097_v50 = vadd.f32 %v3039_v29, %v2798_v14  ;;  %v5251_v14 = vld [vmem:[%s6536_s5 + $0x24] sm:$0x1] }
 0x269   : > { %v4460_v48 = vsel %vm6725_vm12, %v4382_v16, %v5245_v38  ;;  %v4463_v59 = vsel %vm6733_vm13, %v4383_v55, %v5247_v10  ;;  %v4208_v33 = vadd.f32 %v6557_v36, %v4172_v4  ;;  %v5249_v4 = vld [vmem:[%s6536_s5 + $0x20] sm:$0xf] }
 0x26a   : > { %5246 = vst [vmem:[%s6536_s5 + $0x18] sm:$0xf] %v4460_v48 }
 0x26b   : > { %5248 = vst [vmem:[%s6536_s5 + $0x1c] sm:$0x1] %v4463_v59  ;;  %v4240_v15 = vmax.f32 %v4208_v33, 0.0  ;;  %v4115_v3 = vpop.f32.mrf.mxu0 }
 0x26c   : > { %v3705_v8 = vpop.f32.mrf.mxu3  ;;  %v2745_v32 = vpop.f32.mrf.mxu1 }
 0x26d   : > { %v4264_v37 = vmax.f32 %v4238_v21, %v4240_v15  ;;  %v3763_v34 = vadd.f32 %v3705_v8, %v3097_v50  ;;  %v2800_v35 = vadd.f32 %v2745_v32, %v6214_v19 }
 0x26f   : > { %4281 = vst.msk [vmem:[#allocation2 + $0x30] sm:$0xff] %vm4274_vm9, %v4264_v37  ;;  %v4173_v9 = vadd.f32 %v4115_v3, %v3763_v34  ;;  %v3042_v51 = vpop.f32.mrf.mxu2 }
 0x270   : > { %v3098_v56 = vadd.f32 %v3042_v51, %v2799_v30 }
 0x271   : > { %v4209_v27 = vadd.f32 %v6557_v36, %v4173_v9 }
 0x273   : > { %v4241_v45 = vmax.f32 %v4209_v27, 0.0  ;;  %v4118_v5 = vpop.f32.mrf.mxu0 }
 0x274   : > { %v3708_v2 = vpop.f32.mrf.mxu3  ;;  %v2748_v18 = vpop.f32.mrf.mxu1 }
 0x275   : > { %v4265_v12 = vmax.f32 %v4239_v0, %v4241_v45  ;;  %v3764_v6 = vadd.f32 %v3708_v2, %v3098_v56  ;;  %v2801_v46 = vadd.f32 %v2748_v18, %v6234_v25  ;;  %v6917_v25 = vld [vmem:[%s6999_s2] ss:$0 sm:$0xff] }
 0x277   : > { %4282 = vst.msk [vmem:[#allocation2 + $0x38] sm:$0xff] %vm4274_vm9, %v4265_v12  ;;  %v3044_v13 = vpop.f32.mrf.mxu2  ;;  %v4174_v7 = vadd.f32 %v4118_v5, %v3764_v6 }
 0x278   : > { %v3099_v38 = vadd.f32 %v3044_v13, %v2800_v35 }
 0x279   : > { %v4210_v19 = vadd.f32 %v6917_v25, %v4174_v7 }
 0x27b   : > { %v4120_v63 = vpop.f32.mrf.mxu0  ;;  %v4242_v32 = vmax.f32 %v4210_v19, 0.0 }
 0x27c   : > { %v3710_v26 = vpop.f32.mrf.mxu3  ;;  %v2750_v24 = vpop.f32.mrf.mxu1 }
 0x27d   : > { %v3765_v29 = vadd.f32 %v3710_v26, %v3099_v38  ;;  %v2802_v50 = vadd.f32 %v2750_v24, %v6253_v20 }
 0x27e   : > { %v4297_v1 = vld [vmem:[#allocation2 + $0x30] ss:$2 sm:$0xff]  ;;  %v4313_v22 = vld [vmem:[#allocation2 + $0x31] ss:$2 sm:$0xff] }
 0x27f   : > { %v4325_v36 = vmax.f32 %v4297_v1, %v4313_v22  ;;  %v3047_v60 = vpop.f32.mrf.mxu2  ;;  %v4175_v37 = vadd.f32 %v4120_v63, %v3765_v29  ;;  %v5253_v29 = vld [vmem:[%s6536_s5 + $0x28] sm:$0xf] }
 0x280   : > { %v3100_v49 = vadd.f32 %v3047_v60, %v2801_v46 }
 0x281   : > { %v4355_v39 = vpack.c.bf16 %v4325_v36, %v4325_v36  ;;  %v4211_v0 = vadd.f32 %v6917_v25, %v4175_v37 }
 0x283   : > { %v4385_v47 = vshrl.u32 %v4355_v39, 16  ;;  %v4123_v62 = vpop.f32.mrf.mxu0  ;;  %v4388_v16 = vshll.u32 %v4355_v39, 16  ;;  %v4243_v18 = vmax.f32 %v4211_v0, 0.0 }
 0x284   : > { %v3713_v10 = vpop.f32.mrf.mxu3  ;;  %v2753_v54 = vpop.f32.mrf.mxu1 }
 0x285   : > { %v4387_v17 = vrot.slane %v4385_v47, 7  ;;  %v3766_v55 = vadd.f32 %v3713_v10, %v3100_v49  ;;  %v2803_v24 = vadd.f32 %v2753_v54, %v6273_v11 }
 0x287   : > { %v4390_v48 = vor.u32 %v4388_v16, %v4387_v17  ;;  %v4391_v59 = vrot.slane %v4387_v17, 4  ;;  %v4176_v33 = vadd.f32 %v4123_v62, %v3766_v55  ;;  %v3049_v21 = vpop.f32.mrf.mxu2 }
 0x288   : > { %v3101_v8 = vadd.f32 %v3049_v21, %v2802_v50 }
 0x289   : > { %v4466_v31 = vsel %vm6725_vm12, %v4390_v48, %v5249_v4  ;;  %v4469_v15 = vsel %vm6733_vm13, %v4391_v59, %v5251_v14  ;;  %v4212_v3 = vadd.f32 %v6917_v25, %v4176_v33  ;;  %v5255_v48 = vld [vmem:[%s6536_s5 + $0x2c] sm:$0x1] }
 0x28a   : > { %5250 = vst [vmem:[%s6536_s5 + $0x20] sm:$0xf] %v4466_v31 }
 0x28b   : > { %5252 = vst [vmem:[%s6536_s5 + $0x24] sm:$0x1] %v4469_v15  ;;  %v4244_v34 = vmax.f32 %v4212_v3, 0.0  ;;  %v4125_v61 = vpop.f32.mrf.mxu0 }
 0x28c   : > { %v3715_v9 = vpop.f32.mrf.mxu3  ;;  %v2755_v51 = vpop.f32.mrf.mxu1 }
 0x28d   : > { %v4266_v27 = vmax.f32 %v4242_v32, %v4244_v34  ;;  %v3767_v20 = vadd.f32 %v3715_v9, %v3101_v8  ;;  %v2804_v38 = vadd.f32 %v2755_v51, %v6292_v41 }
 0x28f   : > { %4283 = vst.msk [vmem:[#allocation2 + $0x40] sm:$0xff] %vm4274_vm9, %v4266_v27  ;;  %v4177_v45 = vadd.f32 %v4125_v61, %v3767_v20  ;;  %v3052_v5 = vpop.f32.mrf.mxu2 }
 0x290   : > { %v3102_v1 = vadd.f32 %v3052_v5, %v2803_v24 }
 0x291   : > { %v4213_v2 = vadd.f32 %v6917_v25, %v4177_v45 }
 0x293   : > { %v4245_v12 = vmax.f32 %v4213_v2, 0.0  ;;  %v4128_v13 = vpop.f32.mrf.mxu0 }
 0x294   : > { %v3718_v30 = vpop.f32.mrf.mxu3  ;;  %v2758_v56 = vpop.f32.mrf.mxu1 }
 0x295   : > { %v4267_v63 = vmax.f32 %v4243_v18, %v4245_v12  ;;  %v3768_v35 = vadd.f32 %v3718_v30, %v3102_v1  ;;  %v2805_v49 = vadd.f32 %v2758_v56, %v6312_v52 }
 0x297   : > { %4284 = vst.msk [vmem:[#allocation2 + $0x48] sm:$0xff] %vm4274_vm9, %v4267_v63  ;;  %v3054_v26 = vpop.f32.mrf.mxu2  ;;  %v4178_v10 = vadd.f32 %v4128_v13, %v3768_v35 }
 0x298   : > { %v3103_v17 = vadd.f32 %v3054_v26, %v2804_v38 }
 0x299   : > { %v4214_v52 = vadd.f32 %v6917_v25, %v4178_v10 }
 0x29b   : > { %v4130_v22 = vpop.f32.mrf.mxu0  ;;  %v4246_v37 = vmax.f32 %v4214_v52, 0.0 }
 0x29c   : > { %v3720_v6 = vpop.f32.mrf.mxu3  ;;  %v2760_v36 = vpop.f32.mrf.mxu1 }
 0x29d   : > { %v3769_v59 = vadd.f32 %v3720_v6, %v3103_v17  ;;  %v2806_v21 = vadd.f32 %v2760_v36, %v6331_v42 }
 0x29e   : > { %v4299_v46 = vld [vmem:[#allocation2 + $0x40] ss:$2 sm:$0xff]  ;;  %v4315_v60 = vld [vmem:[#allocation2 + $0x41] ss:$2 sm:$0xff] }
 0x29f   : > { %v4326_v39 = vmax.f32 %v4299_v46, %v4315_v60  ;;  %v3057_v7 = vpop.f32.mrf.mxu2  ;;  %v4179_v34 = vadd.f32 %v4130_v22, %v3769_v59 }
 0x2a0   : > { %v3104_v62 = vadd.f32 %v3057_v7, %v2805_v49 }
 0x2a1   : > { %v4356_v47 = vpack.c.bf16 %v4326_v39, %v4326_v39  ;;  %v4215_v0 = vadd.f32 %v6917_v25, %v4179_v34 }
 0x2a3   : > { %v4393_v11 = vshrl.u32 %v4356_v47, 16  ;;  %v4133_v54 = vpop.f32.mrf.mxu0  ;;  %v4396_v14 = vshll.u32 %v4356_v47, 16  ;;  %v4247_v18 = vmax.f32 %v4215_v0, 0.0 }
 0x2a4   : > { %v3723_v16 = vpop.f32.mrf.mxu3  ;;  %v2763_v55 = vpop.f32.mrf.mxu1 }
 0x2a5   : > { %v4395_v4 = vrot.slane %v4393_v11, 7  ;;  %v3770_v19 = vadd.f32 %v3723_v16, %v3104_v62  ;;  %v2807_v24 = vadd.f32 %v2763_v55, %v6351_v53 }
 0x2a7   : > { %v4398_v33 = vor.u32 %v4396_v14, %v4395_v4  ;;  %v4399_v41 = vrot.slane %v4395_v4, 4  ;;  %v4180_v50 = vadd.f32 %v4133_v54, %v3770_v19  ;;  %v3059_v31 = vpop.f32.mrf.mxu2  ;;  %v5257_v19 = vld [vmem:[%s6536_s5 + $0x30] sm:$0xf] }
 0x2a8   : > { %v3105_v32 = vadd.f32 %v3059_v31, %v2806_v21 }
 0x2a9   : > { %v4472_v15 = vsel %vm6725_vm12, %v4398_v33, %v5253_v29  ;;  %v4475_v3 = vsel %vm6733_vm13, %v4399_v41, %v5255_v48  ;;  %v4216_v8 = vadd.f32 %v6917_v25, %v4180_v50  ;;  %v5259_v29 = vld [vmem:[%s6536_s5 + $0x34] sm:$0x1] }
 0x2aa   : > { %5254 = vst [vmem:[%s6536_s5 + $0x28] sm:$0xf] %v4472_v15 }
 0x2ab   : > { %5256 = vst [vmem:[%s6536_s5 + $0x2c] sm:$0x1] %v4475_v3  ;;  %v4248_v61 = vmax.f32 %v4216_v8, 0.0  ;;  %v4135_v9 = vpop.f32.mrf.mxu0 }
 0x2ac   : > { %v3725_v51 = vpop.f32.mrf.mxu3  ;;  %v2765_v27 = vpop.f32.mrf.mxu1 }
 0x2ad   : > { %v4268_v20 = vmax.f32 %v4246_v37, %v4248_v61  ;;  %v3771_v42 = vadd.f32 %v3725_v51, %v3105_v32  ;;  %v2808_v38 = vadd.f32 %v2765_v27, %v6370_v43 }
 0x2af   : > { %4285 = vst.msk [vmem:[#allocation2 + $0x50] sm:$0xff] %vm4274_vm9, %v4268_v20  ;;  %v4181_v45 = vadd.f32 %v4135_v9, %v3771_v42  ;;  %v3062_v5 = vpop.f32.mrf.mxu2 }
 0x2b0   : > { %v3106_v1 = vadd.f32 %v3062_v5, %v2807_v24 }
 0x2b1   : > { %v4217_v2 = vadd.f32 %v6917_v25, %v4181_v45 }
 0x2b3   : > { %v4249_v12 = vmax.f32 %v4217_v2, 0.0  ;;  %v4138_v13 = vpop.f32.mrf.mxu0 }
 0x2b4   : > { %v3728_v30 = vpop.f32.mrf.mxu3  ;;  %v2768_v56 = vpop.f32.mrf.mxu1 }
 0x2b5   : > { %v4269_v63 = vmax.f32 %v4247_v18, %v4249_v12  ;;  %v3772_v35 = vadd.f32 %v3728_v30, %v3106_v1  ;;  %v2809_v49 = vadd.f32 %v2768_v56, %v6390_v44 }
 0x2b7   : > { %4286 = vst.msk [vmem:[#allocation2 + $0x58] sm:$0xff] %vm4274_vm9, %v4269_v63  ;;  %v3064_v26 = vpop.f32.mrf.mxu2  ;;  %v4182_v10 = vadd.f32 %v4138_v13, %v3772_v35 }
 0x2b8   : > { %v3107_v17 = vadd.f32 %v3064_v26, %v2808_v38 }
 0x2b9   : > { %v4218_v44 = vadd.f32 %v6917_v25, %v4182_v10 }
 0x2bb   : > { %v4140_v22 = vpop.f32.mrf.mxu0  ;;  %v4250_v3 = vmax.f32 %v4218_v44, 0.0 }
 0x2bc   : > { %v3730_v6 = vpop.f32.mrf.mxu3  ;;  %v2770_v36 = vpop.f32.mrf.mxu1 }
 0x2bd   : > { %v3773_v48 = vadd.f32 %v3730_v6, %v3107_v17  ;;  %v2810_v33 = vadd.f32 %v2770_v36, %v6412_v40 }
 0x2be   : > { %v4301_v46 = vld [vmem:[#allocation2 + $0x50] ss:$2 sm:$0xff]  ;;  %v4317_v60 = vld [vmem:[#allocation2 + $0x51] ss:$2 sm:$0xff] }
 0x2bf   : > { %v4327_v39 = vmax.f32 %v4301_v46, %v4317_v60  ;;  %v3067_v7 = vpop.f32.mrf.mxu2  ;;  %v4183_v8 = vadd.f32 %v4140_v22, %v3773_v48  ;;  %v7015_v60 = vld [vmem:[#allocation5_spill] sm:$0xff] }
 0x2c0   : > { %v3108_v62 = vadd.f32 %v3067_v7, %v2809_v49 }
 0x2c1   : > { %v4357_v47 = vpack.c.bf16 %v4327_v39, %v4327_v39  ;;  %v4219_v40 = vadd.f32 %v6917_v25, %v4183_v8 }
 0x2c3   : > { %v4401_v53 = vshrl.u32 %v4357_v47, 16  ;;  %v4143_v11 = vpop.f32.mrf.mxu0  ;;  %v4404_v55 = vshll.u32 %v4357_v47, 16  ;;  %v4251_v0 = vmax.f32 %v4219_v40, 0.0 }
 0x2c4   : > { %v3733_v54 = vpop.f32.mrf.mxu3  ;;  %v2773_v14 = vpop.f32.mrf.mxu1 }
 0x2c5   : > { %v4403_v16 = vrot.slane %v4401_v53, 7  ;;  %v3774_v4 = vadd.f32 %v3733_v54, %v3108_v62  ;;  %v2811_v13 = vadd.f32 %v2773_v14, %v6429_v23  ;;  %v5261_v54 = vld [vmem:[%s6536_s5 + $0x38] sm:$0xf] }
 0x2c7   : > { %v4406_v52 = vor.u32 %v4404_v55, %v4403_v16  ;;  %v4407_v43 = vrot.slane %v4403_v16, 4  ;;  %v4184_v59 = vadd.f32 %v4143_v11, %v3774_v4  ;;  %v3069_v41 = vpop.f32.mrf.mxu2  ;;  %v5263_v16 = vld [vmem:[%s6536_s5 + $0x3c] sm:$0x1] }
 0x2c8   : > { %v3109_v15 = vadd.f32 %v3069_v41, %v2810_v33 }
 0x2c9   : > { %v4478_v50 = vsel %vm6725_vm12, %v4406_v52, %v5257_v19  ;;  %v4481_v21 = vsel %vm6733_vm13, %v4407_v43, %v5259_v29  ;;  %v4220_v31 = vadd.f32 %v6917_v25, %v4184_v59  ;;  %v7016_v29 = vld [vmem:[#allocation6_spill] sm:$0xff] }
 0x2ca   : > { %5258 = vst [vmem:[%s6536_s5 + $0x30] sm:$0xf] %v4478_v50 }
 0x2cb   : > { %5260 = vst [vmem:[%s6536_s5 + $0x34] sm:$0x1] %v4481_v21  ;;  %v4252_v32 = vmax.f32 %v4220_v31, 0.0  ;;  %v4145_v37 = vpop.f32.mrf.mxu0 }
 0x2cc   : > { %v3735_v34 = vpop.f32.mrf.mxu3  ;;  %v2775_v20 = vpop.f32.mrf.mxu1 }
 0x2cd   : > { %v4270_v61 = vmax.f32 %v4250_v3, %v4252_v32  ;;  %v3775_v9 = vadd.f32 %v3735_v34, %v3109_v15  ;;  %v2812_v35 = vadd.f32 %v2775_v20, %v7015_v60 }
 0x2cf   : > { %4287 = vst.msk [vmem:[#allocation2 + $0x60] sm:$0xff] %vm4274_vm9, %v4270_v61  ;;  %v4185_v51 = vadd.f32 %v4145_v37, %v3775_v9  ;;  %v3072_v27 = vpop.f32.mrf.mxu2 }
 0x2d0   : > { %v3110_v56 = vadd.f32 %v3072_v27, %v2811_v13 }
 0x2d1   : > { %v4221_v42 = vadd.f32 %v6917_v25, %v4185_v51 }
 0x2d3   : > { %v4253_v45 = vmax.f32 %v4221_v42, 0.0  ;;  %v4148_v5 = vpop.f32.mrf.mxu0 }
 0x2d4   : > { %v3738_v2 = vpop.f32.mrf.mxu3  ;;  %v2778_v30 = vpop.f32.mrf.mxu1 }
 0x2d5   : > { %v4271_v18 = vmax.f32 %v4251_v0, %v4253_v45  ;;  %v3776_v22 = vadd.f32 %v3738_v2, %v3110_v56  ;;  %v2813_v36 = vadd.f32 %v2778_v30, %v6470_v58  ;;  %v5265_v2 = vld [vmem:[%s6536_s5 + $0x40] sm:$0xf] }
 0x2d7   : > { %4288 = vst.msk [vmem:[#allocation2 + $0x68] sm:$0xff] %vm4274_vm9, %v4271_v18  ;;  %v3074_v12 = vpop.f32.mrf.mxu2  ;;  %v4186_v7 = vadd.f32 %v4148_v5, %v3776_v22  ;;  %v5267_v18 = vld [vmem:[%s6536_s5 + $0x44] sm:$0x1] }
 0x2d8   : > { %v3111_v38 = vadd.f32 %v3074_v12, %v2812_v35 }
 0x2d9   : > { %v4222_v58 = vadd.f32 %v6917_v25, %v4186_v7 }
 0x2db   : > { %v4150_v63 = vpop.f32.mrf.mxu0  ;;  %v4254_v41 = vmax.f32 %v4222_v58, 0.0 }
 0x2dc   : > { %v3740_v26 = vpop.f32.mrf.mxu3  ;;  %v2780_v47 = vpop.f32.mrf.mxu1 }
 0x2dd   : > { %v3777_v55 = vadd.f32 %v3740_v26, %v3111_v38  ;;  %v2814_v44 = vadd.f32 %v2780_v47, %v7016_v29 }
 0x2de   : > { %v4303_v24 = vld [vmem:[#allocation2 + $0x60] ss:$2 sm:$0xff]  ;;  %v4319_v1 = vld [vmem:[#allocation2 + $0x61] ss:$2 sm:$0xff] }
 0x2df   : > { %v4328_v6 = vmax.f32 %v4303_v24, %v4319_v1  ;;  %v3077_v46 = vpop.f32.mrf.mxu2  ;;  %v4187_v50 = vadd.f32 %v4150_v63, %v3777_v55 }
 0x2e0   : > { %v3112_v49 = vadd.f32 %v3077_v46, %v2813_v36 }
 0x2e1   : > { %v4358_v39 = vpack.c.bf16 %v4328_v6, %v4328_v6  ;;  %v4223_v32 = vadd.f32 %v6917_v25, %v4187_v50 }
 0x2e3   : > { %v4409_v23 = vshrl.u32 %v4358_v39, 16  ;;  %v4153_v62 = vpop.f32.mrf.mxu0  ;;  %v4412_v53 = vshll.u32 %v4358_v39, 16  ;;  %v4255_v61 = vmax.f32 %v4223_v32, 0.0 }
 0x2e4   : > { %v3743_v10 = vpop.f32.mrf.mxu3 }
 0x2e5   : > { %v4411_v17 = vrot.slane %v4409_v23, 7  ;;  %v3778_v11 = vadd.f32 %v3743_v10, %v3112_v49 }
 0x2e7   : > { %v4414_v4 = vor.u32 %v4412_v53, %v4411_v17  ;;  %v4415_v14 = vrot.slane %v4411_v17, 4  ;;  %v4188_v19 = vadd.f32 %v4153_v62, %v3778_v11  ;;  %v3079_v48 = vpop.f32.mrf.mxu2 }
 0x2e8   : > { %v3113_v33 = vadd.f32 %v3079_v48, %v2814_v44 }
 0x2e9   : > { %v4484_v52 = vsel %vm6725_vm12, %v4414_v4, %v5261_v54  ;;  %v4487_v43 = vsel %vm6733_vm13, %v4415_v14, %v5263_v16  ;;  %v4224_v59 = vadd.f32 %v6917_v25, %v4188_v19 }
 0x2ea   : > { %5262 = vst [vmem:[%s6536_s5 + $0x38] sm:$0xf] %v4484_v52 }
 0x2eb   : > { %5264 = vst [vmem:[%s6536_s5 + $0x3c] sm:$0x1] %v4487_v43  ;;  %v4256_v21 = vmax.f32 %v4224_v59, 0.0  ;;  %v4155_v8 = vpop.f32.mrf.mxu0 }
 0x2ec   : > { %v3745_v31 = vpop.f32.mrf.mxu3 }
 0x2ed   : > { %v4272_v15 = vmax.f32 %v4254_v41, %v4256_v21  ;;  %v3779_v3 = vadd.f32 %v3745_v31, %v3113_v33 }
 0x2ef   : > { %4289 = vst.msk [vmem:[#allocation2 + $0x70] sm:$0xff] %vm4274_vm9, %v4272_v15  ;;  %v4189_v37 = vadd.f32 %v4155_v8, %v3779_v3 }
 0x2f1   : > { %v4225_v34 = vadd.f32 %v6917_v25, %v4189_v37 }
 0x2f3   : > { %v4257_v9 = vmax.f32 %v4225_v34, 0.0 }
 0x2f5   : > { %v4273_v40 = vmax.f32 %v4255_v61, %v4257_v9 }
 0x2f7   : > { %4290 = vst.msk [vmem:[#allocation2 + $0x78] sm:$0xff] %vm4274_vm9, %v4273_v40 }
 0x2fe   : > { %v4305_v51 = vld [vmem:[#allocation2 + $0x70] ss:$2 sm:$0xff]  ;;  %v4321_v27 = vld [vmem:[#allocation2 + $0x71] ss:$2 sm:$0xff] }
 0x2ff   : > { %v4329_v20 = vmax.f32 %v4305_v51, %v4321_v27 }
 0x301   : > { %v4359_v42 = vpack.c.bf16 %v4329_v20, %v4329_v20 }
 0x303   : > { %v4417_v0 = vshrl.u32 %v4359_v42, 16  ;;  %v4420_v5 = vshll.u32 %v4359_v42, 16 }
 0x305   : > { %v4419_v45 = vrot.slane %v4417_v0, 7 }
 0x307   : > { %v4422_v12 = vor.u32 %v4420_v5, %v4419_v45  ;;  %v4423_v13 = vrot.slane %v4419_v45, 4 }
 0x309   : > { %v4490_v25 = vsel %vm6725_vm12, %v4422_v12, %v5265_v2  ;;  %v4493_v30 = vsel %vm6733_vm13, %v4423_v13, %v5267_v18 }
 0x30a   : > { %5266 = vst [vmem:[%s6536_s5 + $0x40] sm:$0xf] %v4490_v25 }
 0x30b   : > { %5268 = vst [vmem:[%s6536_s5 + $0x44] sm:$0x1] %v4493_v30 }
 0x30c PF: > { %s13_s12 = sadd.s32 1, %s5412_s12  }
 0x30d   : > { %p10_p4 = scmp.ge.s32.totalorder %s13_s12, 4  }
 0x30f   :  { %12 = sbr.rel (!%p10_p4) target bundleno = 1 (0x1), region = 88 }

// kernel: face_recognition_forward.7
= control target key start
LH: loop header
LB: loop body
LE: loop exit
PB: predicated region body
PF: predicated region fallthrough
CT: control target
= control target key end

     0   :  { %s3273_s0 = inlined_call_operand.vmem [shape: f32[2,16,128], index: 0, kind: input, shape index: {}]   ;;  %s3274_s1 = inlined_call_operand.vmem [shape: bf16[128,384], index: 1, kind: input, shape index: {}]   ;;  %s3275_s2 = inlined_call_operand.vmem [shape: bf16[128,128], index: 2, kind: input, shape index: {}]   ;;  %s3276_s3 = inlined_call_operand.vmem [shape: f32[1,128], index: 3, kind: input, shape index: {}]   ;;  %s3277_s4 = inlined_call_operand.vmem [shape: bf16[128,384], index: 4, kind: input, shape index: {}]   ;;  %s3278_s5 = inlined_call_operand.vmem [shape: bf16[128,128], index: 5, kind: input, shape index: {}]   ;;  %s3279_s6 = inlined_call_operand.vmem [shape: f32[1,128], index: 6, kind: input, shape index: {}]   ;;  %s3280_s7 = inlined_call_operand.vmem [shape: bf16[16,16,128], index: 7, kind: input, shape index: {}]   ;;  %s3281_s8 = inlined_call_operand.<no memory space> [shape: f32[1,1], index: 8, kind: input, shape index: {}]   ;;  %s3282_s9 = inlined_call_operand.vmem [shape: bf16[128,128], index: 9, kind: input, shape index: {}]   ;;  %s3283_s10 = inlined_call_operand.vmem [shape: f32[1,128], index: 10, kind: input, shape index: {}]   ;;  %s3284_s11 = inlined_call_operand.hbm [shape: f32[2,128], index: 11, kind: output, shape index: {}]  }
   0x1   :  { %v16_v0 = vstv %s3281_s8 }
   0x2   :  { %17 = vst [vmem:[#allocation2] sm:$0x1] %v16_v0 }
   0x3   :  { %v1939_v1 = vld [vmem:[%s3274_s1 + $0xa8] sm:$0xf]  ;;  %v2175_v2 = vld [vmem:[%s3274_s1 + $0xb0] sm:$0xf0]  ;;  %v2174_v3 = vld [vmem:[%s3274_s1 + $0xac] sm:$0xf] }
   0x4   :  { %v1940_v4 = vor.u32 %v2175_v2, %v1939_v1  ;;  %v1941_v5 = vld [vmem:[%s3274_s1 + $0xb4] sm:$0xf0]  ;;  %v1927_v6 = vld [vmem:[%s3274_s1 + $0x90] sm:$0xf]  ;;  %v2172_v7 = vld [vmem:[%s3274_s1 + $0x98] sm:$0xf0] }
   0x5   :  { %v1944_v8 = vor.u32 %v2174_v3, %v1941_v5  ;;  %v2171_v9 = vld [vmem:[%s3274_s1 + $0x94] sm:$0xf]  ;;  %v1929_v10 = vld [vmem:[%s3274_s1 + $0x9c] sm:$0xf0]  ;;  %v1928_v11 = vor.u32 %v2172_v7, %v1927_v6  ;;  %v1915_v13 = vld [vmem:[%s3274_s1 + $0x78] sm:$0xf] }
   0x6   :  { %208 = vmatpush.bf16.msra.mxu0 %v1940_v4  ;;  %v1932_v12 = vor.u32 %v2171_v9, %v1929_v10  ;;  %v2169_v14 = vld [vmem:[%s3274_s1 + $0x80] sm:$0xf0]  ;;  %v2168_v15 = vld [vmem:[%s3274_s1 + $0x7c] sm:$0xf]  ;;  %v1917_v16 = vld [vmem:[%s3274_s1 + $0x84] sm:$0xf0] }
   0x7   :  { %227 = vmatpush.bf16.msra.mxu1 %v1944_v8  ;;  %v1916_v17 = vor.u32 %v2169_v14, %v1915_v13  ;;  %v1920_v18 = vor.u32 %v2168_v15, %v1917_v16  ;;  %v1903_v19 = vld [vmem:[%s3274_s1 + $0x60] sm:$0xf]  ;;  %v2166_v20 = vld [vmem:[%s3274_s1 + $0x68] sm:$0xf0]  ;;  %v2165_v21 = vld [vmem:[%s3274_s1 + $0x64] sm:$0xf] }
   0x8   :  { %v1905_v22 = vld [vmem:[%s3274_s1 + $0x6c] sm:$0xf0]  ;;  %v1904_v23 = vor.u32 %v2166_v20, %v1903_v19  ;;  %v1891_v24 = vld [vmem:[%s3274_s1 + $0x48] sm:$0xf]  ;;  %v2163_v25 = vld [vmem:[%s3274_s1 + $0x50] sm:$0xf0] }
   0x9   :  { %v2162_v26 = vld [vmem:[%s3274_s1 + $0x4c] sm:$0xf]  ;;  %v1908_v27 = vor.u32 %v2165_v21, %v1905_v22  ;;  %v1893_v28 = vld [vmem:[%s3274_s1 + $0x54] sm:$0xf0] }
   0xa   :  { %209 = vmatpush.bf16.msra.mxu0 %v1928_v11 }
   0xb   :  { %228 = vmatpush.bf16.msra.mxu1 %v1932_v12 }
   0xe   :  { %210 = vmatpush.bf16.msra.mxu0 %v1916_v17 }
   0xf   :  { %229 = vmatpush.bf16.msra.mxu1 %v1920_v18 }
  0x10   :  { %18 = vsyncpa [#allocation4], 0  ;;  %v1892_v29 = vor.u32 %v2163_v25, %v1891_v24  ;;  %v1896_v30 = vor.u32 %v2162_v26, %v1893_v28  ;;  %v1879_v31 = vld [vmem:[%s3274_s1 + $0x30] sm:$0xf]  ;;  %v2160_v32 = vld [vmem:[%s3274_s1 + $0x38] sm:$0xf0] }
  0x11   :  { %v2159_v33 = vld [vmem:[%s3274_s1 + $0x34] sm:$0xf]  ;;  %v1881_v34 = vld [vmem:[%s3274_s1 + $0x3c] sm:$0xf0]  ;;  %v1880_v35 = vor.u32 %v2160_v32, %v1879_v31  ;;  %v1947_v36 = vld [vmem:[%s3274_s1 + $0xb0] sm:$0xf] }
  0x12   :  { %211 = vmatpush.bf16.msra.mxu0 %v1904_v23  ;;  %v2176_v37 = vld [vmem:[%s3274_s1 + $0xb8] sm:$0xf0]  ;;  %v1935_v38 = vld [vmem:[%s3274_s1 + $0x98] sm:$0xf]  ;;  %v1884_v39 = vor.u32 %v2159_v33, %v1881_v34  ;;  %v2157_v41 = vld [vmem:[%s3274_s1 + $0x20] sm:$0xf0] }
  0x13   :  { %230 = vmatpush.bf16.msra.mxu1 %v1908_v27  ;;  %v1867_v40 = vld [vmem:[%s3274_s1 + $0x18] sm:$0xf]  ;;  %v1948_v42 = vor.u32 %v2176_v37, %v1947_v36  ;;  %v2173_v43 = vld [vmem:[%s3274_s1 + $0xa0] sm:$0xf0]  ;;  %v2156_v44 = vld [vmem:[%s3274_s1 + $0x1c] sm:$0xf] }
  0x14   :  { %v1869_v45 = vld [vmem:[%s3274_s1 + $0x24] sm:$0xf0]  ;;  %v1936_v46 = vor.u32 %v2173_v43, %v1935_v38  ;;  %v1868_v47 = vor.u32 %v2157_v41, %v1867_v40  ;;  %v1923_v48 = vld [vmem:[%s3274_s1 + $0x80] sm:$0xf]  ;;  %v2170_v49 = vld [vmem:[%s3274_s1 + $0x88] sm:$0xf0] }
  0x15   :  { %246 = vmatpush.bf16.msra.mxu2 %v1948_v42  ;;  %v1872_v50 = vor.u32 %v2156_v44, %v1869_v45  ;;  %v1855_v51 = vld [vmem:[%s3274_s1] sm:$0xf]  ;;  %v2154_v52 = vld [vmem:[%s3274_s1 + $0x8] sm:$0xf0]  ;;  %v2153_v53 = vld [vmem:[%s3274_s1 + $0x4] sm:$0xf]  ;;  %v1924_v56 = vor.u32 %v2170_v49, %v1923_v48 }
  0x16   :  { %212 = vmatpush.bf16.msra.mxu0 %v1892_v29  ;;  %v1857_v54 = vld [vmem:[%s3274_s1 + $0xc] sm:$0xf0]  ;;  %v2585_v55 = vld [vmem:[%s3273_s0] sm:$0xff]  ;;  %v1856_v57 = vor.u32 %v2154_v52, %v1855_v51  ;;  %v2590_v58 = vld [vmem:[%s3273_s0 + $0x8] sm:$0xff]  ;;  %vm333_vm0 = vcmask 130048   ;;  %s2404_s28 = smov [#allocation3]  }
  0x17   :  { %231 = vmatpush.bf16.msra.mxu1 %v1896_v30  ;;  %v1911_v59 = vld [vmem:[%s3274_s1 + $0x68] sm:$0xf]  ;;  %v2167_v60 = vld [vmem:[%s3274_s1 + $0x70] sm:$0xf0]  ;;  %v1860_v61 = vor.u32 %v2153_v53, %v1857_v54  ;;  %v46_v62 = vpack.c.bf16 %v2590_v58, %v2585_v55  ;;  %v1899_v0 = vld [vmem:[%s3274_s1 + $0x50] sm:$0xf] }
  0x18   :  { %v1912_v63 = vor.u32 %v2167_v60, %v1911_v59  ;;  %v2164_v1 = vld [vmem:[%s3274_s1 + $0x58] sm:$0xf0]  ;;  %v1887_v3 = vld [vmem:[%s3274_s1 + $0x38] sm:$0xf]  ;;  %v2161_v4 = vld [vmem:[%s3274_s1 + $0x40] sm:$0xf0] }
  0x19   :  { %247 = vmatpush.bf16.msra.mxu2 %v1936_v46  ;;  %v1900_v2 = vor.u32 %v2164_v1, %v1899_v0  ;;  %v1888_v5 = vor.u32 %v2161_v4, %v1887_v3  ;;  %v1875_v6 = vld [vmem:[%s3274_s1 + $0x20] sm:$0xf]  ;;  %v2158_v7 = vld [vmem:[%s3274_s1 + $0x28] sm:$0xf0]  ;;  %v1863_v9 = vld [vmem:[%s3274_s1 + $0x8] sm:$0xf] }
  0x1a   :  { %213 = vmatpush.bf16.msra.mxu0 %v1880_v35  ;;  %v1876_v8 = vor.u32 %v2158_v7, %v1875_v6  ;;  %v2155_v10 = vld [vmem:[%s3274_s1 + $0x10] sm:$0xf0]  ;;  %v2632_v12 = vld [vmem:[%s3273_s0 + $0x18] sm:$0xff]  ;;  %s1842_s29 = sshll.u32 %s2404_s28, 4  ;;  %s1844_s13 = sshll.u32 %s3284_s11, 4  ;;  %s1843_s29 = int_to_ptr.vmem [resolvable:$true] %s1842_s29  ;;  %s1845_s13 = int_to_ptr.hbm [resolvable:$true] %s1844_s13 }
  0x1b   :  { %232 = vmatpush.bf16.msra.mxu1 %v1884_v39  ;;  %v2627_v11 = vld [vmem:[%s3273_s0 + $0x10] sm:$0xff]  ;;  %v1864_v13 = vor.u32 %v2155_v10, %v1863_v9 }
  0x1c   :  { %v47_v14 = vpack.c.bf16 %v2632_v12, %v2627_v11 }
  0x1d   :  { %248 = vmatpush.bf16.msra.mxu2 %v1924_v56 }
  0x1e   :  { %214 = vmatpush.bf16.msra.mxu0 %v1868_v47 }
  0x1f   :  { %233 = vmatpush.bf16.msra.mxu1 %v1872_v50 }
  0x21   :  { %249 = vmatpush.bf16.msra.mxu2 %v1912_v63 }
  0x22   :  { %215 = vmatpush.bf16.msra.mxu0 %v1856_v57 }
  0x23   :  { %234 = vmatpush.bf16.msra.mxu1 %v1860_v61 }
  0x25   :  { %216 = vmatmul.bf16.vlgmr.msra.gmra.mxu0 %v46_v62  ;;  %250 = vmatpush.bf16.msra.mxu2 %v1900_v2 }
  0x26   :  { %235 = vmatmul.bf16.vlgmr.msra.gmra.mxu1 %v46_v62 }
  0x29   :  { %251 = vmatpush.bf16.msra.mxu2 %v1888_v5 }
  0x2d   :  { %252 = vmatpush.bf16.msra.mxu2 %v1876_v8 }
  0x31   :  { %253 = vmatpush.bf16.msra.mxu2 %v1864_v13 }
  0x34   :  { %254 = vmatmul.bf16.vlgmr.msra.gmra.mxu2 %v46_v62 }
  0x35   :  { %221 = vmatmul.bf16.gmra.mxu0 %v47_v14 }
  0x36   :  { %240 = vmatmul.bf16.gmra.mxu1 %v47_v14 }
  0x44   :  { %259 = vmatmul.bf16.gmra.mxu2 %v47_v14 }
  0xa2   :  { %v217_v15 = vpop.f32.mrf.mxu0 }
  0xa3   :  { %v236_v16 = vpop.f32.mrf.mxu1  ;;  %v265_v23 = vpack.c.bf16 %v217_v15, %v217_v15 }
  0xa4   :  { %v269_v17 = vpack.c.bf16 %v236_v16, %v236_v16 }
  0xa5   :  { %v279_v27 = vunpack.c.l.b16 %v265_v23 }
  0xa6   :  { %v285_v21 = vunpack.c.l.b16 %v269_v17 }
  0xaa   :  { %v219_v18 = vpop.f32.mrf.mxu0 }
  0xab   :  { %v238_v19 = vpop.f32.mrf.mxu1  ;;  %v266_v24 = vpack.c.bf16 %v219_v18, %v219_v18 }
  0xac   :  { %v270_v20 = vpack.c.bf16 %v238_v19, %v238_v19 }
  0xad   :  { %v280_v28 = vunpack.c.l.b16 %v266_v24 }
  0xae   :  { %v286_v22 = vunpack.c.l.b16 %v270_v20 }
  0xaf   :  { %v281_v30 = vpack.c.b16 %v280_v28, %v279_v27 }
  0xb0   :  { %v287_v25 = vpack.c.b16 %v286_v22, %v285_v21 }
  0xb2   :  { %296 = vmatpush.bf16.xpose.msrb.mxu2 %v287_v25  ;;  %v222_v26 = vpop.f32.mrf.mxu0 }
  0xb3   :  { %v241_v29 = vpop.f32.mrf.mxu1  ;;  %v267_v38 = vpack.c.bf16 %v222_v26, %v222_v26 }
  0xb4   :  { %v271_v31 = vpack.c.bf16 %v241_v29, %v241_v29 }
  0xb5   :  { %v305_v42 = vunpack.c.l.b16 %v267_v38 }
  0xb6   :  { %v311_v36 = vunpack.c.l.b16 %v271_v31 }
  0xb7   :  { %v255_v33 = vpop.f32.mrf.mxu2 }
  0xb8   :  { %v273_v41 = vpack.c.bf16 %v255_v33, %v255_v33 }
  0xb9   :  { %297 = vmatmul.bf16.vlgmr.msrb.gmra.mxu2 %v281_v30 }
  0xba   :  { %v224_v35 = vpop.f32.mrf.mxu0  ;;  %v441_v45 = vunpack.c.l.b16 %v273_v41 }
  0xbb   :  { %v243_v32 = vpop.f32.mrf.mxu1  ;;  %v268_v39 = vpack.c.bf16 %v224_v35, %v224_v35 }
  0xbc   :  { %v272_v34 = vpack.c.bf16 %v243_v32, %v243_v32 }
  0xbd   :  { %v306_v43 = vunpack.c.l.b16 %v268_v39 }
  0xbe   :  { %v312_v37 = vunpack.c.l.b16 %v272_v34 }
  0xbf   :  { %v257_v44 = vpop.f32.mrf.mxu2  ;;  %v307_v48 = vpack.c.b16 %v306_v43, %v305_v42 }
  0xc0   :  { %v313_v40 = vpack.c.b16 %v312_v37, %v311_v36  ;;  %v274_v46 = vpack.c.bf16 %v257_v44, %v257_v44  ;;  %v2184_v44 = vld [vmem:[%s3275_s2 + $0x38] sm:$0xff] }
  0xc1   :  { %560 = vmatpush.bf16.msrb.mxu0 %v2184_v44 }
  0xc2   :  { %322 = vmatpush.bf16.xpose.msra.mxu3 %v313_v40  ;;  %v442_v47 = vunpack.c.l.b16 %v274_v46 }
  0xc4   :  { %v443_v49 = vpack.c.b16 %v442_v47, %v441_v45 }
  0xc7   :  { %v260_v50 = vpop.f32.mrf.mxu2 }
  0xc8   :  { %v275_v51 = vpack.c.bf16 %v260_v50, %v260_v50 }
  0xc9   :  { %323 = vmatmul.bf16.vlgmr.msra.gmra.mxu3 %v307_v48 }
  0xca   :  { %455 = vmatpush.bf16.msrb.mxu3 %v443_v49  ;;  %v469_v53 = vunpack.c.l.b16 %v275_v51  ;;  %v2183_v49 = vld [vmem:[%s3275_s2 + $0x30] sm:$0xff] }
  0xcb   :  { %561 = vmatpush.bf16.msrb.mxu0 %v2183_v49 }
  0xcf   :  { %v262_v52 = vpop.f32.mrf.mxu2 }
  0xd0   :  { %v276_v54 = vpack.c.bf16 %v262_v52, %v262_v52 }
  0xd2   :  { %v470_v56 = vunpack.c.l.b16 %v276_v54 }
  0xd4   :  { %v471_v57 = vpack.c.b16 %v470_v56, %v469_v53 }
  0xd6   :  { %483 = vmatpush.bf16.msra.mxu3 %v471_v57 }
 0x13c   :  { %v298_v59 = vpop.f32.mrf.mxu2 }
 0x13d   :  { %v329_v60 = vmul.f32 0.17677669, %v298_v59  ;;  %v2182_v59 = vld [vmem:[%s3275_s2 + $0x28] sm:$0xff] }
 0x13e   :  { %562 = vmatpush.bf16.msrb.mxu0 %v2182_v59 }
 0x13f   :  { %v334_v61 = vsel %vm333_vm0, %v329_v60, -inf }
 0x140   :  { %335 = vmax.xlane.f32.xlu0 %v334_v61 }
 0x144   :  { %v300_v62 = vpop.f32.mrf.mxu2 }
 0x145   :  { %v330_v63 = vmul.f32 0.17677669, %v300_v62 }
 0x147   :  { %v337_v0 = vsel %vm333_vm0, %v330_v63, -inf }
 0x148   :  { %338 = vmax.xlane.f32.xlu0 %v337_v0 }
 0x14c   :  { %v324_v1 = vpop.f32.mrf.mxu3 }
 0x14d   :  { %v331_v2 = vmul.f32 0.17677669, %v324_v1 }
 0x14f   :  { %v340_v3 = vsel %vm333_vm0, %v331_v2, -inf }
 0x150   :  { %341 = vmax.xlane.f32.xlu1 %v340_v3 }
 0x154   :  { %v326_v4 = vpop.f32.mrf.mxu3 }
 0x155   :  { %v332_v5 = vmul.f32 0.17677669, %v326_v4 }
 0x157   :  { %v343_v6 = vsel %vm333_vm0, %v332_v5, -inf }
 0x158   :  { %344 = vmax.xlane.f32.xlu1 %v343_v6 }
 0x1b3   :  { %v336_v7 = vpop.xlane.xlu0 %335 }
 0x1b4   :  { %v346_v8 = vsub.f32 %v329_v60, %v336_v7 }
 0x1b6   :  { %v350_v9 = vmul.f32 1.442695, %v346_v8 }
 0x1b8   :  { %2313 = vpow2.f32 %v350_v9 }
 0x1bb   :  { %v339_v10 = vpop.xlane.xlu0 %338 }
 0x1bc   :  { %v347_v13 = vsub.f32 %v330_v63, %v339_v10 }
 0x1be   :  { %v2314_v14 = vpop.eup %2313  ;;  %v352_v15 = vmul.f32 1.442695, %v347_v13 }
 0x1bf   :  { %v358_v16 = vsel %vm333_vm0, %v2314_v14, 0.0 }
 0x1c0   :  { %2315 = vpow2.f32 %v352_v15  ;;  %359 = vadd.xlane.f32.xlu2 %v358_v16 }
 0x1c3   :  { %v342_v17 = vpop.xlane.xlu1 %341 }
 0x1c4   :  { %v348_v18 = vsub.f32 %v331_v2, %v342_v17  ;;  %v2181_v2 = vld [vmem:[%s3275_s2 + $0x20] sm:$0xff] }
 0x1c5   :  { %563 = vmatpush.bf16.msrb.mxu0 %v2181_v2  ;;  %v2057_v2 = vld [vmem:[%s3277_s4 + $0x80] sm:$0xf] }
 0x1c6   :  { %v2316_v19 = vpop.eup %2315  ;;  %v354_v20 = vmul.f32 1.442695, %v348_v18 }
 0x1c7   :  { %v361_v21 = vsel %vm333_vm0, %v2316_v19, 0.0 }
 0x1c8   :  { %2317 = vpow2.f32 %v354_v20  ;;  %362 = vadd.xlane.f32.xlu2 %v361_v21 }
 0x1cb   :  { %v345_v22 = vpop.xlane.xlu1 %344 }
 0x1cc   :  { %v349_v23 = vsub.f32 %v332_v5, %v345_v22 }
 0x1ce   :  { %v2642_v24 = vpop.eup %2317  ;;  %v356_v25 = vmul.f32 1.442695, %v349_v23 }
 0x1cf   :  { %v364_v26 = vsel %vm333_vm0, %v2642_v24, 0.0 }
 0x1d0   :  { %2319 = vpow2.f32 %v356_v25  ;;  %365 = vadd.xlane.f32.xlu0 %v364_v26 }
 0x1d6   :  { %v2646_v27 = vpop.eup %2319 }
 0x1d7   :  { %v367_v28 = vsel %vm333_vm0, %v2646_v27, 0.0 }
 0x1d8   :  { %368 = vadd.xlane.f32.xlu1 %v367_v28 }
 0x233   :  { %v360_v29 = vpop.xlane.xlu2 %359 }
 0x234   :  { %2321 = vrcp.f32 %v360_v29  ;;  %v381_v35 = vand.u32 2147483648, %v360_v29  ;;  %vm375_vm2 = vweird.f32 %v360_v29  ;;  %v379_v37 = vand.u32 2147483647, %v360_v29 }
 0x236   :  { %v382_v42 = vor.u32 1.1754944e-38, %v381_v35  ;;  %vm380_vm4 = vcmp.eq.f32.partialorder %v379_v37, 8.507059e+37 }
 0x23a   :  { %v2322_v30 = vpop.eup %2321 }
 0x23b   :  { %v371_v31 = vmul.f32 %v2322_v30, %v360_v29  ;;  %v363_v32 = vpop.xlane.xlu2 %362  ;;  %vm376_vm1 = vweird.f32 %v2322_v30 }
 0x23c   :  { %2323 = vrcp.f32 %v363_v32  ;;  %vm377_vm3 = vmor %vm375_vm2, %vm376_vm1  ;;  %v396_v46 = vand.u32 2147483648, %v363_v32  ;;  %v394_v48 = vand.u32 2147483647, %v363_v32  ;;  %vm390_vm6 = vweird.f32 %v363_v32 }
 0x23d   :  { %v372_v33 = vsub.f32 1.0, %v371_v31 }
 0x23e   :  { %v397_v53 = vor.u32 1.1754944e-38, %v396_v46  ;;  %vm395_vm8 = vcmp.eq.f32.partialorder %v394_v48, 8.507059e+37  ;;  %v2081_v46 = vld [vmem:[%s3277_s4 + $0xb0] sm:$0xf] }
 0x23f   :  { %v373_v34 = vmul.f32 %v2322_v30, %v372_v33 }
 0x241   :  { %v374_v36 = vadd.f32 %v2322_v30, %v373_v34  ;;  %v2178_v34 = vld [vmem:[%s3275_s2 + $0x8] sm:$0xff] }
 0x242   :  { %v2324_v38 = vpop.eup %2323 }
 0x243   :  { %v378_v39 = vsel %vm377_vm3, %v2322_v30, %v374_v36  ;;  %v386_v40 = vmul.f32 %v2324_v38, %v363_v32  ;;  %v366_v41 = vpop.xlane.xlu0 %365  ;;  %vm391_vm5 = vweird.f32 %v2324_v38 }
 0x244   :  { %2325 = vrcp.f32 %v366_v41  ;;  %v383_v45 = vsel %vm380_vm4, %v382_v42, %v378_v39  ;;  %vm392_vm7 = vmor %vm390_vm6, %vm391_vm5  ;;  %vm405_vm10 = vweird.f32 %v366_v41  ;;  %v411_v3 = vand.u32 2147483648, %v366_v41  ;;  %v2207_v42 = vld [vmem:[%s3277_s4 + $0xb0] sm:$0xf0] }
 0x245   :  { %v387_v43 = vsub.f32 1.0, %v386_v40  ;;  %v384_v51 = vmul.f32 %v2314_v14, %v383_v45  ;;  %v409_v5 = vand.u32 2147483647, %v366_v41  ;;  %v2180_v14 = vld [vmem:[%s3275_s2 + $0x18] sm:$0xff] }
 0x246   :  { %v412_v15 = vor.u32 1.1754944e-38, %v411_v3  ;;  %564 = vmatpush.bf16.msrb.mxu0 %v2180_v14  ;;  %v2075_v45 = vld [vmem:[%s3277_s4 + $0xb4] sm:$0xf0]  ;;  %v2202_v3 = vld [vmem:[%s3277_s4 + $0x88] sm:$0xf0] }
 0x247   :  { %v388_v47 = vmul.f32 %v2324_v38, %v387_v43  ;;  %v430_v63 = vpack.c.bf16 %v384_v51, %v384_v51  ;;  %vm410_vm12 = vcmp.eq.f32.partialorder %v409_v5, 8.507059e+37  ;;  %v2206_v43 = vld [vmem:[%s3277_s4 + $0xac] sm:$0xf]  ;;  %v2204_v51 = vld [vmem:[%s3277_s4 + $0x98] sm:$0xf0]  ;;  %v2058_v5 = vor.u32 %v2202_v3, %v2057_v2 }
 0x248   :  { %v2078_v48 = vor.u32 %v2206_v43, %v2075_v45  ;;  %v2199_v14 = vld [vmem:[%s3277_s4 + $0x70] sm:$0xf0]  ;;  %v2003_v43 = vld [vmem:[%s3277_s4 + $0x24] sm:$0xf0] }
 0x249   :  { %v389_v50 = vadd.f32 %v2324_v38, %v388_v47  ;;  %v436_v6 = vunpack.c.l.b16 %v430_v63  ;;  %v2208_v47 = vld [vmem:[%s3277_s4 + $0xb8] sm:$0xf0] }
 0x24a   :  { %v2326_v52 = vpop.eup %2325  ;;  %v2082_v49 = vor.u32 %v2208_v47, %v2081_v46  ;;  %840 = vmatpush.bf16.msra.mxu2 %v2078_v48  ;;  %v2200_v63 = vld [vmem:[%s3277_s4 + $0x7c] sm:$0xf]  ;;  %v2190_v46 = vld [vmem:[%s3277_s4 + $0x28] sm:$0xf0]  ;;  %v1989_v48 = vld [vmem:[%s3277_s4] sm:$0xf] }
 0x24b   :  { %v393_v54 = vsel %vm392_vm7, %v2324_v38, %v389_v50  ;;  %v401_v56 = vmul.f32 %v2326_v52, %v366_v41  ;;  %v369_v57 = vpop.xlane.xlu1 %368  ;;  %vm406_vm9 = vweird.f32 %v2326_v52  ;;  %v2073_v41 = vld [vmem:[%s3277_s4 + $0xa8] sm:$0xf]  ;;  %v2061_v50 = vld [vmem:[%s3277_s4 + $0x90] sm:$0xf] }
 0x24c   :  { %v398_v60 = vsel %vm395_vm8, %v397_v53, %v393_v54  ;;  %2327 = vrcp.f32 %v369_v57  ;;  %vm407_vm11 = vmor %vm405_vm10, %vm406_vm9  ;;  %v426_v18 = vand.u32 2147483648, %v369_v57  ;;  %v424_v20 = vand.u32 2147483647, %v369_v57  ;;  %v2063_v54 = vld [vmem:[%s3277_s4 + $0x9c] sm:$0xf0] }
 0x24d   :  { %v402_v61 = vsub.f32 1.0, %v401_v56  ;;  %v399_v62 = vmul.f32 %v2316_v19, %v398_v60  ;;  %vm420_vm14 = vweird.f32 %v369_v57  ;;  %v2074_v44 = vor.u32 %v2207_v42, %v2073_v41  ;;  %v2069_v56 = vld [vmem:[%s3277_s4 + $0x98] sm:$0xf] }
 0x24e   :  { %v427_v23 = vor.u32 1.1754944e-38, %v426_v18  ;;  %vm425_vm1 = vcmp.eq.f32.partialorder %v424_v20, 8.507059e+37  ;;  %v2062_v53 = vor.u32 %v2204_v51, %v2061_v50  ;;  %v2195_v18 = vld [vmem:[%s3277_s4 + $0x50] sm:$0xf0]  ;;  %v2185_v50 = vld [vmem:[%s3277_s4 + $0x4] sm:$0xf] }
 0x24f   :  { %v403_v0 = vmul.f32 %v2326_v52, %v402_v61  ;;  %v431_v1 = vpack.c.bf16 %v399_v62, %v399_v62  ;;  %821 = vmatpush.bf16.msrb.mxu1 %v2074_v44  ;;  %v2049_v61 = vld [vmem:[%s3277_s4 + $0x78] sm:$0xf]  ;;  %v2201_v62 = vld [vmem:[%s3277_s4 + $0x80] sm:$0xf0]  ;;  %v2009_v44 = vld [vmem:[%s3277_s4 + $0x20] sm:$0xf] }
 0x250   :  { %v2010_v47 = vor.u32 %v2190_v46, %v2009_v44 }
 0x251   :  { %v404_v4 = vadd.f32 %v2326_v52, %v403_v0  ;;  %v437_v7 = vunpack.c.l.b16 %v431_v1  ;;  %v2050_v0 = vor.u32 %v2201_v62, %v2049_v61  ;;  %v2051_v1 = vld [vmem:[%s3277_s4 + $0x84] sm:$0xf0] }
 0x252   :  { %v2328_v8 = vpop.eup %2327 }
 0x253   :  { %v408_v9 = vsel %vm407_vm11, %v2326_v52, %v404_v4  ;;  %v416_v10 = vmul.f32 %v2328_v8, %v369_v57  ;;  %v438_v13 = vpack.c.b16 %v437_v7, %v436_v6  ;;  %vm421_vm13 = vweird.f32 %v2328_v8  ;;  %v2203_v52 = vld [vmem:[%s3277_s4 + $0x94] sm:$0xf]  ;;  %v2205_v57 = vld [vmem:[%s3277_s4 + $0xa0] sm:$0xf0]  ;;  %822 = vmatpush.bf16.msrb.mxu1 %v2062_v53  ;;  %v2037_v6 = vld [vmem:[%s3277_s4 + $0x60] sm:$0xf] }
 0x254   :  { %v413_v17 = vsel %vm410_vm12, %v412_v15, %v408_v9  ;;  %vm422_vm15 = vmor %vm420_vm14, %vm421_vm13  ;;  %v2066_v59 = vor.u32 %v2203_v52, %v2063_v54  ;;  %v2070_v60 = vor.u32 %v2205_v57, %v2069_v56  ;;  %v2054_v4 = vor.u32 %v2200_v63, %v2051_v1  ;;  %v2198_v7 = vld [vmem:[%s3277_s4 + $0x68] sm:$0xf0]  ;;  %v1991_v52 = vld [vmem:[%s3277_s4 + $0xc] sm:$0xf0] }
 0x255   :  { %v417_v16 = vsub.f32 1.0, %v416_v10  ;;  %1949 = vmatmul.msk.bf16.vlgmr.msrb.gmra.mxu3 %vm333_vm0, %v438_v13  ;;  %v414_v21 = vmul.f32 %v2642_v24, %v413_v17  ;;  %v2179_v24 = vld [vmem:[%s3275_s2 + $0x10] sm:$0xff]  ;;  %v2038_v9 = vor.u32 %v2198_v7, %v2037_v6  ;;  %v2045_v13 = vld [vmem:[%s3277_s4 + $0x68] sm:$0xf]  ;;  %v1994_v57 = vor.u32 %v2185_v50, %v1991_v52 }
 0x256   :  { %565 = vmatpush.bf16.msrb.mxu0 %v2179_v24  ;;  %859 = vmatpush.bf16.msrb.mxu3 %v2082_v49  ;;  %v2039_v10 = vld [vmem:[%s3277_s4 + $0x6c] sm:$0xf0]  ;;  %v2025_v17 = vld [vmem:[%s3277_s4 + $0x48] sm:$0xf]  ;;  %v2021_v24 = vld [vmem:[%s3277_s4 + $0x38] sm:$0xf] }
 0x257   :  { %v418_v19 = vmul.f32 %v2328_v8, %v417_v16  ;;  %v432_v28 = vpack.c.bf16 %v414_v21, %v414_v21  ;;  %841 = vmatpush.bf16.msra.mxu2 %v2066_v59  ;;  %823 = vmatpush.bf16.msrb.mxu1 %v2050_v0  ;;  %v2046_v16 = vor.u32 %v2199_v14, %v2045_v13  ;;  %v2027_v21 = vld [vmem:[%s3277_s4 + $0x54] sm:$0xf0]  ;;  %v2186_v49 = vld [vmem:[%s3277_s4 + $0x8] sm:$0xf0]  ;;  %v1997_v53 = vld [vmem:[%s3277_s4 + $0x8] sm:$0xf] }
 0x258   :  { %v2026_v20 = vor.u32 %v2195_v18, %v2025_v17  ;;  %v1990_v51 = vor.u32 %v2186_v49, %v1989_v48  ;;  %v2187_v54 = vld [vmem:[%s3277_s4 + $0x10] sm:$0xf0] }
 0x259   :  { %v419_v22 = vadd.f32 %v2328_v8, %v418_v19  ;;  %v464_v31 = vunpack.c.l.b16 %v432_v28  ;;  %v2194_v19 = vld [vmem:[%s3277_s4 + $0x4c] sm:$0xf]  ;;  %v2309_v28 = vld [vmem:[%s3276_s3] ss:$0 sm:$0xff]  ;;  %v1998_v59 = vor.u32 %v2187_v54, %v1997_v53 }
 0x25a   :  { %566 = vmatpush.bf16.msrb.mxu0 %v2178_v34  ;;  %860 = vmatpush.bf16.msrb.mxu3 %v2070_v60  ;;  %v2193_v34 = vld [vmem:[%s3277_s4 + $0x40] sm:$0xf0] }
 0x25b   :  { %v423_v25 = vsel %vm422_vm15, %v2328_v8, %v419_v22  ;;  %842 = vmatpush.bf16.msra.mxu2 %v2054_v4  ;;  %v2197_v8 = vld [vmem:[%s3277_s4 + $0x64] sm:$0xf]  ;;  %824 = vmatpush.bf16.msrb.mxu1 %v2038_v9  ;;  %v2033_v22 = vld [vmem:[%s3277_s4 + $0x50] sm:$0xf] }
 0x25c   :  { %v428_v26 = vsel %vm425_vm1, %v427_v23, %v423_v25  ;;  %v2042_v15 = vor.u32 %v2197_v8, %v2039_v10  ;;  %v2196_v23 = vld [vmem:[%s3277_s4 + $0x58] sm:$0xf0]  ;;  %v2030_v25 = vor.u32 %v2194_v19, %v2027_v21 }
 0x25d   :  { %v429_v29 = vmul.f32 %v2646_v27, %v428_v26  ;;  %v2177_v27 = vld [vmem:[%s3275_s2] sm:$0xff]  ;;  %v2034_v26 = vor.u32 %v2196_v23, %v2033_v22 }
 0x25e   :  { %567 = vmatpush.bf16.msrb.mxu0 %v2177_v27  ;;  %861 = vmatpush.bf16.msrb.mxu3 %v2058_v5 }
 0x25f   :  { %v433_v30 = vpack.c.bf16 %v429_v29, %v429_v29  ;;  %843 = vmatpush.bf16.msra.mxu2 %v2042_v15  ;;  %825 = vmatpush.bf16.msrb.mxu1 %v2026_v20  ;;  %v2013_v29 = vld [vmem:[%s3277_s4 + $0x30] sm:$0xf] }
 0x261   :  { %v465_v32 = vunpack.c.l.b16 %v433_v30  ;;  %v2192_v30 = vld [vmem:[%s3277_s4 + $0x38] sm:$0xf0] }
 0x262   :  { %862 = vmatpush.bf16.msrb.mxu3 %v2046_v16 }
 0x263   :  { %v466_v33 = vpack.c.b16 %v465_v32, %v464_v31  ;;  %844 = vmatpush.bf16.msra.mxu2 %v2030_v25  ;;  %v2191_v31 = vld [vmem:[%s3277_s4 + $0x34] sm:$0xf]  ;;  %v2014_v32 = vor.u32 %v2192_v30, %v2013_v29 }
 0x265   :  { %1950 = vmatmul.msk.bf16.vlgmr.msra.gmra.mxu3 %vm333_vm0, %v466_v33  ;;  %v2015_v33 = vld [vmem:[%s3277_s4 + $0x3c] sm:$0xf0]  ;;  %826 = vmatpush.bf16.msrb.mxu1 %v2014_v32 }
 0x266   :  { %863 = vmatpush.bf16.msrb.mxu3 %v2034_v26 }
 0x2d8   :  { %v457_v35 = vpop.f32.mrf.mxu3 }
 0x2e0   :  { %v459_v36 = vpop.f32.mrf.mxu3 }
 0x2e1   :  { %v490_v37 = vpack.c.bf16 %v459_v36, %v457_v35  ;;  %v2018_v35 = vor.u32 %v2191_v31, %v2015_v33  ;;  %v2022_v36 = vor.u32 %v2193_v34, %v2021_v24 }
 0x2e3   :  { %568 = vmatmul.bf16.vlgmr.msrb.gmra.mxu0 %v490_v37  ;;  %845 = vmatpush.bf16.msra.mxu2 %v2018_v35 }
 0x2e4   :  { %864 = vmatpush.bf16.msrb.mxu3 %v2022_v36 }
 0x2e8   :  { %v485_v38 = vpop.f32.mrf.mxu3  ;;  %865 = vmatpush.bf16.msrb.mxu3 %v2010_v47 }
 0x2ec   :  { %866 = vmatpush.bf16.msrb.mxu3 %v1998_v59 }
 0x2f0   :  { %v487_v39 = vpop.f32.mrf.mxu3 }
 0x2f1   :  { %v491_v40 = vpack.c.bf16 %v487_v39, %v485_v38  ;;  %v2001_v38 = vld [vmem:[%s3277_s4 + $0x18] sm:$0xf]  ;;  %v2189_v39 = vld [vmem:[%s3277_s4 + $0x20] sm:$0xf0] }
 0x2f2   :  { %v2002_v42 = vor.u32 %v2189_v39, %v2001_v38 }
 0x2f3   :  { %573 = vmatmul.bf16.gmra.mxu0 %v491_v40  ;;  %v2188_v40 = vld [vmem:[%s3277_s4 + $0x1c] sm:$0xf] }
 0x2f4   :  { %v2006_v45 = vor.u32 %v2188_v40, %v2003_v43  ;;  %827 = vmatpush.bf16.msrb.mxu1 %v2002_v42 }
 0x2f6   :  { %846 = vmatpush.bf16.msra.mxu2 %v2006_v45 }
 0x2f8   :  { %828 = vmatpush.bf16.msrb.mxu1 %v1990_v51 }
 0x2fa   :  { %847 = vmatpush.bf16.msra.mxu2 %v1994_v57 }
 0x360   :  { %v569_v27 = vpop.f32.mrf.mxu0 }
 0x361   :  { %v570_v37 = vadd.f32 %v2309_v28, %v569_v27 }
 0x363   :  { %v1983_v41 = vmul.f32 -1.442695, %v570_v37 }
 0x365   :  { %2329 = vpow2.f32 %v1983_v41 }
 0x368   :  { %v571_v56 = vpop.f32.mrf.mxu0 }
 0x369   :  { %v572_v60 = vadd.f32 %v2309_v28, %v571_v56 }
 0x36b   :  { %v2330_v61 = vpop.eup %2329  ;;  %v1984_v62 = vmul.f32 -1.442695, %v572_v60 }
 0x36c   :  { %v591_v63 = vadd.f32 1.0, %v2330_v61 }
 0x36d   :  { %2331 = vpow2.f32 %v1984_v62 }
 0x36e   :  { %2333 = vrcp.f32 %v591_v63  ;;  %v606_v19 = vand.u32 2147483648, %v591_v63  ;;  %vm600_vm3 = vweird.f32 %v591_v63  ;;  %v604_v21 = vand.u32 2147483647, %v591_v63 }
 0x370   :  { %v574_v0 = vpop.f32.mrf.mxu0  ;;  %vm605_vm6 = vcmp.eq.f32.partialorder %v604_v21, 8.507059e+37 }
 0x371   :  { %v575_v1 = vadd.f32 %v2309_v28, %v574_v0 }
 0x373   :  { %v2332_v2 = vpop.eup %2331  ;;  %v1985_v3 = vmul.f32 -1.442695, %v575_v1 }
 0x374   :  { %v2334_v4 = vpop.eup %2333  ;;  %v592_v5 = vadd.f32 1.0, %v2332_v2 }
 0x375   :  { %v596_v6 = vmul.f32 %v2334_v4, %v591_v63  ;;  %2335 = vpow2.f32 %v1985_v3  ;;  %vm601_vm2 = vweird.f32 %v2334_v4 }
 0x376   :  { %2337 = vrcp.f32 %v592_v5  ;;  %vm602_vm4 = vmor %vm600_vm3, %vm601_vm2  ;;  %v621_v22 = vand.u32 2147483648, %v592_v5  ;;  %v619_v26 = vand.u32 2147483647, %v592_v5  ;;  %vm615_vm7 = vweird.f32 %v592_v5 }
 0x377   :  { %v597_v7 = vsub.f32 1.0, %v596_v6 }
 0x378   :  { %v576_v8 = vpop.f32.mrf.mxu0  ;;  %v622_v24 = vor.u32 1.1754944e-38, %v621_v22  ;;  %vm620_vm9 = vcmp.eq.f32.partialorder %v619_v26, 8.507059e+37 }
 0x379   :  { %v577_v9 = vadd.f32 %v2309_v28, %v576_v8  ;;  %v598_v10 = vmul.f32 %v2334_v4, %v597_v7  ;;  %v607_v28 = vor.u32 1.1754944e-38, %v606_v19 }
 0x37b   :  { %v2336_v13 = vpop.eup %2335  ;;  %v1986_v14 = vmul.f32 -1.442695, %v577_v9  ;;  %v599_v18 = vadd.f32 %v2334_v4, %v598_v10 }
 0x37c   :  { %v2338_v15 = vpop.eup %2337  ;;  %v593_v16 = vadd.f32 1.0, %v2336_v13 }
 0x37d   :  { %v611_v17 = vmul.f32 %v2338_v15, %v592_v5  ;;  %2339 = vpow2.f32 %v1986_v14  ;;  %v603_v23 = vsel %vm602_vm4, %v2334_v4, %v599_v18  ;;  %vm616_vm5 = vweird.f32 %v2338_v15 }
 0x37e   :  { %2341 = vrcp.f32 %v593_v16  ;;  %v608_v33 = vsel %vm605_vm6, %v607_v28, %v603_v23  ;;  %vm617_vm8 = vmor %vm615_vm7, %vm616_vm5  ;;  %v636_v44 = vand.u32 2147483648, %v593_v16  ;;  %vm630_vm11 = vweird.f32 %v593_v16 }
 0x37f   :  { %v612_v20 = vsub.f32 1.0, %v611_v17  ;;  %v2826_v37 = vmul.f32 %v608_v33, %v2585_v55  ;;  %v634_v46 = vand.u32 2147483647, %v593_v16 }
 0x380   :  { %v637_v49 = vor.u32 1.1754944e-38, %v636_v44 }
 0x381   :  { %v613_v25 = vmul.f32 %v2338_v15, %v612_v20  ;;  %vm635_vm14 = vcmp.eq.f32.partialorder %v634_v46, 8.507059e+37 }
 0x383   :  { %v2340_v29 = vpop.eup %2339  ;;  %v614_v30 = vadd.f32 %v2338_v15, %v613_v25 }
 0x384   :  { %v2342_v31 = vpop.eup %2341  ;;  %v594_v32 = vadd.f32 1.0, %v2340_v29 }
 0x385   :  { %v626_v34 = vmul.f32 %v2342_v31, %v593_v16  ;;  %v618_v27 = vsel %vm617_vm8, %v2338_v15, %v614_v30  ;;  %vm631_vm10 = vweird.f32 %v2342_v31 }
 0x386   :  { %2343 = vrcp.f32 %v594_v32  ;;  %v623_v35 = vsel %vm620_vm9, %v622_v24, %v618_v27  ;;  %vm632_vm12 = vmor %vm630_vm11, %vm631_vm10  ;;  %v651_v55 = vand.u32 2147483648, %v594_v32  ;;  %v649_v48 = vand.u32 2147483647, %v594_v32 }
 0x387   :  { %v627_v36 = vsub.f32 1.0, %v626_v34  ;;  %v2829_v38 = vmul.f32 %v623_v35, %v2590_v58  ;;  %vm645_vm15 = vweird.f32 %v594_v32 }
 0x388   :  { %v652_v52 = vor.u32 1.1754944e-38, %v651_v55  ;;  %vm650_vm2 = vcmp.eq.f32.partialorder %v649_v48, 8.507059e+37 }
 0x389   :  { %v659_v39 = vpack.c.bf16 %v2829_v38, %v2826_v37  ;;  %v628_v40 = vmul.f32 %v2342_v31, %v627_v36 }
 0x38b   :  { %829 = vmatmul.bf16.vlgmr.msrb.gmra.mxu1 %v659_v39  ;;  %848 = vmatmul.bf16.vlgmr.msra.gmra.mxu2 %v659_v39  ;;  %v629_v43 = vadd.f32 %v2342_v31, %v628_v40 }
 0x38c   :  { %v2344_v41 = vpop.eup %2343  ;;  %867 = vmatmul.bf16.vlgmr.msrb.gmra.mxu3 %v659_v39 }
 0x38d   :  { %v641_v42 = vmul.f32 %v2344_v41, %v594_v32  ;;  %v633_v47 = vsel %vm632_vm12, %v2342_v31, %v629_v43  ;;  %vm646_vm13 = vweird.f32 %v2344_v41 }
 0x38e   :  { %v638_v51 = vsel %vm635_vm14, %v637_v49, %v633_v47  ;;  %vm647_vm1 = vmor %vm645_vm15, %vm646_vm13 }
 0x38f   :  { %v642_v45 = vsub.f32 1.0, %v641_v42  ;;  %v2834_v56 = vmul.f32 %v638_v51, %v2627_v11 }
 0x391   :  { %v643_v58 = vmul.f32 %v2344_v41, %v642_v45 }
 0x393   :  { %v644_v50 = vadd.f32 %v2344_v41, %v643_v58 }
 0x395   :  { %v648_v53 = vsel %vm647_vm1, %v2344_v41, %v644_v50 }
 0x396   :  { %v653_v54 = vsel %vm650_vm2, %v652_v52, %v648_v53 }
 0x397   :  { %v2837_v57 = vmul.f32 %v653_v54, %v2632_v12 }
 0x399   :  { %v660_v59 = vpack.c.bf16 %v2837_v57, %v2834_v56 }
 0x39b   :  { %834 = vmatmul.bf16.gmra.mxu1 %v660_v59  ;;  %853 = vmatmul.bf16.gmra.mxu2 %v660_v59 }
 0x39c   :  { %872 = vmatmul.bf16.gmra.mxu3 %v660_v59 }
 0x408   :  { %v830_v60 = vpop.f32.mrf.mxu1 }
 0x409   :  { %v878_v10 = vpack.c.bf16 %v830_v60, %v830_v60 }
 0x40b   :  { %v892_v18 = vunpack.c.l.b16 %v878_v10 }
 0x40e   :  { %v849_v61 = vpop.f32.mrf.mxu2 }
 0x40f   :  { %v868_v62 = vpop.f32.mrf.mxu3  ;;  %v882_v0 = vpack.c.bf16 %v849_v61, %v849_v61 }
 0x410   :  { %v832_v63 = vpop.f32.mrf.mxu1  ;;  %v886_v1 = vpack.c.bf16 %v868_v62, %v868_v62 }
 0x411   :  { %v898_v5 = vunpack.c.l.b16 %v882_v0  ;;  %v879_v7 = vpack.c.bf16 %v832_v63, %v832_v63 }
 0x412   :  { %v1053_v12 = vunpack.c.l.b16 %v886_v1 }
 0x413   :  { %v893_v15 = vunpack.c.l.b16 %v879_v7 }
 0x415   :  { %v894_v19 = vpack.c.b16 %v893_v15, %v892_v18 }
 0x416   :  { %v851_v2 = vpop.f32.mrf.mxu2 }
 0x417   :  { %v883_v3 = vpack.c.bf16 %v851_v2, %v851_v2  ;;  %v870_v4 = vpop.f32.mrf.mxu3 }
 0x418   :  { %v887_v11 = vpack.c.bf16 %v870_v4, %v870_v4  ;;  %v835_v14 = vpop.f32.mrf.mxu1 }
 0x419   :  { %v899_v6 = vunpack.c.l.b16 %v883_v3  ;;  %v880_v34 = vpack.c.bf16 %v835_v14, %v835_v14 }
 0x41a   :  { %v1054_v8 = vunpack.c.l.b16 %v887_v11 }
 0x41b   :  { %v900_v9 = vpack.c.b16 %v899_v6, %v898_v5  ;;  %v918_v36 = vunpack.c.l.b16 %v880_v34 }
 0x41c   :  { %v1055_v13 = vpack.c.b16 %v1054_v8, %v1053_v12 }
 0x41d   :  { %909 = vmatpush.bf16.xpose.msra.mxu0 %v900_v9 }
 0x41e   :  { %1067 = vmatpush.bf16.msrb.mxu2 %v1055_v13  ;;  %v854_v16 = vpop.f32.mrf.mxu2 }
 0x41f   :  { %v873_v17 = vpop.f32.mrf.mxu3  ;;  %v884_v20 = vpack.c.bf16 %v854_v16, %v854_v16 }
 0x420   :  { %v888_v21 = vpack.c.bf16 %v873_v17, %v873_v17  ;;  %v837_v23 = vpop.f32.mrf.mxu1 }
 0x421   :  { %v924_v29 = vunpack.c.l.b16 %v884_v20  ;;  %v881_v32 = vpack.c.bf16 %v837_v23, %v837_v23 }
 0x422   :  { %v1081_v31 = vunpack.c.l.b16 %v888_v21 }
 0x423   :  { %v919_v35 = vunpack.c.l.b16 %v881_v32  ;;  %v2215_v32 = vld [vmem:[%s3278_s5 + $0x30] sm:$0xff] }
 0x424   :  { %910 = vmatmul.bf16.vlgmr.msra.gmra.mxu0 %v894_v19 }
 0x425   :  { %v920_v39 = vpack.c.b16 %v919_v35, %v918_v36 }
 0x426   :  { %v856_v22 = vpop.f32.mrf.mxu2 }
 0x427   :  { %v885_v25 = vpack.c.bf16 %v856_v22, %v856_v22  ;;  %v875_v26 = vpop.f32.mrf.mxu3 }
 0x428   :  { %v889_v28 = vpack.c.bf16 %v875_v26, %v875_v26  ;;  %v2216_v26 = vld [vmem:[%s3278_s5 + $0x38] sm:$0xff] }
 0x429   :  { %v925_v30 = vunpack.c.l.b16 %v885_v25  ;;  %1172 = vmatpush.bf16.msra.mxu3 %v2216_v26  ;;  %v2901_v26 = vld [vmem:[%s3280_s7 + $0x18] sm:$0xff]  }
 0x42a   :  { %v1082_v33 = vunpack.c.l.b16 %v889_v28 }
 0x42b   :  { %v926_v24 = vpack.c.b16 %v925_v30, %v924_v29 }
 0x42c   :  { %v1083_v27 = vpack.c.b16 %v1082_v33, %v1081_v31 }
 0x42d   :  { %935 = vmatpush.bf16.xpose.msra.mxu1 %v926_v24  ;;  %1173 = vmatpush.bf16.msra.mxu3 %v2215_v32  ;;  %v2926_v32 = vld [vmem:[%s3280_s7 + $0x38] sm:$0xff]  }
 0x42e   :  { %1095 = vmatpush.bf16.msrb.mxu0 %v1083_v27 }
 0x434   :  { %936 = vmatmul.bf16.vlgmr.msra.gmra.mxu1 %v920_v39 }
 0x4a1   :  { %v911_v40 = vpop.f32.mrf.mxu0 }
 0x4a2   :  { %v942_v41 = vmul.f32 0.17677669, %v911_v40  ;;  %v2214_v40 = vld [vmem:[%s3278_s5 + $0x28] sm:$0xff] }
 0x4a3   :  { %1174 = vmatpush.bf16.msra.mxu3 %v2214_v40  ;;  %v2958_v40 = vld [vmem:[%s3280_s7 + $0x68] sm:$0xff]  }
 0x4a4   :  { %v946_v42 = vsel %vm333_vm0, %v942_v41, -inf }
 0x4a5   :  { %947 = vmax.xlane.f32.xlu2 %v946_v42 }
 0x4a9   :  { %v913_v43 = vpop.f32.mrf.mxu0 }
 0x4aa   :  { %v943_v44 = vmul.f32 0.17677669, %v913_v43 }
 0x4ac   :  { %v949_v45 = vsel %vm333_vm0, %v943_v44, -inf }
 0x4ad   :  { %950 = vmax.xlane.f32.xlu0 %v949_v45 }
 0x4b1   :  { %v937_v46 = vpop.f32.mrf.mxu1 }
 0x4b2   :  { %v944_v55 = vmul.f32 0.17677669, %v937_v46 }
 0x4b4   :  { %v952_v47 = vsel %vm333_vm0, %v944_v55, -inf }
 0x4b5   :  { %953 = vmax.xlane.f32.xlu1 %v952_v47 }
 0x4b9   :  { %v939_v58 = vpop.f32.mrf.mxu1 }
 0x4ba   :  { %v945_v48 = vmul.f32 0.17677669, %v939_v58 }
 0x4bc   :  { %v955_v49 = vsel %vm333_vm0, %v945_v48, -inf }
 0x4bd   :  { %956 = vmax.xlane.f32.xlu2 %v955_v49 }
 0x518   :  { %v948_v50 = vpop.xlane.xlu2 %947 }
 0x519   :  { %v958_v51 = vsub.f32 %v942_v41, %v948_v50 }
 0x51b   :  { %v962_v52 = vmul.f32 1.442695, %v958_v51 }
 0x51d   :  { %2345 = vpow2.f32 %v962_v52 }
 0x520   :  { %v951_v53 = vpop.xlane.xlu0 %950 }
 0x521   :  { %v959_v54 = vsub.f32 %v943_v44, %v951_v53 }
 0x523   :  { %v2346_v59 = vpop.eup %2345  ;;  %v964_v60 = vmul.f32 1.442695, %v959_v54 }
 0x524   :  { %v970_v61 = vsel %vm333_vm0, %v2346_v59, 0.0 }
 0x525   :  { %2347 = vpow2.f32 %v964_v60  ;;  %971 = vadd.xlane.f32.xlu0 %v970_v61 }
 0x528   :  { %v954_v62 = vpop.xlane.xlu1 %953 }
 0x529   :  { %v960_v63 = vsub.f32 %v944_v55, %v954_v62  ;;  %v2213_v55 = vld [vmem:[%s3278_s5 + $0x20] sm:$0xff] }
 0x52a   :  { %1175 = vmatpush.bf16.msra.mxu3 %v2213_v55 }
 0x52b   :  { %v2348_v0 = vpop.eup %2347  ;;  %v966_v1 = vmul.f32 1.442695, %v960_v63 }
 0x52c   :  { %v973_v2 = vsel %vm333_vm0, %v2348_v0, 0.0 }
 0x52d   :  { %2349 = vpow2.f32 %v966_v1  ;;  %974 = vadd.xlane.f32.xlu1 %v973_v2 }
 0x530   :  { %v957_v3 = vpop.xlane.xlu2 %956 }
 0x531   :  { %v961_v4 = vsub.f32 %v945_v48, %v957_v3 }
 0x533   :  { %v2847_v11 = vpop.eup %2349  ;;  %v968_v5 = vmul.f32 1.442695, %v961_v4 }
 0x534   :  { %v976_v6 = vsel %vm333_vm0, %v2847_v11, 0.0 }
 0x535   :  { %2351 = vpow2.f32 %v968_v5  ;;  %977 = vadd.xlane.f32.xlu2 %v976_v6 }
 0x53b   :  { %v2851_v12 = vpop.eup %2351 }
 0x53c   :  { %v979_v7 = vsel %vm333_vm0, %v2851_v12, 0.0 }
 0x53d   :  { %980 = vadd.xlane.f32.xlu0 %v979_v7 }
 0x598   :  { %v972_v8 = vpop.xlane.xlu0 %971 }
 0x599   :  { %2353 = vrcp.f32 %v972_v8  ;;  %v993_v16 = vand.u32 2147483648, %v972_v8  ;;  %vm987_vm4 = vweird.f32 %v972_v8  ;;  %v991_v18 = vand.u32 2147483647, %v972_v8 }
 0x59b   :  { %v994_v23 = vor.u32 1.1754944e-38, %v993_v16  ;;  %vm992_vm6 = vcmp.eq.f32.partialorder %v991_v18, 8.507059e+37 }
 0x59f   :  { %v2354_v9 = vpop.eup %2353 }
 0x5a0   :  { %v983_v10 = vmul.f32 %v2354_v9, %v972_v8  ;;  %v975_v13 = vpop.xlane.xlu1 %974  ;;  %vm988_vm3 = vweird.f32 %v2354_v9 }
 0x5a1   :  { %2355 = vrcp.f32 %v975_v13  ;;  %vm989_vm5 = vmor %vm987_vm4, %vm988_vm3  ;;  %v1008_v29 = vand.u32 2147483648, %v975_v13  ;;  %v1006_v31 = vand.u32 2147483647, %v975_v13  ;;  %vm1002_vm8 = vweird.f32 %v975_v13 }
 0x5a2   :  { %v984_v14 = vsub.f32 1.0, %v983_v10  ;;  %vm1417_vm4 = vcmask 1042434  }
 0x5a3   :  { %v1009_v27 = vor.u32 1.1754944e-38, %v1008_v29  ;;  %vm1007_vm10 = vcmp.eq.f32.partialorder %v1006_v31, 8.507059e+37  ;;  %v2911_v29 = vld [vmem:[%s3279_s6] ss:$0 sm:$0xff]  ;;  %v2921_v31 = vld [vmem:[%s3280_s7 + $0x30] sm:$0xff]  }
 0x5a4   :  { %v985_v15 = vmul.f32 %v2354_v9, %v984_v14 }
 0x5a6   :  { %v986_v17 = vadd.f32 %v2354_v9, %v985_v15  ;;  %v2210_v15 = vld [vmem:[%s3278_s5 + $0x8] sm:$0xff] }
 0x5a7   :  { %v2356_v19 = vpop.eup %2355 }
 0x5a8   :  { %v990_v20 = vsel %vm989_vm5, %v2354_v9, %v986_v17  ;;  %v998_v21 = vmul.f32 %v2356_v19, %v975_v13  ;;  %v978_v22 = vpop.xlane.xlu2 %977  ;;  %vm1003_vm7 = vweird.f32 %v2356_v19  ;;  %vm1419_vm5 = vcmask 1043459  }
 0x5a9   :  { %2357 = vrcp.f32 %v978_v22  ;;  %v995_v28 = vsel %vm992_vm6, %v994_v23, %v990_v20  ;;  %vm1004_vm9 = vmor %vm1002_vm8, %vm1003_vm7  ;;  %vm1017_vm12 = vweird.f32 %v978_v22  ;;  %v1023_v47 = vand.u32 2147483648, %v978_v22  ;;  %v2891_v23 = vld [vmem:[%s3280_s7 + $0x8] sm:$0xff]  }
 0x5aa   :  { %v999_v25 = vsub.f32 1.0, %v998_v21  ;;  %v996_v33 = vmul.f32 %v2346_v59, %v995_v28  ;;  %v1021_v50 = vand.u32 2147483647, %v978_v22  ;;  %v2212_v59 = vld [vmem:[%s3278_s5 + $0x18] sm:$0xff]  ;;  %v2906_v28 = vld [vmem:[%s3280_s7 + $0x20] sm:$0xff]   ;;  %vm1421_vm6 = vcmask 1044484  }
 0x5ab   :  { %v1024_v60 = vor.u32 1.1754944e-38, %v1023_v47  ;;  %1176 = vmatpush.bf16.msra.mxu3 %v2212_v59  ;;  %v3288_v47 = vunpack.c.l.bf16 %v2921_v31  ;;  %vm1423_vm7 = vcmask 1045509   ;;  %vm1425_vm8 = vcmask 1046534  }
 0x5ac   :  { %v1000_v30 = vmul.f32 %v2356_v19, %v999_v25  ;;  %v1042_v42 = vpack.c.bf16 %v996_v33, %v996_v33  ;;  %vm1022_vm14 = vcmp.eq.f32.partialorder %v1021_v50, 8.507059e+37  ;;  %v2896_v25 = vld [vmem:[%s3280_s7 + $0x10] sm:$0xff]   ;;  %v2931_v33 = vld [vmem:[%s3280_s7 + $0x40] sm:$0xff]  }
 0x5ae   :  { %v1001_v24 = vadd.f32 %v2356_v19, %v1000_v30  ;;  %v1048_v58 = vunpack.c.l.b16 %v1042_v42  ;;  %v2916_v30 = vld [vmem:[%s3280_s7 + $0x28] sm:$0xff]   ;;  %v3290_v42 = vunpack.c.l.bf16 %v2901_v26 }
 0x5af   :  { %v2358_v34 = vpop.eup %2357 }
 0x5b0   :  { %v1005_v35 = vsel %vm1004_vm9, %v2356_v19, %v1001_v24  ;;  %v1013_v36 = vmul.f32 %v2358_v34, %v978_v22  ;;  %v981_v39 = vpop.xlane.xlu0 %980  ;;  %vm1018_vm11 = vweird.f32 %v2358_v34  ;;  %v2886_v22 = vld [vmem:[%s3280_s7] sm:$0xff]   ;;  %v2936_v24 = vld [vmem:[%s3280_s7 + $0x48] sm:$0xff]   ;;  %vm1427_vm9 = vcmask 1047559  }
 0x5b1   :  { %v1010_v41 = vsel %vm1007_vm10, %v1009_v27, %v1005_v35  ;;  %2359 = vrcp.f32 %v981_v39  ;;  %vm1019_vm13 = vmor %vm1017_vm12, %vm1018_vm11  ;;  %v1038_v63 = vand.u32 2147483648, %v981_v39  ;;  %v1036_v1 = vand.u32 2147483647, %v981_v39 }
 0x5b2   :  { %v1011_v43 = vmul.f32 %v2348_v0, %v1010_v41  ;;  %v1014_v44 = vsub.f32 1.0, %v1013_v36  ;;  %vm1032_vm1 = vweird.f32 %v981_v39  ;;  %v3292_v27 = vunpack.c.l.bf16 %v2886_v22  ;;  %v2948_v36 = vld [vmem:[%s3280_s7 + $0x58] sm:$0xff]  }
 0x5b3   :  { %v1039_v4 = vor.u32 1.1754944e-38, %v1038_v63  ;;  %vm1037_vm3 = vcmp.eq.f32.partialorder %v1036_v1, 8.507059e+37  ;;  %v3291_v35 = vunpack.c.l.bf16 %v2891_v23  ;;  %v3285_v41 = vunpack.c.l.bf16 %v2896_v25 }
 0x5b4   :  { %v1043_v45 = vpack.c.bf16 %v1011_v43, %v1011_v43  ;;  %v1015_v46 = vmul.f32 %v2358_v34, %v1014_v44  ;;  %v3286_v43 = vunpack.c.l.bf16 %v2906_v28  ;;  %v3287_v44 = vunpack.c.l.bf16 %v2916_v30 }
 0x5b5   :  { %v3296_v59 = vunpack.c.h.bf16 %v2886_v22  ;;  %v3298_v63 = vunpack.c.h.bf16 %v2896_v25  ;;  %v3305_v1 = vunpack.c.h.bf16 %v2906_v28 }
 0x5b6   :  { %v1049_v48 = vunpack.c.l.b16 %v1043_v45  ;;  %v1016_v49 = vadd.f32 %v2358_v34, %v1015_v46  ;;  %v2967_v45 = vld [vmem:[%s3280_s7 + $0x70] sm:$0xff]   ;;  %v2972_v46 = vld [vmem:[%s3280_s7 + $0x78] sm:$0xff]  }
 0x5b7   :  { %v2360_v51 = vpop.eup %2359 }
 0x5b8   :  { %v1020_v52 = vsel %vm1019_vm13, %v2358_v34, %v1016_v49  ;;  %v1028_v53 = vmul.f32 %v2360_v51, %v981_v39  ;;  %v1050_v54 = vpack.c.b16 %v1049_v48, %v1048_v58  ;;  %vm1033_vm15 = vweird.f32 %v2360_v51  ;;  %v2941_v34 = vld [vmem:[%s3280_s7 + $0x50] sm:$0xff]   ;;  %v2953_v39 = vld [vmem:[%s3280_s7 + $0x60] sm:$0xff]  }
 0x5b9   :  { %v1025_v62 = vsel %vm1022_vm14, %v1024_v60, %v1020_v52  ;;  %vm1034_vm2 = vmor %vm1032_vm1, %vm1033_vm15  ;;  %v3289_v58 = vunpack.c.l.bf16 %v2926_v32  ;;  %v3304_v48 = vunpack.c.l.bf16 %v2931_v33  ;;  %v3303_v49 = vunpack.c.l.bf16 %v2936_v24 }
 0x5ba   :  { %v1029_v61 = vsub.f32 1.0, %v1028_v53  ;;  %2083 = vmatmul.msk.bf16.vlgmr.msrb.gmra.mxu2 %vm333_vm0, %v1050_v54  ;;  %v1026_v2 = vmul.f32 %v2847_v11, %v1025_v62  ;;  %v2211_v11 = vld [vmem:[%s3278_s5 + $0x10] sm:$0xff]  ;;  %v3301_v50 = vunpack.c.l.bf16 %v2941_v34  ;;  %v3293_v52 = vunpack.c.l.bf16 %v2953_v39 }
 0x5bb   :  { %1177 = vmatpush.bf16.msra.mxu3 %v2211_v11  ;;  %v3294_v53 = vunpack.c.l.bf16 %v2958_v40  ;;  %v3295_v60 = vunpack.c.l.bf16 %v2967_v45  ;;  %v3297_v62 = vunpack.c.h.bf16 %v2891_v23 }
 0x5bc   :  { %v1030_v0 = vmul.f32 %v2360_v51, %v1029_v61  ;;  %v1044_v7 = vpack.c.bf16 %v1026_v2, %v1026_v2  ;;  %v3299_v61 = vunpack.c.l.bf16 %v2972_v46  ;;  %v3306_v2 = vunpack.c.h.bf16 %v2916_v30 }
 0x5be   :  { %v1031_v3 = vadd.f32 %v2360_v51, %v1030_v0  ;;  %v1076_v10 = vunpack.c.l.b16 %v1044_v7  ;;  %v3302_v0 = vunpack.c.h.bf16 %v2901_v26 }
 0x5bf   :  { %1178 = vmatpush.bf16.msra.mxu3 %v2210_v15 }
 0x5c0   :  { %v1035_v5 = vsel %vm1034_vm2, %v2360_v51, %v1031_v3  ;;  %v3300_v51 = vunpack.c.l.bf16 %v2948_v36  ;;  %v3307_v3 = vunpack.c.h.bf16 %v2921_v31 }
 0x5c1   :  { %v1040_v6 = vsel %vm1037_vm3, %v1039_v4, %v1035_v5  ;;  %v3308_v4 = vunpack.c.h.bf16 %v2926_v32 }
 0x5c2   :  { %v1041_v8 = vmul.f32 %v2851_v12, %v1040_v6  ;;  %v2209_v12 = vld [vmem:[%s3278_s5] sm:$0xff] }
 0x5c3   :  { %1179 = vmatpush.bf16.msra.mxu3 %v2209_v12 }
 0x5c4   :  { %v1045_v9 = vpack.c.bf16 %v1041_v8, %v1041_v8 }
 0x5c6   :  { %v1077_v13 = vunpack.c.l.b16 %v1045_v9 }
 0x5c8   :  { %v1078_v14 = vpack.c.b16 %v1077_v13, %v1076_v10 }
 0x5ca   :  { %2084 = vmatmul.msk.bf16.vlgmr.msrb.gmra.mxu0 %vm333_vm0, %v1078_v14  ;;  %vm1415_vm0 = vcmask 1041409  }
 0x63d   :  { %v1069_v16 = vpop.f32.mrf.mxu2 }
 0x645   :  { %v1071_v17 = vpop.f32.mrf.mxu2 }
 0x646   :  { %v1102_v18 = vpack.c.bf16 %v1071_v17, %v1069_v16 }
 0x647   :  { %v1097_v19 = vpop.f32.mrf.mxu0 }
 0x648   :  { %1180 = vmatmul.bf16.vlgmr.msra.gmra.mxu3 %v1102_v18 }
 0x64f   :  { %v1099_v20 = vpop.f32.mrf.mxu0 }
 0x650   :  { %v1103_v21 = vpack.c.bf16 %v1099_v20, %v1097_v19 }
 0x658   :  { %1185 = vmatmul.bf16.gmra.mxu3 %v1103_v21 }
 0x6cb   :  { %v1181_v55 = vpop.f32.mrf.mxu3 }
 0x6cc   :  { %v1182_v54 = vadd.f32 %v2911_v29, %v1181_v55 }
 0x6ce   :  { %v1255_v10 = vmul.f32 %v3292_v27, %v1182_v54  ;;  %v1257_v15 = vmul.f32 %v3291_v35, %v1182_v54  ;;  %v1259_v12 = vmul.f32 %v3285_v41, %v1182_v54  ;;  %v1261_v16 = vmul.f32 %v3290_v42, %v1182_v54 }
 0x6cf   :  { %v1263_v17 = vmul.f32 %v3286_v43, %v1182_v54  ;;  %v1265_v19 = vmul.f32 %v3287_v44, %v1182_v54  ;;  %v1267_v20 = vmul.f32 %v3288_v47, %v1182_v54  ;;  %v1269_v21 = vmul.f32 %v3289_v58, %v1182_v54 }
 0x6d0   :  { %v3019_v55 = vmul.f32 %v3304_v48, %v1182_v54  ;;  %v3026_v43 = vmul.f32 %v3303_v49, %v1182_v54  ;;  %v3030_v44 = vmul.f32 %v3301_v50, %v1182_v54  ;;  %v3034_v47 = vmul.f32 %v3300_v51, %v1182_v54 }
 0x6d1   :  { %v3038_v58 = vmul.f32 %v3293_v52, %v1182_v54  ;;  %v3046_v42 = vmul.f32 %v3295_v60, %v1182_v54  ;;  %v3050_v35 = vmul.f32 %v3299_v61, %v1182_v54 }
 0x6d3   :  { %v1183_v18 = vpop.f32.mrf.mxu3 }
 0x6d4   :  { %v3022_v41 = vadd.f32 %v2911_v29, %v1183_v18  ;;  %v3042_v18 = vmul.f32 %v3294_v53, %v1182_v54 }
 0x6d6   :  { %v1256_v27 = vmul.f32 %v3296_v59, %v3022_v41  ;;  %v1258_v52 = vmul.f32 %v3297_v62, %v3022_v41  ;;  %v1260_v53 = vmul.f32 %v3298_v63, %v3022_v41  ;;  %v1262_v60 = vmul.f32 %v3302_v0, %v3022_v41 }
 0x6d7   :  { %v1264_v54 = vmul.f32 %v3305_v1, %v3022_v41  ;;  %v1266_v59 = vmul.f32 %v3306_v2, %v3022_v41  ;;  %v1268_v62 = vmul.f32 %v3307_v3, %v3022_v41  ;;  %v1270_v63 = vmul.f32 %v3308_v4, %v3022_v41 }
 0x6d8   :  { %v1287_v61 = vadd.f32 %v1256_v27, %v1255_v10  ;;  %v1294_v51 = vadd.f32 %v1258_v52, %v1257_v15  ;;  %v1301_v50 = vadd.f32 %v1260_v53, %v1259_v12  ;;  %v1308_v0 = vadd.f32 %v1262_v60, %v1261_v16 }
 0x6d9   :  { %v1315_v49 = vadd.f32 %v1264_v54, %v1263_v17  ;;  %v1322_v48 = vadd.f32 %v1266_v59, %v1265_v19  ;;  %v1329_v11 = vadd.f32 %v1268_v62, %v1267_v20  ;;  %v1336_v1 = vadd.f32 %v1270_v63, %v1269_v21 }
 0x6da   :  { %v1288_v14 = vrot.slane %v1287_v61, 4  ;;  %v1295_v13 = vrot.slane %v1294_v51, 4  ;;  %v1302_v9 = vrot.slane %v1301_v50, 4  ;;  %v1309_v2 = vrot.slane %v1308_v0, 4 }
 0x6db   :  { %v1186_v8 = vpop.f32.mrf.mxu3  ;;  %v1316_v7 = vrot.slane %v1315_v49, 4  ;;  %v1323_v6 = vrot.slane %v1322_v48, 4  ;;  %v1330_v3 = vrot.slane %v1329_v11, 4  ;;  %v1337_v5 = vrot.slane %v1336_v1, 4 }
 0x6dc   :  { %v3077_v4 = vadd.f32 %v2911_v29, %v1186_v8  ;;  %v1289_v27 = vadd.f32 %v1288_v14, %v1287_v61  ;;  %v1296_v52 = vadd.f32 %v1295_v13, %v1294_v51  ;;  %v1303_v53 = vadd.f32 %v1302_v9, %v1301_v50 }
 0x6dd   :  { %v1310_v59 = vadd.f32 %v1309_v2, %v1308_v0  ;;  %v1317_v60 = vadd.f32 %v1316_v7, %v1315_v49  ;;  %v1324_v62 = vadd.f32 %v1323_v6, %v1322_v48  ;;  %v1331_v63 = vadd.f32 %v1330_v3, %v1329_v11 }
 0x6de   :  { %v1290_v10 = vrot.slane %v1289_v27, 2  ;;  %v1297_v15 = vrot.slane %v1296_v52, 2  ;;  %v1304_v12 = vrot.slane %v1303_v53, 2  ;;  %v1338_v16 = vadd.f32 %v1337_v5, %v1336_v1 }
 0x6df   :  { %v1311_v17 = vrot.slane %v1310_v59, 2  ;;  %v1318_v19 = vrot.slane %v1317_v60, 2  ;;  %v1325_v20 = vrot.slane %v1324_v62, 2  ;;  %v1332_v21 = vrot.slane %v1331_v63, 2 }
 0x6e0   :  { %v1291_v8 = vadd.f32 %v1290_v10, %v1289_v27  ;;  %v1298_v61 = vadd.f32 %v1297_v15, %v1296_v52  ;;  %v1305_v51 = vadd.f32 %v1304_v12, %v1303_v53  ;;  %v1339_v50 = vrot.slane %v1338_v16, 2 }
 0x6e1   :  { %v1312_v0 = vadd.f32 %v1311_v17, %v1310_v59  ;;  %v1319_v49 = vadd.f32 %v1318_v19, %v1317_v60  ;;  %v1326_v48 = vadd.f32 %v1325_v20, %v1324_v62  ;;  %v1333_v2 = vadd.f32 %v1332_v21, %v1331_v63 }
 0x6e2   :  { %v1292_v3 = vrot.slane %v1291_v8, 1  ;;  %v1299_v6 = vrot.slane %v1298_v61, 1  ;;  %v1306_v7 = vrot.slane %v1305_v51, 1  ;;  %v1340_v1 = vadd.f32 %v1339_v50, %v1338_v16 }
 0x6e3   :  { %v1188_v5 = vpop.f32.mrf.mxu3  ;;  %v1313_v9 = vrot.slane %v1312_v0, 1  ;;  %v1320_v13 = vrot.slane %v1319_v49, 1  ;;  %v1327_v14 = vrot.slane %v1326_v48, 1  ;;  %v1334_v11 = vrot.slane %v1333_v2, 1 }
 0x6e4   :  { %v3080_v54 = vadd.f32 %v2911_v29, %v1188_v5  ;;  %v1293_v27 = vadd.f32 %v1292_v3, %v1291_v8  ;;  %v1300_v52 = vadd.f32 %v1299_v6, %v1298_v61  ;;  %v1307_v53 = vadd.f32 %v1306_v7, %v1305_v51 }
 0x6e5   :  { %v1314_v59 = vadd.f32 %v1313_v9, %v1312_v0  ;;  %v1321_v60 = vadd.f32 %v1320_v13, %v1319_v49  ;;  %v1328_v62 = vadd.f32 %v1327_v14, %v1326_v48  ;;  %v1335_v63 = vadd.f32 %v1334_v11, %v1333_v2 }
 0x6e6   :  { %v1341_v10 = vrot.slane %v1340_v1, 1  ;;  %v1416_v15 = vsel %vm1415_vm0, %v1300_v52, %v1293_v27  ;;  %v3309_v12 = vunpack.c.h.bf16 %v2931_v33  ;;  %v3310_v17 = vunpack.c.h.bf16 %v2936_v24 }
 0x6e7   :  { %v1418_v29 = vsel %vm1417_vm4, %v1307_v53, %v1416_v15  ;;  %v3311_v20 = vunpack.c.h.bf16 %v2941_v34  ;;  %v3312_v8 = vunpack.c.h.bf16 %v2948_v36  ;;  %v3313_v51 = vunpack.c.h.bf16 %v2953_v39 }
 0x6e8   :  { %v1272_v16 = vmul.f32 %v3309_v12, %v3022_v41  ;;  %v1274_v19 = vmul.f32 %v3310_v17, %v3022_v41  ;;  %v1342_v0 = vadd.f32 %v1341_v10, %v1340_v1  ;;  %v1420_v49 = vsel %vm1419_vm5, %v1314_v59, %v1418_v29 }
 0x6e9   :  { %v1276_v21 = vmul.f32 %v3311_v20, %v3022_v41  ;;  %v1278_v61 = vmul.f32 %v3312_v8, %v3022_v41  ;;  %v1280_v50 = vmul.f32 %v3313_v51, %v3022_v41  ;;  %v3314_v48 = vunpack.c.h.bf16 %v2958_v40 }
 0x6ea   :  { %v3315_v3 = vunpack.c.h.bf16 %v2967_v45  ;;  %v1422_v7 = vsel %vm1421_vm6, %v1321_v60, %v1420_v49  ;;  %v3316_v5 = vunpack.c.h.bf16 %v2972_v46  ;;  %v1343_v13 = vadd.f32 %v1272_v16, %v3019_v55 }
 0x6eb   :  { %v1282_v2 = vmul.f32 %v3314_v48, %v3022_v41  ;;  %v1350_v1 = vadd.f32 %v1274_v19, %v3026_v43  ;;  %v1424_v14 = vsel %vm1423_vm7, %v1328_v62, %v1422_v7  ;;  %v1357_v11 = vadd.f32 %v1276_v21, %v3030_v44 }
 0x6ec   :  { %v1284_v6 = vmul.f32 %v3315_v3, %v3022_v41  ;;  %v1286_v9 = vmul.f32 %v3316_v5, %v3022_v41  ;;  %v1364_v27 = vadd.f32 %v1278_v61, %v3034_v47  ;;  %v1371_v52 = vadd.f32 %v1280_v50, %v3038_v58 }
 0x6ed   :  { %v1426_v53 = vsel %vm1425_vm8, %v1335_v63, %v1424_v14  ;;  %v1344_v59 = vrot.slane %v1343_v13, 4  ;;  %v1351_v60 = vrot.slane %v1350_v1, 4  ;;  %v1378_v10 = vadd.f32 %v1282_v2, %v3042_v18 }
 0x6ee   :  { %v1428_v41 = vsel %vm1427_vm9, %v1342_v0, %v1426_v53  ;;  %v1358_v15 = vrot.slane %v1357_v11, 4  ;;  %v1365_v55 = vrot.slane %v1364_v27, 4  ;;  %v1372_v12 = vrot.slane %v1371_v52, 4 }
 0x6ef   :  { %1438 = vadd.xlane.f32.xlu1 %v1428_v41  ;;  %v1345_v43 = vadd.f32 %v1344_v59, %v1343_v13  ;;  %v1352_v62 = vadd.f32 %v1351_v60, %v1350_v1  ;;  %v1379_v16 = vrot.slane %v1378_v10, 4  ;;  %v1385_v44 = vadd.f32 %v1284_v6, %v3046_v42 }
 0x6f0   :  { %v1359_v47 = vadd.f32 %v1358_v15, %v1357_v11  ;;  %v1366_v17 = vadd.f32 %v1365_v55, %v1364_v27  ;;  %v1373_v58 = vadd.f32 %v1372_v12, %v1371_v52  ;;  %v1392_v63 = vadd.f32 %v1286_v9, %v3050_v35 }
 0x6f1   :  { %v1346_v19 = vrot.slane %v1345_v43, 2  ;;  %v1353_v29 = vrot.slane %v1352_v62, 2  ;;  %v1380_v20 = vadd.f32 %v1379_v16, %v1378_v10  ;;  %v1386_v18 = vrot.slane %v1385_v44, 4 }
 0x6f2   :  { %v1360_v21 = vrot.slane %v1359_v47, 2  ;;  %v1367_v8 = vrot.slane %v1366_v17, 2  ;;  %v1374_v61 = vrot.slane %v1373_v58, 2  ;;  %v1393_v51 = vrot.slane %v1392_v63, 4 }
 0x6f3   :  { %v1347_v50 = vadd.f32 %v1346_v19, %v1345_v43  ;;  %v1354_v0 = vadd.f32 %v1353_v29, %v1352_v62  ;;  %v1381_v49 = vrot.slane %v1380_v20, 2  ;;  %v1387_v48 = vadd.f32 %v1386_v18, %v1385_v44 }
 0x6f4   :  { %v1361_v2 = vadd.f32 %v1360_v21, %v1359_v47  ;;  %v1368_v3 = vadd.f32 %v1367_v8, %v1366_v17  ;;  %v1375_v42 = vadd.f32 %v1374_v61, %v1373_v58  ;;  %v1394_v6 = vadd.f32 %v1393_v51, %v1392_v63 }
 0x6f5   :  { %v1348_v7 = vrot.slane %v1347_v50, 1  ;;  %v1355_v5 = vrot.slane %v1354_v0, 1  ;;  %v1382_v13 = vadd.f32 %v1381_v49, %v1380_v20  ;;  %v1388_v35 = vrot.slane %v1387_v48, 2 }
 0x6f6   :  { %v1362_v9 = vrot.slane %v1361_v2, 1  ;;  %v1369_v1 = vrot.slane %v1368_v3, 1  ;;  %v1376_v14 = vrot.slane %v1375_v42, 1  ;;  %v1395_v11 = vrot.slane %v1394_v6, 2 }
 0x6f7   :  { %v1349_v27 = vadd.f32 %v1348_v7, %v1347_v50  ;;  %v1356_v52 = vadd.f32 %v1355_v5, %v1354_v0  ;;  %v1383_v53 = vrot.slane %v1382_v13, 1  ;;  %v1389_v59 = vadd.f32 %v1388_v35, %v1387_v48 }
 0x6f8   :  { %v1363_v60 = vadd.f32 %v1362_v9, %v1361_v2  ;;  %v1370_v10 = vadd.f32 %v1369_v1, %v1368_v3  ;;  %v1377_v41 = vadd.f32 %v1376_v14, %v1375_v42  ;;  %v1396_v15 = vadd.f32 %v1395_v11, %v1394_v6 }
 0x6f9   :  { %v1384_v55 = vadd.f32 %v1383_v53, %v1382_v13  ;;  %v1390_v12 = vrot.slane %v1389_v59, 1  ;;  %v1429_v43 = vsel %vm1415_vm0, %v1356_v52, %v1349_v27  ;;  %v3317_v62 = vunpack.c.l.bf16 %v2931_v33 }
 0x6fa   :  { %v1397_v44 = vrot.slane %v1396_v15, 1  ;;  %v1430_v47 = vsel %vm1417_vm4, %v1363_v60, %v1429_v43  ;;  %v3318_v17 = vunpack.c.h.bf16 %v2931_v33  ;;  %v3319_v63 = vunpack.c.l.bf16 %v2936_v24 }
 0x6fb   :  { %v1464_v16 = vmul.f32 %v3317_v62, %v3077_v4  ;;  %v1391_v29 = vadd.f32 %v1390_v12, %v1389_v59  ;;  %v1431_v20 = vsel %vm1419_vm5, %v1370_v10, %v1430_v47  ;;  %v3320_v18 = vunpack.c.h.bf16 %v2936_v24 }
 0x6fc   :  { %v1465_v58 = vmul.f32 %v3318_v17, %v3080_v54  ;;  %v1466_v19 = vmul.f32 %v3319_v63, %v3077_v4  ;;  %v3321_v8 = vunpack.c.l.bf16 %v2941_v34  ;;  %v1398_v51 = vadd.f32 %v1397_v44, %v1396_v15 }
 0x6fd   :  { %v1467_v21 = vmul.f32 %v3320_v18, %v3080_v54  ;;  %v1432_v50 = vsel %vm1421_vm6, %v1377_v41, %v1431_v20  ;;  %v3322_v33 = vunpack.c.h.bf16 %v2941_v34  ;;  %v3323_v49 = vunpack.c.l.bf16 %v2948_v36 }
 0x6fe   :  { %v1468_v61 = vmul.f32 %v3321_v8, %v3077_v4  ;;  %v1433_v2 = vsel %vm1423_vm7, %v1384_v55, %v1432_v50  ;;  %v3324_v24 = vunpack.c.h.bf16 %v2948_v36  ;;  %v3325_v42 = vunpack.c.l.bf16 %v2953_v39 }
 0x6ff   :  { %v1469_v0 = vmul.f32 %v3322_v33, %v3080_v54  ;;  %v1470_v48 = vmul.f32 %v3323_v49, %v3077_v4  ;;  %v3326_v7 = vunpack.c.h.bf16 %v2953_v39  ;;  %v1434_v34 = vsel %vm1425_vm8, %v1391_v29, %v1433_v2 }
 0x700   :  { %v1471_v3 = vmul.f32 %v3324_v24, %v3080_v54  ;;  %v1472_v6 = vmul.f32 %v3325_v42, %v3077_v4  ;;  %v3327_v13 = vunpack.c.l.bf16 %v2958_v40  ;;  %v3328_v9 = vunpack.c.h.bf16 %v2958_v40 }
 0x701   :  { %v1473_v5 = vmul.f32 %v3326_v7, %v3080_v54  ;;  %v3329_v36 = vunpack.c.l.bf16 %v2967_v45  ;;  %v1435_v11 = vsel %vm1427_vm9, %v1398_v51, %v1434_v34  ;;  %v3330_v39 = vunpack.c.h.bf16 %v2967_v45 }
 0x702   :  { %v1474_v35 = vmul.f32 %v3327_v13, %v3077_v4  ;;  %v1475_v1 = vmul.f32 %v3328_v9, %v3080_v54  ;;  %v3331_v52 = vunpack.c.l.bf16 %v2972_v46  ;;  %v3332_v59 = vunpack.c.h.bf16 %v2972_v46  ;;  %1440 = vadd.xlane.f32.xlu2 %v1435_v11 }
 0x703   :  { %v1476_v14 = vmul.f32 %v3329_v36, %v3077_v4  ;;  %v1477_v27 = vmul.f32 %v3330_v39, %v3080_v54  ;;  %v1536_v40 = vadd.f32 %v1465_v58, %v1464_v16  ;;  %v1543_v10 = vadd.f32 %v1467_v21, %v1466_v19 }
 0x704   :  { %v1478_v53 = vmul.f32 %v3331_v52, %v3077_v4  ;;  %v1479_v60 = vmul.f32 %v3332_v59, %v3080_v54  ;;  %v1550_v41 = vadd.f32 %v1469_v0, %v1468_v61  ;;  %v1557_v15 = vadd.f32 %v1471_v3, %v1470_v48 }
 0x705   :  { %v1564_v55 = vadd.f32 %v1473_v5, %v1472_v6  ;;  %v1571_v12 = vadd.f32 %v1475_v1, %v1474_v35  ;;  %v1578_v43 = vadd.f32 %v1477_v27, %v1476_v14  ;;  %v1537_v44 = vrot.slane %v1536_v40, 4 }
 0x706   :  { %v1585_v62 = vadd.f32 %v1479_v60, %v1478_v53  ;;  %v1544_v45 = vrot.slane %v1543_v10, 4  ;;  %v1551_v47 = vrot.slane %v1550_v41, 4  ;;  %v1558_v17 = vrot.slane %v1557_v15, 4 }
 0x707   :  { %v1565_v63 = vrot.slane %v1564_v55, 4  ;;  %v1572_v29 = vrot.slane %v1571_v12, 4  ;;  %v1579_v20 = vrot.slane %v1578_v43, 4  ;;  %v1538_v8 = vadd.f32 %v1537_v44, %v1536_v40 }
 0x708   :  { %v1586_v18 = vrot.slane %v1585_v62, 4  ;;  %v1545_v46 = vadd.f32 %v1544_v45, %v1543_v10  ;;  %v1552_v51 = vadd.f32 %v1551_v47, %v1550_v41  ;;  %v1559_v50 = vadd.f32 %v1558_v17, %v1557_v15 }
 0x709   :  { %v1566_v16 = vadd.f32 %v1565_v63, %v1564_v55  ;;  %v1573_v58 = vadd.f32 %v1572_v29, %v1571_v12  ;;  %v1580_v19 = vadd.f32 %v1579_v20, %v1578_v43  ;;  %v1539_v61 = vrot.slane %v1538_v8, 2 }
 0x70a   :  { %v1587_v21 = vadd.f32 %v1586_v18, %v1585_v62  ;;  %v1546_v33 = vrot.slane %v1545_v46, 2  ;;  %v1553_v0 = vrot.slane %v1552_v51, 2  ;;  %v1560_v49 = vrot.slane %v1559_v50, 2 }
 0x70b   :  { %v1567_v48 = vrot.slane %v1566_v16, 2  ;;  %v1574_v2 = vrot.slane %v1573_v58, 2  ;;  %v1581_v24 = vrot.slane %v1580_v19, 2  ;;  %v1540_v42 = vadd.f32 %v1539_v61, %v1538_v8 }
 0x70c   :  { %v1588_v3 = vrot.slane %v1587_v21, 2  ;;  %v1547_v6 = vadd.f32 %v1546_v33, %v1545_v46  ;;  %v1554_v7 = vadd.f32 %v1553_v0, %v1552_v51  ;;  %v1561_v5 = vadd.f32 %v1560_v49, %v1559_v50 }
 0x70d   :  { %v1568_v34 = vadd.f32 %v1567_v48, %v1566_v16  ;;  %v1575_v13 = vadd.f32 %v1574_v2, %v1573_v58  ;;  %v1582_v35 = vadd.f32 %v1581_v24, %v1580_v19  ;;  %v1541_v1 = vrot.slane %v1540_v42, 1 }
 0x70e   :  { %v1589_v9 = vadd.f32 %v1588_v3, %v1587_v21  ;;  %v1548_v36 = vrot.slane %v1547_v6, 1  ;;  %v1555_v14 = vrot.slane %v1554_v7, 1  ;;  %v1562_v11 = vrot.slane %v1561_v5, 1 }
 0x70f   :  { %v1569_v39 = vrot.slane %v1568_v34, 1  ;;  %v1576_v27 = vrot.slane %v1575_v13, 1  ;;  %v1583_v52 = vrot.slane %v1582_v35, 1  ;;  %v1542_v59 = vadd.f32 %v1541_v1, %v1540_v42 }
 0x710   :  { %v1590_v53 = vrot.slane %v1589_v9, 1  ;;  %v1549_v60 = vadd.f32 %v1548_v36, %v1547_v6  ;;  %v1556_v40 = vadd.f32 %v1555_v14, %v1554_v7  ;;  %v1563_v10 = vadd.f32 %v1562_v11, %v1561_v5 }
 0x711   :  { %v1570_v41 = vadd.f32 %v1569_v39, %v1568_v34  ;;  %v1577_v15 = vadd.f32 %v1576_v27, %v1575_v13  ;;  %v1584_v55 = vadd.f32 %v1583_v52, %v1582_v35  ;;  %v3333_v62 = vunpack.c.l.bf16 %v2886_v22 }
 0x712   :  { %v1591_v12 = vadd.f32 %v1590_v53, %v1589_v9  ;;  %v1615_v43 = vsel %vm1415_vm0, %v1549_v60, %v1542_v59  ;;  %v3334_v45 = vunpack.c.h.bf16 %v2886_v22  ;;  %v3335_v17 = vunpack.c.l.bf16 %v2891_v23 }
 0x713   :  { %v1448_v44 = vmul.f32 %v3333_v62, %v3077_v4  ;;  %v1616_v29 = vsel %vm1417_vm4, %v1556_v40, %v1615_v43  ;;  %v3336_v20 = vunpack.c.h.bf16 %v2891_v23  ;;  %v3337_v8 = vunpack.c.l.bf16 %v2896_v25 }
 0x714   :  { %v1449_v47 = vmul.f32 %v3334_v45, %v3080_v54  ;;  %v1450_v63 = vmul.f32 %v3335_v17, %v3077_v4  ;;  %v3338_v51 = vunpack.c.h.bf16 %v2896_v25  ;;  %v1617_v22 = vsel %vm1419_vm5, %v1563_v10, %v1616_v29 }
 0x715   :  { %v1451_v18 = vmul.f32 %v3336_v20, %v3080_v54  ;;  %v1452_v46 = vmul.f32 %v3337_v8, %v3077_v4  ;;  %v3339_v16 = vunpack.c.l.bf16 %v2901_v26  ;;  %v3340_v19 = vunpack.c.h.bf16 %v2901_v26 }
 0x716   :  { %v1453_v50 = vmul.f32 %v3338_v51, %v3080_v54  ;;  %v3341_v23 = vunpack.c.l.bf16 %v2906_v28  ;;  %v1618_v33 = vsel %vm1421_vm6, %v1570_v41, %v1617_v22  ;;  %v3342_v25 = vunpack.c.h.bf16 %v2906_v28 }
 0x717   :  { %v1454_v58 = vmul.f32 %v3339_v16, %v3077_v4  ;;  %v1455_v21 = vmul.f32 %v3340_v19, %v3080_v54  ;;  %v3343_v49 = vunpack.c.l.bf16 %v2916_v30  ;;  %v3344_v2 = vunpack.c.h.bf16 %v2916_v30 }
 0x718   :  { %v1456_v61 = vmul.f32 %v3341_v23, %v3077_v4  ;;  %v1457_v0 = vmul.f32 %v3342_v25, %v3080_v54  ;;  %v1619_v26 = vsel %vm1423_vm7, %v1577_v15, %v1618_v33  ;;  %v3345_v3 = vunpack.c.l.bf16 %v2921_v31 }
 0x719   :  { %v1458_v48 = vmul.f32 %v3343_v49, %v3077_v4  ;;  %v1459_v24 = vmul.f32 %v3344_v2, %v3080_v54  ;;  %v3346_v6 = vunpack.c.h.bf16 %v2921_v31  ;;  %v3347_v28 = vunpack.c.l.bf16 %v2926_v32 }
 0x71a   :  { %v1460_v42 = vmul.f32 %v3345_v3, %v3077_v4  ;;  %v1620_v34 = vsel %vm1425_vm8, %v1584_v55, %v1619_v26  ;;  %v3348_v30 = vunpack.c.h.bf16 %v2926_v32  ;;  %v1480_v35 = vadd.f32 %v1449_v47, %v1448_v44 }
 0x71b   :  { %v1461_v7 = vmul.f32 %v3346_v6, %v3080_v54  ;;  %v1462_v5 = vmul.f32 %v3347_v28, %v3077_v4  ;;  %v1487_v9 = vadd.f32 %v1451_v18, %v1450_v63  ;;  %v1621_v1 = vsel %vm1427_vm9, %v1591_v12, %v1620_v34 }
 0x71c   :  { %v1463_v13 = vmul.f32 %v3348_v30, %v3080_v54  ;;  %v1494_v36 = vadd.f32 %v1453_v50, %v1452_v46  ;;  %v1501_v14 = vadd.f32 %v1455_v21, %v1454_v58  ;;  %v1508_v11 = vadd.f32 %v1457_v0, %v1456_v61  ;;  %1626 = vadd.xlane.f32.xlu1 %v1621_v1 }
 0x71d   :  { %v1481_v31 = vrot.slane %v1480_v35, 4  ;;  %v1488_v39 = vrot.slane %v1487_v9, 4  ;;  %v1515_v27 = vadd.f32 %v1459_v24, %v1458_v48  ;;  %v1522_v52 = vadd.f32 %v1461_v7, %v1460_v42 }
 0x71e   :  { %v1495_v53 = vrot.slane %v1494_v36, 4  ;;  %v1502_v4 = vrot.slane %v1501_v14, 4  ;;  %v1509_v59 = vrot.slane %v1508_v11, 4  ;;  %v1529_v60 = vadd.f32 %v1463_v13, %v1462_v5 }
 0x71f   :  { %v1482_v40 = vadd.f32 %v1481_v31, %v1480_v35  ;;  %v1489_v10 = vadd.f32 %v1488_v39, %v1487_v9  ;;  %v1516_v32 = vrot.slane %v1515_v27, 4  ;;  %v1523_v54 = vrot.slane %v1522_v52, 4 }
 0x720   :  { %v1496_v41 = vadd.f32 %v1495_v53, %v1494_v36  ;;  %v1503_v15 = vadd.f32 %v1502_v4, %v1501_v14  ;;  %v1510_v55 = vadd.f32 %v1509_v59, %v1508_v11  ;;  %v1530_v12 = vrot.slane %v1529_v60, 4  ;;  %v2311_v14 = vld [vmem:[#allocation2] ss:$0 sm:$0xff] }
 0x721   :  { %v1483_v43 = vrot.slane %v1482_v40, 2  ;;  %v1490_v62 = vrot.slane %v1489_v10, 2  ;;  %v1517_v44 = vadd.f32 %v1516_v32, %v1515_v27  ;;  %v1524_v45 = vadd.f32 %v1523_v54, %v1522_v52 }
 0x722   :  { %v1497_v47 = vrot.slane %v1496_v41, 2  ;;  %v1504_v17 = vrot.slane %v1503_v15, 2  ;;  %v1511_v63 = vrot.slane %v1510_v55, 2  ;;  %v1531_v29 = vadd.f32 %v1530_v12, %v1529_v60 }
 0x723   :  { %v1484_v20 = vadd.f32 %v1483_v43, %v1482_v40  ;;  %v1491_v18 = vadd.f32 %v1490_v62, %v1489_v10  ;;  %v1518_v8 = vrot.slane %v1517_v44, 2  ;;  %v1525_v46 = vrot.slane %v1524_v45, 2 }
 0x724   :  { %v1498_v51 = vadd.f32 %v1497_v47, %v1496_v41  ;;  %v1505_v50 = vadd.f32 %v1504_v17, %v1503_v15  ;;  %v1512_v22 = vadd.f32 %v1511_v63, %v1510_v55  ;;  %v1532_v16 = vrot.slane %v1531_v29, 2 }
 0x725   :  { %v1485_v58 = vrot.slane %v1484_v20, 1  ;;  %v1492_v19 = vrot.slane %v1491_v18, 1  ;;  %v1519_v21 = vadd.f32 %v1518_v8, %v1517_v44  ;;  %v1526_v23 = vadd.f32 %v1525_v46, %v1524_v45 }
 0x726   :  { %v1499_v61 = vrot.slane %v1498_v51, 1  ;;  %v1506_v33 = vrot.slane %v1505_v50, 1  ;;  %v1513_v25 = vrot.slane %v1512_v22, 1  ;;  %v1533_v0 = vadd.f32 %v1532_v16, %v1531_v29 }
 0x727   :  { %v1486_v49 = vadd.f32 %v1485_v58, %v1484_v20  ;;  %v1493_v48 = vadd.f32 %v1492_v19, %v1491_v18  ;;  %v1520_v2 = vrot.slane %v1519_v21, 1  ;;  %v1527_v26 = vrot.slane %v1526_v23, 1 }
 0x728   :  { %v1500_v24 = vadd.f32 %v1499_v61, %v1498_v51  ;;  %v1507_v3 = vadd.f32 %v1506_v33, %v1505_v50  ;;  %v1534_v42 = vrot.slane %v1533_v0, 1  ;;  %v1514_v7 = vadd.f32 %v1513_v25, %v1512_v22 }
 0x729   :  { %v1608_v6 = vsel %vm1415_vm0, %v1493_v48, %v1486_v49  ;;  %v1521_v5 = vadd.f32 %v1520_v2, %v1519_v21  ;;  %v1528_v30 = vadd.f32 %v1527_v26, %v1526_v23  ;;  %v2403_v55 = vmov 0  }
 0x72a   :  { %v1609_v28 = vsel %vm1417_vm4, %v1500_v24, %v1608_v6  ;;  %v1535_v35 = vadd.f32 %v1534_v42, %v1533_v0  ;;  %2307 = vset.pattern.permute.xlu0 %v2403_v55  ;;  %2306 = vset.pattern.permute.xlu2 %v2403_v55 }
 0x72b   :  { %v1610_v34 = vsel %vm1419_vm5, %v1507_v3, %v1609_v28  ;;  %2308 = vset.pattern.permute.xlu1 %v2403_v55 }
 0x72c   :  { %v1611_v13 = vsel %vm1421_vm6, %v1514_v7, %v1610_v34 }
 0x72d   :  { %v1612_v9 = vsel %vm1423_vm7, %v1521_v5, %v1611_v13 }
 0x72e   :  { %v1613_v1 = vsel %vm1425_vm8, %v1528_v30, %v1612_v9 }
 0x72f   :  { %v1614_v36 = vsel %vm1427_vm9, %v1535_v35, %v1613_v1 }
 0x730   :  { %1624 = vadd.xlane.f32.xlu0 %v1614_v36 }
 0x762   :  { %v1439_v11 = vpop.xlane.xlu1 %1438 }
 0x763   :  { %v1446_v31 = vadd.f32 %v2311_v14, %v1439_v11 }
 0x765   :  { %v2117_v39 = vmul.f32 -1.442695, %v1446_v31  ;;  %v2224_v31 = vld [vmem:[%s3282_s9 + $0x38] sm:$0xff] }
 0x766   :  { %1823 = vmatpush.bf16.msrb.mxu1 %v2224_v31 }
 0x767   :  { %2361 = vpow2.f32 %v2117_v39  ;;  %v2223_v39 = vld [vmem:[%s3282_s9 + $0x30] sm:$0xff] }
 0x76a   :  { %1824 = vmatpush.bf16.msrb.mxu1 %v2223_v39 }
 0x76d   :  { %v2362_v4 = vpop.eup %2361 }
 0x76e   :  { %v1642_v59 = vadd.f32 1.0, %v2362_v4 }
 0x770   :  { %v1655_v44 = vand.u32 2147483647, %v1642_v59  ;;  %v1657_v45 = vand.u32 2147483648, %v1642_v59  ;;  %vm1651_vm12 = vweird.f32 %v1642_v59 }
 0x772   :  { %v1658_v8 = vor.u32 1.1754944e-38, %v1657_v45  ;;  %vm1656_vm15 = vcmp.eq.f32.partialorder %v1655_v44, 8.507059e+37 }
 0x775   :  { %v1441_v27 = vpop.xlane.xlu2 %1440 }
 0x776   :  { %v1447_v52 = vadd.f32 %v2311_v14, %v1441_v27 }
 0x778   :  { %v2118_v53 = vmul.f32 -1.442695, %v1447_v52  ;;  %v2222_v52 = vld [vmem:[%s3282_s9 + $0x28] sm:$0xff] }
 0x779   :  { %1825 = vmatpush.bf16.msrb.mxu1 %v2222_v52 }
 0x77a   :  { %2363 = vpow2.f32 %v2118_v53 }
 0x77b   :  { %2365 = vrcp.f32 %v1642_v59 }
 0x780   :  { %v2364_v60 = vpop.eup %2363 }
 0x781   :  { %v1643_v40 = vadd.f32 1.0, %v2364_v60  ;;  %v2366_v10 = vpop.eup %2365 }
 0x782   :  { %v1647_v15 = vmul.f32 %v2366_v10, %v1642_v59  ;;  %vm1652_vm10 = vweird.f32 %v2366_v10  ;;  %v2221_v59 = vld [vmem:[%s3282_s9 + $0x20] sm:$0xff] }
 0x783   :  { %2367 = vrcp.f32 %v1643_v40  ;;  %v1672_v63 = vand.u32 2147483648, %v1643_v40  ;;  %v1670_v20 = vand.u32 2147483647, %v1643_v40  ;;  %vm1653_vm13 = vmor %vm1651_vm12, %vm1652_vm10  ;;  %vm1666_vm14 = vweird.f32 %v1643_v40  ;;  %1826 = vmatpush.bf16.msrb.mxu1 %v2221_v59 }
 0x784   :  { %v1648_v62 = vsub.f32 1.0, %v1647_v15 }
 0x785   :  { %v1673_v50 = vor.u32 1.1754944e-38, %v1672_v63  ;;  %vm1671_vm2 = vcmp.eq.f32.partialorder %v1670_v20, 8.507059e+37 }
 0x786   :  { %v1649_v17 = vmul.f32 %v2366_v10, %v1648_v62 }
 0x788   :  { %v1650_v18 = vadd.f32 %v2366_v10, %v1649_v17 }
 0x789   :  { %v2368_v32 = vpop.eup %2367 }
 0x78a   :  { %v1662_v12 = vmul.f32 %v2368_v32, %v1643_v40  ;;  %vm1667_vm11 = vweird.f32 %v2368_v32  ;;  %v1654_v51 = vsel %vm1653_vm13, %v2366_v10, %v1650_v18  ;;  %v2220_v10 = vld [vmem:[%s3282_s9 + $0x18] sm:$0xff] }
 0x78b   :  { %vm1668_vm1 = vmor %vm1666_vm14, %vm1667_vm11  ;;  %v1659_v22 = vsel %vm1656_vm15, %v1658_v8, %v1654_v51  ;;  %1827 = vmatpush.bf16.msrb.mxu1 %v2220_v10 }
 0x78c   :  { %v1663_v47 = vsub.f32 1.0, %v1662_v12  ;;  %1708 = vperm.xlu2 %2306, %v1659_v22  }
 0x78e   :  { %v1664_v29 = vmul.f32 %v2368_v32, %v1663_v47 }
 0x78f   :  { %v1627_v54 = vpop.xlane.xlu1 %1626 }
 0x790   :  { %v1629_v41 = vadd.f32 %v2311_v14, %v1627_v54  ;;  %v1665_v46 = vadd.f32 %v2368_v32, %v1664_v29  ;;  %v2219_v54 = vld [vmem:[%s3282_s9 + $0x10] sm:$0xff] }
 0x791   :  { %1828 = vmatpush.bf16.msrb.mxu1 %v2219_v54 }
 0x792   :  { %v2120_v43 = vmul.f32 -1.442695, %v1629_v41  ;;  %v1669_v16 = vsel %vm1668_vm1, %v2368_v32, %v1665_v46 }
 0x793   :  { %v1674_v19 = vsel %vm1671_vm2, %v1673_v50, %v1669_v16 }
 0x794   :  { %2369 = vpow2.f32 %v2120_v43  ;;  %1713 = vperm.xlu0 %2307, %v1674_v19  }
 0x79a   :  { %v2370_v58 = vpop.eup %2369 }
 0x79b   :  { %v1645_v21 = vadd.f32 1.0, %v2370_v58 }
 0x79d   :  { %2371 = vrcp.f32 %v1645_v21  ;;  %v1702_v48 = vand.u32 2147483648, %v1645_v21  ;;  %v1700_v24 = vand.u32 2147483647, %v1645_v21  ;;  %vm1696_vm4 = vweird.f32 %v1645_v21 }
 0x79f   :  { %v1703_v3 = vor.u32 1.1754944e-38, %v1702_v48  ;;  %vm1701_vm6 = vcmp.eq.f32.partialorder %v1700_v24, 8.507059e+37 }
 0x7a3   :  { %v1625_v23 = vpop.xlane.xlu0 %1624  ;;  %v2372_v61 = vpop.eup %2371 }
 0x7a4   :  { %v1628_v33 = vadd.f32 %v2311_v14, %v1625_v23  ;;  %v1692_v25 = vmul.f32 %v2372_v61, %v1645_v21  ;;  %vm1697_vm3 = vweird.f32 %v2372_v61 }
 0x7a5   :  { %vm1698_vm5 = vmor %vm1696_vm4, %vm1697_vm3 }
 0x7a6   :  { %v2119_v0 = vmul.f32 -1.442695, %v1628_v33  ;;  %v1693_v49 = vsub.f32 1.0, %v1692_v25 }
 0x7a8   :  { %2373 = vpow2.f32 %v2119_v0  ;;  %v1694_v2 = vmul.f32 %v2372_v61, %v1693_v49 }
 0x7aa   :  { %v1695_v26 = vadd.f32 %v2372_v61, %v1694_v2 }
 0x7ac   :  { %v1699_v42 = vsel %vm1698_vm5, %v2372_v61, %v1695_v26 }
 0x7ad   :  { %v1704_v7 = vsel %vm1701_vm6, %v1703_v3, %v1699_v42 }
 0x7ae   :  { %v2374_v6 = vpop.eup %2373  ;;  %1723 = vperm.xlu2 %2306, %v1704_v7  }
 0x7af   :  { %v1644_v28 = vadd.f32 1.0, %v2374_v6 }
 0x7b1   :  { %2375 = vrcp.f32 %v1644_v28  ;;  %v1687_v13 = vand.u32 2147483648, %v1644_v28  ;;  %v1685_v9 = vand.u32 2147483647, %v1644_v28  ;;  %vm1681_vm8 = vweird.f32 %v1644_v28 }
 0x7b3   :  { %v1688_v36 = vor.u32 1.1754944e-38, %v1687_v13  ;;  %vm1686_vm10 = vcmp.eq.f32.partialorder %v1685_v9, 8.507059e+37 }
 0x7b7   :  { %v2376_v5 = vpop.eup %2375 }
 0x7b8   :  { %v1677_v34 = vmul.f32 %v2376_v5, %v1644_v28  ;;  %vm1682_vm7 = vweird.f32 %v2376_v5 }
 0x7b9   :  { %vm1683_vm9 = vmor %vm1681_vm8, %vm1682_vm7 }
 0x7ba   :  { %v1678_v30 = vsub.f32 1.0, %v1677_v34 }
 0x7bc   :  { %v1679_v35 = vmul.f32 %v2376_v5, %v1678_v30 }
 0x7be   :  { %v1680_v1 = vadd.f32 %v2376_v5, %v1679_v35 }
 0x7c0   :  { %v1684_v14 = vsel %vm1683_vm9, %v2376_v5, %v1680_v1 }
 0x7c1   :  { %v1689_v11 = vsel %vm1686_vm10, %v1688_v36, %v1684_v14 }
 0x7c2   :  { %1718 = vperm.xlu1 %2308, %v1689_v11  }
 0x7e6   :  { %v1709_v53 = vpop.permute.xlu2 %1708 }
 0x7e7   :  { %v1726_v60 = vmul.f32 %v1709_v53, %v2826_v37  ;;  %v2217_v37 = vld [vmem:[%s3282_s9] sm:$0xff] }
 0x806   :  { %v1714_v27 = vpop.permute.xlu0 %1713 }
 0x807   :  { %v1727_v4 = vmul.f32 %v1714_v27, %v2829_v38  ;;  %v2218_v38 = vld [vmem:[%s3282_s9 + $0x8] sm:$0xff] }
 0x808   :  { %1829 = vmatpush.bf16.msrb.mxu1 %v2218_v38  ;;  %v1724_v55 = vpop.permute.xlu2 %1723 }
 0x809   :  { %v1730_v40 = vadd.f32 %v1727_v4, %v1726_v60  ;;  %v1729_v43 = vmul.f32 %v1724_v55, %v2837_v57 }
 0x80b   :  { %v1731_v32 = vrot.slane %v1730_v40, 4 }
 0x80c   :  { %1830 = vmatpush.bf16.msrb.mxu1 %v2217_v37 }
 0x80d   :  { %v1732_v41 = vadd.f32 %v1731_v32, %v1730_v40 }
 0x80f   :  { %v1733_v15 = vrot.slane %v1732_v41, 2 }
 0x811   :  { %v1734_v62 = vadd.f32 %v1733_v15, %v1732_v41 }
 0x813   :  { %v1735_v47 = vrot.slane %v1734_v62, 1 }
 0x815   :  { %v1736_v29 = vadd.f32 %v1735_v47, %v1734_v62 }
 0x817   :  { %v1744_v8 = vmul.f32 0.0625, %v1736_v29 }
 0x819   :  { %v1746_v50 = vpack.c.bf16 %v1744_v8, %v1744_v8 }
 0x81b   :  { %v1770_v58 = vunpack.c.l.b16 %v1746_v50 }
 0x834   :  { %v1719_v12 = vpop.permute.xlu1 %1718 }
 0x835   :  { %v1728_v44 = vmul.f32 %v1719_v12, %v2834_v56  ;;  %v2312_v56 = vld [vmem:[%s3283_s10] ss:$0 sm:$0xff] }
 0x837   :  { %v1737_v45 = vadd.f32 %v1729_v43, %v1728_v44 }
 0x839   :  { %v1738_v17 = vrot.slane %v1737_v45, 4 }
 0x83b   :  { %v1739_v63 = vadd.f32 %v1738_v17, %v1737_v45 }
 0x83d   :  { %v1740_v20 = vrot.slane %v1739_v63, 2 }
 0x83f   :  { %v1741_v18 = vadd.f32 %v1740_v20, %v1739_v63 }
 0x841   :  { %v1742_v46 = vrot.slane %v1741_v18, 1 }
 0x843   :  { %v1743_v51 = vadd.f32 %v1742_v46, %v1741_v18 }
 0x845   :  { %v1745_v22 = vmul.f32 0.0625, %v1743_v51 }
 0x847   :  { %v1747_v16 = vpack.c.bf16 %v1745_v22, %v1745_v22 }
 0x849   :  { %v1771_v19 = vunpack.c.l.b16 %v1747_v16 }
 0x84b   :  { %v1772_v57 = vsel %vm1415_vm0, %v1771_v19, %v1770_v58 }
 0x84c   :  { %v1773_v21 = vpack.c.b16 %v1772_v57, %v1772_v57 }
 0x84e   :  { %1831 = vmatmul.bf16.vlgmr.msrb.gmra.mxu1 %v1773_v21 }
 0x8cb   :  { %v1832_v23 = vpop.f32.mrf.mxu1 }
 0x8cc   :  { %v1833_v61 = vadd.f32 %v2312_v56, %v1832_v23 }
 0x8ce   :  { %1836 = vst [vmem:[#allocation3] sm:$0x3] %v1833_v61 }
 0x8cf   :  { %1847 = dma.vmem_to_hbm [thread:$0]  %s1843_s29, 32, %s1845_s13, [#allocation4]  }
 0x8d3   :  { %v1834_v33 = vpop.f32.mrf.mxu1 }
 0x8d4   :  { %2401 = dma.done.wait [#allocation4], 32  }
 0x8d5   :  { %2402 = vsyncadd [#allocation4], 4294967264 }
 0x8d6   :  { %1852 = vsyncpa [#allocation4], 1 }

</bundles_post_ra>
